<compile_context>
chip_gen: v6e
topology: v6e:2x2x1
jax: 0.10.0
libtpu: 0.0.40
codegen_flags: <defaults>
</compile_context>

<pallas_src>
import jax
import jax.numpy as jnp
from jax import lax
from jax.experimental import pallas as pl
from jax.experimental.pallas import tpu as pltpu


# ---------------------------------------------------------------------------
# geometry helpers for the flattened "same"-padded conv formulation
# ---------------------------------------------------------------------------
def _round_up(a, b):
    return ((a + b - 1) // b) * b


def _conv_geom(spatial, k):
    """Tiled geometry: padded volume flattened, split into TR-row lane tiles."""
    p = k // 2
    X, Y, Z = spatial
    Xp, Yp, Zp = X + 2 * p, Y + 2 * p, Z + 2 * p
    F = Xp * Yp * Zp                           # padded-domain output rows
    M = p * (Yp * Zp + Zp + 1)                 # max |flat tap offset|
    TR = max(256, _round_up(2 * M, 128))       # lane row-tile, >= 2*M
    F_round = _round_up(F, TR)
    R = F_round // TR
    L = (R + 1) * TR                           # input rows incl. halo margin
    offs = []
    for dx in range(k):
        for dy in range(k):
            for dz in range(k):
                offs.append(M + (dx - p) * Yp * Zp + (dy - p) * Zp + (dz - p))
    return dict(p=p, spatial=(X, Y, Z), padded=(Xp, Yp, Zp), F=F, M=M,
                TR=TR, F_round=F_round, R=R, L=L, offs=tuple(offs))


def _gru_geom(spatial, k):
    """Single-tile geometry: whole padded volume in one lane tile, with
    128-aligned halo margins on both sides (aligned slices/stores)."""
    p = k // 2
    X, Y, Z = spatial
    Xp, Yp, Zp = X + 2 * p, Y + 2 * p, Z + 2 * p
    F = Xp * Yp * Zp
    raw_m = p * (Yp * Zp + Zp + 1)
    MF = _round_up(raw_m, 128)
    TR = _round_up(F, 128)
    L = 2 * MF + TR
    offs = []
    for dx in range(k):
        for dy in range(k):
            for dz in range(k):
                offs.append(MF + (dx - p) * Yp * Zp + (dy - p) * Zp + (dz - p))
    return dict(p=p, spatial=(X, Y, Z), padded=(Xp, Yp, Zp), F=F, M=MF,
                TR=TR, F_round=TR, R=1, L=L, offs=tuple(offs))


def _pad_flat_input(x, g):
    # (NB, C, X, Y, Z) -> (NB, C, L): spatial zero-pad, flatten, add halo margin.
    p = g["p"]
    NB, C = x.shape[:2]
    xp = jnp.pad(x, ((0, 0), (0, 0), (p, p), (p, p), (p, p)))
    xf = xp.reshape(NB, C, g["F"])
    return jnp.pad(xf, ((0, 0), (0, 0), (g["M"], g["L"] - g["M"] - g["F"])))


def _pad_flat_aligned(x, g):
    # Valid-domain tensor -> rows aligned with the padded OUTPUT domain.
    p = g["p"]
    NB, C = x.shape[:2]
    xp = jnp.pad(x, ((0, 0), (0, 0), (p, p), (p, p), (p, p)))
    xf = xp.reshape(NB, C, g["F"])
    return jnp.pad(xf, ((0, 0), (0, 0), (0, g["F_round"] - g["F"])))


def _crop(y, g):
    # (NB, C, F_round) padded-domain output -> (NB, C, X, Y, Z)
    p = g["p"]
    X, Y, Z = g["spatial"]
    Xp, Yp, Zp = g["padded"]
    NB, C = y.shape[:2]
    y = y[:, :, :g["F"]].reshape(NB, C, Xp, Yp, Zp)
    return y[:, :, p:p + X, p:p + Y, p:p + Z]


def _crop_halo(y, g):
    # (NB, C, L) halo-form rows -> (NB, C, X, Y, Z)
    p, M = g["p"], g["M"]
    X, Y, Z = g["spatial"]
    Xp, Yp, Zp = g["padded"]
    NB, C = y.shape[:2]
    yf = y[:, :, M:M + g["F"]].reshape(NB, C, Xp, Yp, Zp)
    return yf[:, :, p:p + X, p:p + Y, p:p + Z]


def _interior_mask(g):
    # (1, TR) f32: 1.0 for padded-domain rows that are interior voxels.
    X, Y, Z = g["spatial"]
    Xp, Yp, Zp = g["padded"]
    p = g["p"]

    def ax(n, n_pad):
        a = jnp.arange(n_pad)
        return ((a >= p) & (a < p + n)).astype(jnp.float32)

    m = (ax(X, Xp)[:, None, None] * ax(Y, Yp)[None, :, None]
         * ax(Z, Zp)[None, None, :]).reshape(1, g["F"])
    return jnp.pad(m, ((0, 0), (0, g["TR"] - g["F"])))


# ---------------------------------------------------------------------------
# Pallas kernels: tiled conv (+ fused epilogues)
# ---------------------------------------------------------------------------
def _make_conv_kernel(cin, cout, TR, offs, mode):
    """Fused conv (+epilogue) kernel working on one (item, row-tile) grid step.

    mode: "plain" -> out = conv + bias
          "gates" -> rh = sigmoid(gamma) * h ; u = sigmoid(beta)
          "cand"  -> h_next = (1 - u) * h + u * tanh(conv + bias)
    """
    n_extra = {"plain": 0, "gates": 1, "cand": 2}[mode]

    def kernel(*refs):
        x0, x1, w, b = refs[:4]
        extras = refs[4:4 + n_extra]
        outs = refs[4 + n_extra:]

        # two consecutive halo tiles -> (cin, 2*TR), every tap is a static slice
        if cin > 1:
            x = jnp.concatenate([x0[0].astype(jnp.bfloat16),
                                 x1[0].astype(jnp.bfloat16)], axis=-1)
        else:
            x = jnp.concatenate([x0[0], x1[0]], axis=-1)

        acc = jnp.zeros((cout, TR), jnp.float32)       # f32 accumulation
        for t, off in enumerate(offs):
            win = x[:, off:off + TR]                   # (cin, TR)
            wt = w[t]                                  # (cout, cin) bf16
            if cin == 1:
                acc = acc + (wt * win).astype(jnp.float32)
            else:
                acc = acc + jnp.dot(wt, win, preferred_element_type=jnp.float32)
        acc = acc + b[...]                             # (cout, 1) broadcast

        if mode == "plain":
            outs[0][0] = acc
        elif mode == "gates":
            h = extras[0][0]                           # (H, TR)
            hd = cout // 2
            reset = jax.nn.sigmoid(acc[:hd])
            update = jax.nn.sigmoid(acc[hd:])
            outs[0][0] = reset * h                     # rh
            outs[1][0] = update                        # u
        else:  # "cand"
            h = extras[0][0]
            u = extras[1][0]
            outs[0][0] = (1.0 - u) * h + u * jnp.tanh(acc)

    return kernel


def _conv3d_call(x, w, b, *, mode="plain", extras=()):
    """x: (NB, Cin, X, Y, Z); w: (k^3, Cout, Cin); b: (Cout,).
    Returns (padded-flat output(s) of shape (NB, C, F_round), geometry)."""
    NB, cin = x.shape[:2]
    k3, cout, _ = w.shape
    k = int(round(k3 ** (1.0 / 3.0)))
    g = _conv_geom(x.shape[2:], k)
    TR, R = g["TR"], g["R"]

    xin = _pad_flat_input(x, g)
    kernel = _make_conv_kernel(cin, cout, TR, g["offs"], mode)

    in_specs = [
        pl.BlockSpec((1, cin, TR), lambda n, r: (n, 0, r)),       # row tile
        pl.BlockSpec((1, cin, TR), lambda n, r: (n, 0, r + 1)),   # halo tile
        pl.BlockSpec(w.shape, lambda n, r: (0, 0, 0)),            # resident W
        pl.BlockSpec((cout, 1), lambda n, r: (0, 0)),             # resident b
    ]
    args = [xin, xin, w.astype(jnp.bfloat16), b.reshape(cout, 1)]
    for e in extras:                                              # (NB, Ce, F_round)
        in_specs.append(pl.BlockSpec((1, e.shape[1], TR), lambda n, r: (n, 0, r)))
        args.append(e)

    if mode == "gates":
        hd = cout // 2
        out_shape = (jax.ShapeDtypeStruct((NB, hd, g["F_round"]), jnp.float32),
                     jax.ShapeDtypeStruct((NB, hd, g["F_round"]), jnp.float32))
        out_specs = (pl.BlockSpec((1, hd, TR), lambda n, r: (n, 0, r)),
                     pl.BlockSpec((1, hd, TR), lambda n, r: (n, 0, r)))
    else:
        out_shape = jax.ShapeDtypeStruct((NB, cout, g["F_round"]), jnp.float32)
        out_specs = pl.BlockSpec((1, cout, TR), lambda n, r: (n, 0, r))

    out = pl.pallas_call(
        kernel,
        out_shape=out_shape,
        grid=(NB, R),
        in_specs=in_specs,
        out_specs=out_specs,
        compiler_params=pltpu.CompilerParams(
            dimension_semantics=("parallel", "parallel")),
    )(*args)
    return out, g


def conv3d(x, w, b):
    out, g = _conv3d_call(x, w, b, mode="plain")
    return _crop(out, g)


# ---------------------------------------------------------------------------
# Pallas kernel: fused ConvGRU cell (single-tile layout)
# ---------------------------------------------------------------------------
def _make_gru_cell_kernel(cx, hd, TR, MF, offs):
    """One grid step = one batch item; whole padded volume in one lane tile.
    Computes the full ConvGRU cell:
        gamma|beta = W_g * [x, h] + b_g ; r = sig(gamma) ; u = sig(beta)
        cc         = W_c * [x, r*h] + b_c
        h_next     = (1 - u) * h + u * tanh(cc)
    h_next is written back in the same halo-flat layout (interior-masked)."""

    def kernel(x_ref, h_ref, m_ref, wg_ref, bg_ref, wc_ref, bc_ref, o_ref):
        L = x_ref.shape[2]
        x32 = x_ref[0]                                   # (cx, L) f32
        h32 = h_ref[0]                                   # (hd, L) f32
        mask = m_ref[...]                                # (1, TR)

        xb = x32.astype(jnp.bfloat16)
        hb = h32.astype(jnp.bfloat16)
        xh = jnp.concatenate([xb, hb], axis=0)           # (cx+hd, L) bf16

        # gates conv ---------------------------------------------------------
        accg = jnp.zeros((2 * hd, TR), jnp.float32)
        for t, off in enumerate(offs):
            accg = accg + jnp.dot(wg_ref[t], xh[:, off:off + TR],
                                  preferred_element_type=jnp.float32)
        accg = accg + bg_ref[...]
        reset = jax.nn.sigmoid(accg[:hd])
        update = jax.nn.sigmoid(accg[hd:])

        h_c = h32[:, MF:MF + TR]                         # aligned slice of h
        rh = reset * h_c * mask                          # zero outside interior

        # candidate conv on [x, reset*h] --------------------------------------
        rh_halo = jnp.concatenate(
            [jnp.zeros((hd, MF), jnp.bfloat16),
             rh.astype(jnp.bfloat16),
             jnp.zeros((hd, L - MF - TR), jnp.bfloat16)], axis=1)
        xrh = jnp.concatenate([xb, rh_halo], axis=0)     # (cx+hd, L) bf16

        accc = jnp.zeros((hd, TR), jnp.float32)
        for t, off in enumerate(offs):
            accc = accc + jnp.dot(wc_ref[t], xrh[:, off:off + TR],
                                  preferred_element_type=jnp.float32)
        accc = accc + bc_ref[...]

        hn = ((1.0 - update) * h_c + update * jnp.tanh(accc)) * mask
        o_ref[0] = jnp.concatenate(
            [jnp.zeros((hd, MF), jnp.float32), hn,
             jnp.zeros((hd, L - MF - TR), jnp.float32)], axis=1)

    return kernel


_FUSED_VMEM_BUDGET = 10 * (1 << 20)   # stay well inside default scoped VMEM


def _fused_vmem_bytes(cx, hd, g):
    L, TR = g["L"], g["TR"]
    io = 2 * 4 * L * (cx + 2 * hd)            # x, h, h_next (double-buffered)
    tmp = 2 * 2 * L * (cx + hd)               # xh + xrh bf16 staging
    acc = 4 * TR * 8 * hd                     # accumulators / gate temporaries
    return io + tmp + acc


def _gru_layer_fused(xs, p, g):
    T, B, cx = xs.shape[:3]
    X, Y, Z = g["spatial"]
    hd = p["wc"].shape[1]
    TR, MF, L = g["TR"], g["M"], g["L"]

    xs_flat = _pad_flat_input(xs.reshape(T * B, cx, X, Y, Z), g)
    xs_flat = xs_flat.reshape(T, B, cx, L)
    mask = _interior_mask(g)                                  # (1, TR)

    wg = p["wg"].astype(jnp.bfloat16)
    wc = p["wc"].astype(jnp.bfloat16)
    bg = p["bg"].reshape(-1, 1)
    bc = p["bc"].reshape(-1, 1)

    cell = pl.pallas_call(
        _make_gru_cell_kernel(cx, hd, TR, MF, g["offs"]),
        out_shape=jax.ShapeDtypeStruct((B, hd, L), jnp.float32),
        grid=(B,),
        in_specs=[
            pl.BlockSpec((1, cx, L), lambda b: (b, 0, 0)),    # x_t (halo form)
            pl.BlockSpec((1, hd, L), lambda b: (b, 0, 0)),    # h   (halo form)
            pl.BlockSpec((1, TR), lambda b: (0, 0)),          # interior mask
            pl.BlockSpec(wg.shape, lambda b: (0, 0, 0)),      # resident W_g
            pl.BlockSpec((2 * hd, 1), lambda b: (0, 0)),
            pl.BlockSpec(wc.shape, lambda b: (0, 0, 0)),      # resident W_c
            pl.BlockSpec((hd, 1), lambda b: (0, 0)),
        ],
        out_specs=pl.BlockSpec((1, hd, L), lambda b: (b, 0, 0)),
        compiler_params=pltpu.CompilerParams(
            dimension_semantics=("parallel",)),
    )

    h0 = jnp.zeros((B, hd, L), jnp.float32)

    def step(h, x_t):
        h_next = cell(x_t, h, mask, wg, bg, wc, bc)
        return h_next, h_next

    _, hs = lax.scan(step, h0, xs_flat)                       # (T, B, hd, L)
    hs = _crop_halo(hs.reshape(T * B, hd, L), g)
    return hs.reshape(T, B, hd, X, Y, Z)


# --------- fallback path (tiled, two pallas_calls per cell) -----------------
def _gru_cell_tiled(x_t, h, p):
    # x_t: (B, Cin, X, Y, Z); h: (B, H, X, Y, Z)
    k = int(round(p["wg"].shape[0] ** (1.0 / 3.0)))
    g = _conv_geom(x_t.shape[2:], k)
    h_pad = _pad_flat_aligned(h, g)                     # reused by both convs

    comb = jnp.concatenate([x_t, h], axis=1)
    (rh_pad, u_pad), _ = _conv3d_call(comb, p["wg"], p["bg"],
                                      mode="gates", extras=(h_pad,))
    rh = _crop(rh_pad, g)

    comb2 = jnp.concatenate([x_t, rh], axis=1)
    hn_pad, _ = _conv3d_call(comb2, p["wc"], p["bc"],
                             mode="cand", extras=(h_pad, u_pad))
    return _crop(hn_pad, g)


def _gru_layer_tiled(xs, p):
    B = xs.shape[1]
    H = p["wc"].shape[1]
    h0 = jnp.zeros((B, H) + xs.shape[3:], jnp.float32)

    def step(h, x_t):
        h_next = _gru_cell_tiled(x_t, h, p)
        return h_next, h_next

    _, hs = lax.scan(step, h0, xs)
    return hs


def gru_layer(xs, p):
    # xs: (T, B, Cin, X, Y, Z) -> (T, B, H, X, Y, Z)
    cx = xs.shape[2]
    hd = p["wc"].shape[1]
    k = int(round(p["wg"].shape[0] ** (1.0 / 3.0)))
    g = _gru_geom(xs.shape[3:], k)
    if _fused_vmem_bytes(cx, hd, g) <= _FUSED_VMEM_BUDGET:
        return _gru_layer_fused(xs, p, g)
    return _gru_layer_tiled(xs, p)


# ---------------------------------------------------------------------------
# BN + ReLU elementwise kernel and encoder block
# ---------------------------------------------------------------------------
def _bn_relu_kernel(x_ref, s_ref, t_ref, o_ref):
    o_ref[...] = jnp.maximum(x_ref[...] * s_ref[...] + t_ref[...], 0.0)


def _pick_tile(s):
    if s % 128 == 0:
        for cand in (2048, 1024, 512, 256, 128):
            if s % cand == 0:
                return cand
    return s


def bn_relu(x, scale, shift):
    # x: (NB, C, S); scale/shift: (NB, C, 1)  (lane-dense elementwise pass)
    NB, C, S = x.shape
    TS = _pick_tile(S)
    return pl.pallas_call(
        _bn_relu_kernel,
        out_shape=jax.ShapeDtypeStruct((NB, C, S), jnp.float32),
        grid=(NB, S // TS),
        in_specs=[pl.BlockSpec((1, C, TS), lambda n, s: (n, 0, s)),
                  pl.BlockSpec((1, C, 1), lambda n, s: (n, 0, 0)),
                  pl.BlockSpec((1, C, 1), lambda n, s: (n, 0, 0))],
        out_specs=pl.BlockSpec((1, C, TS), lambda n, s: (n, 0, s)),
        compiler_params=pltpu.CompilerParams(
            dimension_semantics=("parallel", "parallel")),
    )(x, scale, shift)


def conv_down(x, p, group, eps=1e-5):
    """conv3x3x3 -> BatchNorm (train-mode batch stats, per `group` items which
    corresponds to one original timestep) -> ReLU -> AvgPool3d(2)."""
    y = conv3d(x, p["w"], p["b"])                       # (NB, C, X, Y, Z)
    NB, C, X, Y, Z = y.shape
    S = X * Y * Z
    yf = y.reshape(NB, C, S)
    # TODO(synk): BN batch statistics are still two small XLA reductions over
    # the conv output rather than scratch-accumulated inside the conv grid.
    yg = yf.reshape(NB // group, group, C, S)
    mean = jnp.mean(yg, axis=(1, 3))                    # (T, C)
    var = jnp.var(yg, axis=(1, 3))                      # biased (train mode)
    scale = p["gamma"][None, :] * lax.rsqrt(var + eps)
    shift = p["beta"][None, :] - mean * scale
    scale = jnp.repeat(scale, group, axis=0)[:, :, None]
    shift = jnp.repeat(shift, group, axis=0)[:, :, None]
    z = bn_relu(yf, scale, shift).reshape(NB, C, X, Y, Z)
    # TODO(synk): AvgPool3d(2) kept as an XLA strided-mean (layout-crossing).
    z = z.reshape(NB, C, X // 2, 2, Y // 2, 2, Z // 2, 2).mean(axis=(3, 5, 7))
    return z


# ---------------------------------------------------------------------------
# trilinear x4 upsample (align_corners) as separable contractions (XLA glue)
# ---------------------------------------------------------------------------
def _interp_matrix(n_in, scale):
    n_out = n_in * scale
    if n_in == 1:
        return jnp.ones((n_out, 1), jnp.float32)
    c = jnp.arange(n_out, dtype=jnp.float32) * ((n_in - 1) / (n_out - 1))
    lo = jnp.clip(jnp.floor(c), 0, n_in - 1)
    w = c - lo
    lo_i = lo.astype(jnp.int32)
    hi_i = jnp.clip(lo_i + 1, 0, n_in - 1)
    rows = jnp.arange(n_out)
    A = jnp.zeros((n_out, n_in), jnp.float32)
    A = A.at[rows, lo_i].add(1.0 - w)
    A = A.at[rows, hi_i].add(w)
    return A


def upsample_trilinear(x, scale=4):
    N, C, X, Y, Z = x.shape
    Ax, Ay, Az = (_interp_matrix(d, scale) for d in (X, Y, Z))
    x = jnp.einsum('ncxyz,ax->ncayz', x, Ax)
    x = jnp.einsum('ncxyz,ay->ncxaz', x, Ay)
    x = jnp.einsum('ncxyz,az->ncxya', x, Az)
    return x


# ---------------------------------------------------------------------------
# full forward
# ---------------------------------------------------------------------------
def crnet_forward(params, img_seq):
    # img_seq: (B, T, 1, X, Y, Z) -> (B, T-1, 3, X, Y, Z)
    B, T, C, X, Y, Z = img_seq.shape
    x = jnp.transpose(img_seq, (1, 0, 2, 3, 4, 5)).astype(jnp.float32)
    x = x.reshape(T * B, C, X, Y, Z)

    # encoder: all T timesteps folded into the batch (per-timestep BN stats)
    d = conv_down(x, params["down1"], group=B)
    d = conv_down(d, params["down2"], group=B)
    c1 = d.shape[1]
    xs = d.reshape(T, B, c1, X // 4, Y // 4, Z // 4)

    # multi-layer ConvGRU over time (lax.scan per layer, fused cell kernel)
    cur = xs
    for layer_p in params["gru"]:
        cur = gru_layer(cur, layer_p)

    # displacement head on timesteps 1..T-1 (batched), then x4 upsample
    hs = cur[1:]
    hs = hs.reshape((T - 1) * B, hs.shape[2], X // 4, Y // 4, Z // 4)
    disp = conv3d(hs, params["disp"]["w"], params["disp"]["b"])
    disp = upsample_trilinear(disp, 4)                  # ((T-1)*B, 3, X, Y, Z)
    disp = disp.reshape(T - 1, B, 3, X, Y, Z)
    return jnp.transpose(disp, (1, 0, 2, 3, 4, 5))


# ---------------------------------------------------------------------------
# deterministic synthetic parameters (layout: (k^3, Cout, Cin))
# ---------------------------------------------------------------------------
def _conv_w(key, k, cout, cin, std):
    w = std * jax.random.normal(key, (k, k, k, cout, cin), dtype=jnp.float32)
    return w.reshape(k ** 3, cout, cin)


def init_params(key, in_ch, down_channels, hidden_dims, kernel_sizes):
    keys = iter(jax.random.split(key, 3 + 2 * len(hidden_dims)))
    c0, c1 = down_channels
    params = {
        "down1": {
            "w": _conv_w(next(keys), 3, c0, in_ch, (2.0 / (in_ch * 27)) ** 0.5),
            "b": jnp.zeros((c0,), jnp.float32),
            "gamma": jnp.ones((c0,), jnp.float32),
            "beta": jnp.zeros((c0,), jnp.float32),
        },
        "down2": {
            "w": _conv_w(next(keys), 3, c1, c0, (2.0 / (c0 * 27)) ** 0.5),
            "b": jnp.zeros((c1,), jnp.float32),
            "gamma": jnp.ones((c1,), jnp.float32),
            "beta": jnp.zeros((c1,), jnp.float32),
        },
    }
    gru = []
    for i, (hd, ks) in enumerate(zip(hidden_dims, kernel_sizes)):
        cin = c1 if i == 0 else hidden_dims[i - 1]
        std = (1.0 / ((cin + hd) * ks ** 3)) ** 0.5
        gru.append({
            "wg": _conv_w(next(keys), ks, 2 * hd, cin + hd, std),
            "bg": jnp.zeros((2 * hd,), jnp.float32),
            "wc": _conv_w(next(keys), ks, hd, cin + hd, std),
            "bc": jnp.zeros((hd,), jnp.float32),
        })
    params["gru"] = gru
    params["disp"] = {
        "w": _conv_w(next(keys), 3, 3, hidden_dims[-1], 1e-5),
        "b": jnp.zeros((3,), jnp.float32),
    }
    return params


# ---------------------------------------------------------------------------
if __name__ == "__main__":
    B, T = 2, 3
    img_size = (16, 16, 16)
    down_out_channel_list = [4, 8]
    hidden_dim_list = [8, 8]
    kernel_size_list = [3, 3]

    root = jax.random.PRNGKey(0)
    pkey, xkey = jax.random.split(root)
    params = init_params(pkey, 1, down_out_channel_list,
                         hidden_dim_list, kernel_size_list)
    img_seq = jax.random.normal(xkey, (B, T, 1) + img_size, dtype=jnp.float32)

    fwd = jax.jit(crnet_forward)
    out = jax.block_until_ready(fwd(params, img_seq))

    assert out.shape == (B, T - 1, 3) + img_size, out.shape
    assert out.dtype == jnp.float32
    assert bool(jnp.isfinite(out).all())
    print("KERNEL_OK")
</pallas_src>

<mosaic_0001>
module attributes {stable_mosaic.version = 11 : i64} {
  func.func private @main(%arg0: i32) attributes {dimension_semantics = [#tpu.dimension_semantics<core_parallel>], iteration_bounds = array<i64: 2>, tpu.core_type = #tpu.core_type<sc_scalar_subcore>, window_params = []} {
    return
  }
}

module attributes {stable_mosaic.version = 11 : i64} {
  func.func private @main(%arg0: i32) attributes {dimension_semantics = [#tpu.dimension_semantics<core_parallel>], iteration_bounds = array<i64: 2>, tpu.core_type = #tpu.core_type<sc_scalar_subcore>, window_params = []} {
    return
  }
}

module attributes {stable_mosaic.version = 11 : i64} {
  func.func @kernel(%arg0: i32, %arg1: i32, %arg2: memref<1x1x768xf32, #tpu.memory_space<vmem>>, %arg3: memref<1x1x768xf32, #tpu.memory_space<vmem>>, %arg4: memref<27x4x1xbf16, #tpu.memory_space<vmem>>, %arg5: memref<4x1xf32, #tpu.memory_space<vmem>>, %arg6: memref<1x4x768xf32, #tpu.memory_space<vmem>>) attributes {dimension_semantics = [#tpu.dimension_semantics<parallel>, #tpu.dimension_semantics<parallel>], iteration_bounds = array<i64: 6, 8>, scalar_prefetch = 0 : i64, scratch_operands = 0 : i64, tpu.core_type = #tpu.core_type<tc>, window_params = [{transform_indices = @transform_0, window_bounds = array<i64: 1, 1, 768>}, {transform_indices = @transform_1, window_bounds = array<i64: 1, 1, 768>}, {pipeline_mode = #tpu.pipeline_mode<synchronous>, transform_indices = @transform_2, window_bounds = array<i64: 27, 4, 1>}, {pipeline_mode = #tpu.pipeline_mode<synchronous>, transform_indices = @transform_3, window_bounds = array<i64: 4, 1>}, {transform_indices = @transform_4, window_bounds = array<i64: 1, 4, 768>}]} {
    %c0 = arith.constant 0 : index
    %c0_0 = arith.constant 0 : index
    %c0_1 = arith.constant 0 : index
    %0 = vector.load %arg2[%c0, %c0_0, %c0_1] : memref<1x1x768xf32, #tpu.memory_space<vmem>>, vector<1x1x768xf32>
    %1 = vector.shape_cast %0 : vector<1x1x768xf32> to vector<1x768xf32>
    %c0_2 = arith.constant 0 : index
    %c0_3 = arith.constant 0 : index
    %c0_4 = arith.constant 0 : index
    %2 = vector.load %arg3[%c0_2, %c0_3, %c0_4] : memref<1x1x768xf32, #tpu.memory_space<vmem>>, vector<1x1x768xf32>
    %3 = vector.shape_cast %2 : vector<1x1x768xf32> to vector<1x768xf32>
    %4 = tpu.concatenate %1, %3 in 1 : vector<1x768xf32>, vector<1x768xf32> -> vector<1x1536xf32>
    %cst = arith.constant 0.000000e+00 : f32
    %5 = vector.broadcast %cst : f32 to vector<4x768xf32>
    %6 = vector.extract_strided_slice %4 {offsets = [0, 0], sizes = [1, 768], strides = [1, 1]} : vector<1x1536xf32> to vector<1x768xf32>
    %c0_5 = arith.constant 0 : index
    %c0_6 = arith.constant 0 : index
    %c0_7 = arith.constant 0 : index
    %7 = vector.load %arg4[%c0_5, %c0_6, %c0_7] : memref<27x4x1xbf16, #tpu.memory_space<vmem>>, vector<1x4x1xbf16>
    %8 = vector.shape_cast %7 : vector<1x4x1xbf16> to vector<4x1xbf16>
    %9 = arith.extf %8 : vector<4x1xbf16> to vector<4x1xf32>
    %10 = vector.broadcast %9 : vector<4x1xf32> to vector<4x768xf32>
    %11 = vector.broadcast %6 : vector<1x768xf32> to vector<4x768xf32>
    %12 = arith.mulf %10, %11 : vector<4x768xf32>
    %13 = arith.addf %5, %12 : vector<4x768xf32>
    %14 = vector.extract_strided_slice %4 {offsets = [0, 1], sizes = [1, 768], strides = [1, 1]} : vector<1x1536xf32> to vector<1x768xf32>
    %c1 = arith.constant 1 : index
    %c0_8 = arith.constant 0 : index
    %c0_9 = arith.constant 0 : index
    %15 = vector.load %arg4[%c1, %c0_8, %c0_9] : memref<27x4x1xbf16, #tpu.memory_space<vmem>>, vector<1x4x1xbf16>
    %16 = vector.shape_cast %15 : vector<1x4x1xbf16> to vector<4x1xbf16>
    %17 = arith.extf %16 : vector<4x1xbf16> to vector<4x1xf32>
    %18 = vector.broadcast %17 : vector<4x1xf32> to vector<4x768xf32>
    %19 = vector.broadcast %14 : vector<1x768xf32> to vector<4x768xf32>
    %20 = arith.mulf %18, %19 : vector<4x768xf32>
    %21 = arith.addf %13, %20 : vector<4x768xf32>
    %22 = vector.extract_strided_slice %4 {offsets = [0, 2], sizes = [1, 768], strides = [1, 1]} : vector<1x1536xf32> to vector<1x768xf32>
    %c2 = arith.constant 2 : index
    %c0_10 = arith.constant 0 : index
    %c0_11 = arith.constant 0 : index
    %23 = vector.load %arg4[%c2, %c0_10, %c0_11] : memref<27x4x1xbf16, #tpu.memory_space<vmem>>, vector<1x4x1xbf16>
    %24 = vector.shape_cast %23 : vector<1x4x1xbf16> to vector<4x1xbf16>
    %25 = arith.extf %24 : vector<4x1xbf16> to vector<4x1xf32>
    %26 = vector.broadcast %25 : vector<4x1xf32> to vector<4x768xf32>
    %27 = vector.broadcast %22 : vector<1x768xf32> to vector<4x768xf32>
    %28 = arith.mulf %26, %27 : vector<4x768xf32>
    %29 = arith.addf %21, %28 : vector<4x768xf32>
    %30 = vector.extract_strided_slice %4 {offsets = [0, 18], sizes = [1, 768], strides = [1, 1]} : vector<1x1536xf32> to vector<1x768xf32>
    %c3 = arith.constant 3 : index
    %c0_12 = arith.constant 0 : index
    %c0_13 = arith.constant 0 : index
    %31 = vector.load %arg4[%c3, %c0_12, %c0_13] : memref<27x4x1xbf16, #tpu.memory_space<vmem>>, vector<1x4x1xbf16>
    %32 = vector.shape_cast %31 : vector<1x4x1xbf16> to vector<4x1xbf16>
    %33 = arith.extf %32 : vector<4x1xbf16> to vector<4x1xf32>
    %34 = vector.broadcast %33 : vector<4x1xf32> to vector<4x768xf32>
    %35 = vector.broadcast %30 : vector<1x768xf32> to vector<4x768xf32>
    %36 = arith.mulf %34, %35 : vector<4x768xf32>
    %37 = arith.addf %29, %36 : vector<4x768xf32>
    %38 = vector.extract_strided_slice %4 {offsets = [0, 19], sizes = [1, 768], strides = [1, 1]} : vector<1x1536xf32> to vector<1x768xf32>
    %c4 = arith.constant 4 : index
    %c0_14 = arith.constant 0 : index
    %c0_15 = arith.constant 0 : index
    %39 = vector.load %arg4[%c4, %c0_14, %c0_15] : memref<27x4x1xbf16, #tpu.memory_space<vmem>>, vector<1x4x1xbf16>
    %40 = vector.shape_cast %39 : vector<1x4x1xbf16> to vector<4x1xbf16>
    %41 = arith.extf %40 : vector<4x1xbf16> to vector<4x1xf32>
    %42 = vector.broadcast %41 : vector<4x1xf32> to vector<4x768xf32>
    %43 = vector.broadcast %38 : vector<1x768xf32> to vector<4x768xf32>
    %44 = arith.mulf %42, %43 : vector<4x768xf32>
    %45 = arith.addf %37, %44 : vector<4x768xf32>
    %46 = vector.extract_strided_slice %4 {offsets = [0, 20], sizes = [1, 768], strides = [1, 1]} : vector<1x1536xf32> to vector<1x768xf32>
    %c5 = arith.constant 5 : index
    %c0_16 = arith.constant 0 : index
    %c0_17 = arith.constant 0 : index
    %47 = vector.load %arg4[%c5, %c0_16, %c0_17] : memref<27x4x1xbf16, #tpu.memory_space<vmem>>, vector<1x4x1xbf16>
    %48 = vector.shape_cast %47 : vector<1x4x1xbf16> to vector<4x1xbf16>
    %49 = arith.extf %48 : vector<4x1xbf16> to vector<4x1xf32>
    %50 = vector.broadcast %49 : vector<4x1xf32> to vector<4x768xf32>
    %51 = vector.broadcast %46 : vector<1x768xf32> to vector<4x768xf32>
    %52 = arith.mulf %50, %51 : vector<4x768xf32>
    %53 = arith.addf %45, %52 : vector<4x768xf32>
    %54 = vector.extract_strided_slice %4 {offsets = [0, 36], sizes = [1, 768], strides = [1, 1]} : vector<1x1536xf32> to vector<1x768xf32>
    %c6 = arith.constant 6 : index
    %c0_18 = arith.constant 0 : index
    %c0_19 = arith.constant 0 : index
    %55 = vector.load %arg4[%c6, %c0_18, %c0_19] : memref<27x4x1xbf16, #tpu.memory_space<vmem>>, vector<1x4x1xbf16>
    %56 = vector.shape_cast %55 : vector<1x4x1xbf16> to vector<4x1xbf16>
    %57 = arith.extf %56 : vector<4x1xbf16> to vector<4x1xf32>
    %58 = vector.broadcast %57 : vector<4x1xf32> to vector<4x768xf32>
    %59 = vector.broadcast %54 : vector<1x768xf32> to vector<4x768xf32>
    %60 = arith.mulf %58, %59 : vector<4x768xf32>
    %61 = arith.addf %53, %60 : vector<4x768xf32>
    %62 = vector.extract_strided_slice %4 {offsets = [0, 37], sizes = [1, 768], strides = [1, 1]} : vector<1x1536xf32> to vector<1x768xf32>
    %c7 = arith.constant 7 : index
    %c0_20 = arith.constant 0 : index
    %c0_21 = arith.constant 0 : index
    %63 = vector.load %arg4[%c7, %c0_20, %c0_21] : memref<27x4x1xbf16, #tpu.memory_space<vmem>>, vector<1x4x1xbf16>
    %64 = vector.shape_cast %63 : vector<1x4x1xbf16> to vector<4x1xbf16>
    %65 = arith.extf %64 : vector<4x1xbf16> to vector<4x1xf32>
    %66 = vector.broadcast %65 : vector<4x1xf32> to vector<4x768xf32>
    %67 = vector.broadcast %62 : vector<1x768xf32> to vector<4x768xf32>
    %68 = arith.mulf %66, %67 : vector<4x768xf32>
    %69 = arith.addf %61, %68 : vector<4x768xf32>
    %70 = vector.extract_strided_slice %4 {offsets = [0, 38], sizes = [1, 768], strides = [1, 1]} : vector<1x1536xf32> to vector<1x768xf32>
    %c8 = arith.constant 8 : index
    %c0_22 = arith.constant 0 : index
    %c0_23 = arith.constant 0 : index
    %71 = vector.load %arg4[%c8, %c0_22, %c0_23] : memref<27x4x1xbf16, #tpu.memory_space<vmem>>, vector<1x4x1xbf16>
    %72 = vector.shape_cast %71 : vector<1x4x1xbf16> to vector<4x1xbf16>
    %73 = arith.extf %72 : vector<4x1xbf16> to vector<4x1xf32>
    %74 = vector.broadcast %73 : vector<4x1xf32> to vector<4x768xf32>
    %75 = vector.broadcast %70 : vector<1x768xf32> to vector<4x768xf32>
    %76 = arith.mulf %74, %75 : vector<4x768xf32>
    %77 = arith.addf %69, %76 : vector<4x768xf32>
    %78 = vector.extract_strided_slice %4 {offsets = [0, 324], sizes = [1, 768], strides = [1, 1]} : vector<1x1536xf32> to vector<1x768xf32>
    %c9 = arith.constant 9 : index
    %c0_24 = arith.constant 0 : index
    %c0_25 = arith.constant 0 : index
    %79 = vector.load %arg4[%c9, %c0_24, %c0_25] : memref<27x4x1xbf16, #tpu.memory_space<vmem>>, vector<1x4x1xbf16>
    %80 = vector.shape_cast %79 : vector<1x4x1xbf16> to vector<4x1xbf16>
    %81 = arith.extf %80 : vector<4x1xbf16> to vector<4x1xf32>
    %82 = vector.broadcast %81 : vector<4x1xf32> to vector<4x768xf32>
    %83 = vector.broadcast %78 : vector<1x768xf32> to vector<4x768xf32>
    %84 = arith.mulf %82, %83 : vector<4x768xf32>
    %85 = arith.addf %77, %84 : vector<4x768xf32>
    %86 = vector.extract_strided_slice %4 {offsets = [0, 325], sizes = [1, 768], strides = [1, 1]} : vector<1x1536xf32> to vector<1x768xf32>
    %c10 = arith.constant 10 : index
    %c0_26 = arith.constant 0 : index
    %c0_27 = arith.constant 0 : index
    %87 = vector.load %arg4[%c10, %c0_26, %c0_27] : memref<27x4x1xbf16, #tpu.memory_space<vmem>>, vector<1x4x1xbf16>
    %88 = vector.shape_cast %87 : vector<1x4x1xbf16> to vector<4x1xbf16>
    %89 = arith.extf %88 : vector<4x1xbf16> to vector<4x1xf32>
    %90 = vector.broadcast %89 : vector<4x1xf32> to vector<4x768xf32>
    %91 = vector.broadcast %86 : vector<1x768xf32> to vector<4x768xf32>
    %92 = arith.mulf %90, %91 : vector<4x768xf32>
    %93 = arith.addf %85, %92 : vector<4x768xf32>
    %94 = vector.extract_strided_slice %4 {offsets = [0, 326], sizes = [1, 768], strides = [1, 1]} : vector<1x1536xf32> to vector<1x768xf32>
    %c11 = arith.constant 11 : index
    %c0_28 = arith.constant 0 : index
    %c0_29 = arith.constant 0 : index
    %95 = vector.load %arg4[%c11, %c0_28, %c0_29] : memref<27x4x1xbf16, #tpu.memory_space<vmem>>, vector<1x4x1xbf16>
    %96 = vector.shape_cast %95 : vector<1x4x1xbf16> to vector<4x1xbf16>
    %97 = arith.extf %96 : vector<4x1xbf16> to vector<4x1xf32>
    %98 = vector.broadcast %97 : vector<4x1xf32> to vector<4x768xf32>
    %99 = vector.broadcast %94 : vector<1x768xf32> to vector<4x768xf32>
    %100 = arith.mulf %98, %99 : vector<4x768xf32>
    %101 = arith.addf %93, %100 : vector<4x768xf32>
    %102 = vector.extract_strided_slice %4 {offsets = [0, 342], sizes = [1, 768], strides = [1, 1]} : vector<1x1536xf32> to vector<1x768xf32>
    %c12 = arith.constant 12 : index
    %c0_30 = arith.constant 0 : index
    %c0_31 = arith.constant 0 : index
    %103 = vector.load %arg4[%c12, %c0_30, %c0_31] : memref<27x4x1xbf16, #tpu.memory_space<vmem>>, vector<1x4x1xbf16>
    %104 = vector.shape_cast %103 : vector<1x4x1xbf16> to vector<4x1xbf16>
    %105 = arith.extf %104 : vector<4x1xbf16> to vector<4x1xf32>
    %106 = vector.broadcast %105 : vector<4x1xf32> to vector<4x768xf32>
    %107 = vector.broadcast %102 : vector<1x768xf32> to vector<4x768xf32>
    %108 = arith.mulf %106, %107 : vector<4x768xf32>
    %109 = arith.addf %101, %108 : vector<4x768xf32>
    %110 = vector.extract_strided_slice %4 {offsets = [0, 343], sizes = [1, 768], strides = [1, 1]} : vector<1x1536xf32> to vector<1x768xf32>
    %c13 = arith.constant 13 : index
    %c0_32 = arith.constant 0 : index
    %c0_33 = arith.constant 0 : index
    %111 = vector.load %arg4[%c13, %c0_32, %c0_33] : memref<27x4x1xbf16, #tpu.memory_space<vmem>>, vector<1x4x1xbf16>
    %112 = vector.shape_cast %111 : vector<1x4x1xbf16> to vector<4x1xbf16>
    %113 = arith.extf %112 : vector<4x1xbf16> to vector<4x1xf32>
    %114 = vector.broadcast %113 : vector<4x1xf32> to vector<4x768xf32>
    %115 = vector.broadcast %110 : vector<1x768xf32> to vector<4x768xf32>
    %116 = arith.mulf %114, %115 : vector<4x768xf32>
    %117 = arith.addf %109, %116 : vector<4x768xf32>
    %118 = vector.extract_strided_slice %4 {offsets = [0, 344], sizes = [1, 768], strides = [1, 1]} : vector<1x1536xf32> to vector<1x768xf32>
    %c14 = arith.constant 14 : index
    %c0_34 = arith.constant 0 : index
    %c0_35 = arith.constant 0 : index
    %119 = vector.load %arg4[%c14, %c0_34, %c0_35] : memref<27x4x1xbf16, #tpu.memory_space<vmem>>, vector<1x4x1xbf16>
    %120 = vector.shape_cast %119 : vector<1x4x1xbf16> to vector<4x1xbf16>
    %121 = arith.extf %120 : vector<4x1xbf16> to vector<4x1xf32>
    %122 = vector.broadcast %121 : vector<4x1xf32> to vector<4x768xf32>
    %123 = vector.broadcast %118 : vector<1x768xf32> to vector<4x768xf32>
    %124 = arith.mulf %122, %123 : vector<4x768xf32>
    %125 = arith.addf %117, %124 : vector<4x768xf32>
    %126 = vector.extract_strided_slice %4 {offsets = [0, 360], sizes = [1, 768], strides = [1, 1]} : vector<1x1536xf32> to vector<1x768xf32>
    %c15 = arith.constant 15 : index
    %c0_36 = arith.constant 0 : index
    %c0_37 = arith.constant 0 : index
    %127 = vector.load %arg4[%c15, %c0_36, %c0_37] : memref<27x4x1xbf16, #tpu.memory_space<vmem>>, vector<1x4x1xbf16>
    %128 = vector.shape_cast %127 : vector<1x4x1xbf16> to vector<4x1xbf16>
    %129 = arith.extf %128 : vector<4x1xbf16> to vector<4x1xf32>
    %130 = vector.broadcast %129 : vector<4x1xf32> to vector<4x768xf32>
    %131 = vector.broadcast %126 : vector<1x768xf32> to vector<4x768xf32>
    %132 = arith.mulf %130, %131 : vector<4x768xf32>
    %133 = arith.addf %125, %132 : vector<4x768xf32>
    %134 = vector.extract_strided_slice %4 {offsets = [0, 361], sizes = [1, 768], strides = [1, 1]} : vector<1x1536xf32> to vector<1x768xf32>
    %c16 = arith.constant 16 : index
    %c0_38 = arith.constant 0 : index
    %c0_39 = arith.constant 0 : index
    %135 = vector.load %arg4[%c16, %c0_38, %c0_39] : memref<27x4x1xbf16, #tpu.memory_space<vmem>>, vector<1x4x1xbf16>
    %136 = vector.shape_cast %135 : vector<1x4x1xbf16> to vector<4x1xbf16>
    %137 = arith.extf %136 : vector<4x1xbf16> to vector<4x1xf32>
    %138 = vector.broadcast %137 : vector<4x1xf32> to vector<4x768xf32>
    %139 = vector.broadcast %134 : vector<1x768xf32> to vector<4x768xf32>
    %140 = arith.mulf %138, %139 : vector<4x768xf32>
    %141 = arith.addf %133, %140 : vector<4x768xf32>
    %142 = vector.extract_strided_slice %4 {offsets = [0, 362], sizes = [1, 768], strides = [1, 1]} : vector<1x1536xf32> to vector<1x768xf32>
    %c17 = arith.constant 17 : index
    %c0_40 = arith.constant 0 : index
    %c0_41 = arith.constant 0 : index
    %143 = vector.load %arg4[%c17, %c0_40, %c0_41] : memref<27x4x1xbf16, #tpu.memory_space<vmem>>, vector<1x4x1xbf16>
    %144 = vector.shape_cast %143 : vector<1x4x1xbf16> to vector<4x1xbf16>
    %145 = arith.extf %144 : vector<4x1xbf16> to vector<4x1xf32>
    %146 = vector.broadcast %145 : vector<4x1xf32> to vector<4x768xf32>
    %147 = vector.broadcast %142 : vector<1x768xf32> to vector<4x768xf32>
    %148 = arith.mulf %146, %147 : vector<4x768xf32>
    %149 = arith.addf %141, %148 : vector<4x768xf32>
    %150 = vector.extract_strided_slice %4 {offsets = [0, 648], sizes = [1, 768], strides = [1, 1]} : vector<1x1536xf32> to vector<1x768xf32>
    %c18 = arith.constant 18 : index
    %c0_42 = arith.constant 0 : index
    %c0_43 = arith.constant 0 : index
    %151 = vector.load %arg4[%c18, %c0_42, %c0_43] : memref<27x4x1xbf16, #tpu.memory_space<vmem>>, vector<1x4x1xbf16>
    %152 = vector.shape_cast %151 : vector<1x4x1xbf16> to vector<4x1xbf16>
    %153 = arith.extf %152 : vector<4x1xbf16> to vector<4x1xf32>
    %154 = vector.broadcast %153 : vector<4x1xf32> to vector<4x768xf32>
    %155 = vector.broadcast %150 : vector<1x768xf32> to vector<4x768xf32>
    %156 = arith.mulf %154, %155 : vector<4x768xf32>
    %157 = arith.addf %149, %156 : vector<4x768xf32>
    %158 = vector.extract_strided_slice %4 {offsets = [0, 649], sizes = [1, 768], strides = [1, 1]} : vector<1x1536xf32> to vector<1x768xf32>
    %c19 = arith.constant 19 : index
    %c0_44 = arith.constant 0 : index
    %c0_45 = arith.constant 0 : index
    %159 = vector.load %arg4[%c19, %c0_44, %c0_45] : memref<27x4x1xbf16, #tpu.memory_space<vmem>>, vector<1x4x1xbf16>
    %160 = vector.shape_cast %159 : vector<1x4x1xbf16> to vector<4x1xbf16>
    %161 = arith.extf %160 : vector<4x1xbf16> to vector<4x1xf32>
    %162 = vector.broadcast %161 : vector<4x1xf32> to vector<4x768xf32>
    %163 = vector.broadcast %158 : vector<1x768xf32> to vector<4x768xf32>
    %164 = arith.mulf %162, %163 : vector<4x768xf32>
    %165 = arith.addf %157, %164 : vector<4x768xf32>
    %166 = vector.extract_strided_slice %4 {offsets = [0, 650], sizes = [1, 768], strides = [1, 1]} : vector<1x1536xf32> to vector<1x768xf32>
    %c20 = arith.constant 20 : index
    %c0_46 = arith.constant 0 : index
    %c0_47 = arith.constant 0 : index
    %167 = vector.load %arg4[%c20, %c0_46, %c0_47] : memref<27x4x1xbf16, #tpu.memory_space<vmem>>, vector<1x4x1xbf16>
    %168 = vector.shape_cast %167 : vector<1x4x1xbf16> to vector<4x1xbf16>
    %169 = arith.extf %168 : vector<4x1xbf16> to vector<4x1xf32>
    %170 = vector.broadcast %169 : vector<4x1xf32> to vector<4x768xf32>
    %171 = vector.broadcast %166 : vector<1x768xf32> to vector<4x768xf32>
    %172 = arith.mulf %170, %171 : vector<4x768xf32>
    %173 = arith.addf %165, %172 : vector<4x768xf32>
    %174 = vector.extract_strided_slice %4 {offsets = [0, 666], sizes = [1, 768], strides = [1, 1]} : vector<1x1536xf32> to vector<1x768xf32>
    %c21 = arith.constant 21 : index
    %c0_48 = arith.constant 0 : index
    %c0_49 = arith.constant 0 : index
    %175 = vector.load %arg4[%c21, %c0_48, %c0_49] : memref<27x4x1xbf16, #tpu.memory_space<vmem>>, vector<1x4x1xbf16>
    %176 = vector.shape_cast %175 : vector<1x4x1xbf16> to vector<4x1xbf16>
    %177 = arith.extf %176 : vector<4x1xbf16> to vector<4x1xf32>
    %178 = vector.broadcast %177 : vector<4x1xf32> to vector<4x768xf32>
    %179 = vector.broadcast %174 : vector<1x768xf32> to vector<4x768xf32>
    %180 = arith.mulf %178, %179 : vector<4x768xf32>
    %181 = arith.addf %173, %180 : vector<4x768xf32>
    %182 = vector.extract_strided_slice %4 {offsets = [0, 667], sizes = [1, 768], strides = [1, 1]} : vector<1x1536xf32> to vector<1x768xf32>
    %c22 = arith.constant 22 : index
    %c0_50 = arith.constant 0 : index
    %c0_51 = arith.constant 0 : index
    %183 = vector.load %arg4[%c22, %c0_50, %c0_51] : memref<27x4x1xbf16, #tpu.memory_space<vmem>>, vector<1x4x1xbf16>
    %184 = vector.shape_cast %183 : vector<1x4x1xbf16> to vector<4x1xbf16>
    %185 = arith.extf %184 : vector<4x1xbf16> to vector<4x1xf32>
    %186 = vector.broadcast %185 : vector<4x1xf32> to vector<4x768xf32>
    %187 = vector.broadcast %182 : vector<1x768xf32> to vector<4x768xf32>
    %188 = arith.mulf %186, %187 : vector<4x768xf32>
    %189 = arith.addf %181, %188 : vector<4x768xf32>
    %190 = vector.extract_strided_slice %4 {offsets = [0, 668], sizes = [1, 768], strides = [1, 1]} : vector<1x1536xf32> to vector<1x768xf32>
    %c23 = arith.constant 23 : index
    %c0_52 = arith.constant 0 : index
    %c0_53 = arith.constant 0 : index
    %191 = vector.load %arg4[%c23, %c0_52, %c0_53] : memref<27x4x1xbf16, #tpu.memory_space<vmem>>, vector<1x4x1xbf16>
    %192 = vector.shape_cast %191 : vector<1x4x1xbf16> to vector<4x1xbf16>
    %193 = arith.extf %192 : vector<4x1xbf16> to vector<4x1xf32>
    %194 = vector.broadcast %193 : vector<4x1xf32> to vector<4x768xf32>
    %195 = vector.broadcast %190 : vector<1x768xf32> to vector<4x768xf32>
    %196 = arith.mulf %194, %195 : vector<4x768xf32>
    %197 = arith.addf %189, %196 : vector<4x768xf32>
    %198 = vector.extract_strided_slice %4 {offsets = [0, 684], sizes = [1, 768], strides = [1, 1]} : vector<1x1536xf32> to vector<1x768xf32>
    %c24 = arith.constant 24 : index
    %c0_54 = arith.constant 0 : index
    %c0_55 = arith.constant 0 : index
    %199 = vector.load %arg4[%c24, %c0_54, %c0_55] : memref<27x4x1xbf16, #tpu.memory_space<vmem>>, vector<1x4x1xbf16>
    %200 = vector.shape_cast %199 : vector<1x4x1xbf16> to vector<4x1xbf16>
    %201 = arith.extf %200 : vector<4x1xbf16> to vector<4x1xf32>
    %202 = vector.broadcast %201 : vector<4x1xf32> to vector<4x768xf32>
    %203 = vector.broadcast %198 : vector<1x768xf32> to vector<4x768xf32>
    %204 = arith.mulf %202, %203 : vector<4x768xf32>
    %205 = arith.addf %197, %204 : vector<4x768xf32>
    %206 = vector.extract_strided_slice %4 {offsets = [0, 685], sizes = [1, 768], strides = [1, 1]} : vector<1x1536xf32> to vector<1x768xf32>
    %c25 = arith.constant 25 : index
    %c0_56 = arith.constant 0 : index
    %c0_57 = arith.constant 0 : index
    %207 = vector.load %arg4[%c25, %c0_56, %c0_57] : memref<27x4x1xbf16, #tpu.memory_space<vmem>>, vector<1x4x1xbf16>
    %208 = vector.shape_cast %207 : vector<1x4x1xbf16> to vector<4x1xbf16>
    %209 = arith.extf %208 : vector<4x1xbf16> to vector<4x1xf32>
    %210 = vector.broadcast %209 : vector<4x1xf32> to vector<4x768xf32>
    %211 = vector.broadcast %206 : vector<1x768xf32> to vector<4x768xf32>
    %212 = arith.mulf %210, %211 : vector<4x768xf32>
    %213 = arith.addf %205, %212 : vector<4x768xf32>
    %214 = vector.extract_strided_slice %4 {offsets = [0, 686], sizes = [1, 768], strides = [1, 1]} : vector<1x1536xf32> to vector<1x768xf32>
    %c26 = arith.constant 26 : index
    %c0_58 = arith.constant 0 : index
    %c0_59 = arith.constant 0 : index
    %215 = vector.load %arg4[%c26, %c0_58, %c0_59] : memref<27x4x1xbf16, #tpu.memory_space<vmem>>, vector<1x4x1xbf16>
    %216 = vector.shape_cast %215 : vector<1x4x1xbf16> to vector<4x1xbf16>
    %217 = arith.extf %216 : vector<4x1xbf16> to vector<4x1xf32>
    %218 = vector.broadcast %217 : vector<4x1xf32> to vector<4x768xf32>
    %219 = vector.broadcast %214 : vector<1x768xf32> to vector<4x768xf32>
    %220 = arith.mulf %218, %219 : vector<4x768xf32>
    %221 = arith.addf %213, %220 : vector<4x768xf32>
    %c0_60 = arith.constant 0 : index
    %c0_61 = arith.constant 0 : index
    %222 = vector.load %arg5[%c0_60, %c0_61] : memref<4x1xf32, #tpu.memory_space<vmem>>, vector<4x1xf32>
    %223 = vector.broadcast %222 : vector<4x1xf32> to vector<4x768xf32>
    %224 = arith.addf %221, %223 : vector<4x768xf32>
    %c0_62 = arith.constant 0 : index
    %c0_63 = arith.constant 0 : index
    %c0_64 = arith.constant 0 : index
    %225 = vector.load %arg6[%c0_62, %c0_63, %c0_64] : memref<1x4x768xf32, #tpu.memory_space<vmem>>, vector<1x4x768xf32>
    %226 = vector.shape_cast %225 : vector<1x4x768xf32> to vector<4x768xf32>
    %227 = vector.shape_cast %224 : vector<4x768xf32> to vector<1x4x768xf32>
    tpu.vector_store %arg6[%c0_62, %c0_63, %c0_64], %227 {strides = array<i32>} : memref<1x4x768xf32, #tpu.memory_space<vmem>>, vector<1x4x768xf32>,
    return
  }
  func.func @transform_0(%arg0: i32, %arg1: i32) -> (i32, i32, i32) {
    %c0_i32 = arith.constant 0 : i32
    %c0_i32_0 = arith.constant 0 : i32
    return %arg0, %c0_i32, %arg1 : i32, i32, i32
  }
  func.func @transform_1(%arg0: i32, %arg1: i32) -> (i32, i32, i32) {
    %c1_i32 = arith.constant 1 : i32
    %0 = arith.addi %arg1, %c1_i32 : i32
    %c0_i32 = arith.constant 0 : i32
    %c0_i32_0 = arith.constant 0 : i32
    return %arg0, %c0_i32, %0 : i32, i32, i32
  }
  func.func @transform_2(%arg0: i32, %arg1: i32) -> (i32, i32, i32) {
    %c0_i32 = arith.constant 0 : i32
    %c0_i32_0 = arith.constant 0 : i32
    %c0_i32_1 = arith.constant 0 : i32
    %c0_i32_2 = arith.constant 0 : i32
    return %c0_i32, %c0_i32_0, %c0_i32_1 : i32, i32, i32
  }
  func.func @transform_3(%arg0: i32, %arg1: i32) -> (i32, i32) {
    %c0_i32 = arith.constant 0 : i32
    %c0_i32_0 = arith.constant 0 : i32
    %c0_i32_1 = arith.constant 0 : i32
    return %c0_i32, %c0_i32_0 : i32, i32
  }
  func.func @transform_4(%arg0: i32, %arg1: i32) -> (i32, i32, i32) {
    %c0_i32 = arith.constant 0 : i32
    %c0_i32_0 = arith.constant 0 : i32
    return %arg0, %c0_i32, %arg1 : i32, i32, i32
  }
}

module attributes {stable_mosaic.version = 11 : i64} {
  func.func @_bn_relu_kernel(%arg0: i32, %arg1: i32, %arg2: memref<1x4x2048xf32, #tpu.memory_space<vmem>>, %arg3: memref<1x4x1xf32, #tpu.memory_space<vmem>>, %arg4: memref<1x4x1xf32, #tpu.memory_space<vmem>>, %arg5: memref<1x4x2048xf32, #tpu.memory_space<vmem>>) attributes {dimension_semantics = [#tpu.dimension_semantics<parallel>, #tpu.dimension_semantics<parallel>], iteration_bounds = array<i64: 6, 2>, scalar_prefetch = 0 : i64, scratch_operands = 0 : i64, tpu.core_type = #tpu.core_type<tc>, window_params = [{transform_indices = @transform_0, window_bounds = array<i64: 1, 4, 2048>}, {transform_indices = @transform_1, window_bounds = array<i64: 1, 4, 1>}, {transform_indices = @transform_2, window_bounds = array<i64: 1, 4, 1>}, {transform_indices = @transform_3, window_bounds = array<i64: 1, 4, 2048>}]} {
    %c0 = arith.constant 0 : index
    %c0_0 = arith.constant 0 : index
    %c0_1 = arith.constant 0 : index
    %0 = vector.load %arg2[%c0, %c0_0, %c0_1] : memref<1x4x2048xf32, #tpu.memory_space<vmem>>, vector<1x4x2048xf32>
    %c0_2 = arith.constant 0 : index
    %c0_3 = arith.constant 0 : index
    %c0_4 = arith.constant 0 : index
    %1 = vector.load %arg3[%c0_2, %c0_3, %c0_4] : memref<1x4x1xf32, #tpu.memory_space<vmem>>, vector<1x4x1xf32>
    %2 = vector.broadcast %1 : vector<1x4x1xf32> to vector<1x4x2048xf32>
    %3 = arith.mulf %0, %2 : vector<1x4x2048xf32>
    %c0_5 = arith.constant 0 : index
    %c0_6 = arith.constant 0 : index
    %c0_7 = arith.constant 0 : index
    %4 = vector.load %arg4[%c0_5, %c0_6, %c0_7] : memref<1x4x1xf32, #tpu.memory_space<vmem>>, vector<1x4x1xf32>
    %5 = vector.broadcast %4 : vector<1x4x1xf32> to vector<1x4x2048xf32>
    %6 = arith.addf %3, %5 : vector<1x4x2048xf32>
    %cst = arith.constant 0.000000e+00 : f32
    %7 = vector.broadcast %cst : f32 to vector<1x4x2048xf32>
    %8 = arith.maximumf %6, %7 : vector<1x4x2048xf32>
    %c0_8 = arith.constant 0 : index
    %c0_9 = arith.constant 0 : index
    %c0_10 = arith.constant 0 : index
    %9 = vector.load %arg5[%c0_8, %c0_9, %c0_10] : memref<1x4x2048xf32, #tpu.memory_space<vmem>>, vector<1x4x2048xf32>
    tpu.vector_store %arg5[%c0_8, %c0_9, %c0_10], %8 {strides = array<i32>} : memref<1x4x2048xf32, #tpu.memory_space<vmem>>, vector<1x4x2048xf32>,
    return
  }
  func.func @transform_0(%arg0: i32, %arg1: i32) -> (i32, i32, i32) {
    %c0_i32 = arith.constant 0 : i32
    %c0_i32_0 = arith.constant 0 : i32
    return %arg0, %c0_i32, %arg1 : i32, i32, i32
  }
  func.func @transform_1(%arg0: i32, %arg1: i32) -> (i32, i32, i32) {
    %c0_i32 = arith.constant 0 : i32
    %c0_i32_0 = arith.constant 0 : i32
    %c0_i32_1 = arith.constant 0 : i32
    return %arg0, %c0_i32, %c0_i32_0 : i32, i32, i32
  }
  func.func @transform_2(%arg0: i32, %arg1: i32) -> (i32, i32, i32) {
    %c0_i32 = arith.constant 0 : i32
    %c0_i32_0 = arith.constant 0 : i32
    %c0_i32_1 = arith.constant 0 : i32
    return %arg0, %c0_i32, %c0_i32_0 : i32, i32, i32
  }
  func.func @transform_3(%arg0: i32, %arg1: i32) -> (i32, i32, i32) {
    %c0_i32 = arith.constant 0 : i32
    %c0_i32_0 = arith.constant 0 : i32
    return %arg0, %c0_i32, %arg1 : i32, i32, i32
  }
}

module attributes {stable_mosaic.version = 11 : i64} {
  func.func @kernel(%arg0: i32, %arg1: i32, %arg2: memref<1x4x256xf32, #tpu.memory_space<vmem>>, %arg3: memref<1x4x256xf32, #tpu.memory_space<vmem>>, %arg4: memref<27x8x4xbf16, #tpu.memory_space<vmem>>, %arg5: memref<8x1xf32, #tpu.memory_space<vmem>>, %arg6: memref<1x8x256xf32, #tpu.memory_space<vmem>>) attributes {dimension_semantics = [#tpu.dimension_semantics<parallel>, #tpu.dimension_semantics<parallel>], iteration_bounds = array<i64: 6, 4>, scalar_prefetch = 0 : i64, scratch_operands = 0 : i64, tpu.core_type = #tpu.core_type<tc>, window_params = [{transform_indices = @transform_0, window_bounds = array<i64: 1, 4, 256>}, {transform_indices = @transform_1, window_bounds = array<i64: 1, 4, 256>}, {pipeline_mode = #tpu.pipeline_mode<synchronous>, transform_indices = @transform_2, window_bounds = array<i64: 27, 8, 4>}, {pipeline_mode = #tpu.pipeline_mode<synchronous>, transform_indices = @transform_3, window_bounds = array<i64: 8, 1>}, {transform_indices = @transform_4, window_bounds = array<i64: 1, 8, 256>}]} {
    %c0 = arith.constant 0 : index
    %c0_0 = arith.constant 0 : index
    %c0_1 = arith.constant 0 : index
    %0 = vector.load %arg2[%c0, %c0_0, %c0_1] : memref<1x4x256xf32, #tpu.memory_space<vmem>>, vector<1x4x256xf32>
    %1 = vector.shape_cast %0 : vector<1x4x256xf32> to vector<4x256xf32>
    %2 = arith.truncf %1 : vector<4x256xf32> to vector<4x256xbf16>
    %c0_2 = arith.constant 0 : index
    %c0_3 = arith.constant 0 : index
    %c0_4 = arith.constant 0 : index
    %3 = vector.load %arg3[%c0_2, %c0_3, %c0_4] : memref<1x4x256xf32, #tpu.memory_space<vmem>>, vector<1x4x256xf32>
    %4 = vector.shape_cast %3 : vector<1x4x256xf32> to vector<4x256xf32>
    %5 = arith.truncf %4 : vector<4x256xf32> to vector<4x256xbf16>
    %6 = tpu.concatenate %2, %5 in 1 : vector<4x256xbf16>, vector<4x256xbf16> -> vector<4x512xbf16>
    %cst = arith.constant 0.000000e+00 : f32
    %7 = vector.broadcast %cst : f32 to vector<8x256xf32>
    %8 = vector.extract_strided_slice %6 {offsets = [0, 0], sizes = [4, 256], strides = [1, 1]} : vector<4x512xbf16> to vector<4x256xbf16>
    %c0_5 = arith.constant 0 : index
    %c0_6 = arith.constant 0 : index
    %c0_7 = arith.constant 0 : index
    %9 = vector.load %arg4[%c0_5, %c0_6, %c0_7] : memref<27x8x4xbf16, #tpu.memory_space<vmem>>, vector<1x8x4xbf16>
    %10 = vector.shape_cast %9 : vector<1x8x4xbf16> to vector<8x4xbf16>
    %cst_8 = arith.constant dense<0.000000e+00> : vector<8x256xf32>
    %11 = tpu.matmul %10, %8, %cst_8 {dimension_numbers = #tpu.dot_dimension_numbers<[1], [0], [0], [1], [0, 0, 1, 1], [], []>} : vector<8x4xbf16>, vector<4x256xbf16>, vector<8x256xf32> -> vector<8x256xf32>
    %12 = arith.addf %7, %11 : vector<8x256xf32>
    %13 = vector.extract_strided_slice %6 {offsets = [0, 1], sizes = [4, 256], strides = [1, 1]} : vector<4x512xbf16> to vector<4x256xbf16>
    %c1 = arith.constant 1 : index
    %c0_9 = arith.constant 0 : index
    %c0_10 = arith.constant 0 : index
    %14 = vector.load %arg4[%c1, %c0_9, %c0_10] : memref<27x8x4xbf16, #tpu.memory_space<vmem>>, vector<1x8x4xbf16>
    %15 = vector.shape_cast %14 : vector<1x8x4xbf16> to vector<8x4xbf16>
    %cst_11 = arith.constant dense<0.000000e+00> : vector<8x256xf32>
    %16 = tpu.matmul %15, %13, %cst_11 {dimension_numbers = #tpu.dot_dimension_numbers<[1], [0], [0], [1], [0, 0, 1, 1], [], []>} : vector<8x4xbf16>, vector<4x256xbf16>, vector<8x256xf32> -> vector<8x256xf32>
    %17 = arith.addf %12, %16 : vector<8x256xf32>
    %18 = vector.extract_strided_slice %6 {offsets = [0, 2], sizes = [4, 256], strides = [1, 1]} : vector<4x512xbf16> to vector<4x256xbf16>
    %c2 = arith.constant 2 : index
    %c0_12 = arith.constant 0 : index
    %c0_13 = arith.constant 0 : index
    %19 = vector.load %arg4[%c2, %c0_12, %c0_13] : memref<27x8x4xbf16, #tpu.memory_space<vmem>>, vector<1x8x4xbf16>
    %20 = vector.shape_cast %19 : vector<1x8x4xbf16> to vector<8x4xbf16>
    %cst_14 = arith.constant dense<0.000000e+00> : vector<8x256xf32>
    %21 = tpu.matmul %20, %18, %cst_14 {dimension_numbers = #tpu.dot_dimension_numbers<[1], [0], [0], [1], [0, 0, 1, 1], [], []>} : vector<8x4xbf16>, vector<4x256xbf16>, vector<8x256xf32> -> vector<8x256xf32>
    %22 = arith.addf %17, %21 : vector<8x256xf32>
    %23 = vector.extract_strided_slice %6 {offsets = [0, 10], sizes = [4, 256], strides = [1, 1]} : vector<4x512xbf16> to vector<4x256xbf16>
    %c3 = arith.constant 3 : index
    %c0_15 = arith.constant 0 : index
    %c0_16 = arith.constant 0 : index
    %24 = vector.load %arg4[%c3, %c0_15, %c0_16] : memref<27x8x4xbf16, #tpu.memory_space<vmem>>, vector<1x8x4xbf16>
    %25 = vector.shape_cast %24 : vector<1x8x4xbf16> to vector<8x4xbf16>
    %cst_17 = arith.constant dense<0.000000e+00> : vector<8x256xf32>
    %26 = tpu.matmul %25, %23, %cst_17 {dimension_numbers = #tpu.dot_dimension_numbers<[1], [0], [0], [1], [0, 0, 1, 1], [], []>} : vector<8x4xbf16>, vector<4x256xbf16>, vector<8x256xf32> -> vector<8x256xf32>
    %27 = arith.addf %22, %26 : vector<8x256xf32>
    %28 = vector.extract_strided_slice %6 {offsets = [0, 11], sizes = [4, 256], strides = [1, 1]} : vector<4x512xbf16> to vector<4x256xbf16>
    %c4 = arith.constant 4 : index
    %c0_18 = arith.constant 0 : index
    %c0_19 = arith.constant 0 : index
    %29 = vector.load %arg4[%c4, %c0_18, %c0_19] : memref<27x8x4xbf16, #tpu.memory_space<vmem>>, vector<1x8x4xbf16>
    %30 = vector.shape_cast %29 : vector<1x8x4xbf16> to vector<8x4xbf16>
    %cst_20 = arith.constant dense<0.000000e+00> : vector<8x256xf32>
    %31 = tpu.matmul %30, %28, %cst_20 {dimension_numbers = #tpu.dot_dimension_numbers<[1], [0], [0], [1], [0, 0, 1, 1], [], []>} : vector<8x4xbf16>, vector<4x256xbf16>, vector<8x256xf32> -> vector<8x256xf32>
    %32 = arith.addf %27, %31 : vector<8x256xf32>
    %33 = vector.extract_strided_slice %6 {offsets = [0, 12], sizes = [4, 256], strides = [1, 1]} : vector<4x512xbf16> to vector<4x256xbf16>
    %c5 = arith.constant 5 : index
    %c0_21 = arith.constant 0 : index
    %c0_22 = arith.constant 0 : index
    %34 = vector.load %arg4[%c5, %c0_21, %c0_22] : memref<27x8x4xbf16, #tpu.memory_space<vmem>>, vector<1x8x4xbf16>
    %35 = vector.shape_cast %34 : vector<1x8x4xbf16> to vector<8x4xbf16>
    %cst_23 = arith.constant dense<0.000000e+00> : vector<8x256xf32>
    %36 = tpu.matmul %35, %33, %cst_23 {dimension_numbers = #tpu.dot_dimension_numbers<[1], [0], [0], [1], [0, 0, 1, 1], [], []>} : vector<8x4xbf16>, vector<4x256xbf16>, vector<8x256xf32> -> vector<8x256xf32>
    %37 = arith.addf %32, %36 : vector<8x256xf32>
    %38 = vector.extract_strided_slice %6 {offsets = [0, 20], sizes = [4, 256], strides = [1, 1]} : vector<4x512xbf16> to vector<4x256xbf16>
    %c6 = arith.constant 6 : index
    %c0_24 = arith.constant 0 : index
    %c0_25 = arith.constant 0 : index
    %39 = vector.load %arg4[%c6, %c0_24, %c0_25] : memref<27x8x4xbf16, #tpu.memory_space<vmem>>, vector<1x8x4xbf16>
    %40 = vector.shape_cast %39 : vector<1x8x4xbf16> to vector<8x4xbf16>
    %cst_26 = arith.constant dense<0.000000e+00> : vector<8x256xf32>
    %41 = tpu.matmul %40, %38, %cst_26 {dimension_numbers = #tpu.dot_dimension_numbers<[1], [0], [0], [1], [0, 0, 1, 1], [], []>} : vector<8x4xbf16>, vector<4x256xbf16>, vector<8x256xf32> -> vector<8x256xf32>
    %42 = arith.addf %37, %41 : vector<8x256xf32>
    %43 = vector.extract_strided_slice %6 {offsets = [0, 21], sizes = [4, 256], strides = [1, 1]} : vector<4x512xbf16> to vector<4x256xbf16>
    %c7 = arith.constant 7 : index
    %c0_27 = arith.constant 0 : index
    %c0_28 = arith.constant 0 : index
    %44 = vector.load %arg4[%c7, %c0_27, %c0_28] : memref<27x8x4xbf16, #tpu.memory_space<vmem>>, vector<1x8x4xbf16>
    %45 = vector.shape_cast %44 : vector<1x8x4xbf16> to vector<8x4xbf16>
    %cst_29 = arith.constant dense<0.000000e+00> : vector<8x256xf32>
    %46 = tpu.matmul %45, %43, %cst_29 {dimension_numbers = #tpu.dot_dimension_numbers<[1], [0], [0], [1], [0, 0, 1, 1], [], []>} : vector<8x4xbf16>, vector<4x256xbf16>, vector<8x256xf32> -> vector<8x256xf32>
    %47 = arith.addf %42, %46 : vector<8x256xf32>
    %48 = vector.extract_strided_slice %6 {offsets = [0, 22], sizes = [4, 256], strides = [1, 1]} : vector<4x512xbf16> to vector<4x256xbf16>
    %c8 = arith.constant 8 : index
    %c0_30 = arith.constant 0 : index
    %c0_31 = arith.constant 0 : index
    %49 = vector.load %arg4[%c8, %c0_30, %c0_31] : memref<27x8x4xbf16, #tpu.memory_space<vmem>>, vector<1x8x4xbf16>
    %50 = vector.shape_cast %49 : vector<1x8x4xbf16> to vector<8x4xbf16>
    %cst_32 = arith.constant dense<0.000000e+00> : vector<8x256xf32>
    %51 = tpu.matmul %50, %48, %cst_32 {dimension_numbers = #tpu.dot_dimension_numbers<[1], [0], [0], [1], [0, 0, 1, 1], [], []>} : vector<8x4xbf16>, vector<4x256xbf16>, vector<8x256xf32> -> vector<8x256xf32>
    %52 = arith.addf %47, %51 : vector<8x256xf32>
    %53 = vector.extract_strided_slice %6 {offsets = [0, 100], sizes = [4, 256], strides = [1, 1]} : vector<4x512xbf16> to vector<4x256xbf16>
    %c9 = arith.constant 9 : index
    %c0_33 = arith.constant 0 : index
    %c0_34 = arith.constant 0 : index
    %54 = vector.load %arg4[%c9, %c0_33, %c0_34] : memref<27x8x4xbf16, #tpu.memory_space<vmem>>, vector<1x8x4xbf16>
    %55 = vector.shape_cast %54 : vector<1x8x4xbf16> to vector<8x4xbf16>
    %cst_35 = arith.constant dense<0.000000e+00> : vector<8x256xf32>
    %56 = tpu.matmul %55, %53, %cst_35 {dimension_numbers = #tpu.dot_dimension_numbers<[1], [0], [0], [1], [0, 0, 1, 1], [], []>} : vector<8x4xbf16>, vector<4x256xbf16>, vector<8x256xf32> -> vector<8x256xf32>
    %57 = arith.addf %52, %56 : vector<8x256xf32>
    %58 = vector.extract_strided_slice %6 {offsets = [0, 101], sizes = [4, 256], strides = [1, 1]} : vector<4x512xbf16> to vector<4x256xbf16>
    %c10 = arith.constant 10 : index
    %c0_36 = arith.constant 0 : index
    %c0_37 = arith.constant 0 : index
    %59 = vector.load %arg4[%c10, %c0_36, %c0_37] : memref<27x8x4xbf16, #tpu.memory_space<vmem>>, vector<1x8x4xbf16>
    %60 = vector.shape_cast %59 : vector<1x8x4xbf16> to vector<8x4xbf16>
    %cst_38 = arith.constant dense<0.000000e+00> : vector<8x256xf32>
    %61 = tpu.matmul %60, %58, %cst_38 {dimension_numbers = #tpu.dot_dimension_numbers<[1], [0], [0], [1], [0, 0, 1, 1], [], []>} : vector<8x4xbf16>, vector<4x256xbf16>, vector<8x256xf32> -> vector<8x256xf32>
    %62 = arith.addf %57, %61 : vector<8x256xf32>
    %63 = vector.extract_strided_slice %6 {offsets = [0, 102], sizes = [4, 256], strides = [1, 1]} : vector<4x512xbf16> to vector<4x256xbf16>
    %c11 = arith.constant 11 : index
    %c0_39 = arith.constant 0 : index
    %c0_40 = arith.constant 0 : index
    %64 = vector.load %arg4[%c11, %c0_39, %c0_40] : memref<27x8x4xbf16, #tpu.memory_space<vmem>>, vector<1x8x4xbf16>
    %65 = vector.shape_cast %64 : vector<1x8x4xbf16> to vector<8x4xbf16>
    %cst_41 = arith.constant dense<0.000000e+00> : vector<8x256xf32>
    %66 = tpu.matmul %65, %63, %cst_41 {dimension_numbers = #tpu.dot_dimension_numbers<[1], [0], [0], [1], [0, 0, 1, 1], [], []>} : vector<8x4xbf16>, vector<4x256xbf16>, vector<8x256xf32> -> vector<8x256xf32>
    %67 = arith.addf %62, %66 : vector<8x256xf32>
    %68 = vector.extract_strided_slice %6 {offsets = [0, 110], sizes = [4, 256], strides = [1, 1]} : vector<4x512xbf16> to vector<4x256xbf16>
    %c12 = arith.constant 12 : index
    %c0_42 = arith.constant 0 : index
    %c0_43 = arith.constant 0 : index
    %69 = vector.load %arg4[%c12, %c0_42, %c0_43] : memref<27x8x4xbf16, #tpu.memory_space<vmem>>, vector<1x8x4xbf16>
    %70 = vector.shape_cast %69 : vector<1x8x4xbf16> to vector<8x4xbf16>
    %cst_44 = arith.constant dense<0.000000e+00> : vector<8x256xf32>
    %71 = tpu.matmul %70, %68, %cst_44 {dimension_numbers = #tpu.dot_dimension_numbers<[1], [0], [0], [1], [0, 0, 1, 1], [], []>} : vector<8x4xbf16>, vector<4x256xbf16>, vector<8x256xf32> -> vector<8x256xf32>
    %72 = arith.addf %67, %71 : vector<8x256xf32>
    %73 = vector.extract_strided_slice %6 {offsets = [0, 111], sizes = [4, 256], strides = [1, 1]} : vector<4x512xbf16> to vector<4x256xbf16>
    %c13 = arith.constant 13 : index
    %c0_45 = arith.constant 0 : index
    %c0_46 = arith.constant 0 : index
    %74 = vector.load %arg4[%c13, %c0_45, %c0_46] : memref<27x8x4xbf16, #tpu.memory_space<vmem>>, vector<1x8x4xbf16>
    %75 = vector.shape_cast %74 : vector<1x8x4xbf16> to vector<8x4xbf16>
    %cst_47 = arith.constant dense<0.000000e+00> : vector<8x256xf32>
    %76 = tpu.matmul %75, %73, %cst_47 {dimension_numbers = #tpu.dot_dimension_numbers<[1], [0], [0], [1], [0, 0, 1, 1], [], []>} : vector<8x4xbf16>, vector<4x256xbf16>, vector<8x256xf32> -> vector<8x256xf32>
    %77 = arith.addf %72, %76 : vector<8x256xf32>
    %78 = vector.extract_strided_slice %6 {offsets = [0, 112], sizes = [4, 256], strides = [1, 1]} : vector<4x512xbf16> to vector<4x256xbf16>
    %c14 = arith.constant 14 : index
    %c0_48 = arith.constant 0 : index
    %c0_49 = arith.constant 0 : index
    %79 = vector.load %arg4[%c14, %c0_48, %c0_49] : memref<27x8x4xbf16, #tpu.memory_space<vmem>>, vector<1x8x4xbf16>
    %80 = vector.shape_cast %79 : vector<1x8x4xbf16> to vector<8x4xbf16>
    %cst_50 = arith.constant dense<0.000000e+00> : vector<8x256xf32>
    %81 = tpu.matmul %80, %78, %cst_50 {dimension_numbers = #tpu.dot_dimension_numbers<[1], [0], [0], [1], [0, 0, 1, 1], [], []>} : vector<8x4xbf16>, vector<4x256xbf16>, vector<8x256xf32> -> vector<8x256xf32>
    %82 = arith.addf %77, %81 : vector<8x256xf32>
    %83 = vector.extract_strided_slice %6 {offsets = [0, 120], sizes = [4, 256], strides = [1, 1]} : vector<4x512xbf16> to vector<4x256xbf16>
    %c15 = arith.constant 15 : index
    %c0_51 = arith.constant 0 : index
    %c0_52 = arith.constant 0 : index
    %84 = vector.load %arg4[%c15, %c0_51, %c0_52] : memref<27x8x4xbf16, #tpu.memory_space<vmem>>, vector<1x8x4xbf16>
    %85 = vector.shape_cast %84 : vector<1x8x4xbf16> to vector<8x4xbf16>
    %cst_53 = arith.constant dense<0.000000e+00> : vector<8x256xf32>
    %86 = tpu.matmul %85, %83, %cst_53 {dimension_numbers = #tpu.dot_dimension_numbers<[1], [0], [0], [1], [0, 0, 1, 1], [], []>} : vector<8x4xbf16>, vector<4x256xbf16>, vector<8x256xf32> -> vector<8x256xf32>
    %87 = arith.addf %82, %86 : vector<8x256xf32>
    %88 = vector.extract_strided_slice %6 {offsets = [0, 121], sizes = [4, 256], strides = [1, 1]} : vector<4x512xbf16> to vector<4x256xbf16>
    %c16 = arith.constant 16 : index
    %c0_54 = arith.constant 0 : index
    %c0_55 = arith.constant 0 : index
    %89 = vector.load %arg4[%c16, %c0_54, %c0_55] : memref<27x8x4xbf16, #tpu.memory_space<vmem>>, vector<1x8x4xbf16>
    %90 = vector.shape_cast %89 : vector<1x8x4xbf16> to vector<8x4xbf16>
    %cst_56 = arith.constant dense<0.000000e+00> : vector<8x256xf32>
    %91 = tpu.matmul %90, %88, %cst_56 {dimension_numbers = #tpu.dot_dimension_numbers<[1], [0], [0], [1], [0, 0, 1, 1], [], []>} : vector<8x4xbf16>, vector<4x256xbf16>, vector<8x256xf32> -> vector<8x256xf32>
    %92 = arith.addf %87, %91 : vector<8x256xf32>
    %93 = vector.extract_strided_slice %6 {offsets = [0, 122], sizes = [4, 256], strides = [1, 1]} : vector<4x512xbf16> to vector<4x256xbf16>
    %c17 = arith.constant 17 : index
    %c0_57 = arith.constant 0 : index
    %c0_58 = arith.constant 0 : index
    %94 = vector.load %arg4[%c17, %c0_57, %c0_58] : memref<27x8x4xbf16, #tpu.memory_space<vmem>>, vector<1x8x4xbf16>
    %95 = vector.shape_cast %94 : vector<1x8x4xbf16> to vector<8x4xbf16>
    %cst_59 = arith.constant dense<0.000000e+00> : vector<8x256xf32>
    %96 = tpu.matmul %95, %93, %cst_59 {dimension_numbers = #tpu.dot_dimension_numbers<[1], [0], [0], [1], [0, 0, 1, 1], [], []>} : vector<8x4xbf16>, vector<4x256xbf16>, vector<8x256xf32> -> vector<8x256xf32>
    %97 = arith.addf %92, %96 : vector<8x256xf32>
    %98 = vector.extract_strided_slice %6 {offsets = [0, 200], sizes = [4, 256], strides = [1, 1]} : vector<4x512xbf16> to vector<4x256xbf16>
    %c18 = arith.constant 18 : index
    %c0_60 = arith.constant 0 : index
    %c0_61 = arith.constant 0 : index
    %99 = vector.load %arg4[%c18, %c0_60, %c0_61] : memref<27x8x4xbf16, #tpu.memory_space<vmem>>, vector<1x8x4xbf16>
    %100 = vector.shape_cast %99 : vector<1x8x4xbf16> to vector<8x4xbf16>
    %cst_62 = arith.constant dense<0.000000e+00> : vector<8x256xf32>
    %101 = tpu.matmul %100, %98, %cst_62 {dimension_numbers = #tpu.dot_dimension_numbers<[1], [0], [0], [1], [0, 0, 1, 1], [], []>} : vector<8x4xbf16>, vector<4x256xbf16>, vector<8x256xf32> -> vector<8x256xf32>
    %102 = arith.addf %97, %101 : vector<8x256xf32>
    %103 = vector.extract_strided_slice %6 {offsets = [0, 201], sizes = [4, 256], strides = [1, 1]} : vector<4x512xbf16> to vector<4x256xbf16>
    %c19 = arith.constant 19 : index
    %c0_63 = arith.constant 0 : index
    %c0_64 = arith.constant 0 : index
    %104 = vector.load %arg4[%c19, %c0_63, %c0_64] : memref<27x8x4xbf16, #tpu.memory_space<vmem>>, vector<1x8x4xbf16>
    %105 = vector.shape_cast %104 : vector<1x8x4xbf16> to vector<8x4xbf16>
    %cst_65 = arith.constant dense<0.000000e+00> : vector<8x256xf32>
    %106 = tpu.matmul %105, %103, %cst_65 {dimension_numbers = #tpu.dot_dimension_numbers<[1], [0], [0], [1], [0, 0, 1, 1], [], []>} : vector<8x4xbf16>, vector<4x256xbf16>, vector<8x256xf32> -> vector<8x256xf32>
    %107 = arith.addf %102, %106 : vector<8x256xf32>
    %108 = vector.extract_strided_slice %6 {offsets = [0, 202], sizes = [4, 256], strides = [1, 1]} : vector<4x512xbf16> to vector<4x256xbf16>
    %c20 = arith.constant 20 : index
    %c0_66 = arith.constant 0 : index
    %c0_67 = arith.constant 0 : index
    %109 = vector.load %arg4[%c20, %c0_66, %c0_67] : memref<27x8x4xbf16, #tpu.memory_space<vmem>>, vector<1x8x4xbf16>
    %110 = vector.shape_cast %109 : vector<1x8x4xbf16> to vector<8x4xbf16>
    %cst_68 = arith.constant dense<0.000000e+00> : vector<8x256xf32>
    %111 = tpu.matmul %110, %108, %cst_68 {dimension_numbers = #tpu.dot_dimension_numbers<[1], [0], [0], [1], [0, 0, 1, 1], [], []>} : vector<8x4xbf16>, vector<4x256xbf16>, vector<8x256xf32> -> vector<8x256xf32>
    %112 = arith.addf %107, %111 : vector<8x256xf32>
    %113 = vector.extract_strided_slice %6 {offsets = [0, 210], sizes = [4, 256], strides = [1, 1]} : vector<4x512xbf16> to vector<4x256xbf16>
    %c21 = arith.constant 21 : index
    %c0_69 = arith.constant 0 : index
    %c0_70 = arith.constant 0 : index
    %114 = vector.load %arg4[%c21, %c0_69, %c0_70] : memref<27x8x4xbf16, #tpu.memory_space<vmem>>, vector<1x8x4xbf16>
    %115 = vector.shape_cast %114 : vector<1x8x4xbf16> to vector<8x4xbf16>
    %cst_71 = arith.constant dense<0.000000e+00> : vector<8x256xf32>
    %116 = tpu.matmul %115, %113, %cst_71 {dimension_numbers = #tpu.dot_dimension_numbers<[1], [0], [0], [1], [0, 0, 1, 1], [], []>} : vector<8x4xbf16>, vector<4x256xbf16>, vector<8x256xf32> -> vector<8x256xf32>
    %117 = arith.addf %112, %116 : vector<8x256xf32>
    %118 = vector.extract_strided_slice %6 {offsets = [0, 211], sizes = [4, 256], strides = [1, 1]} : vector<4x512xbf16> to vector<4x256xbf16>
    %c22 = arith.constant 22 : index
    %c0_72 = arith.constant 0 : index
    %c0_73 = arith.constant 0 : index
    %119 = vector.load %arg4[%c22, %c0_72, %c0_73] : memref<27x8x4xbf16, #tpu.memory_space<vmem>>, vector<1x8x4xbf16>
    %120 = vector.shape_cast %119 : vector<1x8x4xbf16> to vector<8x4xbf16>
    %cst_74 = arith.constant dense<0.000000e+00> : vector<8x256xf32>
    %121 = tpu.matmul %120, %118, %cst_74 {dimension_numbers = #tpu.dot_dimension_numbers<[1], [0], [0], [1], [0, 0, 1, 1], [], []>} : vector<8x4xbf16>, vector<4x256xbf16>, vector<8x256xf32> -> vector<8x256xf32>
    %122 = arith.addf %117, %121 : vector<8x256xf32>
    %123 = vector.extract_strided_slice %6 {offsets = [0, 212], sizes = [4, 256], strides = [1, 1]} : vector<4x512xbf16> to vector<4x256xbf16>
    %c23 = arith.constant 23 : index
    %c0_75 = arith.constant 0 : index
    %c0_76 = arith.constant 0 : index
    %124 = vector.load %arg4[%c23, %c0_75, %c0_76] : memref<27x8x4xbf16, #tpu.memory_space<vmem>>, vector<1x8x4xbf16>
    %125 = vector.shape_cast %124 : vector<1x8x4xbf16> to vector<8x4xbf16>
    %cst_77 = arith.constant dense<0.000000e+00> : vector<8x256xf32>
    %126 = tpu.matmul %125, %123, %cst_77 {dimension_numbers = #tpu.dot_dimension_numbers<[1], [0], [0], [1], [0, 0, 1, 1], [], []>} : vector<8x4xbf16>, vector<4x256xbf16>, vector<8x256xf32> -> vector<8x256xf32>
    %127 = arith.addf %122, %126 : vector<8x256xf32>
    %128 = vector.extract_strided_slice %6 {offsets = [0, 220], sizes = [4, 256], strides = [1, 1]} : vector<4x512xbf16> to vector<4x256xbf16>
    %c24 = arith.constant 24 : index
    %c0_78 = arith.constant 0 : index
    %c0_79 = arith.constant 0 : index
    %129 = vector.load %arg4[%c24, %c0_78, %c0_79] : memref<27x8x4xbf16, #tpu.memory_space<vmem>>, vector<1x8x4xbf16>
    %130 = vector.shape_cast %129 : vector<1x8x4xbf16> to vector<8x4xbf16>
    %cst_80 = arith.constant dense<0.000000e+00> : vector<8x256xf32>
    %131 = tpu.matmul %130, %128, %cst_80 {dimension_numbers = #tpu.dot_dimension_numbers<[1], [0], [0], [1], [0, 0, 1, 1], [], []>} : vector<8x4xbf16>, vector<4x256xbf16>, vector<8x256xf32> -> vector<8x256xf32>
    %132 = arith.addf %127, %131 : vector<8x256xf32>
    %133 = vector.extract_strided_slice %6 {offsets = [0, 221], sizes = [4, 256], strides = [1, 1]} : vector<4x512xbf16> to vector<4x256xbf16>
    %c25 = arith.constant 25 : index
    %c0_81 = arith.constant 0 : index
    %c0_82 = arith.constant 0 : index
    %134 = vector.load %arg4[%c25, %c0_81, %c0_82] : memref<27x8x4xbf16, #tpu.memory_space<vmem>>, vector<1x8x4xbf16>
    %135 = vector.shape_cast %134 : vector<1x8x4xbf16> to vector<8x4xbf16>
    %cst_83 = arith.constant dense<0.000000e+00> : vector<8x256xf32>
    %136 = tpu.matmul %135, %133, %cst_83 {dimension_numbers = #tpu.dot_dimension_numbers<[1], [0], [0], [1], [0, 0, 1, 1], [], []>} : vector<8x4xbf16>, vector<4x256xbf16>, vector<8x256xf32> -> vector<8x256xf32>
    %137 = arith.addf %132, %136 : vector<8x256xf32>
    %138 = vector.extract_strided_slice %6 {offsets = [0, 222], sizes = [4, 256], strides = [1, 1]} : vector<4x512xbf16> to vector<4x256xbf16>
    %c26 = arith.constant 26 : index
    %c0_84 = arith.constant 0 : index
    %c0_85 = arith.constant 0 : index
    %139 = vector.load %arg4[%c26, %c0_84, %c0_85] : memref<27x8x4xbf16, #tpu.memory_space<vmem>>, vector<1x8x4xbf16>
    %140 = vector.shape_cast %139 : vector<1x8x4xbf16> to vector<8x4xbf16>
    %cst_86 = arith.constant dense<0.000000e+00> : vector<8x256xf32>
    %141 = tpu.matmul %140, %138, %cst_86 {dimension_numbers = #tpu.dot_dimension_numbers<[1], [0], [0], [1], [0, 0, 1, 1], [], []>} : vector<8x4xbf16>, vector<4x256xbf16>, vector<8x256xf32> -> vector<8x256xf32>
    %142 = arith.addf %137, %141 : vector<8x256xf32>
    %c0_87 = arith.constant 0 : index
    %c0_88 = arith.constant 0 : index
    %143 = vector.load %arg5[%c0_87, %c0_88] : memref<8x1xf32, #tpu.memory_space<vmem>>, vector<8x1xf32>
    %144 = vector.broadcast %143 : vector<8x1xf32> to vector<8x256xf32>
    %145 = arith.addf %142, %144 : vector<8x256xf32>
    %c0_89 = arith.constant 0 : index
    %c0_90 = arith.constant 0 : index
    %c0_91 = arith.constant 0 : index
    %146 = vector.load %arg6[%c0_89, %c0_90, %c0_91] : memref<1x8x256xf32, #tpu.memory_space<vmem>>, vector<1x8x256xf32>
    %147 = vector.shape_cast %146 : vector<1x8x256xf32> to vector<8x256xf32>
    %148 = vector.shape_cast %145 : vector<8x256xf32> to vector<1x8x256xf32>
    tpu.vector_store %arg6[%c0_89, %c0_90, %c0_91], %148 {strides = array<i32>} : memref<1x8x256xf32, #tpu.memory_space<vmem>>, vector<1x8x256xf32>,
    return
  }
  func.func @transform_0(%arg0: i32, %arg1: i32) -> (i32, i32, i32) {
    %c0_i32 = arith.constant 0 : i32
    %c0_i32_0 = arith.constant 0 : i32
    return %arg0, %c0_i32, %arg1 : i32, i32, i32
  }
  func.func @transform_1(%arg0: i32, %arg1: i32) -> (i32, i32, i32) {
    %c1_i32 = arith.constant 1 : i32
    %0 = arith.addi %arg1, %c1_i32 : i32
    %c0_i32 = arith.constant 0 : i32
    %c0_i32_0 = arith.constant 0 : i32
    return %arg0, %c0_i32, %0 : i32, i32, i32
  }
  func.func @transform_2(%arg0: i32, %arg1: i32) -> (i32, i32, i32) {
    %c0_i32 = arith.constant 0 : i32
    %c0_i32_0 = arith.constant 0 : i32
    %c0_i32_1 = arith.constant 0 : i32
    %c0_i32_2 = arith.constant 0 : i32
    return %c0_i32, %c0_i32_0, %c0_i32_1 : i32, i32, i32
  }
  func.func @transform_3(%arg0: i32, %arg1: i32) -> (i32, i32) {
    %c0_i32 = arith.constant 0 : i32
    %c0_i32_0 = arith.constant 0 : i32
    %c0_i32_1 = arith.constant 0 : i32
    return %c0_i32, %c0_i32_0 : i32, i32
  }
  func.func @transform_4(%arg0: i32, %arg1: i32) -> (i32, i32, i32) {
    %c0_i32 = arith.constant 0 : i32
    %c0_i32_0 = arith.constant 0 : i32
    return %arg0, %c0_i32, %arg1 : i32, i32, i32
  }
}

module attributes {stable_mosaic.version = 11 : i64} {
  func.func @_bn_relu_kernel(%arg0: i32, %arg1: i32, %arg2: memref<1x8x512xf32, #tpu.memory_space<vmem>>, %arg3: memref<1x8x1xf32, #tpu.memory_space<vmem>>, %arg4: memref<1x8x1xf32, #tpu.memory_space<vmem>>, %arg5: memref<1x8x512xf32, #tpu.memory_space<vmem>>) attributes {dimension_semantics = [#tpu.dimension_semantics<parallel>, #tpu.dimension_semantics<parallel>], iteration_bounds = array<i64: 6, 1>, scalar_prefetch = 0 : i64, scratch_operands = 0 : i64, tpu.core_type = #tpu.core_type<tc>, window_params = [{transform_indices = @transform_0, window_bounds = array<i64: 1, 8, 512>}, {transform_indices = @transform_1, window_bounds = array<i64: 1, 8, 1>}, {transform_indices = @transform_2, window_bounds = array<i64: 1, 8, 1>}, {transform_indices = @transform_3, window_bounds = array<i64: 1, 8, 512>}]} {
    %c0 = arith.constant 0 : index
    %c0_0 = arith.constant 0 : index
    %c0_1 = arith.constant 0 : index
    %0 = vector.load %arg2[%c0, %c0_0, %c0_1] : memref<1x8x512xf32, #tpu.memory_space<vmem>>, vector<1x8x512xf32>
    %c0_2 = arith.constant 0 : index
    %c0_3 = arith.constant 0 : index
    %c0_4 = arith.constant 0 : index
    %1 = vector.load %arg3[%c0_2, %c0_3, %c0_4] : memref<1x8x1xf32, #tpu.memory_space<vmem>>, vector<1x8x1xf32>
    %2 = vector.broadcast %1 : vector<1x8x1xf32> to vector<1x8x512xf32>
    %3 = arith.mulf %0, %2 : vector<1x8x512xf32>
    %c0_5 = arith.constant 0 : index
    %c0_6 = arith.constant 0 : index
    %c0_7 = arith.constant 0 : index
    %4 = vector.load %arg4[%c0_5, %c0_6, %c0_7] : memref<1x8x1xf32, #tpu.memory_space<vmem>>, vector<1x8x1xf32>
    %5 = vector.broadcast %4 : vector<1x8x1xf32> to vector<1x8x512xf32>
    %6 = arith.addf %3, %5 : vector<1x8x512xf32>
    %cst = arith.constant 0.000000e+00 : f32
    %7 = vector.broadcast %cst : f32 to vector<1x8x512xf32>
    %8 = arith.maximumf %6, %7 : vector<1x8x512xf32>
    %c0_8 = arith.constant 0 : index
    %c0_9 = arith.constant 0 : index
    %c0_10 = arith.constant 0 : index
    %9 = vector.load %arg5[%c0_8, %c0_9, %c0_10] : memref<1x8x512xf32, #tpu.memory_space<vmem>>, vector<1x8x512xf32>
    tpu.vector_store %arg5[%c0_8, %c0_9, %c0_10], %8 {strides = array<i32>} : memref<1x8x512xf32, #tpu.memory_space<vmem>>, vector<1x8x512xf32>,
    return
  }
  func.func @transform_0(%arg0: i32, %arg1: i32) -> (i32, i32, i32) {
    %c0_i32 = arith.constant 0 : i32
    %c0_i32_0 = arith.constant 0 : i32
    return %arg0, %c0_i32, %arg1 : i32, i32, i32
  }
  func.func @transform_1(%arg0: i32, %arg1: i32) -> (i32, i32, i32) {
    %c0_i32 = arith.constant 0 : i32
    %c0_i32_0 = arith.constant 0 : i32
    %c0_i32_1 = arith.constant 0 : i32
    return %arg0, %c0_i32, %c0_i32_0 : i32, i32, i32
  }
  func.func @transform_2(%arg0: i32, %arg1: i32) -> (i32, i32, i32) {
    %c0_i32 = arith.constant 0 : i32
    %c0_i32_0 = arith.constant 0 : i32
    %c0_i32_1 = arith.constant 0 : i32
    return %arg0, %c0_i32, %c0_i32_0 : i32, i32, i32
  }
  func.func @transform_3(%arg0: i32, %arg1: i32) -> (i32, i32, i32) {
    %c0_i32 = arith.constant 0 : i32
    %c0_i32_0 = arith.constant 0 : i32
    return %arg0, %c0_i32, %arg1 : i32, i32, i32
  }
}

module attributes {stable_mosaic.version = 11 : i64} {
  func.func @kernel(%arg0: i32, %arg1: memref<1x8x512xf32, #tpu.memory_space<vmem>>, %arg2: memref<1x8x512xf32, #tpu.memory_space<vmem>>, %arg3: memref<1x256xf32, #tpu.memory_space<vmem>>, %arg4: memref<27x16x16xbf16, #tpu.memory_space<vmem>>, %arg5: memref<16x1xf32, #tpu.memory_space<vmem>>, %arg6: memref<27x8x16xbf16, #tpu.memory_space<vmem>>, %arg7: memref<8x1xf32, #tpu.memory_space<vmem>>, %arg8: memref<1x8x512xf32, #tpu.memory_space<vmem>>) attributes {dimension_semantics = [#tpu.dimension_semantics<parallel>], iteration_bounds = array<i64: 2>, scalar_prefetch = 0 : i64, scratch_operands = 0 : i64, tpu.core_type = #tpu.core_type<tc>, window_params = [{transform_indices = @transform_0, window_bounds = array<i64: 1, 8, 512>}, {transform_indices = @transform_1, window_bounds = array<i64: 1, 8, 512>}, {pipeline_mode = #tpu.pipeline_mode<synchronous>, transform_indices = @transform_2, window_bounds = array<i64: 1, 256>}, {pipeline_mode = #tpu.pipeline_mode<synchronous>, transform_indices = @transform_3, window_bounds = array<i64: 27, 16, 16>}, {pipeline_mode = #tpu.pipeline_mode<synchronous>, transform_indices = @transform_4, window_bounds = array<i64: 16, 1>}, {pipeline_mode = #tpu.pipeline_mode<synchronous>, transform_indices = @transform_5, window_bounds = array<i64: 27, 8, 16>}, {pipeline_mode = #tpu.pipeline_mode<synchronous>, transform_indices = @transform_6, window_bounds = array<i64: 8, 1>}, {transform_indices = @transform_7, window_bounds = array<i64: 1, 8, 512>}]} {
    %c0 = arith.constant 0 : index
    %c0_0 = arith.constant 0 : index
    %c0_1 = arith.constant 0 : index
    %0 = vector.load %arg1[%c0, %c0_0, %c0_1] : memref<1x8x512xf32, #tpu.memory_space<vmem>>, vector<1x8x512xf32>
    %1 = vector.shape_cast %0 : vector<1x8x512xf32> to vector<8x512xf32>
    %c0_2 = arith.constant 0 : index
    %c0_3 = arith.constant 0 : index
    %c0_4 = arith.constant 0 : index
    %2 = vector.load %arg2[%c0_2, %c0_3, %c0_4] : memref<1x8x512xf32, #tpu.memory_space<vmem>>, vector<1x8x512xf32>
    %3 = vector.shape_cast %2 : vector<1x8x512xf32> to vector<8x512xf32>
    %c0_5 = arith.constant 0 : index
    %c0_6 = arith.constant 0 : index
    %4 = vector.load %arg3[%c0_5, %c0_6] : memref<1x256xf32, #tpu.memory_space<vmem>>, vector<1x256xf32>
    %5 = arith.truncf %1 : vector<8x512xf32> to vector<8x512xbf16>
    %6 = arith.truncf %3 : vector<8x512xf32> to vector<8x512xbf16>
    %7 = tpu.concatenate %5, %6 in 0 : vector<8x512xbf16>, vector<8x512xbf16> -> vector<16x512xbf16>
    %cst = arith.constant 0.000000e+00 : f32
    %8 = vector.broadcast %cst : f32 to vector<16x256xf32>
    %c0_7 = arith.constant 0 : index
    %c0_8 = arith.constant 0 : index
    %c0_9 = arith.constant 0 : index
    %9 = vector.load %arg4[%c0_7, %c0_8, %c0_9] : memref<27x16x16xbf16, #tpu.memory_space<vmem>>, vector<1x16x16xbf16>
    %10 = vector.shape_cast %9 : vector<1x16x16xbf16> to vector<16x16xbf16>
    %11 = vector.extract_strided_slice %7 {offsets = [0, 85], sizes = [16, 256], strides = [1, 1]} : vector<16x512xbf16> to vector<16x256xbf16>
    %cst_10 = arith.constant dense<0.000000e+00> : vector<16x256xf32>
    %12 = tpu.matmul %10, %11, %cst_10 {dimension_numbers = #tpu.dot_dimension_numbers<[1], [0], [0], [1], [0, 0, 1, 1], [], []>} : vector<16x16xbf16>, vector<16x256xbf16>, vector<16x256xf32> -> vector<16x256xf32>
    %13 = arith.addf %8, %12 : vector<16x256xf32>
    %c1 = arith.constant 1 : index
    %c0_11 = arith.constant 0 : index
    %c0_12 = arith.constant 0 : index
    %14 = vector.load %arg4[%c1, %c0_11, %c0_12] : memref<27x16x16xbf16, #tpu.memory_space<vmem>>, vector<1x16x16xbf16>
    %15 = vector.shape_cast %14 : vector<1x16x16xbf16> to vector<16x16xbf16>
    %16 = vector.extract_strided_slice %7 {offsets = [0, 86], sizes = [16, 256], strides = [1, 1]} : vector<16x512xbf16> to vector<16x256xbf16>
    %cst_13 = arith.constant dense<0.000000e+00> : vector<16x256xf32>
    %17 = tpu.matmul %15, %16, %cst_13 {dimension_numbers = #tpu.dot_dimension_numbers<[1], [0], [0], [1], [0, 0, 1, 1], [], []>} : vector<16x16xbf16>, vector<16x256xbf16>, vector<16x256xf32> -> vector<16x256xf32>
    %18 = arith.addf %13, %17 : vector<16x256xf32>
    %c2 = arith.constant 2 : index
    %c0_14 = arith.constant 0 : index
    %c0_15 = arith.constant 0 : index
    %19 = vector.load %arg4[%c2, %c0_14, %c0_15] : memref<27x16x16xbf16, #tpu.memory_space<vmem>>, vector<1x16x16xbf16>
    %20 = vector.shape_cast %19 : vector<1x16x16xbf16> to vector<16x16xbf16>
    %21 = vector.extract_strided_slice %7 {offsets = [0, 87], sizes = [16, 256], strides = [1, 1]} : vector<16x512xbf16> to vector<16x256xbf16>
    %cst_16 = arith.constant dense<0.000000e+00> : vector<16x256xf32>
    %22 = tpu.matmul %20, %21, %cst_16 {dimension_numbers = #tpu.dot_dimension_numbers<[1], [0], [0], [1], [0, 0, 1, 1], [], []>} : vector<16x16xbf16>, vector<16x256xbf16>, vector<16x256xf32> -> vector<16x256xf32>
    %23 = arith.addf %18, %22 : vector<16x256xf32>
    %c3 = arith.constant 3 : index
    %c0_17 = arith.constant 0 : index
    %c0_18 = arith.constant 0 : index
    %24 = vector.load %arg4[%c3, %c0_17, %c0_18] : memref<27x16x16xbf16, #tpu.memory_space<vmem>>, vector<1x16x16xbf16>
    %25 = vector.shape_cast %24 : vector<1x16x16xbf16> to vector<16x16xbf16>
    %26 = vector.extract_strided_slice %7 {offsets = [0, 91], sizes = [16, 256], strides = [1, 1]} : vector<16x512xbf16> to vector<16x256xbf16>
    %cst_19 = arith.constant dense<0.000000e+00> : vector<16x256xf32>
    %27 = tpu.matmul %25, %26, %cst_19 {dimension_numbers = #tpu.dot_dimension_numbers<[1], [0], [0], [1], [0, 0, 1, 1], [], []>} : vector<16x16xbf16>, vector<16x256xbf16>, vector<16x256xf32> -> vector<16x256xf32>
    %28 = arith.addf %23, %27 : vector<16x256xf32>
    %c4 = arith.constant 4 : index
    %c0_20 = arith.constant 0 : index
    %c0_21 = arith.constant 0 : index
    %29 = vector.load %arg4[%c4, %c0_20, %c0_21] : memref<27x16x16xbf16, #tpu.memory_space<vmem>>, vector<1x16x16xbf16>
    %30 = vector.shape_cast %29 : vector<1x16x16xbf16> to vector<16x16xbf16>
    %31 = vector.extract_strided_slice %7 {offsets = [0, 92], sizes = [16, 256], strides = [1, 1]} : vector<16x512xbf16> to vector<16x256xbf16>
    %cst_22 = arith.constant dense<0.000000e+00> : vector<16x256xf32>
    %32 = tpu.matmul %30, %31, %cst_22 {dimension_numbers = #tpu.dot_dimension_numbers<[1], [0], [0], [1], [0, 0, 1, 1], [], []>} : vector<16x16xbf16>, vector<16x256xbf16>, vector<16x256xf32> -> vector<16x256xf32>
    %33 = arith.addf %28, %32 : vector<16x256xf32>
    %c5 = arith.constant 5 : index
    %c0_23 = arith.constant 0 : index
    %c0_24 = arith.constant 0 : index
    %34 = vector.load %arg4[%c5, %c0_23, %c0_24] : memref<27x16x16xbf16, #tpu.memory_space<vmem>>, vector<1x16x16xbf16>
    %35 = vector.shape_cast %34 : vector<1x16x16xbf16> to vector<16x16xbf16>
    %36 = vector.extract_strided_slice %7 {offsets = [0, 93], sizes = [16, 256], strides = [1, 1]} : vector<16x512xbf16> to vector<16x256xbf16>
    %cst_25 = arith.constant dense<0.000000e+00> : vector<16x256xf32>
    %37 = tpu.matmul %35, %36, %cst_25 {dimension_numbers = #tpu.dot_dimension_numbers<[1], [0], [0], [1], [0, 0, 1, 1], [], []>} : vector<16x16xbf16>, vector<16x256xbf16>, vector<16x256xf32> -> vector<16x256xf32>
    %38 = arith.addf %33, %37 : vector<16x256xf32>
    %c6 = arith.constant 6 : index
    %c0_26 = arith.constant 0 : index
    %c0_27 = arith.constant 0 : index
    %39 = vector.load %arg4[%c6, %c0_26, %c0_27] : memref<27x16x16xbf16, #tpu.memory_space<vmem>>, vector<1x16x16xbf16>
    %40 = vector.shape_cast %39 : vector<1x16x16xbf16> to vector<16x16xbf16>
    %41 = vector.extract_strided_slice %7 {offsets = [0, 97], sizes = [16, 256], strides = [1, 1]} : vector<16x512xbf16> to vector<16x256xbf16>
    %cst_28 = arith.constant dense<0.000000e+00> : vector<16x256xf32>
    %42 = tpu.matmul %40, %41, %cst_28 {dimension_numbers = #tpu.dot_dimension_numbers<[1], [0], [0], [1], [0, 0, 1, 1], [], []>} : vector<16x16xbf16>, vector<16x256xbf16>, vector<16x256xf32> -> vector<16x256xf32>
    %43 = arith.addf %38, %42 : vector<16x256xf32>
    %c7 = arith.constant 7 : index
    %c0_29 = arith.constant 0 : index
    %c0_30 = arith.constant 0 : index
    %44 = vector.load %arg4[%c7, %c0_29, %c0_30] : memref<27x16x16xbf16, #tpu.memory_space<vmem>>, vector<1x16x16xbf16>
    %45 = vector.shape_cast %44 : vector<1x16x16xbf16> to vector<16x16xbf16>
    %46 = vector.extract_strided_slice %7 {offsets = [0, 98], sizes = [16, 256], strides = [1, 1]} : vector<16x512xbf16> to vector<16x256xbf16>
    %cst_31 = arith.constant dense<0.000000e+00> : vector<16x256xf32>
    %47 = tpu.matmul %45, %46, %cst_31 {dimension_numbers = #tpu.dot_dimension_numbers<[1], [0], [0], [1], [0, 0, 1, 1], [], []>} : vector<16x16xbf16>, vector<16x256xbf16>, vector<16x256xf32> -> vector<16x256xf32>
    %48 = arith.addf %43, %47 : vector<16x256xf32>
    %c8 = arith.constant 8 : index
    %c0_32 = arith.constant 0 : index
    %c0_33 = arith.constant 0 : index
    %49 = vector.load %arg4[%c8, %c0_32, %c0_33] : memref<27x16x16xbf16, #tpu.memory_space<vmem>>, vector<1x16x16xbf16>
    %50 = vector.shape_cast %49 : vector<1x16x16xbf16> to vector<16x16xbf16>
    %51 = vector.extract_strided_slice %7 {offsets = [0, 99], sizes = [16, 256], strides = [1, 1]} : vector<16x512xbf16> to vector<16x256xbf16>
    %cst_34 = arith.constant dense<0.000000e+00> : vector<16x256xf32>
    %52 = tpu.matmul %50, %51, %cst_34 {dimension_numbers = #tpu.dot_dimension_numbers<[1], [0], [0], [1], [0, 0, 1, 1], [], []>} : vector<16x16xbf16>, vector<16x256xbf16>, vector<16x256xf32> -> vector<16x256xf32>
    %53 = arith.addf %48, %52 : vector<16x256xf32>
    %c9 = arith.constant 9 : index
    %c0_35 = arith.constant 0 : index
    %c0_36 = arith.constant 0 : index
    %54 = vector.load %arg4[%c9, %c0_35, %c0_36] : memref<27x16x16xbf16, #tpu.memory_space<vmem>>, vector<1x16x16xbf16>
    %55 = vector.shape_cast %54 : vector<1x16x16xbf16> to vector<16x16xbf16>
    %56 = vector.extract_strided_slice %7 {offsets = [0, 121], sizes = [16, 256], strides = [1, 1]} : vector<16x512xbf16> to vector<16x256xbf16>
    %cst_37 = arith.constant dense<0.000000e+00> : vector<16x256xf32>
    %57 = tpu.matmul %55, %56, %cst_37 {dimension_numbers = #tpu.dot_dimension_numbers<[1], [0], [0], [1], [0, 0, 1, 1], [], []>} : vector<16x16xbf16>, vector<16x256xbf16>, vector<16x256xf32> -> vector<16x256xf32>
    %58 = arith.addf %53, %57 : vector<16x256xf32>
    %c10 = arith.constant 10 : index
    %c0_38 = arith.constant 0 : index
    %c0_39 = arith.constant 0 : index
    %59 = vector.load %arg4[%c10, %c0_38, %c0_39] : memref<27x16x16xbf16, #tpu.memory_space<vmem>>, vector<1x16x16xbf16>
    %60 = vector.shape_cast %59 : vector<1x16x16xbf16> to vector<16x16xbf16>
    %61 = vector.extract_strided_slice %7 {offsets = [0, 122], sizes = [16, 256], strides = [1, 1]} : vector<16x512xbf16> to vector<16x256xbf16>
    %cst_40 = arith.constant dense<0.000000e+00> : vector<16x256xf32>
    %62 = tpu.matmul %60, %61, %cst_40 {dimension_numbers = #tpu.dot_dimension_numbers<[1], [0], [0], [1], [0, 0, 1, 1], [], []>} : vector<16x16xbf16>, vector<16x256xbf16>, vector<16x256xf32> -> vector<16x256xf32>
    %63 = arith.addf %58, %62 : vector<16x256xf32>
    %c11 = arith.constant 11 : index
    %c0_41 = arith.constant 0 : index
    %c0_42 = arith.constant 0 : index
    %64 = vector.load %arg4[%c11, %c0_41, %c0_42] : memref<27x16x16xbf16, #tpu.memory_space<vmem>>, vector<1x16x16xbf16>
    %65 = vector.shape_cast %64 : vector<1x16x16xbf16> to vector<16x16xbf16>
    %66 = vector.extract_strided_slice %7 {offsets = [0, 123], sizes = [16, 256], strides = [1, 1]} : vector<16x512xbf16> to vector<16x256xbf16>
    %cst_43 = arith.constant dense<0.000000e+00> : vector<16x256xf32>
    %67 = tpu.matmul %65, %66, %cst_43 {dimension_numbers = #tpu.dot_dimension_numbers<[1], [0], [0], [1], [0, 0, 1, 1], [], []>} : vector<16x16xbf16>, vector<16x256xbf16>, vector<16x256xf32> -> vector<16x256xf32>
    %68 = arith.addf %63, %67 : vector<16x256xf32>
    %c12 = arith.constant 12 : index
    %c0_44 = arith.constant 0 : index
    %c0_45 = arith.constant 0 : index
    %69 = vector.load %arg4[%c12, %c0_44, %c0_45] : memref<27x16x16xbf16, #tpu.memory_space<vmem>>, vector<1x16x16xbf16>
    %70 = vector.shape_cast %69 : vector<1x16x16xbf16> to vector<16x16xbf16>
    %71 = vector.extract_strided_slice %7 {offsets = [0, 127], sizes = [16, 256], strides = [1, 1]} : vector<16x512xbf16> to vector<16x256xbf16>
    %cst_46 = arith.constant dense<0.000000e+00> : vector<16x256xf32>
    %72 = tpu.matmul %70, %71, %cst_46 {dimension_numbers = #tpu.dot_dimension_numbers<[1], [0], [0], [1], [0, 0, 1, 1], [], []>} : vector<16x16xbf16>, vector<16x256xbf16>, vector<16x256xf32> -> vector<16x256xf32>
    %73 = arith.addf %68, %72 : vector<16x256xf32>
    %c13 = arith.constant 13 : index
    %c0_47 = arith.constant 0 : index
    %c0_48 = arith.constant 0 : index
    %74 = vector.load %arg4[%c13, %c0_47, %c0_48] : memref<27x16x16xbf16, #tpu.memory_space<vmem>>, vector<1x16x16xbf16>
    %75 = vector.shape_cast %74 : vector<1x16x16xbf16> to vector<16x16xbf16>
    %76 = vector.extract_strided_slice %7 {offsets = [0, 128], sizes = [16, 256], strides = [1, 1]} : vector<16x512xbf16> to vector<16x256xbf16>
    %cst_49 = arith.constant dense<0.000000e+00> : vector<16x256xf32>
    %77 = tpu.matmul %75, %76, %cst_49 {dimension_numbers = #tpu.dot_dimension_numbers<[1], [0], [0], [1], [0, 0, 1, 1], [], []>} : vector<16x16xbf16>, vector<16x256xbf16>, vector<16x256xf32> -> vector<16x256xf32>
    %78 = arith.addf %73, %77 : vector<16x256xf32>
    %c14 = arith.constant 14 : index
    %c0_50 = arith.constant 0 : index
    %c0_51 = arith.constant 0 : index
    %79 = vector.load %arg4[%c14, %c0_50, %c0_51] : memref<27x16x16xbf16, #tpu.memory_space<vmem>>, vector<1x16x16xbf16>
    %80 = vector.shape_cast %79 : vector<1x16x16xbf16> to vector<16x16xbf16>
    %81 = vector.extract_strided_slice %7 {offsets = [0, 129], sizes = [16, 256], strides = [1, 1]} : vector<16x512xbf16> to vector<16x256xbf16>
    %cst_52 = arith.constant dense<0.000000e+00> : vector<16x256xf32>
    %82 = tpu.matmul %80, %81, %cst_52 {dimension_numbers = #tpu.dot_dimension_numbers<[1], [0], [0], [1], [0, 0, 1, 1], [], []>} : vector<16x16xbf16>, vector<16x256xbf16>, vector<16x256xf32> -> vector<16x256xf32>
    %83 = arith.addf %78, %82 : vector<16x256xf32>
    %c15 = arith.constant 15 : index
    %c0_53 = arith.constant 0 : index
    %c0_54 = arith.constant 0 : index
    %84 = vector.load %arg4[%c15, %c0_53, %c0_54] : memref<27x16x16xbf16, #tpu.memory_space<vmem>>, vector<1x16x16xbf16>
    %85 = vector.shape_cast %84 : vector<1x16x16xbf16> to vector<16x16xbf16>
    %86 = vector.extract_strided_slice %7 {offsets = [0, 133], sizes = [16, 256], strides = [1, 1]} : vector<16x512xbf16> to vector<16x256xbf16>
    %cst_55 = arith.constant dense<0.000000e+00> : vector<16x256xf32>
    %87 = tpu.matmul %85, %86, %cst_55 {dimension_numbers = #tpu.dot_dimension_numbers<[1], [0], [0], [1], [0, 0, 1, 1], [], []>} : vector<16x16xbf16>, vector<16x256xbf16>, vector<16x256xf32> -> vector<16x256xf32>
    %88 = arith.addf %83, %87 : vector<16x256xf32>
    %c16 = arith.constant 16 : index
    %c0_56 = arith.constant 0 : index
    %c0_57 = arith.constant 0 : index
    %89 = vector.load %arg4[%c16, %c0_56, %c0_57] : memref<27x16x16xbf16, #tpu.memory_space<vmem>>, vector<1x16x16xbf16>
    %90 = vector.shape_cast %89 : vector<1x16x16xbf16> to vector<16x16xbf16>
    %91 = vector.extract_strided_slice %7 {offsets = [0, 134], sizes = [16, 256], strides = [1, 1]} : vector<16x512xbf16> to vector<16x256xbf16>
    %cst_58 = arith.constant dense<0.000000e+00> : vector<16x256xf32>
    %92 = tpu.matmul %90, %91, %cst_58 {dimension_numbers = #tpu.dot_dimension_numbers<[1], [0], [0], [1], [0, 0, 1, 1], [], []>} : vector<16x16xbf16>, vector<16x256xbf16>, vector<16x256xf32> -> vector<16x256xf32>
    %93 = arith.addf %88, %92 : vector<16x256xf32>
    %c17 = arith.constant 17 : index
    %c0_59 = arith.constant 0 : index
    %c0_60 = arith.constant 0 : index
    %94 = vector.load %arg4[%c17, %c0_59, %c0_60] : memref<27x16x16xbf16, #tpu.memory_space<vmem>>, vector<1x16x16xbf16>
    %95 = vector.shape_cast %94 : vector<1x16x16xbf16> to vector<16x16xbf16>
    %96 = vector.extract_strided_slice %7 {offsets = [0, 135], sizes = [16, 256], strides = [1, 1]} : vector<16x512xbf16> to vector<16x256xbf16>
    %cst_61 = arith.constant dense<0.000000e+00> : vector<16x256xf32>
    %97 = tpu.matmul %95, %96, %cst_61 {dimension_numbers = #tpu.dot_dimension_numbers<[1], [0], [0], [1], [0, 0, 1, 1], [], []>} : vector<16x16xbf16>, vector<16x256xbf16>, vector<16x256xf32> -> vector<16x256xf32>
    %98 = arith.addf %93, %97 : vector<16x256xf32>
    %c18 = arith.constant 18 : index
    %c0_62 = arith.constant 0 : index
    %c0_63 = arith.constant 0 : index
    %99 = vector.load %arg4[%c18, %c0_62, %c0_63] : memref<27x16x16xbf16, #tpu.memory_space<vmem>>, vector<1x16x16xbf16>
    %100 = vector.shape_cast %99 : vector<1x16x16xbf16> to vector<16x16xbf16>
    %101 = vector.extract_strided_slice %7 {offsets = [0, 157], sizes = [16, 256], strides = [1, 1]} : vector<16x512xbf16> to vector<16x256xbf16>
    %cst_64 = arith.constant dense<0.000000e+00> : vector<16x256xf32>
    %102 = tpu.matmul %100, %101, %cst_64 {dimension_numbers = #tpu.dot_dimension_numbers<[1], [0], [0], [1], [0, 0, 1, 1], [], []>} : vector<16x16xbf16>, vector<16x256xbf16>, vector<16x256xf32> -> vector<16x256xf32>
    %103 = arith.addf %98, %102 : vector<16x256xf32>
    %c19 = arith.constant 19 : index
    %c0_65 = arith.constant 0 : index
    %c0_66 = arith.constant 0 : index
    %104 = vector.load %arg4[%c19, %c0_65, %c0_66] : memref<27x16x16xbf16, #tpu.memory_space<vmem>>, vector<1x16x16xbf16>
    %105 = vector.shape_cast %104 : vector<1x16x16xbf16> to vector<16x16xbf16>
    %106 = vector.extract_strided_slice %7 {offsets = [0, 158], sizes = [16, 256], strides = [1, 1]} : vector<16x512xbf16> to vector<16x256xbf16>
    %cst_67 = arith.constant dense<0.000000e+00> : vector<16x256xf32>
    %107 = tpu.matmul %105, %106, %cst_67 {dimension_numbers = #tpu.dot_dimension_numbers<[1], [0], [0], [1], [0, 0, 1, 1], [], []>} : vector<16x16xbf16>, vector<16x256xbf16>, vector<16x256xf32> -> vector<16x256xf32>
    %108 = arith.addf %103, %107 : vector<16x256xf32>
    %c20 = arith.constant 20 : index
    %c0_68 = arith.constant 0 : index
    %c0_69 = arith.constant 0 : index
    %109 = vector.load %arg4[%c20, %c0_68, %c0_69] : memref<27x16x16xbf16, #tpu.memory_space<vmem>>, vector<1x16x16xbf16>
    %110 = vector.shape_cast %109 : vector<1x16x16xbf16> to vector<16x16xbf16>
    %111 = vector.extract_strided_slice %7 {offsets = [0, 159], sizes = [16, 256], strides = [1, 1]} : vector<16x512xbf16> to vector<16x256xbf16>
    %cst_70 = arith.constant dense<0.000000e+00> : vector<16x256xf32>
    %112 = tpu.matmul %110, %111, %cst_70 {dimension_numbers = #tpu.dot_dimension_numbers<[1], [0], [0], [1], [0, 0, 1, 1], [], []>} : vector<16x16xbf16>, vector<16x256xbf16>, vector<16x256xf32> -> vector<16x256xf32>
    %113 = arith.addf %108, %112 : vector<16x256xf32>
    %c21 = arith.constant 21 : index
    %c0_71 = arith.constant 0 : index
    %c0_72 = arith.constant 0 : index
    %114 = vector.load %arg4[%c21, %c0_71, %c0_72] : memref<27x16x16xbf16, #tpu.memory_space<vmem>>, vector<1x16x16xbf16>
    %115 = vector.shape_cast %114 : vector<1x16x16xbf16> to vector<16x16xbf16>
    %116 = vector.extract_strided_slice %7 {offsets = [0, 163], sizes = [16, 256], strides = [1, 1]} : vector<16x512xbf16> to vector<16x256xbf16>
    %cst_73 = arith.constant dense<0.000000e+00> : vector<16x256xf32>
    %117 = tpu.matmul %115, %116, %cst_73 {dimension_numbers = #tpu.dot_dimension_numbers<[1], [0], [0], [1], [0, 0, 1, 1], [], []>} : vector<16x16xbf16>, vector<16x256xbf16>, vector<16x256xf32> -> vector<16x256xf32>
    %118 = arith.addf %113, %117 : vector<16x256xf32>
    %c22 = arith.constant 22 : index
    %c0_74 = arith.constant 0 : index
    %c0_75 = arith.constant 0 : index
    %119 = vector.load %arg4[%c22, %c0_74, %c0_75] : memref<27x16x16xbf16, #tpu.memory_space<vmem>>, vector<1x16x16xbf16>
    %120 = vector.shape_cast %119 : vector<1x16x16xbf16> to vector<16x16xbf16>
    %121 = vector.extract_strided_slice %7 {offsets = [0, 164], sizes = [16, 256], strides = [1, 1]} : vector<16x512xbf16> to vector<16x256xbf16>
    %cst_76 = arith.constant dense<0.000000e+00> : vector<16x256xf32>
    %122 = tpu.matmul %120, %121, %cst_76 {dimension_numbers = #tpu.dot_dimension_numbers<[1], [0], [0], [1], [0, 0, 1, 1], [], []>} : vector<16x16xbf16>, vector<16x256xbf16>, vector<16x256xf32> -> vector<16x256xf32>
    %123 = arith.addf %118, %122 : vector<16x256xf32>
    %c23 = arith.constant 23 : index
    %c0_77 = arith.constant 0 : index
    %c0_78 = arith.constant 0 : index
    %124 = vector.load %arg4[%c23, %c0_77, %c0_78] : memref<27x16x16xbf16, #tpu.memory_space<vmem>>, vector<1x16x16xbf16>
    %125 = vector.shape_cast %124 : vector<1x16x16xbf16> to vector<16x16xbf16>
    %126 = vector.extract_strided_slice %7 {offsets = [0, 165], sizes = [16, 256], strides = [1, 1]} : vector<16x512xbf16> to vector<16x256xbf16>
    %cst_79 = arith.constant dense<0.000000e+00> : vector<16x256xf32>
    %127 = tpu.matmul %125, %126, %cst_79 {dimension_numbers = #tpu.dot_dimension_numbers<[1], [0], [0], [1], [0, 0, 1, 1], [], []>} : vector<16x16xbf16>, vector<16x256xbf16>, vector<16x256xf32> -> vector<16x256xf32>
    %128 = arith.addf %123, %127 : vector<16x256xf32>
    %c24 = arith.constant 24 : index
    %c0_80 = arith.constant 0 : index
    %c0_81 = arith.constant 0 : index
    %129 = vector.load %arg4[%c24, %c0_80, %c0_81] : memref<27x16x16xbf16, #tpu.memory_space<vmem>>, vector<1x16x16xbf16>
    %130 = vector.shape_cast %129 : vector<1x16x16xbf16> to vector<16x16xbf16>
    %131 = vector.extract_strided_slice %7 {offsets = [0, 169], sizes = [16, 256], strides = [1, 1]} : vector<16x512xbf16> to vector<16x256xbf16>
    %cst_82 = arith.constant dense<0.000000e+00> : vector<16x256xf32>
    %132 = tpu.matmul %130, %131, %cst_82 {dimension_numbers = #tpu.dot_dimension_numbers<[1], [0], [0], [1], [0, 0, 1, 1], [], []>} : vector<16x16xbf16>, vector<16x256xbf16>, vector<16x256xf32> -> vector<16x256xf32>
    %133 = arith.addf %128, %132 : vector<16x256xf32>
    %c25 = arith.constant 25 : index
    %c0_83 = arith.constant 0 : index
    %c0_84 = arith.constant 0 : index
    %134 = vector.load %arg4[%c25, %c0_83, %c0_84] : memref<27x16x16xbf16, #tpu.memory_space<vmem>>, vector<1x16x16xbf16>
    %135 = vector.shape_cast %134 : vector<1x16x16xbf16> to vector<16x16xbf16>
    %136 = vector.extract_strided_slice %7 {offsets = [0, 170], sizes = [16, 256], strides = [1, 1]} : vector<16x512xbf16> to vector<16x256xbf16>
    %cst_85 = arith.constant dense<0.000000e+00> : vector<16x256xf32>
    %137 = tpu.matmul %135, %136, %cst_85 {dimension_numbers = #tpu.dot_dimension_numbers<[1], [0], [0], [1], [0, 0, 1, 1], [], []>} : vector<16x16xbf16>, vector<16x256xbf16>, vector<16x256xf32> -> vector<16x256xf32>
    %138 = arith.addf %133, %137 : vector<16x256xf32>
    %c26 = arith.constant 26 : index
    %c0_86 = arith.constant 0 : index
    %c0_87 = arith.constant 0 : index
    %139 = vector.load %arg4[%c26, %c0_86, %c0_87] : memref<27x16x16xbf16, #tpu.memory_space<vmem>>, vector<1x16x16xbf16>
    %140 = vector.shape_cast %139 : vector<1x16x16xbf16> to vector<16x16xbf16>
    %141 = vector.extract_strided_slice %7 {offsets = [0, 171], sizes = [16, 256], strides = [1, 1]} : vector<16x512xbf16> to vector<16x256xbf16>
    %cst_88 = arith.constant dense<0.000000e+00> : vector<16x256xf32>
    %142 = tpu.matmul %140, %141, %cst_88 {dimension_numbers = #tpu.dot_dimension_numbers<[1], [0], [0], [1], [0, 0, 1, 1], [], []>} : vector<16x16xbf16>, vector<16x256xbf16>, vector<16x256xf32> -> vector<16x256xf32>
    %143 = arith.addf %138, %142 : vector<16x256xf32>
    %c0_89 = arith.constant 0 : index
    %c0_90 = arith.constant 0 : index
    %144 = vector.load %arg5[%c0_89, %c0_90] : memref<16x1xf32, #tpu.memory_space<vmem>>, vector<16x1xf32>
    %145 = vector.broadcast %144 : vector<16x1xf32> to vector<16x256xf32>
    %146 = arith.addf %143, %145 : vector<16x256xf32>
    %147 = vector.extract_strided_slice %146 {offsets = [0, 0], sizes = [8, 256], strides = [1, 1]} : vector<16x256xf32> to vector<8x256xf32>
    %148 = arith.negf %147 : vector<8x256xf32>
    %149 = math.exp %148 : vector<8x256xf32>
    %cst_91 = arith.constant 1.000000e+00 : f32
    %150 = vector.broadcast %cst_91 : f32 to vector<8x256xf32>
    %151 = arith.addf %150, %149 : vector<8x256xf32>
    %152 = arith.divf %150, %151 : vector<8x256xf32>
    %153 = vector.extract_strided_slice %146 {offsets = [8, 0], sizes = [8, 256], strides = [1, 1]} : vector<16x256xf32> to vector<8x256xf32>
    %154 = arith.negf %153 : vector<8x256xf32>
    %155 = math.exp %154 : vector<8x256xf32>
    %cst_92 = arith.constant 1.000000e+00 : f32
    %156 = vector.broadcast %cst_92 : f32 to vector<8x256xf32>
    %157 = arith.addf %156, %155 : vector<8x256xf32>
    %158 = arith.divf %156, %157 : vector<8x256xf32>
    %159 = vector.extract_strided_slice %3 {offsets = [0, 128], sizes = [8, 256], strides = [1, 1]} : vector<8x512xf32> to vector<8x256xf32>
    %160 = arith.mulf %152, %159 : vector<8x256xf32>
    %161 = vector.broadcast %4 : vector<1x256xf32> to vector<8x256xf32>
    %162 = arith.mulf %160, %161 : vector<8x256xf32>
    %cst_93 = arith.constant 0.000000e+00 : bf16
    %163 = vector.broadcast %cst_93 : bf16 to vector<8x128xbf16>
    %164 = arith.truncf %162 : vector<8x256xf32> to vector<8x256xbf16>
    %cst_94 = arith.constant 0.000000e+00 : bf16
    %165 = vector.broadcast %cst_94 : bf16 to vector<8x128xbf16>
    %166 = tpu.concatenate %163, %164, %165 in 1 : vector<8x128xbf16>, vector<8x256xbf16>, vector<8x128xbf16> -> vector<8x512xbf16>
    %167 = tpu.concatenate %5, %166 in 0 : vector<8x512xbf16>, vector<8x512xbf16> -> vector<16x512xbf16>
    %cst_95 = arith.constant 0.000000e+00 : f32
    %168 = vector.broadcast %cst_95 : f32 to vector<8x256xf32>
    %c0_96 = arith.constant 0 : index
    %c0_97 = arith.constant 0 : index
    %c0_98 = arith.constant 0 : index
    %169 = vector.load %arg6[%c0_96, %c0_97, %c0_98] : memref<27x8x16xbf16, #tpu.memory_space<vmem>>, vector<1x8x16xbf16>
    %170 = vector.shape_cast %169 : vector<1x8x16xbf16> to vector<8x16xbf16>
    %171 = vector.extract_strided_slice %167 {offsets = [0, 85], sizes = [16, 256], strides = [1, 1]} : vector<16x512xbf16> to vector<16x256xbf16>
    %cst_99 = arith.constant dense<0.000000e+00> : vector<8x256xf32>
    %172 = tpu.matmul %170, %171, %cst_99 {dimension_numbers = #tpu.dot_dimension_numbers<[1], [0], [0], [1], [0, 0, 1, 1], [], []>} : vector<8x16xbf16>, vector<16x256xbf16>, vector<8x256xf32> -> vector<8x256xf32>
    %173 = arith.addf %168, %172 : vector<8x256xf32>
    %c1_100 = arith.constant 1 : index
    %c0_101 = arith.constant 0 : index
    %c0_102 = arith.constant 0 : index
    %174 = vector.load %arg6[%c1_100, %c0_101, %c0_102] : memref<27x8x16xbf16, #tpu.memory_space<vmem>>, vector<1x8x16xbf16>
    %175 = vector.shape_cast %174 : vector<1x8x16xbf16> to vector<8x16xbf16>
    %176 = vector.extract_strided_slice %167 {offsets = [0, 86], sizes = [16, 256], strides = [1, 1]} : vector<16x512xbf16> to vector<16x256xbf16>
    %cst_103 = arith.constant dense<0.000000e+00> : vector<8x256xf32>
    %177 = tpu.matmul %175, %176, %cst_103 {dimension_numbers = #tpu.dot_dimension_numbers<[1], [0], [0], [1], [0, 0, 1, 1], [], []>} : vector<8x16xbf16>, vector<16x256xbf16>, vector<8x256xf32> -> vector<8x256xf32>
    %178 = arith.addf %173, %177 : vector<8x256xf32>
    %c2_104 = arith.constant 2 : index
    %c0_105 = arith.constant 0 : index
    %c0_106 = arith.constant 0 : index
    %179 = vector.load %arg6[%c2_104, %c0_105, %c0_106] : memref<27x8x16xbf16, #tpu.memory_space<vmem>>, vector<1x8x16xbf16>
    %180 = vector.shape_cast %179 : vector<1x8x16xbf16> to vector<8x16xbf16>
    %181 = vector.extract_strided_slice %167 {offsets = [0, 87], sizes = [16, 256], strides = [1, 1]} : vector<16x512xbf16> to vector<16x256xbf16>
    %cst_107 = arith.constant dense<0.000000e+00> : vector<8x256xf32>
    %182 = tpu.matmul %180, %181, %cst_107 {dimension_numbers = #tpu.dot_dimension_numbers<[1], [0], [0], [1], [0, 0, 1, 1], [], []>} : vector<8x16xbf16>, vector<16x256xbf16>, vector<8x256xf32> -> vector<8x256xf32>
    %183 = arith.addf %178, %182 : vector<8x256xf32>
    %c3_108 = arith.constant 3 : index
    %c0_109 = arith.constant 0 : index
    %c0_110 = arith.constant 0 : index
    %184 = vector.load %arg6[%c3_108, %c0_109, %c0_110] : memref<27x8x16xbf16, #tpu.memory_space<vmem>>, vector<1x8x16xbf16>
    %185 = vector.shape_cast %184 : vector<1x8x16xbf16> to vector<8x16xbf16>
    %186 = vector.extract_strided_slice %167 {offsets = [0, 91], sizes = [16, 256], strides = [1, 1]} : vector<16x512xbf16> to vector<16x256xbf16>
    %cst_111 = arith.constant dense<0.000000e+00> : vector<8x256xf32>
    %187 = tpu.matmul %185, %186, %cst_111 {dimension_numbers = #tpu.dot_dimension_numbers<[1], [0], [0], [1], [0, 0, 1, 1], [], []>} : vector<8x16xbf16>, vector<16x256xbf16>, vector<8x256xf32> -> vector<8x256xf32>
    %188 = arith.addf %183, %187 : vector<8x256xf32>
    %c4_112 = arith.constant 4 : index
    %c0_113 = arith.constant 0 : index
    %c0_114 = arith.constant 0 : index
    %189 = vector.load %arg6[%c4_112, %c0_113, %c0_114] : memref<27x8x16xbf16, #tpu.memory_space<vmem>>, vector<1x8x16xbf16>
    %190 = vector.shape_cast %189 : vector<1x8x16xbf16> to vector<8x16xbf16>
    %191 = vector.extract_strided_slice %167 {offsets = [0, 92], sizes = [16, 256], strides = [1, 1]} : vector<16x512xbf16> to vector<16x256xbf16>
    %cst_115 = arith.constant dense<0.000000e+00> : vector<8x256xf32>
    %192 = tpu.matmul %190, %191, %cst_115 {dimension_numbers = #tpu.dot_dimension_numbers<[1], [0], [0], [1], [0, 0, 1, 1], [], []>} : vector<8x16xbf16>, vector<16x256xbf16>, vector<8x256xf32> -> vector<8x256xf32>
    %193 = arith.addf %188, %192 : vector<8x256xf32>
    %c5_116 = arith.constant 5 : index
    %c0_117 = arith.constant 0 : index
    %c0_118 = arith.constant 0 : index
    %194 = vector.load %arg6[%c5_116, %c0_117, %c0_118] : memref<27x8x16xbf16, #tpu.memory_space<vmem>>, vector<1x8x16xbf16>
    %195 = vector.shape_cast %194 : vector<1x8x16xbf16> to vector<8x16xbf16>
    %196 = vector.extract_strided_slice %167 {offsets = [0, 93], sizes = [16, 256], strides = [1, 1]} : vector<16x512xbf16> to vector<16x256xbf16>
    %cst_119 = arith.constant dense<0.000000e+00> : vector<8x256xf32>
    %197 = tpu.matmul %195, %196, %cst_119 {dimension_numbers = #tpu.dot_dimension_numbers<[1], [0], [0], [1], [0, 0, 1, 1], [], []>} : vector<8x16xbf16>, vector<16x256xbf16>, vector<8x256xf32> -> vector<8x256xf32>
    %198 = arith.addf %193, %197 : vector<8x256xf32>
    %c6_120 = arith.constant 6 : index
    %c0_121 = arith.constant 0 : index
    %c0_122 = arith.constant 0 : index
    %199 = vector.load %arg6[%c6_120, %c0_121, %c0_122] : memref<27x8x16xbf16, #tpu.memory_space<vmem>>, vector<1x8x16xbf16>
    %200 = vector.shape_cast %199 : vector<1x8x16xbf16> to vector<8x16xbf16>
    %201 = vector.extract_strided_slice %167 {offsets = [0, 97], sizes = [16, 256], strides = [1, 1]} : vector<16x512xbf16> to vector<16x256xbf16>
    %cst_123 = arith.constant dense<0.000000e+00> : vector<8x256xf32>
    %202 = tpu.matmul %200, %201, %cst_123 {dimension_numbers = #tpu.dot_dimension_numbers<[1], [0], [0], [1], [0, 0, 1, 1], [], []>} : vector<8x16xbf16>, vector<16x256xbf16>, vector<8x256xf32> -> vector<8x256xf32>
    %203 = arith.addf %198, %202 : vector<8x256xf32>
    %c7_124 = arith.constant 7 : index
    %c0_125 = arith.constant 0 : index
    %c0_126 = arith.constant 0 : index
    %204 = vector.load %arg6[%c7_124, %c0_125, %c0_126] : memref<27x8x16xbf16, #tpu.memory_space<vmem>>, vector<1x8x16xbf16>
    %205 = vector.shape_cast %204 : vector<1x8x16xbf16> to vector<8x16xbf16>
    %206 = vector.extract_strided_slice %167 {offsets = [0, 98], sizes = [16, 256], strides = [1, 1]} : vector<16x512xbf16> to vector<16x256xbf16>
    %cst_127 = arith.constant dense<0.000000e+00> : vector<8x256xf32>
    %207 = tpu.matmul %205, %206, %cst_127 {dimension_numbers = #tpu.dot_dimension_numbers<[1], [0], [0], [1], [0, 0, 1, 1], [], []>} : vector<8x16xbf16>, vector<16x256xbf16>, vector<8x256xf32> -> vector<8x256xf32>
    %208 = arith.addf %203, %207 : vector<8x256xf32>
    %c8_128 = arith.constant 8 : index
    %c0_129 = arith.constant 0 : index
    %c0_130 = arith.constant 0 : index
    %209 = vector.load %arg6[%c8_128, %c0_129, %c0_130] : memref<27x8x16xbf16, #tpu.memory_space<vmem>>, vector<1x8x16xbf16>
    %210 = vector.shape_cast %209 : vector<1x8x16xbf16> to vector<8x16xbf16>
    %211 = vector.extract_strided_slice %167 {offsets = [0, 99], sizes = [16, 256], strides = [1, 1]} : vector<16x512xbf16> to vector<16x256xbf16>
    %cst_131 = arith.constant dense<0.000000e+00> : vector<8x256xf32>
    %212 = tpu.matmul %210, %211, %cst_131 {dimension_numbers = #tpu.dot_dimension_numbers<[1], [0], [0], [1], [0, 0, 1, 1], [], []>} : vector<8x16xbf16>, vector<16x256xbf16>, vector<8x256xf32> -> vector<8x256xf32>
    %213 = arith.addf %208, %212 : vector<8x256xf32>
    %c9_132 = arith.constant 9 : index
    %c0_133 = arith.constant 0 : index
    %c0_134 = arith.constant 0 : index
    %214 = vector.load %arg6[%c9_132, %c0_133, %c0_134] : memref<27x8x16xbf16, #tpu.memory_space<vmem>>, vector<1x8x16xbf16>
    %215 = vector.shape_cast %214 : vector<1x8x16xbf16> to vector<8x16xbf16>
    %216 = vector.extract_strided_slice %167 {offsets = [0, 121], sizes = [16, 256], strides = [1, 1]} : vector<16x512xbf16> to vector<16x256xbf16>
    %cst_135 = arith.constant dense<0.000000e+00> : vector<8x256xf32>
    %217 = tpu.matmul %215, %216, %cst_135 {dimension_numbers = #tpu.dot_dimension_numbers<[1], [0], [0], [1], [0, 0, 1, 1], [], []>} : vector<8x16xbf16>, vector<16x256xbf16>, vector<8x256xf32> -> vector<8x256xf32>
    %218 = arith.addf %213, %217 : vector<8x256xf32>
    %c10_136 = arith.constant 10 : index
    %c0_137 = arith.constant 0 : index
    %c0_138 = arith.constant 0 : index
    %219 = vector.load %arg6[%c10_136, %c0_137, %c0_138] : memref<27x8x16xbf16, #tpu.memory_space<vmem>>, vector<1x8x16xbf16>
    %220 = vector.shape_cast %219 : vector<1x8x16xbf16> to vector<8x16xbf16>
    %221 = vector.extract_strided_slice %167 {offsets = [0, 122], sizes = [16, 256], strides = [1, 1]} : vector<16x512xbf16> to vector<16x256xbf16>
    %cst_139 = arith.constant dense<0.000000e+00> : vector<8x256xf32>
    %222 = tpu.matmul %220, %221, %cst_139 {dimension_numbers = #tpu.dot_dimension_numbers<[1], [0], [0], [1], [0, 0, 1, 1], [], []>} : vector<8x16xbf16>, vector<16x256xbf16>, vector<8x256xf32> -> vector<8x256xf32>
    %223 = arith.addf %218, %222 : vector<8x256xf32>
    %c11_140 = arith.constant 11 : index
    %c0_141 = arith.constant 0 : index
    %c0_142 = arith.constant 0 : index
    %224 = vector.load %arg6[%c11_140, %c0_141, %c0_142] : memref<27x8x16xbf16, #tpu.memory_space<vmem>>, vector<1x8x16xbf16>
    %225 = vector.shape_cast %224 : vector<1x8x16xbf16> to vector<8x16xbf16>
    %226 = vector.extract_strided_slice %167 {offsets = [0, 123], sizes = [16, 256], strides = [1, 1]} : vector<16x512xbf16> to vector<16x256xbf16>
    %cst_143 = arith.constant dense<0.000000e+00> : vector<8x256xf32>
    %227 = tpu.matmul %225, %226, %cst_143 {dimension_numbers = #tpu.dot_dimension_numbers<[1], [0], [0], [1], [0, 0, 1, 1], [], []>} : vector<8x16xbf16>, vector<16x256xbf16>, vector<8x256xf32> -> vector<8x256xf32>
    %228 = arith.addf %223, %227 : vector<8x256xf32>
    %c12_144 = arith.constant 12 : index
    %c0_145 = arith.constant 0 : index
    %c0_146 = arith.constant 0 : index
    %229 = vector.load %arg6[%c12_144, %c0_145, %c0_146] : memref<27x8x16xbf16, #tpu.memory_space<vmem>>, vector<1x8x16xbf16>
    %230 = vector.shape_cast %229 : vector<1x8x16xbf16> to vector<8x16xbf16>
    %231 = vector.extract_strided_slice %167 {offsets = [0, 127], sizes = [16, 256], strides = [1, 1]} : vector<16x512xbf16> to vector<16x256xbf16>
    %cst_147 = arith.constant dense<0.000000e+00> : vector<8x256xf32>
    %232 = tpu.matmul %230, %231, %cst_147 {dimension_numbers = #tpu.dot_dimension_numbers<[1], [0], [0], [1], [0, 0, 1, 1], [], []>} : vector<8x16xbf16>, vector<16x256xbf16>, vector<8x256xf32> -> vector<8x256xf32>
    %233 = arith.addf %228, %232 : vector<8x256xf32>
    %c13_148 = arith.constant 13 : index
    %c0_149 = arith.constant 0 : index
    %c0_150 = arith.constant 0 : index
    %234 = vector.load %arg6[%c13_148, %c0_149, %c0_150] : memref<27x8x16xbf16, #tpu.memory_space<vmem>>, vector<1x8x16xbf16>
    %235 = vector.shape_cast %234 : vector<1x8x16xbf16> to vector<8x16xbf16>
    %236 = vector.extract_strided_slice %167 {offsets = [0, 128], sizes = [16, 256], strides = [1, 1]} : vector<16x512xbf16> to vector<16x256xbf16>
    %cst_151 = arith.constant dense<0.000000e+00> : vector<8x256xf32>
    %237 = tpu.matmul %235, %236, %cst_151 {dimension_numbers = #tpu.dot_dimension_numbers<[1], [0], [0], [1], [0, 0, 1, 1], [], []>} : vector<8x16xbf16>, vector<16x256xbf16>, vector<8x256xf32> -> vector<8x256xf32>
    %238 = arith.addf %233, %237 : vector<8x256xf32>
    %c14_152 = arith.constant 14 : index
    %c0_153 = arith.constant 0 : index
    %c0_154 = arith.constant 0 : index
    %239 = vector.load %arg6[%c14_152, %c0_153, %c0_154] : memref<27x8x16xbf16, #tpu.memory_space<vmem>>, vector<1x8x16xbf16>
    %240 = vector.shape_cast %239 : vector<1x8x16xbf16> to vector<8x16xbf16>
    %241 = vector.extract_strided_slice %167 {offsets = [0, 129], sizes = [16, 256], strides = [1, 1]} : vector<16x512xbf16> to vector<16x256xbf16>
    %cst_155 = arith.constant dense<0.000000e+00> : vector<8x256xf32>
    %242 = tpu.matmul %240, %241, %cst_155 {dimension_numbers = #tpu.dot_dimension_numbers<[1], [0], [0], [1], [0, 0, 1, 1], [], []>} : vector<8x16xbf16>, vector<16x256xbf16>, vector<8x256xf32> -> vector<8x256xf32>
    %243 = arith.addf %238, %242 : vector<8x256xf32>
    %c15_156 = arith.constant 15 : index
    %c0_157 = arith.constant 0 : index
    %c0_158 = arith.constant 0 : index
    %244 = vector.load %arg6[%c15_156, %c0_157, %c0_158] : memref<27x8x16xbf16, #tpu.memory_space<vmem>>, vector<1x8x16xbf16>
    %245 = vector.shape_cast %244 : vector<1x8x16xbf16> to vector<8x16xbf16>
    %246 = vector.extract_strided_slice %167 {offsets = [0, 133], sizes = [16, 256], strides = [1, 1]} : vector<16x512xbf16> to vector<16x256xbf16>
    %cst_159 = arith.constant dense<0.000000e+00> : vector<8x256xf32>
    %247 = tpu.matmul %245, %246, %cst_159 {dimension_numbers = #tpu.dot_dimension_numbers<[1], [0], [0], [1], [0, 0, 1, 1], [], []>} : vector<8x16xbf16>, vector<16x256xbf16>, vector<8x256xf32> -> vector<8x256xf32>
    %248 = arith.addf %243, %247 : vector<8x256xf32>
    %c16_160 = arith.constant 16 : index
    %c0_161 = arith.constant 0 : index
    %c0_162 = arith.constant 0 : index
    %249 = vector.load %arg6[%c16_160, %c0_161, %c0_162] : memref<27x8x16xbf16, #tpu.memory_space<vmem>>, vector<1x8x16xbf16>
    %250 = vector.shape_cast %249 : vector<1x8x16xbf16> to vector<8x16xbf16>
    %251 = vector.extract_strided_slice %167 {offsets = [0, 134], sizes = [16, 256], strides = [1, 1]} : vector<16x512xbf16> to vector<16x256xbf16>
    %cst_163 = arith.constant dense<0.000000e+00> : vector<8x256xf32>
    %252 = tpu.matmul %250, %251, %cst_163 {dimension_numbers = #tpu.dot_dimension_numbers<[1], [0], [0], [1], [0, 0, 1, 1], [], []>} : vector<8x16xbf16>, vector<16x256xbf16>, vector<8x256xf32> -> vector<8x256xf32>
    %253 = arith.addf %248, %252 : vector<8x256xf32>
    %c17_164 = arith.constant 17 : index
    %c0_165 = arith.constant 0 : index
    %c0_166 = arith.constant 0 : index
    %254 = vector.load %arg6[%c17_164, %c0_165, %c0_166] : memref<27x8x16xbf16, #tpu.memory_space<vmem>>, vector<1x8x16xbf16>
    %255 = vector.shape_cast %254 : vector<1x8x16xbf16> to vector<8x16xbf16>
    %256 = vector.extract_strided_slice %167 {offsets = [0, 135], sizes = [16, 256], strides = [1, 1]} : vector<16x512xbf16> to vector<16x256xbf16>
    %cst_167 = arith.constant dense<0.000000e+00> : vector<8x256xf32>
    %257 = tpu.matmul %255, %256, %cst_167 {dimension_numbers = #tpu.dot_dimension_numbers<[1], [0], [0], [1], [0, 0, 1, 1], [], []>} : vector<8x16xbf16>, vector<16x256xbf16>, vector<8x256xf32> -> vector<8x256xf32>
    %258 = arith.addf %253, %257 : vector<8x256xf32>
    %c18_168 = arith.constant 18 : index
    %c0_169 = arith.constant 0 : index
    %c0_170 = arith.constant 0 : index
    %259 = vector.load %arg6[%c18_168, %c0_169, %c0_170] : memref<27x8x16xbf16, #tpu.memory_space<vmem>>, vector<1x8x16xbf16>
    %260 = vector.shape_cast %259 : vector<1x8x16xbf16> to vector<8x16xbf16>
    %261 = vector.extract_strided_slice %167 {offsets = [0, 157], sizes = [16, 256], strides = [1, 1]} : vector<16x512xbf16> to vector<16x256xbf16>
    %cst_171 = arith.constant dense<0.000000e+00> : vector<8x256xf32>
    %262 = tpu.matmul %260, %261, %cst_171 {dimension_numbers = #tpu.dot_dimension_numbers<[1], [0], [0], [1], [0, 0, 1, 1], [], []>} : vector<8x16xbf16>, vector<16x256xbf16>, vector<8x256xf32> -> vector<8x256xf32>
    %263 = arith.addf %258, %262 : vector<8x256xf32>
    %c19_172 = arith.constant 19 : index
    %c0_173 = arith.constant 0 : index
    %c0_174 = arith.constant 0 : index
    %264 = vector.load %arg6[%c19_172, %c0_173, %c0_174] : memref<27x8x16xbf16, #tpu.memory_space<vmem>>, vector<1x8x16xbf16>
    %265 = vector.shape_cast %264 : vector<1x8x16xbf16> to vector<8x16xbf16>
    %266 = vector.extract_strided_slice %167 {offsets = [0, 158], sizes = [16, 256], strides = [1, 1]} : vector<16x512xbf16> to vector<16x256xbf16>
    %cst_175 = arith.constant dense<0.000000e+00> : vector<8x256xf32>
    %267 = tpu.matmul %265, %266, %cst_175 {dimension_numbers = #tpu.dot_dimension_numbers<[1], [0], [0], [1], [0, 0, 1, 1], [], []>} : vector<8x16xbf16>, vector<16x256xbf16>, vector<8x256xf32> -> vector<8x256xf32>
    %268 = arith.addf %263, %267 : vector<8x256xf32>
    %c20_176 = arith.constant 20 : index
    %c0_177 = arith.constant 0 : index
    %c0_178 = arith.constant 0 : index
    %269 = vector.load %arg6[%c20_176, %c0_177, %c0_178] : memref<27x8x16xbf16, #tpu.memory_space<vmem>>, vector<1x8x16xbf16>
    %270 = vector.shape_cast %269 : vector<1x8x16xbf16> to vector<8x16xbf16>
    %271 = vector.extract_strided_slice %167 {offsets = [0, 159], sizes = [16, 256], strides = [1, 1]} : vector<16x512xbf16> to vector<16x256xbf16>
    %cst_179 = arith.constant dense<0.000000e+00> : vector<8x256xf32>
    %272 = tpu.matmul %270, %271, %cst_179 {dimension_numbers = #tpu.dot_dimension_numbers<[1], [0], [0], [1], [0, 0, 1, 1], [], []>} : vector<8x16xbf16>, vector<16x256xbf16>, vector<8x256xf32> -> vector<8x256xf32>
    %273 = arith.addf %268, %272 : vector<8x256xf32>
    %c21_180 = arith.constant 21 : index
    %c0_181 = arith.constant 0 : index
    %c0_182 = arith.constant 0 : index
    %274 = vector.load %arg6[%c21_180, %c0_181, %c0_182] : memref<27x8x16xbf16, #tpu.memory_space<vmem>>, vector<1x8x16xbf16>
    %275 = vector.shape_cast %274 : vector<1x8x16xbf16> to vector<8x16xbf16>
    %276 = vector.extract_strided_slice %167 {offsets = [0, 163], sizes = [16, 256], strides = [1, 1]} : vector<16x512xbf16> to vector<16x256xbf16>
    %cst_183 = arith.constant dense<0.000000e+00> : vector<8x256xf32>
    %277 = tpu.matmul %275, %276, %cst_183 {dimension_numbers = #tpu.dot_dimension_numbers<[1], [0], [0], [1], [0, 0, 1, 1], [], []>} : vector<8x16xbf16>, vector<16x256xbf16>, vector<8x256xf32> -> vector<8x256xf32>
    %278 = arith.addf %273, %277 : vector<8x256xf32>
    %c22_184 = arith.constant 22 : index
    %c0_185 = arith.constant 0 : index
    %c0_186 = arith.constant 0 : index
    %279 = vector.load %arg6[%c22_184, %c0_185, %c0_186] : memref<27x8x16xbf16, #tpu.memory_space<vmem>>, vector<1x8x16xbf16>
    %280 = vector.shape_cast %279 : vector<1x8x16xbf16> to vector<8x16xbf16>
    %281 = vector.extract_strided_slice %167 {offsets = [0, 164], sizes = [16, 256], strides = [1, 1]} : vector<16x512xbf16> to vector<16x256xbf16>
    %cst_187 = arith.constant dense<0.000000e+00> : vector<8x256xf32>
    %282 = tpu.matmul %280, %281, %cst_187 {dimension_numbers = #tpu.dot_dimension_numbers<[1], [0], [0], [1], [0, 0, 1, 1], [], []>} : vector<8x16xbf16>, vector<16x256xbf16>, vector<8x256xf32> -> vector<8x256xf32>
    %283 = arith.addf %278, %282 : vector<8x256xf32>
    %c23_188 = arith.constant 23 : index
    %c0_189 = arith.constant 0 : index
    %c0_190 = arith.constant 0 : index
    %284 = vector.load %arg6[%c23_188, %c0_189, %c0_190] : memref<27x8x16xbf16, #tpu.memory_space<vmem>>, vector<1x8x16xbf16>
    %285 = vector.shape_cast %284 : vector<1x8x16xbf16> to vector<8x16xbf16>
    %286 = vector.extract_strided_slice %167 {offsets = [0, 165], sizes = [16, 256], strides = [1, 1]} : vector<16x512xbf16> to vector<16x256xbf16>
    %cst_191 = arith.constant dense<0.000000e+00> : vector<8x256xf32>
    %287 = tpu.matmul %285, %286, %cst_191 {dimension_numbers = #tpu.dot_dimension_numbers<[1], [0], [0], [1], [0, 0, 1, 1], [], []>} : vector<8x16xbf16>, vector<16x256xbf16>, vector<8x256xf32> -> vector<8x256xf32>
    %288 = arith.addf %283, %287 : vector<8x256xf32>
    %c24_192 = arith.constant 24 : index
    %c0_193 = arith.constant 0 : index
    %c0_194 = arith.constant 0 : index
    %289 = vector.load %arg6[%c24_192, %c0_193, %c0_194] : memref<27x8x16xbf16, #tpu.memory_space<vmem>>, vector<1x8x16xbf16>
    %290 = vector.shape_cast %289 : vector<1x8x16xbf16> to vector<8x16xbf16>
    %291 = vector.extract_strided_slice %167 {offsets = [0, 169], sizes = [16, 256], strides = [1, 1]} : vector<16x512xbf16> to vector<16x256xbf16>
    %cst_195 = arith.constant dense<0.000000e+00> : vector<8x256xf32>
    %292 = tpu.matmul %290, %291, %cst_195 {dimension_numbers = #tpu.dot_dimension_numbers<[1], [0], [0], [1], [0, 0, 1, 1], [], []>} : vector<8x16xbf16>, vector<16x256xbf16>, vector<8x256xf32> -> vector<8x256xf32>
    %293 = arith.addf %288, %292 : vector<8x256xf32>
    %c25_196 = arith.constant 25 : index
    %c0_197 = arith.constant 0 : index
    %c0_198 = arith.constant 0 : index
    %294 = vector.load %arg6[%c25_196, %c0_197, %c0_198] : memref<27x8x16xbf16, #tpu.memory_space<vmem>>, vector<1x8x16xbf16>
    %295 = vector.shape_cast %294 : vector<1x8x16xbf16> to vector<8x16xbf16>
    %296 = vector.extract_strided_slice %167 {offsets = [0, 170], sizes = [16, 256], strides = [1, 1]} : vector<16x512xbf16> to vector<16x256xbf16>
    %cst_199 = arith.constant dense<0.000000e+00> : vector<8x256xf32>
    %297 = tpu.matmul %295, %296, %cst_199 {dimension_numbers = #tpu.dot_dimension_numbers<[1], [0], [0], [1], [0, 0, 1, 1], [], []>} : vector<8x16xbf16>, vector<16x256xbf16>, vector<8x256xf32> -> vector<8x256xf32>
    %298 = arith.addf %293, %297 : vector<8x256xf32>
    %c26_200 = arith.constant 26 : index
    %c0_201 = arith.constant 0 : index
    %c0_202 = arith.constant 0 : index
    %299 = vector.load %arg6[%c26_200, %c0_201, %c0_202] : memref<27x8x16xbf16, #tpu.memory_space<vmem>>, vector<1x8x16xbf16>
    %300 = vector.shape_cast %299 : vector<1x8x16xbf16> to vector<8x16xbf16>
    %301 = vector.extract_strided_slice %167 {offsets = [0, 171], sizes = [16, 256], strides = [1, 1]} : vector<16x512xbf16> to vector<16x256xbf16>
    %cst_203 = arith.constant dense<0.000000e+00> : vector<8x256xf32>
    %302 = tpu.matmul %300, %301, %cst_203 {dimension_numbers = #tpu.dot_dimension_numbers<[1], [0], [0], [1], [0, 0, 1, 1], [], []>} : vector<8x16xbf16>, vector<16x256xbf16>, vector<8x256xf32> -> vector<8x256xf32>
    %303 = arith.addf %298, %302 : vector<8x256xf32>
    %c0_204 = arith.constant 0 : index
    %c0_205 = arith.constant 0 : index
    %304 = vector.load %arg7[%c0_204, %c0_205] : memref<8x1xf32, #tpu.memory_space<vmem>>, vector<8x1xf32>
    %305 = vector.broadcast %304 : vector<8x1xf32> to vector<8x256xf32>
    %306 = arith.addf %303, %305 : vector<8x256xf32>
    %cst_206 = arith.constant 1.000000e+00 : f32
    %307 = vector.broadcast %cst_206 : f32 to vector<8x256xf32>
    %308 = arith.subf %307, %158 : vector<8x256xf32>
    %309 = arith.mulf %308, %159 : vector<8x256xf32>
    %310 = math.tanh %306 : vector<8x256xf32>
    %311 = arith.mulf %158, %310 : vector<8x256xf32>
    %312 = arith.addf %309, %311 : vector<8x256xf32>
    %313 = vector.broadcast %4 : vector<1x256xf32> to vector<8x256xf32>
    %314 = arith.mulf %312, %313 : vector<8x256xf32>
    %cst_207 = arith.constant 0.000000e+00 : f32
    %315 = vector.broadcast %cst_207 : f32 to vector<8x128xf32>
    %cst_208 = arith.constant 0.000000e+00 : f32
    %316 = vector.broadcast %cst_208 : f32 to vector<8x128xf32>
    %317 = tpu.concatenate %315, %314, %316 in 1 : vector<8x128xf32>, vector<8x256xf32>, vector<8x128xf32> -> vector<8x512xf32>
    %c0_209 = arith.constant 0 : index
    %c0_210 = arith.constant 0 : index
    %c0_211 = arith.constant 0 : index
    %318 = vector.load %arg8[%c0_209, %c0_210, %c0_211] : memref<1x8x512xf32, #tpu.memory_space<vmem>>, vector<1x8x512xf32>
    %319 = vector.shape_cast %318 : vector<1x8x512xf32> to vector<8x512xf32>
    %320 = vector.shape_cast %317 : vector<8x512xf32> to vector<1x8x512xf32>
    tpu.vector_store %arg8[%c0_209, %c0_210, %c0_211], %320 {strides = array<i32>} : memref<1x8x512xf32, #tpu.memory_space<vmem>>, vector<1x8x512xf32>,
    return
  }
  func.func @transform_0(%arg0: i32) -> (i32, i32, i32) {
    %c0_i32 = arith.constant 0 : i32
    %c0_i32_0 = arith.constant 0 : i32
    %c0_i32_1 = arith.constant 0 : i32
    return %arg0, %c0_i32, %c0_i32_0 : i32, i32, i32
  }
  func.func @transform_1(%arg0: i32) -> (i32, i32, i32) {
    %c0_i32 = arith.constant 0 : i32
    %c0_i32_0 = arith.constant 0 : i32
    %c0_i32_1 = arith.constant 0 : i32
    return %arg0, %c0_i32, %c0_i32_0 : i32, i32, i32
  }
  func.func @transform_2(%arg0: i32) -> (i32, i32) {
    %c0_i32 = arith.constant 0 : i32
    %c0_i32_0 = arith.constant 0 : i32
    %c0_i32_1 = arith.constant 0 : i32
    return %c0_i32, %c0_i32_0 : i32, i32
  }
  func.func @transform_3(%arg0: i32) -> (i32, i32, i32) {
    %c0_i32 = arith.constant 0 : i32
    %c0_i32_0 = arith.constant 0 : i32
    %c0_i32_1 = arith.constant 0 : i32
    %c0_i32_2 = arith.constant 0 : i32
    return %c0_i32, %c0_i32_0, %c0_i32_1 : i32, i32, i32
  }
  func.func @transform_4(%arg0: i32) -> (i32, i32) {
    %c0_i32 = arith.constant 0 : i32
    %c0_i32_0 = arith.constant 0 : i32
    %c0_i32_1 = arith.constant 0 : i32
    return %c0_i32, %c0_i32_0 : i32, i32
  }
  func.func @transform_5(%arg0: i32) -> (i32, i32, i32) {
    %c0_i32 = arith.constant 0 : i32
    %c0_i32_0 = arith.constant 0 : i32
    %c0_i32_1 = arith.constant 0 : i32
    %c0_i32_2 = arith.constant 0 : i32
    return %c0_i32, %c0_i32_0, %c0_i32_1 : i32, i32, i32
  }
  func.func @transform_6(%arg0: i32) -> (i32, i32) {
    %c0_i32 = arith.constant 0 : i32
    %c0_i32_0 = arith.constant 0 : i32
    %c0_i32_1 = arith.constant 0 : i32
    return %c0_i32, %c0_i32_0 : i32, i32
  }
  func.func @transform_7(%arg0: i32) -> (i32, i32, i32) {
    %c0_i32 = arith.constant 0 : i32
    %c0_i32_0 = arith.constant 0 : i32
    %c0_i32_1 = arith.constant 0 : i32
    return %arg0, %c0_i32, %c0_i32_0 : i32, i32, i32
  }
}

module attributes {stable_mosaic.version = 11 : i64} {
  func.func @kernel(%arg0: i32, %arg1: i32, %arg2: memref<1x8x256xf32, #tpu.memory_space<vmem>>, %arg3: memref<1x8x256xf32, #tpu.memory_space<vmem>>, %arg4: memref<27x3x8xbf16, #tpu.memory_space<vmem>>, %arg5: memref<3x1xf32, #tpu.memory_space<vmem>>, %arg6: memref<1x3x256xf32, #tpu.memory_space<vmem>>) attributes {dimension_semantics = [#tpu.dimension_semantics<parallel>, #tpu.dimension_semantics<parallel>], iteration_bounds = array<i64: 4, 1>, scalar_prefetch = 0 : i64, scratch_operands = 0 : i64, tpu.core_type = #tpu.core_type<tc>, window_params = [{transform_indices = @transform_0, window_bounds = array<i64: 1, 8, 256>}, {transform_indices = @transform_1, window_bounds = array<i64: 1, 8, 256>}, {pipeline_mode = #tpu.pipeline_mode<synchronous>, transform_indices = @transform_2, window_bounds = array<i64: 27, 3, 8>}, {pipeline_mode = #tpu.pipeline_mode<synchronous>, transform_indices = @transform_3, window_bounds = array<i64: 3, 1>}, {transform_indices = @transform_4, window_bounds = array<i64: 1, 3, 256>}]} {
    %c0 = arith.constant 0 : index
    %c0_0 = arith.constant 0 : index
    %c0_1 = arith.constant 0 : index
    %0 = vector.load %arg2[%c0, %c0_0, %c0_1] : memref<1x8x256xf32, #tpu.memory_space<vmem>>, vector<1x8x256xf32>
    %1 = vector.shape_cast %0 : vector<1x8x256xf32> to vector<8x256xf32>
    %2 = arith.truncf %1 : vector<8x256xf32> to vector<8x256xbf16>
    %c0_2 = arith.constant 0 : index
    %c0_3 = arith.constant 0 : index
    %c0_4 = arith.constant 0 : index
    %3 = vector.load %arg3[%c0_2, %c0_3, %c0_4] : memref<1x8x256xf32, #tpu.memory_space<vmem>>, vector<1x8x256xf32>
    %4 = vector.shape_cast %3 : vector<1x8x256xf32> to vector<8x256xf32>
    %5 = arith.truncf %4 : vector<8x256xf32> to vector<8x256xbf16>
    %6 = tpu.concatenate %2, %5 in 1 : vector<8x256xbf16>, vector<8x256xbf16> -> vector<8x512xbf16>
    %cst = arith.constant 0.000000e+00 : f32
    %7 = vector.broadcast %cst : f32 to vector<3x256xf32>
    %8 = vector.extract_strided_slice %6 {offsets = [0, 0], sizes = [8, 256], strides = [1, 1]} : vector<8x512xbf16> to vector<8x256xbf16>
    %c0_5 = arith.constant 0 : index
    %c0_6 = arith.constant 0 : index
    %c0_7 = arith.constant 0 : index
    %9 = vector.load %arg4[%c0_5, %c0_6, %c0_7] : memref<27x3x8xbf16, #tpu.memory_space<vmem>>, vector<1x3x8xbf16>
    %10 = vector.shape_cast %9 : vector<1x3x8xbf16> to vector<3x8xbf16>
    %cst_8 = arith.constant dense<0.000000e+00> : vector<3x256xf32>
    %11 = tpu.matmul %10, %8, %cst_8 {dimension_numbers = #tpu.dot_dimension_numbers<[1], [0], [0], [1], [0, 0, 1, 1], [], []>} : vector<3x8xbf16>, vector<8x256xbf16>, vector<3x256xf32> -> vector<3x256xf32>
    %12 = arith.addf %7, %11 : vector<3x256xf32>
    %13 = vector.extract_strided_slice %6 {offsets = [0, 1], sizes = [8, 256], strides = [1, 1]} : vector<8x512xbf16> to vector<8x256xbf16>
    %c1 = arith.constant 1 : index
    %c0_9 = arith.constant 0 : index
    %c0_10 = arith.constant 0 : index
    %14 = vector.load %arg4[%c1, %c0_9, %c0_10] : memref<27x3x8xbf16, #tpu.memory_space<vmem>>, vector<1x3x8xbf16>
    %15 = vector.shape_cast %14 : vector<1x3x8xbf16> to vector<3x8xbf16>
    %cst_11 = arith.constant dense<0.000000e+00> : vector<3x256xf32>
    %16 = tpu.matmul %15, %13, %cst_11 {dimension_numbers = #tpu.dot_dimension_numbers<[1], [0], [0], [1], [0, 0, 1, 1], [], []>} : vector<3x8xbf16>, vector<8x256xbf16>, vector<3x256xf32> -> vector<3x256xf32>
    %17 = arith.addf %12, %16 : vector<3x256xf32>
    %18 = vector.extract_strided_slice %6 {offsets = [0, 2], sizes = [8, 256], strides = [1, 1]} : vector<8x512xbf16> to vector<8x256xbf16>
    %c2 = arith.constant 2 : index
    %c0_12 = arith.constant 0 : index
    %c0_13 = arith.constant 0 : index
    %19 = vector.load %arg4[%c2, %c0_12, %c0_13] : memref<27x3x8xbf16, #tpu.memory_space<vmem>>, vector<1x3x8xbf16>
    %20 = vector.shape_cast %19 : vector<1x3x8xbf16> to vector<3x8xbf16>
    %cst_14 = arith.constant dense<0.000000e+00> : vector<3x256xf32>
    %21 = tpu.matmul %20, %18, %cst_14 {dimension_numbers = #tpu.dot_dimension_numbers<[1], [0], [0], [1], [0, 0, 1, 1], [], []>} : vector<3x8xbf16>, vector<8x256xbf16>, vector<3x256xf32> -> vector<3x256xf32>
    %22 = arith.addf %17, %21 : vector<3x256xf32>
    %23 = vector.extract_strided_slice %6 {offsets = [0, 6], sizes = [8, 256], strides = [1, 1]} : vector<8x512xbf16> to vector<8x256xbf16>
    %c3 = arith.constant 3 : index
    %c0_15 = arith.constant 0 : index
    %c0_16 = arith.constant 0 : index
    %24 = vector.load %arg4[%c3, %c0_15, %c0_16] : memref<27x3x8xbf16, #tpu.memory_space<vmem>>, vector<1x3x8xbf16>
    %25 = vector.shape_cast %24 : vector<1x3x8xbf16> to vector<3x8xbf16>
    %cst_17 = arith.constant dense<0.000000e+00> : vector<3x256xf32>
    %26 = tpu.matmul %25, %23, %cst_17 {dimension_numbers = #tpu.dot_dimension_numbers<[1], [0], [0], [1], [0, 0, 1, 1], [], []>} : vector<3x8xbf16>, vector<8x256xbf16>, vector<3x256xf32> -> vector<3x256xf32>
    %27 = arith.addf %22, %26 : vector<3x256xf32>
    %28 = vector.extract_strided_slice %6 {offsets = [0, 7], sizes = [8, 256], strides = [1, 1]} : vector<8x512xbf16> to vector<8x256xbf16>
    %c4 = arith.constant 4 : index
    %c0_18 = arith.constant 0 : index
    %c0_19 = arith.constant 0 : index
    %29 = vector.load %arg4[%c4, %c0_18, %c0_19] : memref<27x3x8xbf16, #tpu.memory_space<vmem>>, vector<1x3x8xbf16>
    %30 = vector.shape_cast %29 : vector<1x3x8xbf16> to vector<3x8xbf16>
    %cst_20 = arith.constant dense<0.000000e+00> : vector<3x256xf32>
    %31 = tpu.matmul %30, %28, %cst_20 {dimension_numbers = #tpu.dot_dimension_numbers<[1], [0], [0], [1], [0, 0, 1, 1], [], []>} : vector<3x8xbf16>, vector<8x256xbf16>, vector<3x256xf32> -> vector<3x256xf32>
    %32 = arith.addf %27, %31 : vector<3x256xf32>
    %33 = vector.extract_strided_slice %6 {offsets = [0, 8], sizes = [8, 256], strides = [1, 1]} : vector<8x512xbf16> to vector<8x256xbf16>
    %c5 = arith.constant 5 : index
    %c0_21 = arith.constant 0 : index
    %c0_22 = arith.constant 0 : index
    %34 = vector.load %arg4[%c5, %c0_21, %c0_22] : memref<27x3x8xbf16, #tpu.memory_space<vmem>>, vector<1x3x8xbf16>
    %35 = vector.shape_cast %34 : vector<1x3x8xbf16> to vector<3x8xbf16>
    %cst_23 = arith.constant dense<0.000000e+00> : vector<3x256xf32>
    %36 = tpu.matmul %35, %33, %cst_23 {dimension_numbers = #tpu.dot_dimension_numbers<[1], [0], [0], [1], [0, 0, 1, 1], [], []>} : vector<3x8xbf16>, vector<8x256xbf16>, vector<3x256xf32> -> vector<3x256xf32>
    %37 = arith.addf %32, %36 : vector<3x256xf32>
    %38 = vector.extract_strided_slice %6 {offsets = [0, 12], sizes = [8, 256], strides = [1, 1]} : vector<8x512xbf16> to vector<8x256xbf16>
    %c6 = arith.constant 6 : index
    %c0_24 = arith.constant 0 : index
    %c0_25 = arith.constant 0 : index
    %39 = vector.load %arg4[%c6, %c0_24, %c0_25] : memref<27x3x8xbf16, #tpu.memory_space<vmem>>, vector<1x3x8xbf16>
    %40 = vector.shape_cast %39 : vector<1x3x8xbf16> to vector<3x8xbf16>
    %cst_26 = arith.constant dense<0.000000e+00> : vector<3x256xf32>
    %41 = tpu.matmul %40, %38, %cst_26 {dimension_numbers = #tpu.dot_dimension_numbers<[1], [0], [0], [1], [0, 0, 1, 1], [], []>} : vector<3x8xbf16>, vector<8x256xbf16>, vector<3x256xf32> -> vector<3x256xf32>
    %42 = arith.addf %37, %41 : vector<3x256xf32>
    %43 = vector.extract_strided_slice %6 {offsets = [0, 13], sizes = [8, 256], strides = [1, 1]} : vector<8x512xbf16> to vector<8x256xbf16>
    %c7 = arith.constant 7 : index
    %c0_27 = arith.constant 0 : index
    %c0_28 = arith.constant 0 : index
    %44 = vector.load %arg4[%c7, %c0_27, %c0_28] : memref<27x3x8xbf16, #tpu.memory_space<vmem>>, vector<1x3x8xbf16>
    %45 = vector.shape_cast %44 : vector<1x3x8xbf16> to vector<3x8xbf16>
    %cst_29 = arith.constant dense<0.000000e+00> : vector<3x256xf32>
    %46 = tpu.matmul %45, %43, %cst_29 {dimension_numbers = #tpu.dot_dimension_numbers<[1], [0], [0], [1], [0, 0, 1, 1], [], []>} : vector<3x8xbf16>, vector<8x256xbf16>, vector<3x256xf32> -> vector<3x256xf32>
    %47 = arith.addf %42, %46 : vector<3x256xf32>
    %48 = vector.extract_strided_slice %6 {offsets = [0, 14], sizes = [8, 256], strides = [1, 1]} : vector<8x512xbf16> to vector<8x256xbf16>
    %c8 = arith.constant 8 : index
    %c0_30 = arith.constant 0 : index
    %c0_31 = arith.constant 0 : index
    %49 = vector.load %arg4[%c8, %c0_30, %c0_31] : memref<27x3x8xbf16, #tpu.memory_space<vmem>>, vector<1x3x8xbf16>
    %50 = vector.shape_cast %49 : vector<1x3x8xbf16> to vector<3x8xbf16>
    %cst_32 = arith.constant dense<0.000000e+00> : vector<3x256xf32>
    %51 = tpu.matmul %50, %48, %cst_32 {dimension_numbers = #tpu.dot_dimension_numbers<[1], [0], [0], [1], [0, 0, 1, 1], [], []>} : vector<3x8xbf16>, vector<8x256xbf16>, vector<3x256xf32> -> vector<3x256xf32>
    %52 = arith.addf %47, %51 : vector<3x256xf32>
    %53 = vector.extract_strided_slice %6 {offsets = [0, 36], sizes = [8, 256], strides = [1, 1]} : vector<8x512xbf16> to vector<8x256xbf16>
    %c9 = arith.constant 9 : index
    %c0_33 = arith.constant 0 : index
    %c0_34 = arith.constant 0 : index
    %54 = vector.load %arg4[%c9, %c0_33, %c0_34] : memref<27x3x8xbf16, #tpu.memory_space<vmem>>, vector<1x3x8xbf16>
    %55 = vector.shape_cast %54 : vector<1x3x8xbf16> to vector<3x8xbf16>
    %cst_35 = arith.constant dense<0.000000e+00> : vector<3x256xf32>
    %56 = tpu.matmul %55, %53, %cst_35 {dimension_numbers = #tpu.dot_dimension_numbers<[1], [0], [0], [1], [0, 0, 1, 1], [], []>} : vector<3x8xbf16>, vector<8x256xbf16>, vector<3x256xf32> -> vector<3x256xf32>
    %57 = arith.addf %52, %56 : vector<3x256xf32>
    %58 = vector.extract_strided_slice %6 {offsets = [0, 37], sizes = [8, 256], strides = [1, 1]} : vector<8x512xbf16> to vector<8x256xbf16>
    %c10 = arith.constant 10 : index
    %c0_36 = arith.constant 0 : index
    %c0_37 = arith.constant 0 : index
    %59 = vector.load %arg4[%c10, %c0_36, %c0_37] : memref<27x3x8xbf16, #tpu.memory_space<vmem>>, vector<1x3x8xbf16>
    %60 = vector.shape_cast %59 : vector<1x3x8xbf16> to vector<3x8xbf16>
    %cst_38 = arith.constant dense<0.000000e+00> : vector<3x256xf32>
    %61 = tpu.matmul %60, %58, %cst_38 {dimension_numbers = #tpu.dot_dimension_numbers<[1], [0], [0], [1], [0, 0, 1, 1], [], []>} : vector<3x8xbf16>, vector<8x256xbf16>, vector<3x256xf32> -> vector<3x256xf32>
    %62 = arith.addf %57, %61 : vector<3x256xf32>
    %63 = vector.extract_strided_slice %6 {offsets = [0, 38], sizes = [8, 256], strides = [1, 1]} : vector<8x512xbf16> to vector<8x256xbf16>
    %c11 = arith.constant 11 : index
    %c0_39 = arith.constant 0 : index
    %c0_40 = arith.constant 0 : index
    %64 = vector.load %arg4[%c11, %c0_39, %c0_40] : memref<27x3x8xbf16, #tpu.memory_space<vmem>>, vector<1x3x8xbf16>
    %65 = vector.shape_cast %64 : vector<1x3x8xbf16> to vector<3x8xbf16>
    %cst_41 = arith.constant dense<0.000000e+00> : vector<3x256xf32>
    %66 = tpu.matmul %65, %63, %cst_41 {dimension_numbers = #tpu.dot_dimension_numbers<[1], [0], [0], [1], [0, 0, 1, 1], [], []>} : vector<3x8xbf16>, vector<8x256xbf16>, vector<3x256xf32> -> vector<3x256xf32>
    %67 = arith.addf %62, %66 : vector<3x256xf32>
    %68 = vector.extract_strided_slice %6 {offsets = [0, 42], sizes = [8, 256], strides = [1, 1]} : vector<8x512xbf16> to vector<8x256xbf16>
    %c12 = arith.constant 12 : index
    %c0_42 = arith.constant 0 : index
    %c0_43 = arith.constant 0 : index
    %69 = vector.load %arg4[%c12, %c0_42, %c0_43] : memref<27x3x8xbf16, #tpu.memory_space<vmem>>, vector<1x3x8xbf16>
    %70 = vector.shape_cast %69 : vector<1x3x8xbf16> to vector<3x8xbf16>
    %cst_44 = arith.constant dense<0.000000e+00> : vector<3x256xf32>
    %71 = tpu.matmul %70, %68, %cst_44 {dimension_numbers = #tpu.dot_dimension_numbers<[1], [0], [0], [1], [0, 0, 1, 1], [], []>} : vector<3x8xbf16>, vector<8x256xbf16>, vector<3x256xf32> -> vector<3x256xf32>
    %72 = arith.addf %67, %71 : vector<3x256xf32>
    %73 = vector.extract_strided_slice %6 {offsets = [0, 43], sizes = [8, 256], strides = [1, 1]} : vector<8x512xbf16> to vector<8x256xbf16>
    %c13 = arith.constant 13 : index
    %c0_45 = arith.constant 0 : index
    %c0_46 = arith.constant 0 : index
    %74 = vector.load %arg4[%c13, %c0_45, %c0_46] : memref<27x3x8xbf16, #tpu.memory_space<vmem>>, vector<1x3x8xbf16>
    %75 = vector.shape_cast %74 : vector<1x3x8xbf16> to vector<3x8xbf16>
    %cst_47 = arith.constant dense<0.000000e+00> : vector<3x256xf32>
    %76 = tpu.matmul %75, %73, %cst_47 {dimension_numbers = #tpu.dot_dimension_numbers<[1], [0], [0], [1], [0, 0, 1, 1], [], []>} : vector<3x8xbf16>, vector<8x256xbf16>, vector<3x256xf32> -> vector<3x256xf32>
    %77 = arith.addf %72, %76 : vector<3x256xf32>
    %78 = vector.extract_strided_slice %6 {offsets = [0, 44], sizes = [8, 256], strides = [1, 1]} : vector<8x512xbf16> to vector<8x256xbf16>
    %c14 = arith.constant 14 : index
    %c0_48 = arith.constant 0 : index
    %c0_49 = arith.constant 0 : index
    %79 = vector.load %arg4[%c14, %c0_48, %c0_49] : memref<27x3x8xbf16, #tpu.memory_space<vmem>>, vector<1x3x8xbf16>
    %80 = vector.shape_cast %79 : vector<1x3x8xbf16> to vector<3x8xbf16>
    %cst_50 = arith.constant dense<0.000000e+00> : vector<3x256xf32>
    %81 = tpu.matmul %80, %78, %cst_50 {dimension_numbers = #tpu.dot_dimension_numbers<[1], [0], [0], [1], [0, 0, 1, 1], [], []>} : vector<3x8xbf16>, vector<8x256xbf16>, vector<3x256xf32> -> vector<3x256xf32>
    %82 = arith.addf %77, %81 : vector<3x256xf32>
    %83 = vector.extract_strided_slice %6 {offsets = [0, 48], sizes = [8, 256], strides = [1, 1]} : vector<8x512xbf16> to vector<8x256xbf16>
    %c15 = arith.constant 15 : index
    %c0_51 = arith.constant 0 : index
    %c0_52 = arith.constant 0 : index
    %84 = vector.load %arg4[%c15, %c0_51, %c0_52] : memref<27x3x8xbf16, #tpu.memory_space<vmem>>, vector<1x3x8xbf16>
    %85 = vector.shape_cast %84 : vector<1x3x8xbf16> to vector<3x8xbf16>
    %cst_53 = arith.constant dense<0.000000e+00> : vector<3x256xf32>
    %86 = tpu.matmul %85, %83, %cst_53 {dimension_numbers = #tpu.dot_dimension_numbers<[1], [0], [0], [1], [0, 0, 1, 1], [], []>} : vector<3x8xbf16>, vector<8x256xbf16>, vector<3x256xf32> -> vector<3x256xf32>
    %87 = arith.addf %82, %86 : vector<3x256xf32>
    %88 = vector.extract_strided_slice %6 {offsets = [0, 49], sizes = [8, 256], strides = [1, 1]} : vector<8x512xbf16> to vector<8x256xbf16>
    %c16 = arith.constant 16 : index
    %c0_54 = arith.constant 0 : index
    %c0_55 = arith.constant 0 : index
    %89 = vector.load %arg4[%c16, %c0_54, %c0_55] : memref<27x3x8xbf16, #tpu.memory_space<vmem>>, vector<1x3x8xbf16>
    %90 = vector.shape_cast %89 : vector<1x3x8xbf16> to vector<3x8xbf16>
    %cst_56 = arith.constant dense<0.000000e+00> : vector<3x256xf32>
    %91 = tpu.matmul %90, %88, %cst_56 {dimension_numbers = #tpu.dot_dimension_numbers<[1], [0], [0], [1], [0, 0, 1, 1], [], []>} : vector<3x8xbf16>, vector<8x256xbf16>, vector<3x256xf32> -> vector<3x256xf32>
    %92 = arith.addf %87, %91 : vector<3x256xf32>
    %93 = vector.extract_strided_slice %6 {offsets = [0, 50], sizes = [8, 256], strides = [1, 1]} : vector<8x512xbf16> to vector<8x256xbf16>
    %c17 = arith.constant 17 : index
    %c0_57 = arith.constant 0 : index
    %c0_58 = arith.constant 0 : index
    %94 = vector.load %arg4[%c17, %c0_57, %c0_58] : memref<27x3x8xbf16, #tpu.memory_space<vmem>>, vector<1x3x8xbf16>
    %95 = vector.shape_cast %94 : vector<1x3x8xbf16> to vector<3x8xbf16>
    %cst_59 = arith.constant dense<0.000000e+00> : vector<3x256xf32>
    %96 = tpu.matmul %95, %93, %cst_59 {dimension_numbers = #tpu.dot_dimension_numbers<[1], [0], [0], [1], [0, 0, 1, 1], [], []>} : vector<3x8xbf16>, vector<8x256xbf16>, vector<3x256xf32> -> vector<3x256xf32>
    %97 = arith.addf %92, %96 : vector<3x256xf32>
    %98 = vector.extract_strided_slice %6 {offsets = [0, 72], sizes = [8, 256], strides = [1, 1]} : vector<8x512xbf16> to vector<8x256xbf16>
    %c18 = arith.constant 18 : index
    %c0_60 = arith.constant 0 : index
    %c0_61 = arith.constant 0 : index
    %99 = vector.load %arg4[%c18, %c0_60, %c0_61] : memref<27x3x8xbf16, #tpu.memory_space<vmem>>, vector<1x3x8xbf16>
    %100 = vector.shape_cast %99 : vector<1x3x8xbf16> to vector<3x8xbf16>
    %cst_62 = arith.constant dense<0.000000e+00> : vector<3x256xf32>
    %101 = tpu.matmul %100, %98, %cst_62 {dimension_numbers = #tpu.dot_dimension_numbers<[1], [0], [0], [1], [0, 0, 1, 1], [], []>} : vector<3x8xbf16>, vector<8x256xbf16>, vector<3x256xf32> -> vector<3x256xf32>
    %102 = arith.addf %97, %101 : vector<3x256xf32>
    %103 = vector.extract_strided_slice %6 {offsets = [0, 73], sizes = [8, 256], strides = [1, 1]} : vector<8x512xbf16> to vector<8x256xbf16>
    %c19 = arith.constant 19 : index
    %c0_63 = arith.constant 0 : index
    %c0_64 = arith.constant 0 : index
    %104 = vector.load %arg4[%c19, %c0_63, %c0_64] : memref<27x3x8xbf16, #tpu.memory_space<vmem>>, vector<1x3x8xbf16>
    %105 = vector.shape_cast %104 : vector<1x3x8xbf16> to vector<3x8xbf16>
    %cst_65 = arith.constant dense<0.000000e+00> : vector<3x256xf32>
    %106 = tpu.matmul %105, %103, %cst_65 {dimension_numbers = #tpu.dot_dimension_numbers<[1], [0], [0], [1], [0, 0, 1, 1], [], []>} : vector<3x8xbf16>, vector<8x256xbf16>, vector<3x256xf32> -> vector<3x256xf32>
    %107 = arith.addf %102, %106 : vector<3x256xf32>
    %108 = vector.extract_strided_slice %6 {offsets = [0, 74], sizes = [8, 256], strides = [1, 1]} : vector<8x512xbf16> to vector<8x256xbf16>
    %c20 = arith.constant 20 : index
    %c0_66 = arith.constant 0 : index
    %c0_67 = arith.constant 0 : index
    %109 = vector.load %arg4[%c20, %c0_66, %c0_67] : memref<27x3x8xbf16, #tpu.memory_space<vmem>>, vector<1x3x8xbf16>
    %110 = vector.shape_cast %109 : vector<1x3x8xbf16> to vector<3x8xbf16>
    %cst_68 = arith.constant dense<0.000000e+00> : vector<3x256xf32>
    %111 = tpu.matmul %110, %108, %cst_68 {dimension_numbers = #tpu.dot_dimension_numbers<[1], [0], [0], [1], [0, 0, 1, 1], [], []>} : vector<3x8xbf16>, vector<8x256xbf16>, vector<3x256xf32> -> vector<3x256xf32>
    %112 = arith.addf %107, %111 : vector<3x256xf32>
    %113 = vector.extract_strided_slice %6 {offsets = [0, 78], sizes = [8, 256], strides = [1, 1]} : vector<8x512xbf16> to vector<8x256xbf16>
    %c21 = arith.constant 21 : index
    %c0_69 = arith.constant 0 : index
    %c0_70 = arith.constant 0 : index
    %114 = vector.load %arg4[%c21, %c0_69, %c0_70] : memref<27x3x8xbf16, #tpu.memory_space<vmem>>, vector<1x3x8xbf16>
    %115 = vector.shape_cast %114 : vector<1x3x8xbf16> to vector<3x8xbf16>
    %cst_71 = arith.constant dense<0.000000e+00> : vector<3x256xf32>
    %116 = tpu.matmul %115, %113, %cst_71 {dimension_numbers = #tpu.dot_dimension_numbers<[1], [0], [0], [1], [0, 0, 1, 1], [], []>} : vector<3x8xbf16>, vector<8x256xbf16>, vector<3x256xf32> -> vector<3x256xf32>
    %117 = arith.addf %112, %116 : vector<3x256xf32>
    %118 = vector.extract_strided_slice %6 {offsets = [0, 79], sizes = [8, 256], strides = [1, 1]} : vector<8x512xbf16> to vector<8x256xbf16>
    %c22 = arith.constant 22 : index
    %c0_72 = arith.constant 0 : index
    %c0_73 = arith.constant 0 : index
    %119 = vector.load %arg4[%c22, %c0_72, %c0_73] : memref<27x3x8xbf16, #tpu.memory_space<vmem>>, vector<1x3x8xbf16>
    %120 = vector.shape_cast %119 : vector<1x3x8xbf16> to vector<3x8xbf16>
    %cst_74 = arith.constant dense<0.000000e+00> : vector<3x256xf32>
    %121 = tpu.matmul %120, %118, %cst_74 {dimension_numbers = #tpu.dot_dimension_numbers<[1], [0], [0], [1], [0, 0, 1, 1], [], []>} : vector<3x8xbf16>, vector<8x256xbf16>, vector<3x256xf32> -> vector<3x256xf32>
    %122 = arith.addf %117, %121 : vector<3x256xf32>
    %123 = vector.extract_strided_slice %6 {offsets = [0, 80], sizes = [8, 256], strides = [1, 1]} : vector<8x512xbf16> to vector<8x256xbf16>
    %c23 = arith.constant 23 : index
    %c0_75 = arith.constant 0 : index
    %c0_76 = arith.constant 0 : index
    %124 = vector.load %arg4[%c23, %c0_75, %c0_76] : memref<27x3x8xbf16, #tpu.memory_space<vmem>>, vector<1x3x8xbf16>
    %125 = vector.shape_cast %124 : vector<1x3x8xbf16> to vector<3x8xbf16>
    %cst_77 = arith.constant dense<0.000000e+00> : vector<3x256xf32>
    %126 = tpu.matmul %125, %123, %cst_77 {dimension_numbers = #tpu.dot_dimension_numbers<[1], [0], [0], [1], [0, 0, 1, 1], [], []>} : vector<3x8xbf16>, vector<8x256xbf16>, vector<3x256xf32> -> vector<3x256xf32>
    %127 = arith.addf %122, %126 : vector<3x256xf32>
    %128 = vector.extract_strided_slice %6 {offsets = [0, 84], sizes = [8, 256], strides = [1, 1]} : vector<8x512xbf16> to vector<8x256xbf16>
    %c24 = arith.constant 24 : index
    %c0_78 = arith.constant 0 : index
    %c0_79 = arith.constant 0 : index
    %129 = vector.load %arg4[%c24, %c0_78, %c0_79] : memref<27x3x8xbf16, #tpu.memory_space<vmem>>, vector<1x3x8xbf16>
    %130 = vector.shape_cast %129 : vector<1x3x8xbf16> to vector<3x8xbf16>
    %cst_80 = arith.constant dense<0.000000e+00> : vector<3x256xf32>
    %131 = tpu.matmul %130, %128, %cst_80 {dimension_numbers = #tpu.dot_dimension_numbers<[1], [0], [0], [1], [0, 0, 1, 1], [], []>} : vector<3x8xbf16>, vector<8x256xbf16>, vector<3x256xf32> -> vector<3x256xf32>
    %132 = arith.addf %127, %131 : vector<3x256xf32>
    %133 = vector.extract_strided_slice %6 {offsets = [0, 85], sizes = [8, 256], strides = [1, 1]} : vector<8x512xbf16> to vector<8x256xbf16>
    %c25 = arith.constant 25 : index
    %c0_81 = arith.constant 0 : index
    %c0_82 = arith.constant 0 : index
    %134 = vector.load %arg4[%c25, %c0_81, %c0_82] : memref<27x3x8xbf16, #tpu.memory_space<vmem>>, vector<1x3x8xbf16>
    %135 = vector.shape_cast %134 : vector<1x3x8xbf16> to vector<3x8xbf16>
    %cst_83 = arith.constant dense<0.000000e+00> : vector<3x256xf32>
    %136 = tpu.matmul %135, %133, %cst_83 {dimension_numbers = #tpu.dot_dimension_numbers<[1], [0], [0], [1], [0, 0, 1, 1], [], []>} : vector<3x8xbf16>, vector<8x256xbf16>, vector<3x256xf32> -> vector<3x256xf32>
    %137 = arith.addf %132, %136 : vector<3x256xf32>
    %138 = vector.extract_strided_slice %6 {offsets = [0, 86], sizes = [8, 256], strides = [1, 1]} : vector<8x512xbf16> to vector<8x256xbf16>
    %c26 = arith.constant 26 : index
    %c0_84 = arith.constant 0 : index
    %c0_85 = arith.constant 0 : index
    %139 = vector.load %arg4[%c26, %c0_84, %c0_85] : memref<27x3x8xbf16, #tpu.memory_space<vmem>>, vector<1x3x8xbf16>
    %140 = vector.shape_cast %139 : vector<1x3x8xbf16> to vector<3x8xbf16>
    %cst_86 = arith.constant dense<0.000000e+00> : vector<3x256xf32>
    %141 = tpu.matmul %140, %138, %cst_86 {dimension_numbers = #tpu.dot_dimension_numbers<[1], [0], [0], [1], [0, 0, 1, 1], [], []>} : vector<3x8xbf16>, vector<8x256xbf16>, vector<3x256xf32> -> vector<3x256xf32>
    %142 = arith.addf %137, %141 : vector<3x256xf32>
    %c0_87 = arith.constant 0 : index
    %c0_88 = arith.constant 0 : index
    %143 = vector.load %arg5[%c0_87, %c0_88] : memref<3x1xf32, #tpu.memory_space<vmem>>, vector<3x1xf32>
    %144 = vector.broadcast %143 : vector<3x1xf32> to vector<3x256xf32>
    %145 = arith.addf %142, %144 : vector<3x256xf32>
    %c0_89 = arith.constant 0 : index
    %c0_90 = arith.constant 0 : index
    %c0_91 = arith.constant 0 : index
    %146 = vector.load %arg6[%c0_89, %c0_90, %c0_91] : memref<1x3x256xf32, #tpu.memory_space<vmem>>, vector<1x3x256xf32>
    %147 = vector.shape_cast %146 : vector<1x3x256xf32> to vector<3x256xf32>
    %148 = vector.shape_cast %145 : vector<3x256xf32> to vector<1x3x256xf32>
    tpu.vector_store %arg6[%c0_89, %c0_90, %c0_91], %148 {strides = array<i32>} : memref<1x3x256xf32, #tpu.memory_space<vmem>>, vector<1x3x256xf32>,
    return
  }
  func.func @transform_0(%arg0: i32, %arg1: i32) -> (i32, i32, i32) {
    %c0_i32 = arith.constant 0 : i32
    %c0_i32_0 = arith.constant 0 : i32
    return %arg0, %c0_i32, %arg1 : i32, i32, i32
  }
  func.func @transform_1(%arg0: i32, %arg1: i32) -> (i32, i32, i32) {
    %c1_i32 = arith.constant 1 : i32
    %0 = arith.addi %arg1, %c1_i32 : i32
    %c0_i32 = arith.constant 0 : i32
    %c0_i32_0 = arith.constant 0 : i32
    return %arg0, %c0_i32, %0 : i32, i32, i32
  }
  func.func @transform_2(%arg0: i32, %arg1: i32) -> (i32, i32, i32) {
    %c0_i32 = arith.constant 0 : i32
    %c0_i32_0 = arith.constant 0 : i32
    %c0_i32_1 = arith.constant 0 : i32
    %c0_i32_2 = arith.constant 0 : i32
    return %c0_i32, %c0_i32_0, %c0_i32_1 : i32, i32, i32
  }
  func.func @transform_3(%arg0: i32, %arg1: i32) -> (i32, i32) {
    %c0_i32 = arith.constant 0 : i32
    %c0_i32_0 = arith.constant 0 : i32
    %c0_i32_1 = arith.constant 0 : i32
    return %c0_i32, %c0_i32_0 : i32, i32
  }
  func.func @transform_4(%arg0: i32, %arg1: i32) -> (i32, i32, i32) {
    %c0_i32 = arith.constant 0 : i32
    %c0_i32_0 = arith.constant 0 : i32
    return %arg0, %c0_i32, %arg1 : i32, i32, i32
  }
}

</mosaic_0001>

<bundles_post_ra>
// kernel: crnet_forward.5
= control target key start
LH: loop header
LB: loop body
LE: loop exit
PB: predicated region body
PF: predicated region fallthrough
CT: control target
= control target key end

     0   :  { %s1932_s15 = smov 0   ;;  %s1934_s16 = smov 0   ;;  %s2527_s0 = inlined_call_operand.vmem [shape: f32[6,1,6912], index: 0, kind: input, shape index: {}, may-alias: {0,1}]   ;;  %s2528_s1 = inlined_call_operand.vmem [shape: f32[6,1,6912], index: 1, kind: input, shape index: {}, may-alias: {0,1}]   ;;  %s2529_s2 = inlined_call_operand.vmem [shape: bf16[27,4,1], index: 2, kind: input, shape index: {}]   ;;  %s2530_s3 = inlined_call_operand.vmem [shape: f32[4,1], index: 3, kind: input, shape index: {}]   ;;  %s2531_s4 = inlined_call_operand.vmem [shape: f32[6,4,6144], index: 4, kind: output, shape index: {}]  }
   0x1   :  { %s1936_s17 = smov 0   ;;  %s1938_s18 = smov 0  }
   0x2   :  { %s1940_s19 = smov 0  }
   0x3 LB: > { %s23_s20 = sadd.s32 1, %s1869_s17  ;;  %s26_s21 = sadd.s32 1, %s1873_s18  ;;  %s1877_s19 = sphi %s1940_s19, %s14_s19   ;;  %s1873_s18 = sphi %s1938_s18, %s2535_s18   ;;  %s1869_s17 = sphi %s1936_s17, %s2534_s17   ;;  %s1865_s16 = sphi %s1934_s16, %s2533_s16   ;;  %s1861_s15 = sphi %s1932_s15, %s2532_s15  }
   0x4   : > { %p24_p0 = scmp.ge.s32.totalorder %s23_s20, 8  ;;  %p1672_p1 = scmp.ge.s32.totalorder %s1877_s19, 1 }
   0x5   : > { %p202_p2 = scmp.lt.s32.totalorder %s1877_s19, 49 }
   0x6   : > { %s2537_s20 = smov (%p24_p0, %s23_s20), 0  ;;  %s2539_s21 = smov (!%p24_p0, %s26_s21), %s1873_s18 }
   0x7   : > { %p203_p3 = pnand %p1672_p1, %p202_p2  ;;  %p28_p4 = scmp.ge.s32.totalorder %s2539_s21, 6 }
   0x8   : > { %p245_p5 = scmp.lt.s32.totalorder (!%p203_p3), %s1865_s16, 5  ;;  %s253_s30 = sadd.s32 (!%p203_p3), 1, %s1861_s15 }
   0x9   : > { %s2541_s21 = smov (%p28_p4, %s2539_s21), 0  ;;  %206 = sbr.rel (%p203_p3) target bundleno = 390 (0x186), region = 36 }
   0xa   : > { %s254_s5 = smul.u32 (!%p203_p3), 6, %s253_s30  ;;  %s1880_s23 = smov (!%p203_p3), 127  }
   0xb   : > { %s1983_s7 = smul.u32 (!%p203_p3), 6, %s1861_s15  ;;  %s1881_s24 = smov (!%p203_p3), 126  }
   0xc   : > { %p257_p6 = scmp.lt.s32.totalorder (!%p203_p3), %s254_s5, 53  ;;  %s1882_s29 = smov (!%p203_p3), 110  }
   0xd   : > { %p247_p7 = scmp.lt.s32.totalorder (!%p203_p3), %s1983_s7, 53  ;;  %s1883_s30 = smov (!%p203_p3), 109  }
   0xe   : > { %v1675_v0 = vld [vmem:[%s2529_s2 + $0x4] sm:$0x3]  ;;  %v1676_v1 = vld [vmem:[%s2529_s2 + $0x6] sm:$0x3]  ;;  %v277_v2 = vlaneseq  ;;  %v1879_v3 = vmov 0   ;;  %s2543_s16 = smov (!%p245_p5, %s1865_s16), 5 }
   0xf   : > { %1778 = vset.pattern.permute.xlu1 %v1879_v3  ;;  %1772 = vset.pattern.permute.xlu0 %v1879_v3  ;;  %v445_v4 = vunpack.c.l.bf16 %v1675_v0  ;;  %v488_v5 = vunpack.c.l.bf16 %v1676_v1  ;;  %v338_v6 = vld [vmem:[%s2529_s2] sm:$0x3]  ;;  %v1674_v7 = vld [vmem:[%s2529_s2 + $0x2] sm:$0x3]  ;;  %s1702_s6 = smul.u32 54, %s2543_s16  ;;  %s2545_s5 = smov (!%p257_p6, %s254_s5), 53 }
  0x10   : > { %v339_v8 = vunpack.c.l.bf16 %v338_v6  ;;  %v396_v9 = vunpack.c.l.bf16 %v1674_v7  ;;  %v1980_v12 = vshrl.u32 %v277_v2, 7  ;;  %s248_s12 = scalar_select %p247_p7, %s1983_s7, 53  ;;  %v1677_v42 = vld [vmem:[%s2529_s2 + $0x8] sm:$0x3]  ;;  %v1678_v43 = vld [vmem:[%s2529_s2 + $0xa] sm:$0x3] }
  0x11   : > { %v1779_v10 = vpack.i.bf16 %v488_v5, %v445_v4  ;;  %s260_s8 = sadd.s32 %s1702_s6, %s2545_s5  ;;  %v531_v44 = vunpack.c.l.bf16 %v1677_v42  ;;  %v574_v45 = vunpack.c.l.bf16 %v1678_v43  ;;  %v1679_v54 = vld [vmem:[%s2529_s2 + $0xc] sm:$0x3]  ;;  %v1680_v55 = vld [vmem:[%s2529_s2 + $0xe] sm:$0x3]  ;;  %s1884_s10 = smov 108   ;;  %vm426_vm0 = vcmask 1043456  }
  0x12   : > { %v1773_v11 = vpack.i.bf16 %v396_v9, %v339_v8  ;;  %v1986_v13 = vsub.s32 0, %v1980_v12  ;;  %s261_s11 = scalar_lea.vmem %s2528_s1, %s260_s8  ;;  %v287_v14 = vsub.s32 2, %v1980_v12  ;;  %v283_v15 = vsub.s32 1, %v1980_v12  ;;  %s250_s13 = sadd.s32 %s1702_s6, %s248_s12  ;;  %v1681_v59 = vld [vmem:[%s2529_s2 + $0x10] sm:$0x3] }
  0x13   : > { %1780 = vperm.xlu1 %1778, %v1779_v10   ;;  %v275_v16 = vld [vmem:[%s261_s11] sm:$0x3f]  ;;  %v291_v17 = vsub.s32 3, %v1980_v12  ;;  %v295_v18 = vsub.s32 4, %v1980_v12  ;;  %v299_v19 = vsub.s32 5, %v1980_v12  ;;  %s251_s22 = scalar_lea.vmem %s2527_s0, %s250_s13  ;;  %v1784_v46 = vpack.i.bf16 %v574_v45, %v531_v44  ;;  %s1885_s11 = smov 92  }
  0x14   : > { %1774 = vperm.xlu0 %1772, %v1773_v11   ;;  %v311_v20 = vrot.slane %v275_v16, %v1986_v13  ;;  %v315_v21 = vrot.slane %v275_v16, %v283_v15  ;;  %v319_v22 = vrot.slane %v275_v16, %v287_v14  ;;  %v274_v26 = vld [vmem:[%s251_s22] sm:$0x3f]  ;;  %v617_v56 = vunpack.c.l.bf16 %v1679_v54  ;;  %v1682_v60 = vld [vmem:[%s2529_s2 + $0x12] sm:$0x3]  ;;  %s1886_s22 = smov 91   ;;  %s1888_s28 = smov 60  }
  0x15   : > { %v288_v27 = vrot.slane %v274_v26, %v287_v14  ;;  %v292_v28 = vrot.slane %v274_v26, %v291_v17  ;;  %v296_v29 = vrot.slane %v274_v26, %v295_v18  ;;  %v300_v30 = vrot.slane %v274_v26, %v299_v19  ;;  %v1683_v0 = vld [vmem:[%s2529_s2 + $0x14] sm:$0x3]  ;;  %v1684_v1 = vld [vmem:[%s2529_s2 + $0x16] sm:$0x3]  ;;  %v1685_v6 = vld [vmem:[%s2529_s2 + $0x18] sm:$0x3] }
  0x16   : > { %v2000_v23 = vrot.slane %v311_v20, %v1986_v13  ;;  %v2006_v24 = vrot.slane %v315_v21, %v1986_v13  ;;  %v2009_v25 = vrot.slane %v319_v22, %v1986_v13  ;;  %v280_v31 = vrot.slane %v274_v26, %v1986_v13  ;;  %v1686_v7 = vld [vmem:[%s2529_s2 + $0x1a] sm:$0x3]  ;;  %s1890_s9 = smov 58   ;;  %v1687_v11 = vld [vmem:[%s2529_s2 + $0x1c] sm:$0x3]  ;;  %s1892_s15 = smov 41  }
  0x17   : > { %v284_v32 = vrot.slane %v274_v26, %v283_v15  ;;  %v363_v33 = vrot.slane %v288_v27, %v1986_v13  ;;  %v367_v34 = vrot.slane %v292_v28, %v1986_v13  ;;  %v371_v35 = vrot.slane %v296_v29, %v1986_v13  ;;  %v1689_v26 = vld [vmem:[%s2529_s2 + $0x20] sm:$0x3]  ;;  %v1690_v27 = vld [vmem:[%s2529_s2 + $0x22] sm:$0x3]  ;;  %s1894_s27 = smov 24   ;;  %s1897_s12 = smov 22  }
  0x18   : > { %420 = vrot.lane.b32.xlu0 %v2000_v23, %s1880_s23  ;;  %v2017_v36 = vrot.slane %v300_v30, %v1986_v13  ;;  %v355_v37 = vrot.slane %v280_v31, %v1986_v13  ;;  %v323_v47 = vrot.slane %v275_v16, %v291_v17  ;;  %v327_v48 = vrot.slane %v275_v16, %v295_v18  ;;  %v1691_v44 = vld [vmem:[%s2529_s2 + $0x24] sm:$0x3]  ;;  %v1692_v45 = vld [vmem:[%s2529_s2 + $0x26] sm:$0x3]  ;;  %s1898_s13 = smov 120   ;;  %s1899_s14 = smov 119  }
  0x19   : > { %v359_v38 = vrot.slane %v284_v32, %v1986_v13  ;;  %v2021_v39 = vcombine.low %v363_v33, %v367_v34  ;;  %v331_v51 = vrot.slane %v275_v16, %v299_v19  ;;  %v660_v57 = vunpack.c.l.bf16 %v1680_v55  ;;  %s1900_s25 = smov 118   ;;  %s1901_s26 = smov 102  }
  0x1a   : > { %v2026_v41 = vcombine.low %v371_v35, %v2017_v36  ;;  %v1160_v49 = vrot.slane %v323_v47, %v1986_v13  ;;  %v1164_v50 = vrot.slane %v327_v48, %v1986_v13  ;;  %v703_v61 = vunpack.c.l.bf16 %v1681_v59  ;;  %s1902_s5 = smov 101   ;;  %s1903_s6 = smov 100  }
  0x1b   : > { %v2023_v40 = vcombine.low %v355_v37, %v359_v38  ;;  %416 = vrot.lane.b32.xlu1 %v2021_v39, %s1880_s23  ;;  %v2052_v53 = vrot.slane %v331_v51, %v1986_v13  ;;  %v1789_v58 = vpack.i.bf16 %v660_v57, %v617_v56  ;;  %v746_v62 = vunpack.c.l.bf16 %v1682_v60  ;;  %v1688_v13 = vld [vmem:[%s2529_s2 + $0x1e] sm:$0x3]  ;;  %v1694_v51 = vld [vmem:[%s2529_s2 + $0x2a] sm:$0x3]  ;;  %s1904_s8 = smov 84   ;;  %p267_p8 = scmp.lt.s32.totalorder %s1983_s7, 47 }
  0x1c   : > { %v2049_v52 = vcombine.low %v1160_v49, %v1164_v50  ;;  %v2093_v2 = vcombine.low %v2000_v23, %v2006_v24  ;;  %v800_v3 = vunpack.c.l.bf16 %v1683_v0  ;;  %v843_v4 = vunpack.c.l.bf16 %v1684_v1  ;;  %v1693_v50 = vld [vmem:[%s2529_s2 + $0x28] sm:$0x3] }
  0x1d   : > { %414 = vrot.lane.b32.xlu0 %v2023_v40, %s1880_s23  ;;  %v1794_v63 = vpack.i.bf16 %v746_v62, %v703_v61  ;;  %v886_v8 = vunpack.c.l.bf16 %v1685_v6  ;;  %v929_v9 = vunpack.c.l.bf16 %v1686_v7  ;;  %v972_v14 = vunpack.c.l.bf16 %v1687_v11  ;;  %s2547_s7 = smov (!%p267_p8, %s1983_s7), 47 }
  0x1e   : > { %v1799_v5 = vpack.i.bf16 %v843_v4, %v800_v3  ;;  %v1015_v15 = vunpack.c.l.bf16 %v1688_v13  ;;  %v1058_v28 = vunpack.c.l.bf16 %v1689_v26  ;;  %v1101_v29 = vunpack.c.l.bf16 %v1690_v27 }
  0x1f   : > { %418 = vrot.lane.b32.xlu1 %v2026_v41, %s1880_s23  ;;  %s1887_s23 = smov 90   ;;  %v1804_v10 = vpack.i.bf16 %v929_v9, %v886_v8  ;;  %v1895_v37 = vmov 839922192   ;;  %v1144_v47 = vunpack.c.l.bf16 %v1691_v44  ;;  %v1205_v48 = vunpack.c.l.bf16 %v1692_v45 }
  0x20   : > { %v1809_v17 = vpack.i.bf16 %v1015_v15, %v972_v14  ;;  %v1814_v32 = vpack.i.bf16 %v1101_v29, %v1058_v28  ;;  %v346_v38 = vunpack.c.l.s4 %v1895_v37  ;;  %vm428_vm1 = vcmask 1039360  }
  0x21   : > { %458 = vrot.lane.b32.xlu0 %v2023_v40, %s1881_s24  ;;  %vm471_vm2 = vcmask 1031168   ;;  %v1248_v59 = vunpack.c.l.bf16 %v1693_v50  ;;  %vm514_vm3 = vcmask 900096   ;;  %vm557_vm4 = vcmask 891904  }
  0x22   : > { %v2209_v8 = vcombine.low %v2017_v36, %v2000_v23  ;;  %v2217_v13 = vcombine.low %v2006_v24, %v2009_v25  ;;  %vm600_vm5 = vcmask 883712   ;;  %vm643_vm6 = vcmask 752640  }
  0x23   : > { %460 = vrot.lane.b32.xlu1 %v2021_v39, %s1881_s24  ;;  %vm686_vm7 = vcmask 744448   ;;  %vm729_vm8 = vcmask 736256   ;;  %vm783_vm9 = vcmask 490496   ;;  %vm826_vm10 = vcmask 482304  }
  0x24   : > { %vm869_vm11 = vcmask 474112   ;;  %vm912_vm12 = vcmask 343040   ;;  %vm955_vm13 = vcmask 334848   ;;  %vm998_vm14 = vcmask 326656  }
  0x25   : > { %462 = vrot.lane.b32.xlu0 %v2026_v41, %s1881_s24  ;;  %vm1041_vm15 = vcmask 195584  }
  0x27   : > { %464 = vrot.lane.b32.xlu1 %v2000_v23, %s1881_s24 }
  0x29   : > { %501 = vrot.lane.b32.xlu0 %v2023_v40, %s1882_s29 }
  0x2b   : > { %503 = vrot.lane.b32.xlu1 %v2021_v39, %s1882_s29 }
  0x2d   : > { %505 = vrot.lane.b32.xlu0 %v2026_v41, %s1882_s29 }
  0x2f   : > { %507 = vrot.lane.b32.xlu1 %v2000_v23, %s1882_s29  ;;  %s1889_s29 = smov 59  }
  0x31   : > { %1785 = vperm.xlu0 %1772, %v1784_v46   ;;  %v347_v46 = vunpack.c.0.s8 %v346_v38 }
  0x33   : > { %544 = vrot.lane.b32.xlu1 %v2023_v40, %s1883_s30  ;;  %v2185_v54 = vsub.s32 %v347_v46, %v1980_v12 }
  0x35   : > { %546 = vrot.lane.b32.xlu0 %v2021_v39, %s1883_s30 }
  0x37   : > { %548 = vrot.lane.b32.xlu1 %v2026_v41, %s1883_s30 }
  0x39   : > { %550 = vrot.lane.b32.xlu0 %v2000_v23, %s1883_s30 }
  0x3b   : > { %587 = vrot.lane.b32.xlu1 %v2023_v40, %s1884_s10 }
  0x3d   : > { %589 = vrot.lane.b32.xlu0 %v2021_v39, %s1884_s10 }
  0x3f   : > { %591 = vrot.lane.b32.xlu1 %v2026_v41, %s1884_s10 }
  0x41   : > { %593 = vrot.lane.b32.xlu0 %v2000_v23, %s1884_s10  ;;  %s1891_s10 = smov 42  }
  0x43   : > { %1790 = vperm.xlu1 %1778, %v1789_v58   ;;  %v1819_v58 = vpack.i.bf16 %v1205_v48, %v1144_v47 }
  0x45   : > { %630 = vrot.lane.b32.xlu0 %v2023_v40, %s1885_s11 }
  0x47   : > { %632 = vrot.lane.b32.xlu1 %v2021_v39, %s1885_s11 }
  0x49   : > { %634 = vrot.lane.b32.xlu0 %v2026_v41, %s1885_s11 }
  0x4b   : > { %636 = vrot.lane.b32.xlu1 %v2000_v23, %s1885_s11  ;;  %s1905_s11 = smov 83  }
  0x4d   : > { %673 = vrot.lane.b32.xlu0 %v2023_v40, %s1886_s22 }
  0x4f   : > { %675 = vrot.lane.b32.xlu1 %v2021_v39, %s1886_s22 }
  0x51   : > { %677 = vrot.lane.b32.xlu0 %v2026_v41, %s1886_s22 }
  0x53   : > { %679 = vrot.lane.b32.xlu1 %v2000_v23, %s1886_s22  ;;  %s1893_s22 = smov 40  }
  0x55   : > { %1795 = vperm.xlu0 %1772, %v1794_v63   ;;  %v1291_v63 = vunpack.c.l.bf16 %v1694_v51 }
  0x57   : > { %716 = vrot.lane.b32.xlu1 %v2023_v40, %s1887_s23 }
  0x59   : > { %718 = vrot.lane.b32.xlu0 %v2021_v39, %s1887_s23 }
  0x5b   : > { %720 = vrot.lane.b32.xlu1 %v2026_v41, %s1887_s23 }
  0x5d   : > { %722 = vrot.lane.b32.xlu0 %v2000_v23, %s1887_s23  ;;  %v2222_v23 = vpack.i.bf16 %v1291_v63, %v1248_v59 }
  0x5f   : > { %770 = vrot.lane.b32.xlu1 %v2021_v39, %s1888_s28 }
  0x61   : > { %772 = vrot.lane.b32.xlu0 %v2026_v41, %s1888_s28 }
  0x63   : > { %774 = vrot.lane.b32.xlu1 %v2093_v2, %s1888_s28 }
  0x65   : > { %776 = vrot.lane.b32.xlu0 %v2009_v25, %s1888_s28  ;;  %s1896_s28 = smov 23  }
  0x67   : > { %1800 = vperm.xlu1 %1778, %v1799_v5  }
  0x69   : > { %813 = vrot.lane.b32.xlu0 %v2021_v39, %s1889_s29 }
  0x6b   : > { %815 = vrot.lane.b32.xlu1 %v2026_v41, %s1889_s29 }
  0x6d   : > { %817 = vrot.lane.b32.xlu0 %v2093_v2, %s1889_s29 }
  0x6f   : > { %819 = vrot.lane.b32.xlu1 %v2009_v25, %s1889_s29 }
  0x71   : > { %856 = vrot.lane.b32.xlu0 %v2021_v39, %s1890_s9 }
  0x73   : > { %858 = vrot.lane.b32.xlu1 %v2026_v41, %s1890_s9 }
  0x75   : > { %860 = vrot.lane.b32.xlu0 %v2093_v2, %s1890_s9 }
  0x77   : > { %862 = vrot.lane.b32.xlu1 %v2009_v25, %s1890_s9 }
  0x79   : > { %1805 = vperm.xlu0 %1772, %v1804_v10  }
  0x7b   : > { %899 = vrot.lane.b32.xlu1 %v2021_v39, %s1891_s10 }
  0x7d   : > { %901 = vrot.lane.b32.xlu0 %v2026_v41, %s1891_s10 }
  0x7f   : > { %903 = vrot.lane.b32.xlu1 %v2093_v2, %s1891_s10 }
  0x81   : > { %905 = vrot.lane.b32.xlu0 %v2009_v25, %s1891_s10 }
  0x83   : > { %942 = vrot.lane.b32.xlu1 %v2021_v39, %s1892_s15 }
  0x85   : > { %944 = vrot.lane.b32.xlu0 %v2026_v41, %s1892_s15 }
  0x87   : > { %946 = vrot.lane.b32.xlu1 %v2093_v2, %s1892_s15 }
  0x89   : > { %948 = vrot.lane.b32.xlu0 %v2009_v25, %s1892_s15  ;;  %s1703_s15 = smul.u32 48, %s2543_s16 }
  0x8b   : > { %1810 = vperm.xlu1 %1778, %v1809_v17  }
  0x8d   : > { %985 = vrot.lane.b32.xlu0 %v2021_v39, %s1893_s22 }
  0x8e   : > { %v2127_v18 = vpop.permute.xlu1 %1780 }
  0x8f   : > { %v2124_v16 = vpop.permute.xlu0 %1774  ;;  %987 = vrot.lane.b32.xlu1 %v2026_v41, %s1893_s22  ;;  %v1782_v60 = vunpack.i.l.bf16 %v2127_v18  ;;  %v1783_v0 = vunpack.i.h.bf16 %v2127_v18 }
  0x90   : > { %v1776_v12 = vunpack.i.l.bf16 %v2124_v16  ;;  %v1777_v4 = vunpack.i.h.bf16 %v2124_v16 }
  0x91   : > { %989 = vrot.lane.b32.xlu0 %v2093_v2, %s1893_s22  ;;  %v2225_v36 = vrot.slane %v1783_v0, %v2185_v54 }
  0x92   : > { %v2133_v20 = vpop.permute.xlu1 %416  ;;  %v351_v14 = vrot.slane %v1776_v12, %v2185_v54  ;;  %v408_v24 = vrot.slane %v1777_v4, %v2185_v54 }
  0x93   : > { %v2130_v19 = vpop.permute.xlu0 %420  ;;  %991 = vrot.lane.b32.xlu1 %v2009_v25, %s1893_s22  ;;  %v423_v61 = vrot.slane %v2133_v20, 4  ;;  %s270_s22 = sadd.s32 %s1703_s15, %s2547_s7 }
  0x94   : > { %v425_v1 = vrot.slane %v2130_v19, 4  ;;  %v388_v48 = vmul.f32 %v2023_v40, %v351_v14  ;;  %s1673_s16 = sshll.u32 %s270_s22, 2 }
  0x95   : > { %1028 = vrot.lane.b32.xlu0 %v2021_v39, %s1894_s27  ;;  %s272_s24 = scalar_lea.vmem %s2531_s4, %s1673_s16 }
  0x96   : > { %v2139_v22 = vpop.permute.xlu1 %418 }
  0x97   : > { %v2136_v21 = vpop.permute.xlu0 %414  ;;  %1030 = vrot.lane.b32.xlu1 %v2026_v41, %s1894_s27  ;;  %v424_v55 = vrot.slane %v2139_v22, 4 }
  0x98   : > { %v422_v15 = vrot.slane %v2136_v21, 4 }
  0x99   : > { %1032 = vrot.lane.b32.xlu0 %v2093_v2, %s1894_s27  ;;  %v430_v5 = vsel %vm426_vm0, %v423_v61, %v424_v55  ;;  %v432_v9 = vsel %vm426_vm0, %v424_v55, %v425_v1 }
  0x9a   : > { %v2149_v30 = vpop.permute.xlu1 %460  ;;  %v431_v16 = vsel %vm428_vm1, %v2133_v20, %v430_v5  ;;  %v427_v38 = vsel %vm426_vm0, %v422_v15, %v423_v61 }
  0x9b   : > { %v2151_v31 = vpop.permute.xlu0 %458  ;;  %1034 = vrot.lane.b32.xlu1 %v2009_v25, %s1894_s27  ;;  %v467_v3 = vrot.slane %v2149_v30, 4  ;;  %v438_v37 = vmul.f32 %v431_v16, %v408_v24  ;;  %v429_v51 = vsel %vm428_vm1, %v2136_v21, %v427_v38 }
  0x9c   : > { %v466_v17 = vrot.slane %v2151_v31, 4  ;;  %v437_v1 = vmul.f32 %v429_v51, %v408_v24 }
  0x9d   : > { %1815 = vperm.xlu0 %1772, %v1814_v32  }
  0x9e   : > { %v2155_v33 = vpop.permute.xlu1 %464  ;;  %v470_v44 = vsel %vm426_vm0, %v466_v17, %v467_v3 }
  0x9f   : > { %v2158_v34 = vpop.permute.xlu0 %462  ;;  %1071 = vrot.lane.b32.xlu1 %v2021_v39, %s1896_s28  ;;  %v469_v6 = vrot.slane %v2155_v33, 4 }
  0xa0   : > { %v468_v57 = vrot.slane %v2158_v34, 4 }
  0xa1   : > { %1073 = vrot.lane.b32.xlu0 %v2026_v41, %s1896_s28 }
  0xa2   : > { %v2160_v35 = vpop.permute.xlu1 %503  ;;  %v473_v10 = vsel %vm426_vm0, %v467_v3, %v468_v57  ;;  %v475_v26 = vsel %vm426_vm0, %v468_v57, %v469_v6 }
  0xa3   : > { %v2164_v42 = vpop.permute.xlu0 %501  ;;  %1075 = vrot.lane.b32.xlu1 %v2093_v2, %s1896_s28  ;;  %v510_v18 = vrot.slane %v2160_v35, 4  ;;  %v474_v19 = vsel %vm471_vm2, %v2149_v30, %v473_v10  ;;  %v390_v30 = vmul.f32 %v2026_v41, %v351_v14 }
  0xa5   : > { %1077 = vrot.lane.b32.xlu0 %v2009_v25, %s1896_s28 }
  0xa6   : > { %v2166_v43 = vpop.permute.xlu1 %507 }
  0xa7   : > { %v2188_v56 = vpop.permute.xlu0 %505  ;;  %1114 = vrot.lane.b32.xlu1 %v2021_v39, %s1897_s12  ;;  %v512_v20 = vrot.slane %v2166_v43, 4  ;;  %v476_v43 = vsel %vm471_vm2, %v2158_v34, %v475_v26  ;;  %v509_v34 = vrot.slane %v2164_v42, 4 }
  0xa8   : > { %v511_v11 = vrot.slane %v2188_v56, 4 }
  0xa9   : > { %1116 = vrot.lane.b32.xlu0 %v2026_v41, %s1897_s12  ;;  %v513_v5 = vsel %vm426_vm0, %v509_v34, %v510_v18 }
  0xaa   : > { %v2176_v49 = vpop.permute.xlu1 %544  ;;  %v516_v29 = vsel %vm426_vm0, %v510_v18, %v511_v11  ;;  %v518_v55 = vsel %vm426_vm0, %v511_v11, %v512_v20 }
  0xab   : > { %1118 = vrot.lane.b32.xlu1 %v2093_v2, %s1897_s12  ;;  %v457_v2 = vrot.slane %v1782_v60, %v2185_v54  ;;  %v519_v3 = vsel %vm514_vm3, %v2188_v56, %v518_v55 }
  0xac   : > { %v2205_v7 = vpop.permute.xlu0 %1785  ;;  %v525_v15 = vmul.f32 %v519_v3, %v2225_v36 }
  0xad   : > { %1120 = vrot.lane.b32.xlu0 %v2009_v25, %s1897_s12  ;;  %v433_v25 = vsel %vm428_vm1, %v2139_v22, %v432_v9  ;;  %v389_v22 = vmul.f32 %v2021_v39, %v351_v14  ;;  %v1787_v45 = vunpack.i.l.bf16 %v2205_v7  ;;  %v481_v50 = vmul.f32 %v474_v19, %v457_v2  ;;  %s1906_s12 = smov 82  }
  0xae   : > { %v2196_v62 = vpop.permute.xlu1 %548  ;;  %v439_v47 = vmul.f32 %v433_v25, %v408_v24  ;;  %v517_v39 = vsel %vm514_vm3, %v2160_v35, %v516_v29  ;;  %v482_v35 = vmul.f32 %v476_v43, %v457_v2  ;;  %v1788_v12 = vunpack.i.h.bf16 %v2205_v7 }
  0xaf   : > { %1820 = vperm.xlu1 %1778, %v1819_v58   ;;  %v554_v32 = vrot.slane %v2196_v62, 4  ;;  %v441_v40 = vadd.f32 %v438_v37, %v389_v22  ;;  %v472_v58 = vsel %vm471_vm2, %v2151_v31, %v470_v44  ;;  %v543_v21 = vrot.slane %v1787_v45, %v2185_v54 }
  0xb0   : > { %v547_v28 = vpop.permute.xlu0 %546  ;;  %v524_v61 = vmul.f32 %v517_v39, %v2225_v36  ;;  %v442_v0 = vadd.f32 %v439_v47, %v390_v30  ;;  %v480_v10 = vmul.f32 %v472_v58, %v457_v2  ;;  %v552_v14 = vrot.slane %v2176_v49, 4 }
  0xb1   : > { %v553_v33 = vrot.slane %v547_v28, 4  ;;  %1175 = vrot.lane.b32.xlu0 %v2209_v8, %s1898_s13  ;;  %v484_v4 = vadd.f32 %v481_v50, %v441_v40  ;;  %v586_v16 = vrot.slane %v1788_v12, %v2185_v54  ;;  %v515_v24 = vsel %vm514_vm3, %v2164_v42, %v513_v5 }
  0xb2   : > { %v2237_v27 = vpop.permute.xlu1 %587  ;;  %v485_v11 = vadd.f32 %v482_v35, %v442_v0  ;;  %v523_v44 = vmul.f32 %v515_v24, %v2225_v36  ;;  %vm1084_vm1 = vcmask 187392   ;;  %vm1127_vm2 = vcmask 179200  }
  0xb3   : > { %v559_v46 = vsel %vm426_vm0, %v553_v33, %v554_v32  ;;  %1177 = vrot.lane.b32.xlu1 %v2217_v13, %s1898_s13  ;;  %v527_v17 = vadd.f32 %v524_v61, %v484_v4  ;;  %v595_v25 = vrot.slane %v2237_v27, 4  ;;  %v556_v2 = vsel %vm426_vm0, %v552_v14, %v553_v33 }
  0xb4   : > { %v551_v41 = vpop.permute.xlu0 %550  ;;  %v560_v59 = vsel %vm557_vm4, %v547_v28, %v559_v46  ;;  %v528_v22 = vadd.f32 %v525_v15, %v485_v11  ;;  %v558_v33 = vsel %vm557_vm4, %v2176_v49, %v556_v2  ;;  %v1696_v49 = vld [vmem:[%s2529_s2 + $0x2e] sm:$0x3]  ;;  %vm1188_vm3 = vcmask 982016  }
  0xb5   : > { %v555_v57 = vrot.slane %v551_v41, 4  ;;  %1179 = vrot.lane.b32.xlu0 %v2049_v52, %s1898_s13  ;;  %v567_v6 = vmul.f32 %v560_v59, %v543_v21  ;;  %v566_v51 = vmul.f32 %v558_v33, %v543_v21  ;;  %v1377_v59 = vunpack.c.l.bf16 %v1696_v49 }
  0xb6   : > { %v592_v60 = vpop.permute.xlu1 %591 }
  0xb7   : > { %v561_v63 = vsel %vm426_vm0, %v554_v32, %v555_v57  ;;  %1181 = vrot.lane.b32.xlu1 %v2052_v53, %s1898_s13  ;;  %v597_v7 = vrot.slane %v592_v60, 4  ;;  %v570_v26 = vadd.f32 %v567_v6, %v527_v17  ;;  %v440_v32 = vadd.f32 %v437_v1, %v388_v48  ;;  %v1695_v48 = vld [vmem:[%s2529_s2 + $0x2c] sm:$0x3] }
  0xb8   : > { %v590_v31 = vpop.permute.xlu0 %589  ;;  %v562_v56 = vsel %vm557_vm4, %v2196_v62, %v561_v63  ;;  %v1334_v35 = vunpack.c.l.bf16 %v1695_v48  ;;  %vm1231_vm4 = vcmask 973824  }
  0xb9   : > { %v596_v9 = vrot.slane %v590_v31, 4  ;;  %1218 = vrot.lane.b32.xlu0 %v2209_v8, %s1899_s14  ;;  %v568_v28 = vmul.f32 %v562_v56, %v543_v21  ;;  %v483_v50 = vadd.f32 %v480_v10, %v440_v32 }
  0xba   : > { %v1829_v4 = vpack.i.bf16 %v1377_v59, %v1334_v35 }
  0xbb   : > { %v602_v18 = vsel %vm426_vm0, %v596_v9, %v597_v7  ;;  %1220 = vrot.lane.b32.xlu1 %v2217_v13, %s1899_s14  ;;  %v599_v42 = vsel %vm426_vm0, %v595_v25, %v596_v9  ;;  %v571_v39 = vadd.f32 %v568_v28, %v528_v22 }
  0xbc   : > { %v603_v19 = vsel %vm600_vm5, %v590_v31, %v602_v18  ;;  %v594_v62 = vpop.permute.xlu0 %593  ;;  %v601_v36 = vsel %vm600_vm5, %v2237_v27, %v599_v42 }
  0xbd   : > { %v610_v20 = vmul.f32 %v603_v19, %v586_v16  ;;  %v598_v29 = vrot.slane %v594_v62, 4  ;;  %1222 = vrot.lane.b32.xlu0 %v2049_v52, %s1899_s14  ;;  %v609_v12 = vmul.f32 %v601_v36, %v586_v16 }
  0xbe   : > { %v1791_v38 = vpop.permute.xlu1 %1790 }
  0xbf   : > { %v613_v30 = vadd.f32 %v610_v20, %v570_v26  ;;  %v604_v37 = vsel %vm426_vm0, %v597_v7, %v598_v29  ;;  %v1793_v45 = vunpack.i.h.bf16 %v1791_v38  ;;  %v1792_v46 = vunpack.i.l.bf16 %v1791_v38  ;;  %1224 = vrot.lane.b32.xlu1 %v2052_v53, %s1899_s14 }
  0xc0   : > { %v605_v43 = vsel %vm600_vm5, %v592_v60, %v604_v37  ;;  %v631_v47 = vpop.permute.xlu0 %630  ;;  %v526_v60 = vadd.f32 %v523_v44, %v483_v50  ;;  %vm1274_vm5 = vcmask 965632  }
  0xc1   : > { %v611_v41 = vmul.f32 %v605_v43, %v586_v16  ;;  %1825 = vperm.xlu0 %1772, %v2222_v23   ;;  %v2310_v34 = vrot.slane %v1793_v45, %v2185_v54  ;;  %v629_v55 = vrot.slane %v1792_v46, %v2185_v54  ;;  %v638_v57 = vrot.slane %v631_v47, 4  ;;  %v1697_v43 = vld [vmem:[%s2529_s2 + $0x30] sm:$0x3]  ;;  %v1698_v45 = vld [vmem:[%s2529_s2 + $0x32] sm:$0x3] }
  0xc2   : > { %v633_v58 = vpop.permute.xlu1 %632  ;;  %v569_v21 = vadd.f32 %v566_v51, %v526_v60 }
  0xc3   : > { %v614_v40 = vadd.f32 %v611_v41, %v571_v39  ;;  %v639_v61 = vrot.slane %v633_v58, 4  ;;  %1261 = vrot.lane.b32.xlu1 %v2209_v8, %s1900_s25 }
  0xc4   : > { %v635_v27 = vpop.permute.xlu0 %634  ;;  %v612_v31 = vadd.f32 %v609_v12, %v569_v21 }
  0xc5   : > { %v640_v23 = vrot.slane %v635_v27, 4  ;;  %1263 = vrot.lane.b32.xlu0 %v2217_v13, %s1900_s25  ;;  %v642_v63 = vsel %vm426_vm0, %v638_v57, %v639_v61  ;;  %v1463_v57 = vunpack.c.l.bf16 %v1698_v45 }
  0xc6   : > { %v644_v0 = vsel %vm643_vm6, %v631_v47, %v642_v63  ;;  %v637_v3 = vpop.permute.xlu1 %636 }
  0xc7   : > { %v645_v1 = vsel %vm426_vm0, %v639_v61, %v640_v23  ;;  %v652_v5 = vmul.f32 %v644_v0, %v629_v55  ;;  %v641_v7 = vrot.slane %v637_v3, 4  ;;  %1265 = vrot.lane.b32.xlu1 %v2049_v52, %s1900_s25 }
  0xc8   : > { %v646_v6 = vsel %vm643_vm6, %v633_v58, %v645_v1  ;;  %v674_v9 = vpop.permute.xlu0 %673 }
  0xc9   : > { %v653_v10 = vmul.f32 %v646_v6, %v629_v55  ;;  %1267 = vrot.lane.b32.xlu0 %v2052_v53, %s1900_s25  ;;  %v655_v11 = vadd.f32 %v652_v5, %v612_v31  ;;  %v647_v14 = vsel %vm426_vm0, %v640_v23, %v641_v7  ;;  %v681_v56 = vrot.slane %v674_v9, 4 }
  0xca   : > { %v648_v16 = vsel %vm643_vm6, %v635_v27, %v647_v14  ;;  %v676_v17 = vpop.permute.xlu1 %675  ;;  %vm1317_vm6 = vcmask 834560  }
  0xcb   : > { %v656_v15 = vadd.f32 %v653_v10, %v613_v30  ;;  %v654_v18 = vmul.f32 %v648_v16, %v629_v55  ;;  %v682_v24 = vrot.slane %v676_v17, 4  ;;  %1830 = vperm.xlu1 %1778, %v1829_v4   ;;  %v1420_v55 = vunpack.c.l.bf16 %v1697_v43 }
  0xcc   : > { %v678_v25 = vpop.permute.xlu0 %677 }
  0xcd   : > { %v683_v2 = vrot.slane %v678_v25, 4  ;;  %1304 = vrot.lane.b32.xlu0 %v2209_v8, %s1901_s26  ;;  %v657_v19 = vadd.f32 %v654_v18, %v614_v40  ;;  %v685_v62 = vsel %vm426_vm0, %v681_v56, %v682_v24  ;;  %v1834_v27 = vpack.i.bf16 %v1463_v57, %v1420_v55 }
  0xce   : > { %v687_v26 = vsel %vm686_vm7, %v674_v9, %v685_v62  ;;  %v680_v20 = vpop.permute.xlu1 %679 }
  0xcf   : > { %v688_v28 = vsel %vm426_vm0, %v682_v24, %v683_v2  ;;  %v695_v29 = vmul.f32 %v687_v26, %v2310_v34  ;;  %v684_v42 = vrot.slane %v680_v20, 4  ;;  %1306 = vrot.lane.b32.xlu1 %v2217_v13, %s1901_s26 }
  0xd0   : > { %v689_v32 = vsel %vm686_vm7, %v676_v17, %v688_v28  ;;  %v1796_v22 = vpop.permute.xlu0 %1795 }
  0xd1   : > { %v696_v33 = vmul.f32 %v689_v32, %v2310_v34  ;;  %v1798_v30 = vunpack.i.h.bf16 %v1796_v22  ;;  %v1797_v37 = vunpack.i.l.bf16 %v1796_v22  ;;  %1308 = vrot.lane.b32.xlu0 %v2049_v52, %s1901_s26  ;;  %v698_v38 = vadd.f32 %v695_v29, %v655_v11 }
  0xd2   : > { %v690_v44 = vsel %vm426_vm0, %v683_v2, %v684_v42  ;;  %v717_v50 = vpop.permute.xlu1 %716 }
  0xd3   : > { %v699_v46 = vadd.f32 %v696_v33, %v656_v15  ;;  %v691_v47 = vsel %vm686_vm7, %v678_v25, %v690_v44  ;;  %v758_v48 = vrot.slane %v1798_v30, %v2185_v54  ;;  %v715_v49 = vrot.slane %v1797_v37, %v2185_v54  ;;  %1310 = vrot.lane.b32.xlu1 %v2052_v53, %s1901_s26 }
  0xd4   : > { %v697_v39 = vmul.f32 %v691_v47, %v2310_v34  ;;  %v719_v36 = vpop.permute.xlu0 %718  ;;  %v724_v41 = vrot.slane %v717_v50, 4  ;;  %v1699_v47 = vld [vmem:[%s2529_s2 + $0x34] sm:$0x3]  ;;  %vm1360_vm7 = vcmask 826368  }
  0xd5   : > { %v725_v51 = vrot.slane %v719_v36, 4  ;;  %1347 = vrot.lane.b32.xlu0 %v2209_v8, %s1902_s5  ;;  %v1506_v57 = vunpack.c.l.bf16 %v1699_v47 }
  0xd6   : > { %v700_v40 = vadd.f32 %v697_v39, %v657_v19  ;;  %v721_v35 = vpop.permute.xlu1 %720 }
  0xd7   : > { %v728_v58 = vsel %vm426_vm0, %v724_v41, %v725_v51  ;;  %v726_v60 = vrot.slane %v721_v35, 4  ;;  %1349 = vrot.lane.b32.xlu1 %v2217_v13, %s1902_s5 }
  0xd8   : > { %v730_v59 = vsel %vm729_vm8, %v717_v50, %v728_v58  ;;  %v723_v34 = vpop.permute.xlu0 %722 }
  0xd9   : > { %v738_v12 = vmul.f32 %v730_v59, %v715_v49  ;;  %v727_v61 = vrot.slane %v723_v34, 4  ;;  %1351 = vrot.lane.b32.xlu0 %v2049_v52, %s1902_s5  ;;  %v731_v23 = vsel %vm426_vm0, %v725_v51, %v726_v60 }
  0xda   : > { %v732_v63 = vsel %vm729_vm8, %v719_v36, %v731_v23  ;;  %v771_v1 = vpop.permute.xlu1 %770 }
  0xdb   : > { %v741_v21 = vadd.f32 %v738_v12, %v698_v38  ;;  %v733_v0 = vsel %vm426_vm0, %v726_v60, %v727_v61  ;;  %v739_v3 = vmul.f32 %v732_v63, %v715_v49  ;;  %1353 = vrot.lane.b32.xlu1 %v2052_v53, %s1902_s5  ;;  %v778_v6 = vrot.slane %v771_v1, 4 }
  0xdc   : > { %v734_v4 = vsel %vm729_vm8, %v721_v35, %v733_v0  ;;  %v773_v31 = vpop.permute.xlu0 %772  ;;  %vm1403_vm8 = vcmask 818176  }
  0xdd   : > { %v740_v5 = vmul.f32 %v734_v4, %v715_v49  ;;  %v779_v7 = vrot.slane %v773_v31, 4  ;;  %1835 = vperm.xlu0 %1772, %v1834_v27   ;;  %v742_v9 = vadd.f32 %v739_v3, %v699_v46 }
  0xde   : > { %v775_v14 = vpop.permute.xlu1 %774 }
  0xdf   : > { %v743_v10 = vadd.f32 %v740_v5, %v700_v40  ;;  %v782_v11 = vsel %vm426_vm0, %v778_v6, %v779_v7  ;;  %v780_v15 = vrot.slane %v775_v14, 4  ;;  %1390 = vrot.lane.b32.xlu1 %v2209_v8, %s1903_s6 }
  0xe0   : > { %v784_v56 = vsel %vm783_vm9, %v771_v1, %v782_v11  ;;  %v777_v16 = vpop.permute.xlu0 %776 }
  0xe1   : > { %v792_v17 = vmul.f32 %v784_v56, %v758_v48  ;;  %v781_v18 = vrot.slane %v777_v16, 4  ;;  %1392 = vrot.lane.b32.xlu0 %v2217_v13, %s1903_s6  ;;  %v785_v24 = vsel %vm426_vm0, %v779_v7, %v780_v15 }
  0xe2   : > { %v786_v2 = vsel %vm783_vm9, %v773_v31, %v785_v24  ;;  %v1801_v62 = vpop.permute.xlu1 %1800 }
  0xe3   : > { %v795_v25 = vadd.f32 %v792_v17, %v741_v21  ;;  %v787_v19 = vsel %vm426_vm0, %v780_v15, %v781_v18  ;;  %v793_v26 = vmul.f32 %v786_v2, %v758_v48  ;;  %v1803_v20 = vunpack.i.h.bf16 %v1801_v62  ;;  %1394 = vrot.lane.b32.xlu1 %v2049_v52, %s1903_s6 }
  0xe4   : > { %v788_v28 = vsel %vm783_vm9, %v775_v14, %v787_v19  ;;  %v1802_v29 = vunpack.i.l.bf16 %v1801_v62  ;;  %v814_v32 = vpop.permute.xlu0 %813  ;;  %vm1446_vm9 = vcmask 687104  }
  0xe5   : > { %v794_v42 = vmul.f32 %v788_v28, %v758_v48  ;;  %1396 = vrot.lane.b32.xlu0 %v2052_v53, %s1903_s6  ;;  %v796_v22 = vadd.f32 %v793_v26, %v742_v9  ;;  %v855_v33 = vrot.slane %v1803_v20, %v2185_v54  ;;  %v821_v37 = vrot.slane %v814_v32, 4 }
  0xe6   : > { %v812_v30 = vrot.slane %v1802_v29, %v2185_v54  ;;  %v816_v44 = vpop.permute.xlu1 %815 }
  0xe7   : > { %v797_v38 = vadd.f32 %v794_v42, %v743_v10  ;;  %v822_v43 = vrot.slane %v816_v44, 4  ;;  %1433 = vrot.lane.b32.xlu1 %v2209_v8, %s1904_s8 }
  0xe8   : > { %v818_v45 = vpop.permute.xlu0 %817 }
  0xe9   : > { %v823_v46 = vrot.slane %v818_v45, 4  ;;  %1435 = vrot.lane.b32.xlu0 %v2217_v13, %s1904_s8  ;;  %v825_v48 = vsel %vm426_vm0, %v821_v37, %v822_v43 }
  0xea   : > { %v827_v49 = vsel %vm826_vm10, %v814_v32, %v825_v48  ;;  %v820_v39 = vpop.permute.xlu1 %819 }
  0xeb   : > { %v828_v50 = vsel %vm426_vm0, %v822_v43, %v823_v46  ;;  %v835_v36 = vmul.f32 %v827_v49, %v812_v30  ;;  %v824_v51 = vrot.slane %v820_v39, 4  ;;  %1437 = vrot.lane.b32.xlu1 %v2049_v52, %s1904_s8 }
  0xec   : > { %v829_v41 = vsel %vm826_vm10, %v816_v44, %v828_v50  ;;  %v857_v55 = vpop.permute.xlu0 %856 }
  0xed   : > { %v836_v40 = vmul.f32 %v829_v41, %v812_v30  ;;  %1439 = vrot.lane.b32.xlu0 %v2052_v53, %s1904_s8  ;;  %v838_v58 = vadd.f32 %v835_v36, %v795_v25  ;;  %v830_v35 = vsel %vm426_vm0, %v823_v46, %v824_v51  ;;  %v864_v59 = vrot.slane %v857_v55, 4 }
  0xee   : > { %v831_v34 = vsel %vm826_vm10, %v818_v45, %v830_v35  ;;  %v859_v12 = vpop.permute.xlu1 %858  ;;  %vm1489_vm10 = vcmask 678912  }
  0xef   : > { %v839_v60 = vadd.f32 %v836_v40, %v796_v22  ;;  %v837_v61 = vmul.f32 %v831_v34, %v812_v30  ;;  %v865_v27 = vrot.slane %v859_v12, 4  ;;  %1509 = vperm.xlu1 %1778, %v1506_v57  }
  0xf0   : > { %v861_v23 = vpop.permute.xlu0 %860 }
  0xf1   : > { %v866_v21 = vrot.slane %v861_v23, 4  ;;  %1476 = vrot.lane.b32.xlu0 %v2209_v8, %s1905_s11  ;;  %v840_v63 = vadd.f32 %v837_v61, %v797_v38  ;;  %v868_v0 = vsel %vm426_vm0, %v864_v59, %v865_v27 }
  0xf2   : > { %v870_v1 = vsel %vm869_vm11, %v857_v55, %v868_v0  ;;  %v863_v4 = vpop.permute.xlu1 %862 }
  0xf3   : > { %v871_v3 = vsel %vm426_vm0, %v865_v27, %v866_v21  ;;  %v878_v31 = vmul.f32 %v870_v1, %v855_v33  ;;  %v867_v6 = vrot.slane %v863_v4, 4  ;;  %1478 = vrot.lane.b32.xlu1 %v2217_v13, %s1905_s11 }
  0xf4   : > { %v872_v5 = vsel %vm869_vm11, %v859_v12, %v871_v3  ;;  %v1806_v7 = vpop.permute.xlu0 %1805 }
  0xf5   : > { %v879_v9 = vmul.f32 %v872_v5, %v855_v33  ;;  %v1808_v10 = vunpack.i.h.bf16 %v1806_v7  ;;  %v1807_v11 = vunpack.i.l.bf16 %v1806_v7  ;;  %1480 = vrot.lane.b32.xlu0 %v2049_v52, %s1905_s11  ;;  %v881_v14 = vadd.f32 %v878_v31, %v838_v58 }
  0xf6   : > { %v873_v56 = vsel %vm426_vm0, %v866_v21, %v867_v6  ;;  %v900_v24 = vpop.permute.xlu1 %899 }
  0xf7   : > { %v882_v15 = vadd.f32 %v879_v9, %v839_v60  ;;  %v874_v16 = vsel %vm869_vm11, %v861_v23, %v873_v56  ;;  %v941_v17 = vrot.slane %v1808_v10, %v2185_v54  ;;  %v898_v18 = vrot.slane %v1807_v11, %v2185_v54  ;;  %1482 = vrot.lane.b32.xlu1 %v2052_v53, %s1905_s11 }
  0xf8   : > { %v880_v25 = vmul.f32 %v874_v16, %v855_v33  ;;  %v902_v2 = vpop.permute.xlu0 %901  ;;  %v907_v19 = vrot.slane %v900_v24, 4  ;;  %vm1532_vm11 = vcmask 670720  }
  0xf9   : > { %v908_v62 = vrot.slane %v902_v2, 4  ;;  %1519 = vrot.lane.b32.xlu0 %v2209_v8, %s1906_s12  ;;  %v1547_v8 = vld [vmem:[%s2530_s3] sm:$0xf] }
  0xfa   : > { %v883_v26 = vadd.f32 %v880_v25, %v840_v63  ;;  %v904_v20 = vpop.permute.xlu1 %903 }
  0xfb   : > { %v911_v28 = vsel %vm426_vm0, %v907_v19, %v908_v62  ;;  %v909_v32 = vrot.slane %v904_v20, 4  ;;  %1521 = vrot.lane.b32.xlu1 %v2217_v13, %s1906_s12 }
  0xfc   : > { %v913_v29 = vsel %vm912_vm12, %v900_v24, %v911_v28  ;;  %v906_v42 = vpop.permute.xlu0 %905 }
  0xfd   : > { %v921_v22 = vmul.f32 %v913_v29, %v898_v18  ;;  %v910_v33 = vrot.slane %v906_v42, 4  ;;  %1523 = vrot.lane.b32.xlu0 %v2049_v52, %s1906_s12  ;;  %v914_v30 = vsel %vm426_vm0, %v908_v62, %v909_v32 }
  0xfe   : > { %v915_v38 = vsel %vm912_vm12, %v902_v2, %v914_v30  ;;  %v943_v43 = vpop.permute.xlu1 %942 }
  0xff   : > { %v924_v37 = vadd.f32 %v921_v22, %v881_v14  ;;  %v916_v44 = vsel %vm426_vm0, %v909_v32, %v910_v33  ;;  %v922_v45 = vmul.f32 %v915_v38, %v898_v18  ;;  %1525 = vrot.lane.b32.xlu1 %v2052_v53, %s1906_s12  ;;  %v950_v52 = vrot.slane %v943_v43, 4 }
 0x100   : > { %v917_v46 = vsel %vm912_vm12, %v904_v20, %v916_v44  ;;  %v945_v13 = vpop.permute.xlu0 %944 }
 0x101   : > { %v923_v47 = vmul.f32 %v917_v46, %v898_v18  ;;  %v951_v48 = vrot.slane %v945_v13, 4  ;;  %1550 = vperm.xlu0 %1772, %v1547_v8   ;;  %v925_v49 = vadd.f32 %v922_v45, %v882_v15 }
 0x102   : > { %v947_v36 = vpop.permute.xlu1 %946 }
 0x103   : > { %v926_v50 = vadd.f32 %v923_v47, %v883_v26  ;;  %v954_v39 = vsel %vm426_vm0, %v950_v52, %v951_v48  ;;  %v952_v51 = vrot.slane %v947_v36, 4 }
 0x104   : > { %v956_v41 = vsel %vm955_vm13, %v943_v43, %v954_v39  ;;  %v949_v55 = vpop.permute.xlu0 %948 }
 0x105   : > { %v964_v57 = vmul.f32 %v956_v41, %v941_v17  ;;  %v953_v40 = vrot.slane %v949_v55, 4  ;;  %v957_v58 = vsel %vm426_vm0, %v951_v48, %v952_v51 }
 0x106   : > { %v958_v53 = vsel %vm955_vm13, %v945_v13, %v957_v58  ;;  %v1811_v60 = vpop.permute.xlu1 %1810 }
 0x107   : > { %v967_v35 = vadd.f32 %v964_v57, %v924_v37  ;;  %v959_v59 = vsel %vm426_vm0, %v952_v51, %v953_v40  ;;  %v965_v34 = vmul.f32 %v958_v53, %v941_v17  ;;  %v1813_v61 = vunpack.i.h.bf16 %v1811_v60 }
 0x108   : > { %v960_v12 = vsel %vm955_vm13, %v947_v36, %v959_v59  ;;  %v1812_v27 = vunpack.i.l.bf16 %v1811_v60  ;;  %v986_v23 = vpop.permute.xlu0 %985 }
 0x109   : > { %v966_v21 = vmul.f32 %v960_v12, %v941_v17  ;;  %v968_v63 = vadd.f32 %v965_v34, %v925_v49  ;;  %v1027_v0 = vrot.slane %v1813_v61, %v2185_v54  ;;  %v993_v3 = vrot.slane %v986_v23, 4 }
 0x10a   : > { %v984_v1 = vrot.slane %v1812_v27, %v2185_v54  ;;  %v988_v31 = vpop.permute.xlu1 %987 }
 0x10b   : > { %v969_v4 = vadd.f32 %v966_v21, %v926_v50  ;;  %v994_v5 = vrot.slane %v988_v31, 4 }
 0x10c   : > { %v990_v6 = vpop.permute.xlu0 %989 }
 0x10d   : > { %v995_v7 = vrot.slane %v990_v6, 4  ;;  %v997_v9 = vsel %vm426_vm0, %v993_v3, %v994_v5 }
 0x10e   : > { %v999_v10 = vsel %vm998_vm14, %v986_v23, %v997_v9  ;;  %v992_v14 = vpop.permute.xlu1 %991 }
 0x10f   : > { %v1000_v11 = vsel %vm426_vm0, %v994_v5, %v995_v7  ;;  %v1007_v56 = vmul.f32 %v999_v10, %v984_v1  ;;  %v996_v16 = vrot.slane %v992_v14, 4 }
 0x110   : > { %v1001_v15 = vsel %vm998_vm14, %v988_v31, %v1000_v11  ;;  %v1029_v17 = vpop.permute.xlu0 %1028 }
 0x111   : > { %v1008_v18 = vmul.f32 %v1001_v15, %v984_v1  ;;  %v1010_v24 = vadd.f32 %v1007_v56, %v967_v35  ;;  %v1002_v25 = vsel %vm426_vm0, %v995_v7, %v996_v16  ;;  %v1036_v2 = vrot.slane %v1029_v17, 4 }
 0x112   : > { %v1003_v62 = vsel %vm998_vm14, %v990_v6, %v1002_v25  ;;  %v1031_v26 = vpop.permute.xlu1 %1030 }
 0x113   : > { %v1011_v19 = vadd.f32 %v1008_v18, %v968_v63  ;;  %v1009_v28 = vmul.f32 %v1003_v62, %v984_v1  ;;  %v1037_v20 = vrot.slane %v1031_v26, 4 }
 0x114   : > { %v1033_v29 = vpop.permute.xlu0 %1032 }
 0x115   : > { %v1038_v32 = vrot.slane %v1033_v29, 4  ;;  %v1012_v42 = vadd.f32 %v1009_v28, %v969_v4  ;;  %v1040_v22 = vsel %vm426_vm0, %v1036_v2, %v1037_v20 }
 0x116   : > { %v1042_v33 = vsel %vm1041_vm15, %v1029_v17, %v1040_v22  ;;  %v1035_v8 = vpop.permute.xlu1 %1034 }
 0x117   : > { %v1043_v30 = vsel %vm426_vm0, %v1037_v20, %v1038_v32  ;;  %v1050_v37 = vmul.f32 %v1042_v33, %v1027_v0  ;;  %v1039_v44 = vrot.slane %v1035_v8, 4 }
 0x118   : > { %v1044_v38 = vsel %vm1041_vm15, %v1031_v26, %v1043_v30  ;;  %v1816_v43 = vpop.permute.xlu0 %1815 }
 0x119   : > { %v1051_v45 = vmul.f32 %v1044_v38, %v1027_v0  ;;  %v1818_v46 = vunpack.i.h.bf16 %v1816_v43  ;;  %v1817_v13 = vunpack.i.l.bf16 %v1816_v43  ;;  %v1053_v47 = vadd.f32 %v1050_v37, %v1010_v24 }
 0x11a   : > { %v1045_v52 = vsel %vm426_vm0, %v1038_v32, %v1039_v44  ;;  %v1072_v36 = vpop.permute.xlu1 %1071 }
 0x11b   : > { %v1054_v48 = vadd.f32 %v1051_v45, %v1011_v19  ;;  %v1046_v49 = vsel %vm1041_vm15, %v1033_v29, %v1045_v52  ;;  %v1113_v50 = vrot.slane %v1818_v46, %v2185_v54  ;;  %v1070_v39 = vrot.slane %v1817_v13, %v2185_v54 }
 0x11c   : > { %v1052_v41 = vmul.f32 %v1046_v49, %v1027_v0  ;;  %v1074_v51 = vpop.permute.xlu0 %1073  ;;  %v1079_v55 = vrot.slane %v1072_v36, 4 }
 0x11d   : > { %v1080_v57 = vrot.slane %v1074_v51, 4 }
 0x11e   : > { %v1055_v40 = vadd.f32 %v1052_v41, %v1012_v42  ;;  %v1076_v35 = vpop.permute.xlu1 %1075 }
 0x11f   : > { %v1083_v58 = vsel %vm426_vm0, %v1079_v55, %v1080_v57  ;;  %v1081_v59 = vrot.slane %v1076_v35, 4 }
 0x120   : > { %v1085_v53 = vsel %vm1084_vm1, %v1072_v36, %v1083_v58  ;;  %v1078_v60 = vpop.permute.xlu0 %1077 }
 0x121   : > { %v1093_v34 = vmul.f32 %v1085_v53, %v1070_v39  ;;  %v1082_v12 = vrot.slane %v1078_v60, 4  ;;  %v1086_v61 = vsel %vm426_vm0, %v1080_v57, %v1081_v59 }
 0x122   : > { %v1087_v23 = vsel %vm1084_vm1, %v1074_v51, %v1086_v61  ;;  %v1115_v63 = vpop.permute.xlu1 %1114 }
 0x123   : > { %v1096_v27 = vadd.f32 %v1093_v34, %v1053_v47  ;;  %v1088_v21 = vsel %vm426_vm0, %v1081_v59, %v1082_v12  ;;  %v1094_v0 = vmul.f32 %v1087_v23, %v1070_v39  ;;  %v1122_v31 = vrot.slane %v1115_v63, 4 }
 0x124   : > { %v1089_v1 = vsel %vm1084_vm1, %v1076_v35, %v1088_v21  ;;  %v1117_v3 = vpop.permute.xlu0 %1116 }
 0x125   : > { %v1095_v4 = vmul.f32 %v1089_v1, %v1070_v39  ;;  %v1123_v5 = vrot.slane %v1117_v3, 4  ;;  %v1097_v6 = vadd.f32 %v1094_v0, %v1054_v48 }
 0x126   : > { %v1119_v10 = vpop.permute.xlu1 %1118 }
 0x127   : > { %v1098_v7 = vadd.f32 %v1095_v4, %v1055_v40  ;;  %v1126_v9 = vsel %vm426_vm0, %v1122_v31, %v1123_v5  ;;  %v1124_v14 = vrot.slane %v1119_v10, 4 }
 0x128   : > { %v1128_v11 = vsel %vm1127_vm2, %v1115_v63, %v1126_v9  ;;  %v1121_v56 = vpop.permute.xlu0 %1120 }
 0x129   : > { %v1136_v15 = vmul.f32 %v1128_v11, %v1113_v50  ;;  %v1125_v16 = vrot.slane %v1121_v56, 4  ;;  %v1129_v17 = vsel %vm426_vm0, %v1123_v5, %v1124_v14 }
 0x12a   : > { %v1130_v24 = vsel %vm1127_vm2, %v1117_v3, %v1129_v17  ;;  %v1821_v2 = vpop.permute.xlu1 %1820 }
 0x12b   : > { %v1139_v18 = vadd.f32 %v1136_v15, %v1096_v27  ;;  %v1131_v25 = vsel %vm426_vm0, %v1124_v14, %v1125_v16  ;;  %v1137_v19 = vmul.f32 %v1130_v24, %v1113_v50  ;;  %v1822_v29 = vunpack.i.l.bf16 %v1821_v2 }
 0x12c   : > { %v1132_v62 = vsel %vm1127_vm2, %v1119_v10, %v1131_v25  ;;  %v1176_v26 = vpop.permute.xlu0 %1175  ;;  %v1823_v49 = vunpack.i.h.bf16 %v1821_v2 }
 0x12d   : > { %v1138_v28 = vmul.f32 %v1132_v62, %v1113_v50  ;;  %v1140_v20 = vadd.f32 %v1137_v19, %v1097_v6  ;;  %v1183_v32 = vrot.slane %v1176_v26, 4  ;;  %v1156_v37 = vrot.slane %v1822_v29, %v2185_v54 }
 0x12e   : > { %v1178_v22 = vpop.permute.xlu1 %1177  ;;  %v1217_v53 = vrot.slane %v1823_v49, %v2185_v54 }
 0x12f   : > { %v1141_v42 = vadd.f32 %v1138_v28, %v1098_v7  ;;  %v1184_v33 = vrot.slane %v1178_v22, 4 }
 0x130   : > { %v1180_v30 = vpop.permute.xlu0 %1179 }
 0x131   : > { %v1185_v8 = vrot.slane %v1180_v30, 4  ;;  %v1187_v38 = vsel %vm426_vm0, %v1183_v32, %v1184_v33 }
 0x132   : > { %v1189_v44 = vsel %vm1188_vm3, %v1176_v26, %v1187_v38  ;;  %v1182_v45 = vpop.permute.xlu1 %1181 }
 0x133   : > { %v1190_v43 = vsel %vm426_vm0, %v1184_v33, %v1185_v8  ;;  %v1197_v46 = vmul.f32 %v1189_v44, %v1156_v37  ;;  %v1186_v47 = vrot.slane %v1182_v45, 4 }
 0x134   : > { %v1191_v13 = vsel %vm1188_vm3, %v1178_v22, %v1190_v43  ;;  %v1219_v52 = vpop.permute.xlu0 %1218 }
 0x135   : > { %v1198_v48 = vmul.f32 %v1191_v13, %v1156_v37  ;;  %v1200_v50 = vadd.f32 %v1197_v46, %v1139_v18  ;;  %v1192_v39 = vsel %vm426_vm0, %v1185_v8, %v1186_v47  ;;  %v1226_v36 = vrot.slane %v1219_v52, 4 }
 0x136   : > { %v1193_v51 = vsel %vm1188_vm3, %v1180_v30, %v1192_v39  ;;  %v1221_v55 = vpop.permute.xlu1 %1220 }
 0x137   : > { %v1201_v41 = vadd.f32 %v1198_v48, %v1140_v20  ;;  %v1199_v57 = vmul.f32 %v1193_v51, %v1156_v37  ;;  %v1227_v40 = vrot.slane %v1221_v55, 4 }
 0x138   : > { %v1223_v58 = vpop.permute.xlu0 %1222 }
 0x139   : > { %v1228_v35 = vrot.slane %v1223_v58, 4  ;;  %v1202_v59 = vadd.f32 %v1199_v57, %v1141_v42  ;;  %v1230_v60 = vsel %vm426_vm0, %v1226_v36, %v1227_v40 }
 0x13a   : > { %v1232_v34 = vsel %vm1231_vm4, %v1219_v52, %v1230_v60  ;;  %v1225_v61 = vpop.permute.xlu1 %1224 }
 0x13b   : > { %v1233_v12 = vsel %vm426_vm0, %v1227_v40, %v1228_v35  ;;  %v1240_v27 = vmul.f32 %v1232_v34, %v1217_v53  ;;  %v1229_v21 = vrot.slane %v1225_v61, 4 }
 0x13c   : > { %v1234_v23 = vsel %vm1231_vm4, %v1221_v55, %v1233_v12  ;;  %v1826_v63 = vpop.permute.xlu0 %1825 }
 0x13d   : > { %v1241_v0 = vmul.f32 %v1234_v23, %v1217_v53  ;;  %v1243_v1 = vadd.f32 %v1240_v27, %v1200_v50  ;;  %v1235_v3 = vsel %vm426_vm0, %v1228_v35, %v1229_v21  ;;  %v1827_v5 = vunpack.i.l.bf16 %v1826_v63 }
 0x13e   : > { %v1236_v31 = vsel %vm1231_vm4, %v1223_v58, %v1235_v3  ;;  %v1262_v6 = vpop.permute.xlu1 %1261  ;;  %v1828_v33 = vunpack.i.h.bf16 %v1826_v63 }
 0x13f   : > { %v1244_v4 = vadd.f32 %v1241_v0, %v1201_v41  ;;  %v1242_v7 = vmul.f32 %v1236_v31, %v1217_v53  ;;  %v1269_v10 = vrot.slane %v1262_v6, 4  ;;  %v1260_v56 = vrot.slane %v1827_v5, %v2185_v54 }
 0x140   : > { %v1264_v9 = vpop.permute.xlu0 %1263  ;;  %v1303_v46 = vrot.slane %v1828_v33, %v2185_v54 }
 0x141   : > { %v1270_v11 = vrot.slane %v1264_v9, 4  ;;  %v1245_v14 = vadd.f32 %v1242_v7, %v1202_v59 }
 0x142   : > { %v1266_v16 = vpop.permute.xlu1 %1265 }
 0x143   : > { %v1273_v15 = vsel %vm426_vm0, %v1269_v10, %v1270_v11  ;;  %v1271_v18 = vrot.slane %v1266_v16, 4 }
 0x144   : > { %v1275_v17 = vsel %vm1274_vm5, %v1262_v6, %v1273_v15  ;;  %v1268_v24 = vpop.permute.xlu0 %1267 }
 0x145   : > { %v1283_v25 = vmul.f32 %v1275_v17, %v1260_v56  ;;  %v1272_v2 = vrot.slane %v1268_v24, 4  ;;  %v1276_v19 = vsel %vm426_vm0, %v1270_v11, %v1271_v18 }
 0x146   : > { %v1277_v26 = vsel %vm1274_vm5, %v1264_v9, %v1276_v19  ;;  %v1831_v20 = vpop.permute.xlu1 %1830 }
 0x147   : > { %v1286_v62 = vadd.f32 %v1283_v25, %v1243_v1  ;;  %v1278_v28 = vsel %vm426_vm0, %v1271_v18, %v1272_v2  ;;  %v1284_v29 = vmul.f32 %v1277_v26, %v1260_v56  ;;  %v1832_v51 = vunpack.i.l.bf16 %v1831_v20 }
 0x148   : > { %v1279_v32 = vsel %vm1274_vm5, %v1266_v16, %v1278_v28  ;;  %v1305_v42 = vpop.permute.xlu0 %1304  ;;  %v1833_v9 = vunpack.i.h.bf16 %v1831_v20 }
 0x149   : > { %v1285_v22 = vmul.f32 %v1279_v32, %v1260_v56  ;;  %v1287_v30 = vadd.f32 %v1284_v29, %v1244_v4  ;;  %v1312_v8 = vrot.slane %v1305_v42, 4  ;;  %v1346_v61 = vrot.slane %v1832_v51, %v2185_v54 }
 0x14a   : > { %v1307_v38 = vpop.permute.xlu1 %1306  ;;  %v1389_v24 = vrot.slane %v1833_v9, %v2185_v54 }
 0x14b   : > { %v1288_v37 = vadd.f32 %v1285_v22, %v1245_v14  ;;  %v1313_v44 = vrot.slane %v1307_v38, 4 }
 0x14c   : > { %v1309_v43 = vpop.permute.xlu0 %1308 }
 0x14d   : > { %v1314_v45 = vrot.slane %v1309_v43, 4  ;;  %v1316_v13 = vsel %vm426_vm0, %v1312_v8, %v1313_v44 }
 0x14e   : > { %v1318_v47 = vsel %vm1317_vm6, %v1305_v42, %v1316_v13  ;;  %v1311_v48 = vpop.permute.xlu1 %1310 }
 0x14f   : > { %v1319_v52 = vsel %vm426_vm0, %v1313_v44, %v1314_v45  ;;  %v1326_v49 = vmul.f32 %v1318_v47, %v1303_v46  ;;  %v1315_v39 = vrot.slane %v1311_v48, 4 }
 0x150   : > { %v1320_v50 = vsel %vm1317_vm6, %v1307_v38, %v1319_v52  ;;  %v1348_v36 = vpop.permute.xlu0 %1347 }
 0x151   : > { %v1327_v41 = vmul.f32 %v1320_v50, %v1303_v46  ;;  %v1329_v55 = vadd.f32 %v1326_v49, %v1286_v62  ;;  %v1321_v57 = vsel %vm426_vm0, %v1314_v45, %v1315_v39  ;;  %v1355_v40 = vrot.slane %v1348_v36, 4 }
 0x152   : > { %v1322_v35 = vsel %vm1317_vm6, %v1309_v43, %v1321_v57  ;;  %v1350_v53 = vpop.permute.xlu1 %1349 }
 0x153   : > { %v1330_v58 = vadd.f32 %v1327_v41, %v1287_v30  ;;  %v1328_v59 = vmul.f32 %v1322_v35, %v1303_v46  ;;  %v1356_v60 = vrot.slane %v1350_v53, 4 }
 0x154   : > { %v1352_v34 = vpop.permute.xlu0 %1351 }
 0x155   : > { %v1357_v12 = vrot.slane %v1352_v34, 4  ;;  %v1331_v27 = vadd.f32 %v1328_v59, %v1288_v37  ;;  %v1359_v23 = vsel %vm426_vm0, %v1355_v40, %v1356_v60 }
 0x156   : > { %v1361_v21 = vsel %vm1360_vm7, %v1348_v36, %v1359_v23  ;;  %v1354_v0 = vpop.permute.xlu1 %1353 }
 0x157   : > { %v1362_v63 = vsel %vm426_vm0, %v1356_v60, %v1357_v12  ;;  %v1369_v1 = vmul.f32 %v1361_v21, %v1346_v61  ;;  %v1358_v4 = vrot.slane %v1354_v0, 4 }
 0x158   : > { %v1363_v3 = vsel %vm1360_vm7, %v1350_v53, %v1362_v63  ;;  %v2471_v31 = vpop.permute.xlu0 %1835 }
 0x159   : > { %v1370_v5 = vmul.f32 %v1363_v3, %v1346_v61  ;;  %v1372_v6 = vadd.f32 %v1369_v1, %v1329_v55  ;;  %v1364_v7 = vsel %vm426_vm0, %v1357_v12, %v1358_v4  ;;  %v1837_v32 = vunpack.i.l.bf16 %v2471_v31 }
 0x15a   : > { %v1365_v11 = vsel %vm1360_vm7, %v1352_v34, %v1364_v7  ;;  %v1391_v14 = vpop.permute.xlu1 %1390  ;;  %v1838_v34 = vunpack.i.h.bf16 %v2471_v31 }
 0x15b   : > { %v1373_v10 = vadd.f32 %v1370_v5, %v1330_v58  ;;  %v1371_v56 = vmul.f32 %v1365_v11, %v1346_v61  ;;  %v1398_v16 = vrot.slane %v1391_v14, 4  ;;  %v1432_v13 = vrot.slane %v1837_v32, %v2185_v54 }
 0x15c   : > { %v1393_v15 = vpop.permute.xlu0 %1392  ;;  %v1475_v1 = vrot.slane %v1838_v34, %v2185_v54 }
 0x15d   : > { %v1399_v17 = vrot.slane %v1393_v15, 4  ;;  %v1374_v18 = vadd.f32 %v1371_v56, %v1331_v27 }
 0x15e   : > { %v1395_v2 = vpop.permute.xlu1 %1394 }
 0x15f   : > { %v1402_v25 = vsel %vm426_vm0, %v1398_v16, %v1399_v17  ;;  %v1400_v62 = vrot.slane %v1395_v2, 4 }
 0x160   : > { %v1404_v19 = vsel %vm1403_vm8, %v1391_v14, %v1402_v25  ;;  %v1397_v26 = vpop.permute.xlu0 %1396 }
 0x161   : > { %v1412_v28 = vmul.f32 %v1404_v19, %v1389_v24  ;;  %v1401_v20 = vrot.slane %v1397_v26, 4  ;;  %v1405_v29 = vsel %vm426_vm0, %v1399_v17, %v1400_v62 }
 0x162   : > { %v1406_v22 = vsel %vm1403_vm8, %v1393_v15, %v1405_v29  ;;  %v1434_v30 = vpop.permute.xlu1 %1433 }
 0x163   : > { %v1415_v42 = vadd.f32 %v1412_v28, %v1372_v6  ;;  %v1407_v33 = vsel %vm426_vm0, %v1400_v62, %v1401_v20  ;;  %v1413_v8 = vmul.f32 %v1406_v22, %v1389_v24  ;;  %v1441_v43 = vrot.slane %v1434_v30, 4 }
 0x164   : > { %v1408_v37 = vsel %vm1403_vm8, %v1395_v2, %v1407_v33  ;;  %v1436_v38 = vpop.permute.xlu0 %1435 }
 0x165   : > { %v1414_v44 = vmul.f32 %v1408_v37, %v1389_v24  ;;  %v1442_v45 = vrot.slane %v1436_v38, 4  ;;  %v1416_v46 = vadd.f32 %v1413_v8, %v1373_v10 }
 0x166   : > { %v1438_v48 = vpop.permute.xlu1 %1437 }
 0x167   : > { %v1417_v47 = vadd.f32 %v1414_v44, %v1374_v18  ;;  %v1445_v52 = vsel %vm426_vm0, %v1441_v43, %v1442_v45  ;;  %v1443_v50 = vrot.slane %v1438_v48, 4 }
 0x168   : > { %v1447_v49 = vsel %vm1446_vm9, %v1434_v30, %v1445_v52  ;;  %v1440_v39 = vpop.permute.xlu0 %1439 }
 0x169   : > { %v1455_v36 = vmul.f32 %v1447_v49, %v1432_v13  ;;  %v1444_v41 = vrot.slane %v1440_v39, 4  ;;  %v1448_v51 = vsel %vm426_vm0, %v1442_v45, %v1443_v50 }
 0x16a   : > { %v1449_v55 = vsel %vm1446_vm9, %v1436_v38, %v1448_v51  ;;  %v1510_v40 = vpop.permute.xlu1 %1509 }
 0x16b   : > { %v1450_v57 = vsel %vm426_vm0, %v1443_v50, %v1444_v41  ;;  %v1458_v58 = vadd.f32 %v1455_v36, %v1415_v42  ;;  %v1456_v35 = vmul.f32 %v1449_v55, %v1432_v13  ;;  %v1518_v62 = vrot.slane %v1510_v40, %v2185_v54 }
 0x16c   : > { %v1451_v53 = vsel %vm1446_vm9, %v1438_v48, %v1450_v57  ;;  %v1477_v59 = vpop.permute.xlu0 %1476 }
 0x16d   : > { %v1457_v60 = vmul.f32 %v1451_v53, %v1432_v13  ;;  %v1484_v12 = vrot.slane %v1477_v59, 4  ;;  %v1459_v61 = vadd.f32 %v1456_v35, %v1416_v46 }
 0x16e   : > { %v1479_v23 = vpop.permute.xlu1 %1478 }
 0x16f   : > { %v1460_v27 = vadd.f32 %v1457_v60, %v1417_v47  ;;  %v1485_v21 = vrot.slane %v1479_v23, 4 }
 0x170   : > { %v1481_v63 = vpop.permute.xlu0 %1480 }
 0x171   : > { %v1486_v0 = vrot.slane %v1481_v63, 4  ;;  %v1488_v3 = vsel %vm426_vm0, %v1484_v12, %v1485_v21 }
 0x172   : > { %v1490_v4 = vsel %vm1489_vm10, %v1477_v59, %v1488_v3  ;;  %v1483_v31 = vpop.permute.xlu1 %1482 }
 0x173   : > { %v1491_v5 = vsel %vm426_vm0, %v1485_v21, %v1486_v0  ;;  %v1498_v6 = vmul.f32 %v1490_v4, %v1475_v1  ;;  %v1487_v9 = vrot.slane %v1483_v31, 4 }
 0x174   : > { %v1492_v7 = vsel %vm1489_vm10, %v1479_v23, %v1491_v5  ;;  %v1520_v10 = vpop.permute.xlu0 %1519 }
 0x175   : > { %v1499_v11 = vmul.f32 %v1492_v7, %v1475_v1  ;;  %v1493_v14 = vsel %vm426_vm0, %v1486_v0, %v1487_v9  ;;  %v1527_v56 = vrot.slane %v1520_v10, 4  ;;  %v1501_v15 = vadd.f32 %v1498_v6, %v1458_v58 }
 0x176   : > { %v1494_v16 = vsel %vm1489_vm10, %v1481_v63, %v1493_v14  ;;  %v1522_v17 = vpop.permute.xlu1 %1521 }
 0x177   : > { %v1502_v18 = vadd.f32 %v1499_v11, %v1459_v61  ;;  %v1500_v24 = vmul.f32 %v1494_v16, %v1475_v1  ;;  %v1528_v25 = vrot.slane %v1522_v17, 4 }
 0x178   : > { %v1524_v2 = vpop.permute.xlu0 %1523 }
 0x179   : > { %v1529_v19 = vrot.slane %v1524_v2, 4  ;;  %v1531_v26 = vsel %vm426_vm0, %v1527_v56, %v1528_v25  ;;  %v1503_v28 = vadd.f32 %v1500_v24, %v1460_v27 }
 0x17a   : > { %v1533_v20 = vsel %vm1532_vm11, %v1520_v10, %v1531_v26  ;;  %v1526_v32 = vpop.permute.xlu1 %1525 }
 0x17b   : > { %v1534_v29 = vsel %vm426_vm0, %v1528_v25, %v1529_v19  ;;  %v1530_v22 = vrot.slane %v1526_v32, 4  ;;  %v1541_v33 = vmul.f32 %v1533_v20, %v1518_v62 }
 0x17c   : > { %v1535_v42 = vsel %vm1532_vm11, %v1522_v17, %v1534_v29  ;;  %v1551_v30 = vpop.permute.xlu0 %1550 }
 0x17d   : > { %v1542_v8 = vmul.f32 %v1535_v42, %v1518_v62  ;;  %v1558_v37 = vrot.slane %v1551_v30, %v2185_v54  ;;  %v1536_v38 = vsel %vm426_vm0, %v1529_v19, %v1530_v22  ;;  %v1544_v44 = vadd.f32 %v1541_v33, %v1501_v15 }
 0x17e   : > { %v1537_v43 = vsel %vm1532_vm11, %v1524_v2, %v1536_v38 }
 0x17f   : > { %v1545_v45 = vadd.f32 %v1542_v8, %v1502_v18  ;;  %v1543_v46 = vmul.f32 %v1537_v43, %v1518_v62  ;;  %v1560_v13 = vadd.f32 %v1558_v37, %v1544_v44 }
 0x181   : > { %v1561_v47 = vadd.f32 %v1558_v37, %v1545_v45  ;;  %v1546_v52 = vadd.f32 %v1543_v46, %v1503_v28  ;;  %1563 = vst [vmem:[%s272_s24] sm:$0xff] %v1560_v13 }
 0x183   : > { %1564 = vst [vmem:[%s272_s24 + $0x8] sm:$0xff] %v1561_v47  ;;  %v1562_v48 = vadd.f32 %v1558_v37, %v1546_v52 }
 0x185   : > { %1565 = vst [vmem:[%s272_s24 + $0x10] sm:$0xff] %v1562_v48 }
 0x186 PF: > { %s14_s19 = sadd.s32 1, %s1877_s19   ;;  %s2532_s15 = smov %s1869_s17 }
 0x187   : > { %p11_p9 = scmp.ge.s32.totalorder %s14_s19, 50   ;;  %s2533_s16 = smov %s1873_s18 }
 0x188   : > { %s2534_s17 = smov %s2537_s20  ;;  %s2535_s18 = smov %s2541_s21 }
 0x189   :  { %13 = sbr.rel (!%p11_p9) target bundleno = 3 (0x3), region = 95 }

// kernel: crnet_forward.6
= control target key start
LH: loop header
LB: loop body
LE: loop exit
PB: predicated region body
PF: predicated region fallthrough
CT: control target
= control target key end

     0   :  { %s544_s12 = smov 0   ;;  %s546_s13 = smov 0   ;;  %s607_s0 = inlined_call_operand.vmem [shape: f32[6,4,4096], index: 0, kind: input, shape index: {}]   ;;  %s608_s1 = inlined_call_operand.vmem [shape: f32[6,4,1], index: 1, kind: input, shape index: {}]   ;;  %s609_s2 = inlined_call_operand.vmem [shape: f32[6,4,1], index: 2, kind: input, shape index: {}]   ;;  %s610_s3 = inlined_call_operand.vmem [shape: f32[6,4,4096], index: 3, kind: output, shape index: {}]  }
   0x1   :  { %s548_s14 = smov 0   ;;  %s550_s15 = smov 0  }
   0x2   :  { %s552_s16 = smov 0  }
   0x3 LB: > { %s22_s17 = sadd.s32 1, %s512_s14  ;;  %s25_s18 = sadd.s32 1, %s516_s15  ;;  %s520_s16 = sphi %s552_s16, %s13_s16   ;;  %s516_s15 = sphi %s550_s15, %s614_s15   ;;  %s512_s14 = sphi %s548_s14, %s613_s14   ;;  %s508_s13 = sphi %s546_s13, %s612_s13   ;;  %s504_s12 = sphi %s544_s12, %s611_s12  }
   0x4   : > { %p23_p0 = scmp.ge.s32.totalorder %s22_s17, 2  ;;  %p428_p1 = scmp.ge.s32.totalorder %s520_s16, 1 }
   0x5   : > { %p176_p2 = scmp.lt.s32.totalorder %s520_s16, 13 }
   0x6   : > { %s616_s17 = smov (%p23_p0, %s22_s17), 0  ;;  %s618_s18 = smov (!%p23_p0, %s25_s18), %s516_s15 }
   0x7   : > { %p177_p3 = pnand %p428_p1, %p176_p2  ;;  %p27_p4 = scmp.ge.s32.totalorder %s618_s18, 6 }
   0x8   : > { %p217_p5 = scmp.lt.s32.totalorder (!%p177_p3), %s508_s13, 5  ;;  %s429_s26 = sshll.u32 (!%p177_p3), %s504_s12, 4 }
   0x9   : > { %s620_s18 = smov (%p27_p4, %s618_s18), 0  ;;  %180 = sbr.rel (%p177_p3) target bundleno = 156 (0x9c), region = 32 }
   0xa   : > { %p219_p6 = scmp.lt.s32.totalorder (!%p177_p3), %s429_s26, 31 }
   0xe   : > { %v522_v0 = vmov 0   ;;  %s622_s13 = smov (!%p217_p5, %s508_s13), 5  ;;  %s624_s26 = smov (!%p219_p6, %s429_s26), 31  ;;  %v523_v3 = vmov 839922192   ;;  %v260_v5 = vlaneseq }
   0xf   : > { %481 = vset.pattern.permute.xlu0 %v522_v0  ;;  %s432_s19 = sshll.u32 %s622_s13, 2  ;;  %s430_s27 = sshll.u32 %s622_s13, 5  ;;  %v258_v4 = vunpack.c.l.s4 %v523_v3 }
  0x10   : > { %s229_s22 = scalar_lea.vmem %s608_s1, %s432_s19  ;;  %s233_s25 = scalar_lea.vmem %s609_s2, %s432_s19  ;;  %v261_v7 = vshrl.u32 %v260_v5, 7 }
  0x11   : > { %v252_v1 = vld [vmem:[%s229_s22] sm:$0xf]  ;;  %s583_s28 = sadd.s32 %s430_s27, %s624_s26  ;;  %v259_v6 = vunpack.c.0.s8 %v258_v4 }
  0x12   : > { %255 = vperm.xlu0 %481, %v252_v1   ;;  %v273_v2 = vld [vmem:[%s233_s25] sm:$0xf]  ;;  %s431_s29 = sshll.u32 %s583_s28, 2 }
  0x13   : > { %v262_v8 = vsub.s32 %v259_v6, %v261_v7  ;;  %s224_s5 = scalar_lea.vmem %s607_s0, %s431_s29  ;;  %s242_s8 = scalar_lea.vmem %s610_s3, %s431_s29 }
  0x14   : > { %v244_v10 = vld [vmem:[%s224_s5] sm:$0xff]  ;;  %v245_v11 = vld [vmem:[%s224_s5 + $0x8] sm:$0xff]  ;;  %v246_v13 = vld [vmem:[%s224_s5 + $0x10] sm:$0xff] }
  0x15   : > { %v247_v14 = vld [vmem:[%s224_s5 + $0x18] sm:$0xff]  ;;  %v248_v15 = vld [vmem:[%s224_s5 + $0x20] sm:$0xff]  ;;  %v249_v16 = vld [vmem:[%s224_s5 + $0x28] sm:$0xff] }
  0x16   : > { %276 = vperm.xlu0 %481, %v273_v2   ;;  %v250_v17 = vld [vmem:[%s224_s5 + $0x30] sm:$0xff]  ;;  %v251_v18 = vld [vmem:[%s224_s5 + $0x38] sm:$0xff] }
  0x8d   : > { %v256_v9 = vpop.permute.xlu0 %255 }
  0x8e   : > { %v263_v12 = vrot.slane %v256_v9, %v262_v8 }
  0x90   : > { %v265_v19 = vmul.f32 %v263_v12, %v244_v10  ;;  %v266_v21 = vmul.f32 %v263_v12, %v245_v11  ;;  %v267_v22 = vmul.f32 %v263_v12, %v246_v13  ;;  %v268_v23 = vmul.f32 %v263_v12, %v247_v14 }
  0x91   : > { %v277_v20 = vpop.permute.xlu0 %276  ;;  %v269_v25 = vmul.f32 %v263_v12, %v248_v15  ;;  %v270_v26 = vmul.f32 %v263_v12, %v249_v16  ;;  %v271_v27 = vmul.f32 %v263_v12, %v250_v17  ;;  %v272_v28 = vmul.f32 %v263_v12, %v251_v18 }
  0x92   : > { %v284_v24 = vrot.slane %v277_v20, %v262_v8 }
  0x94   : > { %v286_v29 = vadd.f32 %v284_v24, %v265_v19  ;;  %v287_v30 = vadd.f32 %v284_v24, %v266_v21  ;;  %v288_v31 = vadd.f32 %v284_v24, %v267_v22  ;;  %v289_v32 = vadd.f32 %v284_v24, %v268_v23 }
  0x95   : > { %v290_v33 = vadd.f32 %v284_v24, %v269_v25  ;;  %v291_v34 = vadd.f32 %v284_v24, %v270_v26  ;;  %v292_v35 = vadd.f32 %v284_v24, %v271_v27  ;;  %v293_v36 = vadd.f32 %v284_v24, %v272_v28 }
  0x96   : > { %v294_v37 = vmax.f32 %v286_v29, 0.0  ;;  %v295_v38 = vmax.f32 %v287_v30, 0.0  ;;  %v296_v39 = vmax.f32 %v288_v31, 0.0  ;;  %v297_v40 = vmax.f32 %v289_v32, 0.0 }
  0x97   : > { %v298_v41 = vmax.f32 %v290_v33, 0.0  ;;  %v299_v42 = vmax.f32 %v291_v34, 0.0  ;;  %v300_v43 = vmax.f32 %v292_v35, 0.0  ;;  %v301_v44 = vmax.f32 %v293_v36, 0.0 }
  0x98   : > { %302 = vst [vmem:[%s242_s8] sm:$0xff] %v294_v37  ;;  %303 = vst [vmem:[%s242_s8 + $0x8] sm:$0xff] %v295_v38 }
  0x99   : > { %304 = vst [vmem:[%s242_s8 + $0x10] sm:$0xff] %v296_v39  ;;  %305 = vst [vmem:[%s242_s8 + $0x18] sm:$0xff] %v297_v40 }
  0x9a   : > { %306 = vst [vmem:[%s242_s8 + $0x20] sm:$0xff] %v298_v41  ;;  %307 = vst [vmem:[%s242_s8 + $0x28] sm:$0xff] %v299_v42 }
  0x9b   : > { %308 = vst [vmem:[%s242_s8 + $0x30] sm:$0xff] %v300_v43  ;;  %309 = vst [vmem:[%s242_s8 + $0x38] sm:$0xff] %v301_v44 }
  0x9c PF: > { %s13_s16 = sadd.s32 1, %s520_s16   ;;  %s611_s12 = smov %s512_s14 }
  0x9d   : > { %p10_p7 = scmp.ge.s32.totalorder %s13_s16, 14   ;;  %s612_s13 = smov %s516_s15 }
  0x9e   : > { %s613_s14 = smov %s616_s17  ;;  %s614_s15 = smov %s620_s18 }
  0x9f   :  { %12 = sbr.rel (!%p10_p7) target bundleno = 3 (0x3), region = 68 }

// kernel: crnet_forward.7
= control target key start
LH: loop header
LB: loop body
LE: loop exit
PB: predicated region body
PF: predicated region fallthrough
CT: control target
= control target key end

     0   :  { %s2363_s15 = smov 0   ;;  %s2365_s16 = smov 0   ;;  %s2721_s0 = inlined_call_operand.vmem [shape: f32[6,4,1280], index: 0, kind: input, shape index: {}, may-alias: {0,1}]   ;;  %s2722_s1 = inlined_call_operand.vmem [shape: f32[6,4,1280], index: 1, kind: input, shape index: {}, may-alias: {0,1}]   ;;  %s2723_s2 = inlined_call_operand.vmem [shape: bf16[27,8,4], index: 2, kind: input, shape index: {}]   ;;  %s2724_s3 = inlined_call_operand.vmem [shape: f32[8,1], index: 3, kind: input, shape index: {}]   ;;  %s2725_s4 = inlined_call_operand.vmem [shape: f32[6,8,1024], index: 4, kind: output, shape index: {}]  }
   0x1   :  { %s2367_s17 = smov 0   ;;  %s2369_s18 = smov 0  }
   0x2   :  { %s2371_s19 = smov 0  }
   0x3 LB: > { %s23_s20 = sadd.s32 1, %s2301_s17  ;;  %s26_s21 = sadd.s32 1, %s2305_s18  ;;  %s2309_s19 = sphi %s2371_s19, %s14_s19   ;;  %s2305_s18 = sphi %s2369_s18, %s2729_s18   ;;  %s2301_s17 = sphi %s2367_s17, %s2728_s17   ;;  %s2297_s16 = sphi %s2365_s16, %s2727_s16   ;;  %s2293_s15 = sphi %s2363_s15, %s2726_s15  }
   0x4   : > { %p24_p0 = scmp.ge.s32.totalorder %s23_s20, 4  ;;  %p2108_p1 = scmp.ge.s32.totalorder %s2309_s19, 1 }
   0x5   : > { %p204_p2 = scmp.lt.s32.totalorder %s2309_s19, 25 }
   0x6   : > { %s2731_s20 = smov (%p24_p0, %s23_s20), 0  ;;  %s2733_s21 = smov (!%p24_p0, %s26_s21), %s2305_s18 }
   0x7   : > { %p205_p3 = pnand %p2108_p1, %p204_p2  ;;  %p28_p4 = scmp.ge.s32.totalorder %s2733_s21, 6 }
   0x8   : > { %s2393_s22 = sshll.u32 (!%p205_p3), %s2293_s15, 1  ;;  %p249_p5 = scmp.lt.s32.totalorder (!%p205_p3), %s2297_s16, 5 }
   0x9   : > { %s2735_s21 = smov (%p28_p4, %s2733_s21), 0  ;;  %208 = sbr.rel (%p205_p3) target bundleno = 496 (0x1f0), region = 36 }
   0xa   : > { %s2199_s23 = sadd.s32 (!%p205_p3), 2, %s2393_s22  ;;  %p251_p7 = scmp.lt.s32.totalorder (!%p205_p3), %s2393_s22, 9 }
   0xb   : > { %p262_p6 = scmp.lt.s32.totalorder (!%p205_p3), %s2199_s23, 9  ;;  %s2311_s10 = smov (!%p205_p3), 127  }
   0xc   : > { %s2313_s11 = smov (!%p205_p3), 126   ;;  %s2314_s12 = smov (!%p205_p3), 118  }
   0xd   : > { %s2315_s15 = smov (!%p205_p3), 117   ;;  %s2322_s29 = smov (!%p205_p3), 26  }
   0xe   : > { %s2737_s16 = smov (!%p249_p5, %s2297_s16), 5  ;;  %s2739_s23 = smov (!%p262_p6, %s2199_s23), 9  ;;  %vm312_vm0 = vcmask 1041408   ;;  %v2312_v6 = vmov 0   ;;  %v293_v8 = vld [vmem:[%s2723_s2] sm:$0xf] }
   0xf   : > { %s2200_s24 = smul.u32 10, %s2737_s16  ;;  %351 = vmatprep.mubr.bf16.mxu0 %v2312_v6  ;;  %401 = vmatprep.mubr.bf16.mxu1 %v2312_v6  ;;  %vm308_vm1 = vcmask 31744   ;;  %s2323_s30 = smov 18   ;;  %vm305_vm2 = vcmask 1039360   ;;  %vm418_vm3 = vcmask 1031168   ;;  %vm481_vm4 = vcmask 965632  }
  0x10   : > { %s252_s25 = scalar_select %p251_p7, %s2393_s22, 9  ;;  %2268 = vset.pattern.permute.xlu0 %v2312_v6  ;;  %v2116_v22 = vld [vmem:[%s2723_s2 + $0x4] sm:$0xf]  ;;  %vm544_vm5 = vcmask 957440   ;;  %v2121_v33 = vld [vmem:[%s2723_s2 + $0x8] sm:$0xf] }
  0x11   : > { %s265_s26 = sadd.s32 %s2200_s24, %s2739_s23  ;;  %s2316_s23 = smov 116   ;;  %v2124_v34 = vld [vmem:[%s2723_s2 + $0xc] sm:$0xf]  ;;  %vm607_vm6 = vcmask 949248   ;;  %v2127_v43 = vld [vmem:[%s2723_s2 + $0x10] sm:$0xf] }
  0x12   : > { %s2112_s27 = sshll.u32 %s265_s26, 2  ;;  %s254_s28 = sadd.s32 %s2200_s24, %s252_s25  ;;  %vm670_vm7 = vcmask 883712   ;;  %v2130_v48 = vld [vmem:[%s2723_s2 + $0x14] sm:$0xf]  ;;  %vm733_vm8 = vcmask 875520   ;;  %vm796_vm9 = vcmask 867328  }
  0x13   : > { %s267_s5 = scalar_lea.vmem %s2722_s1, %s2112_s27  ;;  %s2110_s6 = sshll.u32 %s254_s28, 2  ;;  %v2133_v54 = vld [vmem:[%s2723_s2 + $0x18] sm:$0xf]  ;;  %v2136_v61 = vld [vmem:[%s2723_s2 + $0x1c] sm:$0xf]  ;;  %vm859_vm10 = vcmask 228352  }
  0x14   : > { %v2404_v0 = vld [vmem:[%s267_s5] sm:$0xff]  ;;  %s256_s9 = scalar_lea.vmem %s2721_s0, %s2110_s6  ;;  %s2317_s24 = smov 108   ;;  %vm922_vm11 = vcmask 220160   ;;  %vm985_vm12 = vcmask 211968   ;;  %vm1048_vm13 = vcmask 146432   ;;  %vm1111_vm14 = vcmask 138240  }
  0x15   : > { %v2411_v1 = vpack.c.bf16 %v2404_v0, %v2404_v0  ;;  %v281_v2 = vld [vmem:[%s256_s9] sm:$0xff]  ;;  %s2318_s25 = smov 107   ;;  %s2319_s26 = smov 106   ;;  %v289_v9 = vcombine.high %v2404_v0, %v2404_v0  ;;  %vm1174_vm15 = vcmask 130048  }
  0x16   : > { %v2413_v3 = vpack.c.bf16 %v281_v2, %v281_v2  ;;  %v283_v4 = vcombine.high %v281_v2, %v281_v2  ;;  %s2320_s27 = smov 28   ;;  %s2321_s28 = smov 27  }
  0x17   : > { %303 = vrot.lane.b32.xlu1 %v2411_v1, %s2311_s10  ;;  %s2324_s5 = smov 17   ;;  %s2325_s6 = smov 16   ;;  %v2482_v10 = vpack.c.bf16 %v289_v9, %v289_v9 }
  0x18   : > { %299 = vrot.lane.b32.xlu0 %v2413_v3, %s2311_s10  ;;  %v2417_v5 = vpack.c.bf16 %v283_v4, %v283_v4  ;;  %v364_v7 = vsel %vm312_vm0, %v2413_v3, 0  ;;  %s2326_s7 = smov 8   ;;  %s2327_s8 = smov 7  }
  0x19   : > { %s2328_s9 = smov 6   ;;  %s2332_s13 = smov 46  }
  0x1a   : > { %2119 = vmatprep.subr.msk.bf16.mxu1 %vm312_vm0, %v2417_v5  ;;  %s2333_s14 = smov 45   ;;  %p273_p8 = scmp.lt.s32.totalorder %s2393_s22, 7 }
  0x1b   : > { %412 = vrot.lane.b32.xlu1 %v2413_v3, %s2313_s11  ;;  %384 = vmatpush1.bf16.msra.mxu1 %v364_v7 }
  0x1c   : > { %475 = vrot.lane.b32.xlu0 %v2413_v3, %s2314_s12  ;;  %s2741_s22 = smov (!%p273_p8, %s2393_s22), 7 }
  0x1e   : > { %2120 = vmatmul.mubr.msk.bf16.vlgmr.msra.gmra.mxu1 %vm308_vm1, %v293_v8 }
  0x1f   : > { %416 = vrot.lane.b32.xlu1 %v2411_v1, %s2313_s11  ;;  %525 = vmatprep.mubr.bf16.mxu1 %v2312_v6 }
  0x20   : > { %301 = vrot.lane.b32.xlu0 %v2417_v5, %s2311_s10  ;;  %s2329_s10 = smov 56  }
  0x23   : > { %477 = vrot.lane.b32.xlu1 %v2417_v5, %s2314_s12 }
  0x24   : > { %414 = vrot.lane.b32.xlu0 %v2417_v5, %s2313_s11  ;;  %s2330_s11 = smov 55  }
  0x27   : > { %538 = vrot.lane.b32.xlu1 %v2413_v3, %s2315_s15 }
  0x28   : > { %479 = vrot.lane.b32.xlu0 %v2411_v1, %s2314_s12  ;;  %s2331_s12 = smov 54  }
  0x2b   : > { %542 = vrot.lane.b32.xlu1 %v2411_v1, %s2315_s15 }
  0x2c   : > { %540 = vrot.lane.b32.xlu0 %v2417_v5, %s2315_s15 }
  0x2f   : > { %603 = vrot.lane.b32.xlu1 %v2417_v5, %s2316_s23 }
  0x30   : > { %601 = vrot.lane.b32.xlu0 %v2413_v3, %s2316_s23 }
  0x33   : > { %664 = vrot.lane.b32.xlu1 %v2413_v3, %s2317_s24 }
  0x34   : > { %605 = vrot.lane.b32.xlu0 %v2411_v1, %s2316_s23  ;;  %s2114_s23 = sshll.u32 %s2737_s16, 3 }
  0x37   : > { %668 = vrot.lane.b32.xlu1 %v2411_v1, %s2317_s24 }
  0x38   : > { %666 = vrot.lane.b32.xlu0 %v2417_v5, %s2317_s24  ;;  %s2334_s24 = smov 44  }
  0x3b   : > { %729 = vrot.lane.b32.xlu1 %v2417_v5, %s2318_s25 }
  0x3c   : > { %727 = vrot.lane.b32.xlu0 %v2413_v3, %s2318_s25 }
  0x3f   : > { %790 = vrot.lane.b32.xlu1 %v2413_v3, %s2319_s26 }
  0x40   : > { %731 = vrot.lane.b32.xlu0 %v2411_v1, %s2318_s25 }
  0x43   : > { %794 = vrot.lane.b32.xlu1 %v2411_v1, %s2319_s26 }
  0x44   : > { %792 = vrot.lane.b32.xlu0 %v2417_v5, %s2319_s26 }
  0x47   : > { %855 = vrot.lane.b32.xlu1 %v2417_v5, %s2320_s27 }
  0x48   : > { %853 = vrot.lane.b32.xlu0 %v2413_v3, %s2320_s27 }
  0x4b   : > { %916 = vrot.lane.b32.xlu1 %v2413_v3, %s2321_s28 }
  0x4c   : > { %857 = vrot.lane.b32.xlu0 %v2411_v1, %s2320_s27 }
  0x4f   : > { %920 = vrot.lane.b32.xlu1 %v2411_v1, %s2321_s28 }
  0x50   : > { %918 = vrot.lane.b32.xlu0 %v2417_v5, %s2321_s28 }
  0x53   : > { %981 = vrot.lane.b32.xlu1 %v2417_v5, %s2322_s29 }
  0x54   : > { %979 = vrot.lane.b32.xlu0 %v2413_v3, %s2322_s29 }
  0x57   : > { %1042 = vrot.lane.b32.xlu1 %v2413_v3, %s2323_s30 }
  0x58   : > { %983 = vrot.lane.b32.xlu0 %v2411_v1, %s2322_s29  ;;  %s2335_s29 = smov 36  }
  0x5b   : > { %1046 = vrot.lane.b32.xlu1 %v2411_v1, %s2323_s30 }
  0x5c   : > { %1044 = vrot.lane.b32.xlu0 %v2417_v5, %s2323_s30 }
  0x5f   : > { %1107 = vrot.lane.b32.xlu1 %v2417_v5, %s2324_s5 }
  0x60   : > { %1105 = vrot.lane.b32.xlu0 %v2413_v3, %s2324_s5 }
  0x63   : > { %1168 = vrot.lane.b32.xlu1 %v2413_v3, %s2325_s6 }
  0x64   : > { %1109 = vrot.lane.b32.xlu0 %v2411_v1, %s2324_s5 }
  0x67   : > { %1172 = vrot.lane.b32.xlu1 %v2411_v1, %s2325_s6 }
  0x68   : > { %1170 = vrot.lane.b32.xlu0 %v2417_v5, %s2325_s6  ;;  %s2336_s6 = smov 35  }
  0x6b   : > { %1233 = vrot.lane.b32.xlu1 %v2417_v5, %s2326_s7 }
  0x6c   : > { %1231 = vrot.lane.b32.xlu0 %v2413_v3, %s2326_s7 }
  0x6f   : > { %1294 = vrot.lane.b32.xlu1 %v2413_v3, %s2327_s8 }
  0x70   : > { %1235 = vrot.lane.b32.xlu0 %v2411_v1, %s2326_s7 }
  0x73   : > { %1298 = vrot.lane.b32.xlu1 %v2411_v1, %s2327_s8 }
  0x74   : > { %1296 = vrot.lane.b32.xlu0 %v2417_v5, %s2327_s8 }
  0x77   : > { %1359 = vrot.lane.b32.xlu1 %v2417_v5, %s2328_s9 }
  0x78   : > { %1357 = vrot.lane.b32.xlu0 %v2413_v3, %s2328_s9  ;;  %v2139_v3 = vld [vmem:[%s2723_s2 + $0x20] sm:$0xf] }
  0x7b   : > { %1421 = vrot.lane.b32.xlu1 %v2417_v5, %s2329_s10 }
  0x7c   : > { %1361 = vrot.lane.b32.xlu0 %v2411_v1, %s2328_s9  ;;  %s2337_s9 = smov 34  }
  0x7f   : > { %1425 = vrot.lane.b32.xlu1 %v2482_v10, %s2329_s10 }
  0x80   : > { %1423 = vrot.lane.b32.xlu0 %v2411_v1, %s2329_s10 }
  0x83   : > { %1486 = vrot.lane.b32.xlu1 %v2411_v1, %s2330_s11 }
  0x84   : > { %1484 = vrot.lane.b32.xlu0 %v2417_v5, %s2330_s11 }
  0x87   : > { %1547 = vrot.lane.b32.xlu1 %v2417_v5, %s2331_s12 }
  0x88   : > { %1488 = vrot.lane.b32.xlu0 %v2482_v10, %s2330_s11 }
  0x89   : > { %v304_v11 = vpop.permute.xlu1 %303 }
  0x8a   : > { %v300_v12 = vpop.permute.xlu0 %299 }
  0x8b   : > { %1551 = vrot.lane.b32.xlu1 %v2482_v10, %s2331_s12 }
  0x8c   : > { %1549 = vrot.lane.b32.xlu0 %v2411_v1, %s2331_s12 }
  0x8d   : > { %v413_v13 = vpop.permute.xlu1 %412 }
  0x8e   : > { %v476_v14 = vpop.permute.xlu0 %475 }
  0x8f   : > { %1612 = vrot.lane.b32.xlu1 %v2411_v1, %s2332_s13 }
  0x90   : > { %1610 = vrot.lane.b32.xlu0 %v2417_v5, %s2332_s13 }
  0x91   : > { %v417_v15 = vpop.permute.xlu1 %416 }
  0x92   : > { %v302_v16 = vpop.permute.xlu0 %301 }
  0x93   : > { %1673 = vrot.lane.b32.xlu1 %v2417_v5, %s2333_s14  ;;  %v307_v17 = vsel %vm305_vm2, %v302_v16, %v304_v11  ;;  %v306_v18 = vsel %vm305_vm2, %v300_v12, %v302_v16  ;;  %v2142_v12 = vld [vmem:[%s2723_s2 + $0x24] sm:$0xf]  ;;  %vm1237_vm2 = vcmask 64512  }
  0x94   : > { %1614 = vrot.lane.b32.xlu0 %v2482_v10, %s2332_s13  ;;  %2117 = vmatprep.subr.msk.bf16.mxu0 %vm312_vm0, %v307_v17  ;;  %v314_v19 = vsel %vm312_vm0, %v306_v18, 0  ;;  %v2145_v18 = vld [vmem:[%s2723_s2 + $0x28] sm:$0xf] }
  0x95   : > { %334 = vmatpush1.bf16.msra.mxu0 %v314_v19  ;;  %v478_v20 = vpop.permute.xlu1 %477 }
  0x96   : > { %v415_v21 = vpop.permute.xlu0 %414  ;;  %v482_v26 = vsel %vm481_vm4, %v476_v14, %v478_v20 }
  0x97   : > { %v419_v23 = vsel %vm418_vm3, %v413_v13, %v415_v21  ;;  %v420_v24 = vsel %vm418_vm3, %v415_v21, %v417_v15  ;;  %1677 = vrot.lane.b32.xlu1 %v2482_v10, %s2333_s14  ;;  %v488_v30 = vsel %vm312_vm0, %v482_v26, 0  ;;  %v2148_v26 = vld [vmem:[%s2723_s2 + $0x2c] sm:$0xf]  ;;  %vm1300_vm3 = vcmask 56320  }
  0x98   : > { %v425_v25 = vsel %vm312_vm0, %v419_v23, 0  ;;  %1675 = vrot.lane.b32.xlu0 %v2411_v1, %s2333_s14  ;;  %2122 = vmatprep.subr.msk.bf16.mxu0 %vm312_vm0, %v420_v24 }
  0x99   : > { %2118 = vmatmul.mubr.msk.bf16.vlgmr.msra.gmra.mxu0 %vm308_vm1, %v2116_v22  ;;  %v539_v27 = vpop.permute.xlu1 %538 }
  0x9a   : > { %445 = vmatpush1.bf16.msra.mxu0 %v425_v25  ;;  %v480_v28 = vpop.permute.xlu0 %479  ;;  %462 = vmatprep.mubr.bf16.mxu0 %v2312_v6 }
  0x9b   : > { %v483_v29 = vsel %vm481_vm4, %v478_v20, %v480_v28  ;;  %1738 = vrot.lane.b32.xlu1 %v2411_v1, %s2334_s24  ;;  %vm1363_vm4 = vcmask 48128  }
  0x9c   : > { %1736 = vrot.lane.b32.xlu0 %v2417_v5, %s2334_s24  ;;  %2125 = vmatprep.subr.msk.bf16.mxu1 %vm312_vm0, %v483_v29 }
  0x9d   : > { %508 = vmatpush1.bf16.msra.mxu1 %v488_v30  ;;  %v543_v31 = vpop.permute.xlu1 %542 }
  0x9e   : > { %v541_v32 = vpop.permute.xlu0 %540 }
  0x9f   : > { %v545_v35 = vsel %vm544_vm5, %v539_v27, %v541_v32  ;;  %v546_v36 = vsel %vm544_vm5, %v541_v32, %v543_v31  ;;  %1799 = vrot.lane.b32.xlu1 %v2417_v5, %s2335_s29  ;;  %v2151_v32 = vld [vmem:[%s2723_s2 + $0x30] sm:$0xf]  ;;  %vm1427_vm5 = vcmask 457728  }
  0xa0   : > { %v551_v37 = vsel %vm312_vm0, %v545_v35, 0  ;;  %1740 = vrot.lane.b32.xlu0 %v2482_v10, %s2334_s24  ;;  %2128 = vmatprep.subr.msk.bf16.mxu0 %vm312_vm0, %v546_v36  ;;  %s276_s24 = sadd.s32 %s2114_s23, %s2741_s22 }
  0xa1   : > { %2123 = vmatmul.mubr.msk.bf16.vlgmr.msra.gmra.mxu0 %vm308_vm1, %v2121_v33  ;;  %v604_v38 = vpop.permute.xlu1 %603  ;;  %2126 = vmatmul.mubr.msk.bf16.vlgmr.msra.gmra.mxu1 %vm308_vm1, %v2124_v34  ;;  %s2115_s25 = sshll.u32 %s276_s24, 3 }
  0xa2   : > { %571 = vmatpush1.bf16.msra.mxu0 %v551_v37  ;;  %v602_v39 = vpop.permute.xlu0 %601  ;;  %588 = vmatprep.mubr.bf16.mxu0 %v2312_v6  ;;  %s278_s16 = scalar_lea.vmem %s2725_s4, %s2115_s25 }
  0xa3   : > { %1803 = vrot.lane.b32.xlu1 %v2482_v10, %s2335_s29  ;;  %651 = vmatprep.mubr.bf16.mxu1 %v2312_v6  ;;  %v608_v40 = vsel %vm607_vm6, %v602_v39, %v604_v38 }
  0xa4   : > { %1801 = vrot.lane.b32.xlu0 %v2411_v1, %s2335_s29  ;;  %v614_v45 = vsel %vm312_vm0, %v608_v40, 0  ;;  %v2154_v40 = vld [vmem:[%s2723_s2 + $0x34] sm:$0xf] }
  0xa5   : > { %v665_v41 = vpop.permute.xlu1 %664 }
  0xa6   : > { %v606_v42 = vpop.permute.xlu0 %605 }
  0xa7   : > { %v609_v44 = vsel %vm607_vm6, %v604_v38, %v606_v42  ;;  %1864 = vrot.lane.b32.xlu1 %v2411_v1, %s2336_s6  ;;  %vm1490_vm6 = vcmask 449536  }
  0xa8   : > { %1862 = vrot.lane.b32.xlu0 %v2417_v5, %s2336_s6  ;;  %2131 = vmatprep.subr.msk.bf16.mxu1 %vm312_vm0, %v609_v44 }
  0xa9   : > { %634 = vmatpush1.bf16.msra.mxu1 %v614_v45  ;;  %v669_v46 = vpop.permute.xlu1 %668  ;;  %2129 = vmatmul.mubr.msk.bf16.vlgmr.msra.gmra.mxu0 %vm308_vm1, %v2127_v43 }
  0xaa   : > { %v667_v47 = vpop.permute.xlu0 %666  ;;  %714 = vmatprep.mubr.bf16.mxu0 %v2312_v6 }
  0xab   : > { %v671_v49 = vsel %vm670_vm7, %v665_v41, %v667_v47  ;;  %v672_v50 = vsel %vm670_vm7, %v667_v47, %v669_v46  ;;  %1925 = vrot.lane.b32.xlu1 %v2417_v5, %s2337_s9  ;;  %v2157_v46 = vld [vmem:[%s2723_s2 + $0x38] sm:$0xf]  ;;  %vm1553_vm7 = vcmask 441344  }
  0xac   : > { %v677_v51 = vsel %vm312_vm0, %v671_v49, 0  ;;  %1866 = vrot.lane.b32.xlu0 %v2482_v10, %s2336_s6  ;;  %2134 = vmatprep.subr.msk.bf16.mxu0 %vm312_vm0, %v672_v50  ;;  %v1986_v49 = vld [vmem:[%s2724_s3] sm:$0xff] }
  0xad   : > { %697 = vmatpush1.bf16.msra.mxu0 %v677_v51  ;;  %v730_v52 = vpop.permute.xlu1 %729  ;;  %2132 = vmatmul.mubr.msk.bf16.vlgmr.msra.gmra.mxu1 %vm308_vm1, %v2130_v48 }
  0xae   : > { %v728_v53 = vpop.permute.xlu0 %727  ;;  %777 = vmatprep.mubr.bf16.mxu1 %v2312_v6 }
  0xaf   : > { %1929 = vrot.lane.b32.xlu1 %v2482_v10, %s2337_s9  ;;  %v734_v55 = vsel %vm733_vm8, %v728_v53, %v730_v52 }
  0xb0   : > { %1927 = vrot.lane.b32.xlu0 %v2411_v1, %s2337_s9  ;;  %v740_v59 = vsel %vm312_vm0, %v734_v55, 0 }
  0xb1   : > { %v791_v56 = vpop.permute.xlu1 %790  ;;  %2135 = vmatmul.mubr.msk.bf16.vlgmr.msra.gmra.mxu0 %vm308_vm1, %v2133_v54 }
  0xb2   : > { %v732_v57 = vpop.permute.xlu0 %731  ;;  %840 = vmatprep.mubr.bf16.mxu0 %v2312_v6 }
  0xb3   : > { %v735_v58 = vsel %vm733_vm8, %v730_v52, %v732_v57  ;;  %vm1616_vm8 = vcmask 375808  }
  0xb4   : > { %2137 = vmatprep.subr.msk.bf16.mxu1 %vm312_vm0, %v735_v58  ;;  %1989 = vperm.xlu0 %2268, %v1986_v49  }
  0xb5   : > { %760 = vmatpush1.bf16.msra.mxu1 %v740_v59  ;;  %v795_v60 = vpop.permute.xlu1 %794  ;;  %v2160_v59 = vld [vmem:[%s2723_s2 + $0x3c] sm:$0xf] }
  0xb6   : > { %v793_v62 = vpop.permute.xlu0 %792 }
  0xb7   : > { %v797_v63 = vsel %vm796_vm9, %v791_v56, %v793_v62  ;;  %v798_v0 = vsel %vm796_vm9, %v793_v62, %v795_v60  ;;  %vm1679_vm9 = vcmask 367616  }
  0xb8   : > { %v803_v1 = vsel %vm312_vm0, %v797_v63, 0  ;;  %2140 = vmatprep.subr.msk.bf16.mxu0 %vm312_vm0, %v798_v0  ;;  %2138 = vmatmul.mubr.msk.bf16.vlgmr.msra.gmra.mxu1 %vm308_vm1, %v2136_v61 }
  0xb9   : > { %823 = vmatpush1.bf16.msra.mxu0 %v803_v1  ;;  %v856_v2 = vpop.permute.xlu1 %855  ;;  %903 = vmatprep.mubr.bf16.mxu1 %v2312_v6  ;;  %v2163_v1 = vld [vmem:[%s2723_s2 + $0x40] sm:$0xf] }
  0xba   : > { %v854_v4 = vpop.permute.xlu0 %853 }
  0xbb   : > { %v860_v5 = vsel %vm859_vm10, %v854_v4, %v856_v2 }
  0xbc   : > { %2141 = vmatmul.mubr.msk.bf16.vlgmr.msra.gmra.mxu0 %vm308_vm1, %v2139_v3  ;;  %v866_v10 = vsel %vm312_vm0, %v860_v5, 0 }
  0xbd   : > { %v917_v7 = vpop.permute.xlu1 %916  ;;  %966 = vmatprep.mubr.bf16.mxu0 %v2312_v6 }
  0xbe   : > { %v858_v8 = vpop.permute.xlu0 %857 }
  0xbf   : > { %v861_v9 = vsel %vm859_vm10, %v856_v2, %v858_v8  ;;  %vm1742_vm10 = vcmask 359424  }
  0xc0   : > { %2143 = vmatprep.subr.msk.bf16.mxu1 %vm312_vm0, %v861_v9 }
  0xc1   : > { %886 = vmatpush1.bf16.msra.mxu1 %v866_v10  ;;  %v921_v11 = vpop.permute.xlu1 %920  ;;  %v2166_v10 = vld [vmem:[%s2723_s2 + $0x44] sm:$0xf] }
  0xc2   : > { %v919_v13 = vpop.permute.xlu0 %918 }
  0xc3   : > { %v923_v14 = vsel %vm922_vm11, %v917_v7, %v919_v13  ;;  %v924_v15 = vsel %vm922_vm11, %v919_v13, %v921_v11  ;;  %vm1805_vm11 = vcmask 293888  }
  0xc4   : > { %v929_v16 = vsel %vm312_vm0, %v923_v14, 0  ;;  %2146 = vmatprep.subr.msk.bf16.mxu0 %vm312_vm0, %v924_v15  ;;  %2144 = vmatmul.mubr.msk.bf16.vlgmr.msra.gmra.mxu1 %vm308_vm1, %v2142_v12 }
  0xc5   : > { %949 = vmatpush1.bf16.msra.mxu0 %v929_v16  ;;  %v982_v17 = vpop.permute.xlu1 %981  ;;  %1029 = vmatprep.mubr.bf16.mxu1 %v2312_v6  ;;  %v2169_v16 = vld [vmem:[%s2723_s2 + $0x48] sm:$0xf] }
  0xc6   : > { %v980_v19 = vpop.permute.xlu0 %979 }
  0xc7   : > { %v986_v20 = vsel %vm985_vm12, %v980_v19, %v982_v17 }
  0xc8   : > { %2147 = vmatmul.mubr.msk.bf16.vlgmr.msra.gmra.mxu0 %vm308_vm1, %v2145_v18  ;;  %v992_v24 = vsel %vm312_vm0, %v986_v20, 0 }
  0xc9   : > { %v1043_v21 = vpop.permute.xlu1 %1042  ;;  %1092 = vmatprep.mubr.bf16.mxu0 %v2312_v6 }
  0xca   : > { %v984_v22 = vpop.permute.xlu0 %983 }
  0xcb   : > { %v987_v23 = vsel %vm985_vm12, %v982_v17, %v984_v22  ;;  %vm1868_vm12 = vcmask 285696  }
  0xcc   : > { %2149 = vmatprep.subr.msk.bf16.mxu1 %vm312_vm0, %v987_v23 }
  0xcd   : > { %1012 = vmatpush1.bf16.msra.mxu1 %v992_v24  ;;  %v1047_v25 = vpop.permute.xlu1 %1046  ;;  %v2172_v24 = vld [vmem:[%s2723_s2 + $0x4c] sm:$0xf] }
  0xce   : > { %v1045_v27 = vpop.permute.xlu0 %1044 }
  0xcf   : > { %v1049_v28 = vsel %vm1048_vm13, %v1043_v21, %v1045_v27  ;;  %v1050_v29 = vsel %vm1048_vm13, %v1045_v27, %v1047_v25  ;;  %vm1931_vm13 = vcmask 277504  }
  0xd0   : > { %v1055_v30 = vsel %vm312_vm0, %v1049_v28, 0  ;;  %2152 = vmatprep.subr.msk.bf16.mxu0 %vm312_vm0, %v1050_v29  ;;  %2150 = vmatmul.mubr.msk.bf16.vlgmr.msra.gmra.mxu1 %vm308_vm1, %v2148_v26 }
  0xd1   : > { %1075 = vmatpush1.bf16.msra.mxu0 %v1055_v30  ;;  %v1108_v31 = vpop.permute.xlu1 %1107  ;;  %1155 = vmatprep.mubr.bf16.mxu1 %v2312_v6  ;;  %v2175_v30 = vld [vmem:[%s2723_s2 + $0x50] sm:$0xf] }
  0xd2   : > { %v1106_v33 = vpop.permute.xlu0 %1105 }
  0xd3   : > { %v1112_v34 = vsel %vm1111_vm14, %v1106_v33, %v1108_v31 }
  0xd4   : > { %2153 = vmatmul.mubr.msk.bf16.vlgmr.msra.gmra.mxu0 %vm308_vm1, %v2151_v32  ;;  %v1118_v38 = vsel %vm312_vm0, %v1112_v34, 0 }
  0xd5   : > { %v1169_v35 = vpop.permute.xlu1 %1168  ;;  %1218 = vmatprep.mubr.bf16.mxu0 %v2312_v6 }
  0xd6   : > { %v1110_v36 = vpop.permute.xlu0 %1109 }
  0xd7   : > { %v1113_v37 = vsel %vm1111_vm14, %v1108_v31, %v1110_v36 }
  0xd8   : > { %2155 = vmatprep.subr.msk.bf16.mxu1 %vm312_vm0, %v1113_v37 }
  0xd9   : > { %1138 = vmatpush1.bf16.msra.mxu1 %v1118_v38  ;;  %v1173_v39 = vpop.permute.xlu1 %1172  ;;  %v2178_v38 = vld [vmem:[%s2723_s2 + $0x54] sm:$0xf] }
  0xda   : > { %v1171_v41 = vpop.permute.xlu0 %1170 }
  0xdb   : > { %v1175_v42 = vsel %vm1174_vm15, %v1169_v35, %v1171_v41  ;;  %v1176_v43 = vsel %vm1174_vm15, %v1171_v41, %v1173_v39 }
  0xdc   : > { %v1181_v44 = vsel %vm312_vm0, %v1175_v42, 0  ;;  %2156 = vmatmul.mubr.msk.bf16.vlgmr.msra.gmra.mxu1 %vm308_vm1, %v2154_v40  ;;  %2158 = vmatprep.subr.msk.bf16.mxu0 %vm312_vm0, %v1176_v43 }
  0xdd   : > { %1201 = vmatpush1.bf16.msra.mxu0 %v1181_v44  ;;  %v1234_v45 = vpop.permute.xlu1 %1233  ;;  %1281 = vmatprep.mubr.bf16.mxu1 %v2312_v6  ;;  %v2181_v44 = vld [vmem:[%s2723_s2 + $0x58] sm:$0xf] }
  0xde   : > { %v1232_v47 = vpop.permute.xlu0 %1231  ;;  %v2607_v48 = vpop.f32.mrf.mxu1 }
  0xdf   : > { %v1238_v51 = vsel %vm1237_vm2, %v1232_v47, %v1234_v45 }
  0xe0   : > { %2159 = vmatmul.mubr.msk.bf16.vlgmr.msra.gmra.mxu0 %vm308_vm1, %v2157_v46  ;;  %v2613_v50 = vpop.f32.mrf.mxu1  ;;  %v1244_v56 = vsel %vm312_vm0, %v1238_v51, 0 }
  0xe1   : > { %v1295_v52 = vpop.permute.xlu1 %1294  ;;  %1344 = vmatprep.mubr.bf16.mxu0 %v2312_v6 }
  0xe2   : > { %v1236_v53 = vpop.permute.xlu0 %1235  ;;  %v407_v54 = vpop.f32.mrf.mxu1 }
  0xe3   : > { %v1239_v55 = vsel %vm1237_vm2, %v1234_v45, %v1236_v53  ;;  %v2184_v54 = vld [vmem:[%s2723_s2 + $0x5c] sm:$0xf] }
  0xe4   : > { %2161 = vmatprep.subr.msk.bf16.mxu1 %vm312_vm0, %v1239_v55  ;;  %v408_v57 = vpop.f32.mrf.mxu1 }
  0xe5   : > { %1264 = vmatpush1.bf16.msra.mxu1 %v1244_v56  ;;  %v1299_v58 = vpop.permute.xlu1 %1298 }
  0xe6   : > { %v1297_v60 = vpop.permute.xlu0 %1296 }
  0xe7   : > { %v1301_v61 = vsel %vm1300_vm3, %v1295_v52, %v1297_v60  ;;  %v1302_v62 = vsel %vm1300_vm3, %v1297_v60, %v1299_v58  ;;  %v2187_v60 = vld [vmem:[%s2723_s2 + $0x60] sm:$0xf] }
  0xe8   : > { %v1307_v63 = vsel %vm312_vm0, %v1301_v61, 0  ;;  %2162 = vmatmul.mubr.msk.bf16.vlgmr.msra.gmra.mxu1 %vm308_vm1, %v2160_v59  ;;  %2164 = vmatprep.subr.msk.bf16.mxu0 %vm312_vm0, %v1302_v62 }
  0xe9   : > { %1327 = vmatpush1.bf16.msra.mxu0 %v1307_v63  ;;  %v1360_v0 = vpop.permute.xlu1 %1359  ;;  %1407 = vmatprep.mubr.bf16.mxu1 %v2312_v6 }
  0xea   : > { %v1358_v2 = vpop.permute.xlu0 %1357 }
  0xeb   : > { %v1364_v3 = vsel %vm1363_vm4, %v1358_v2, %v1360_v0 }
  0xec   : > { %2165 = vmatmul.mubr.msk.bf16.vlgmr.msra.gmra.mxu0 %vm308_vm1, %v2163_v1  ;;  %v1370_v8 = vsel %vm312_vm0, %v1364_v3, 0 }
  0xed   : > { %v1422_v4 = vpop.permute.xlu1 %1421  ;;  %1471 = vmatprep.mubr.bf16.mxu0 %v2312_v6 }
  0xee   : > { %v1362_v5 = vpop.permute.xlu0 %1361 }
  0xef   : > { %v1365_v7 = vsel %vm1363_vm4, %v1360_v0, %v1362_v5 }
  0xf0   : > { %2167 = vmatprep.subr.msk.bf16.mxu1 %vm312_vm0, %v1365_v7 }
  0xf1   : > { %1390 = vmatpush1.bf16.msra.mxu1 %v1370_v8  ;;  %v1426_v9 = vpop.permute.xlu1 %1425 }
  0xf2   : > { %v1424_v11 = vpop.permute.xlu0 %1423 }
  0xf3   : > { %v1428_v12 = vsel %vm1427_vm5, %v1422_v4, %v1424_v11  ;;  %v1429_v13 = vsel %vm1427_vm5, %v1424_v11, %v1426_v9  ;;  %v2190_v4 = vld [vmem:[%s2723_s2 + $0x64] sm:$0xf] }
  0xf4   : > { %v1434_v14 = vsel %vm312_vm0, %v1428_v12, 0  ;;  %2168 = vmatmul.mubr.msk.bf16.vlgmr.msra.gmra.mxu1 %vm308_vm1, %v2166_v10  ;;  %2170 = vmatprep.subr.msk.bf16.mxu0 %vm312_vm0, %v1429_v13 }
  0xf5   : > { %1454 = vmatpush1.bf16.msra.mxu0 %v1434_v14  ;;  %v1487_v15 = vpop.permute.xlu1 %1486  ;;  %1534 = vmatprep.mubr.bf16.mxu1 %v2312_v6 }
  0xf6   : > { %v1485_v17 = vpop.permute.xlu0 %1484 }
  0xf7   : > { %v1491_v18 = vsel %vm1490_vm6, %v1485_v17, %v1487_v15 }
  0xf8   : > { %2171 = vmatmul.mubr.msk.bf16.vlgmr.msra.gmra.mxu0 %vm308_vm1, %v2169_v16  ;;  %v1497_v22 = vsel %vm312_vm0, %v1491_v18, 0 }
  0xf9   : > { %v1548_v19 = vpop.permute.xlu1 %1547  ;;  %1597 = vmatprep.mubr.bf16.mxu0 %v2312_v6 }
  0xfa   : > { %v1489_v20 = vpop.permute.xlu0 %1488 }
  0xfb   : > { %v1492_v21 = vsel %vm1490_vm6, %v1487_v15, %v1489_v20 }
  0xfc   : > { %2173 = vmatprep.subr.msk.bf16.mxu1 %vm312_vm0, %v1492_v21 }
  0xfd   : > { %1517 = vmatpush1.bf16.msra.mxu1 %v1497_v22  ;;  %v1552_v23 = vpop.permute.xlu1 %1551 }
  0xfe   : > { %v1550_v25 = vpop.permute.xlu0 %1549 }
  0xff   : > { %v1554_v26 = vsel %vm1553_vm7, %v1548_v19, %v1550_v25  ;;  %v1555_v27 = vsel %vm1553_vm7, %v1550_v25, %v1552_v23 }
 0x100   : > { %v1560_v28 = vsel %vm312_vm0, %v1554_v26, 0  ;;  %2174 = vmatmul.mubr.msk.bf16.vlgmr.msra.gmra.mxu1 %vm308_vm1, %v2172_v24  ;;  %2176 = vmatprep.subr.msk.bf16.mxu0 %vm312_vm0, %v1555_v27 }
 0x101   : > { %1580 = vmatpush1.bf16.msra.mxu0 %v1560_v28  ;;  %v1613_v29 = vpop.permute.xlu1 %1612  ;;  %1660 = vmatprep.mubr.bf16.mxu1 %v2312_v6 }
 0x102   : > { %v1611_v31 = vpop.permute.xlu0 %1610 }
 0x103   : > { %v1617_v32 = vsel %vm1616_vm8, %v1611_v31, %v1613_v29 }
 0x104   : > { %2177 = vmatmul.mubr.msk.bf16.vlgmr.msra.gmra.mxu0 %vm308_vm1, %v2175_v30  ;;  %v1623_v36 = vsel %vm312_vm0, %v1617_v32, 0 }
 0x105   : > { %v1674_v33 = vpop.permute.xlu1 %1673  ;;  %1723 = vmatprep.mubr.bf16.mxu0 %v2312_v6 }
 0x106   : > { %v1615_v34 = vpop.permute.xlu0 %1614 }
 0x107   : > { %v1618_v35 = vsel %vm1616_vm8, %v1613_v29, %v1615_v34 }
 0x108   : > { %2179 = vmatprep.subr.msk.bf16.mxu1 %vm312_vm0, %v1618_v35 }
 0x109   : > { %1643 = vmatpush1.bf16.msra.mxu1 %v1623_v36  ;;  %v1678_v37 = vpop.permute.xlu1 %1677 }
 0x10a   : > { %v1676_v39 = vpop.permute.xlu0 %1675 }
 0x10b   : > { %v1680_v40 = vsel %vm1679_vm9, %v1674_v33, %v1676_v39  ;;  %v1681_v41 = vsel %vm1679_vm9, %v1676_v39, %v1678_v37 }
 0x10c   : > { %v1686_v42 = vsel %vm312_vm0, %v1680_v40, 0  ;;  %2180 = vmatmul.mubr.msk.bf16.vlgmr.msra.gmra.mxu1 %vm308_vm1, %v2178_v38  ;;  %2182 = vmatprep.subr.msk.bf16.mxu0 %vm312_vm0, %v1681_v41 }
 0x10d   : > { %1706 = vmatpush1.bf16.msra.mxu0 %v1686_v42  ;;  %v1739_v43 = vpop.permute.xlu1 %1738  ;;  %1786 = vmatprep.mubr.bf16.mxu1 %v2312_v6 }
 0x10e   : > { %v1737_v45 = vpop.permute.xlu0 %1736 }
 0x10f   : > { %v1743_v46 = vsel %vm1742_vm10, %v1737_v45, %v1739_v43 }
 0x110   : > { %2183 = vmatmul.mubr.msk.bf16.vlgmr.msra.gmra.mxu0 %vm308_vm1, %v2181_v44  ;;  %v1749_v52 = vsel %vm312_vm0, %v1743_v46, 0 }
 0x111   : > { %v1800_v47 = vpop.permute.xlu1 %1799  ;;  %1849 = vmatprep.mubr.bf16.mxu0 %v2312_v6 }
 0x112   : > { %v1741_v49 = vpop.permute.xlu0 %1740 }
 0x113   : > { %v1744_v51 = vsel %vm1742_vm10, %v1739_v43, %v1741_v49 }
 0x114   : > { %2185 = vmatprep.subr.msk.bf16.mxu1 %vm312_vm0, %v1744_v51 }
 0x115   : > { %1769 = vmatpush1.bf16.msra.mxu1 %v1749_v52  ;;  %v1804_v53 = vpop.permute.xlu1 %1803 }
 0x116   : > { %v1802_v55 = vpop.permute.xlu0 %1801 }
 0x117   : > { %v1806_v56 = vsel %vm1805_vm11, %v1800_v47, %v1802_v55  ;;  %v1807_v57 = vsel %vm1805_vm11, %v1802_v55, %v1804_v53 }
 0x118   : > { %v1812_v58 = vsel %vm312_vm0, %v1806_v56, 0  ;;  %2186 = vmatmul.mubr.msk.bf16.vlgmr.msra.gmra.mxu1 %vm308_vm1, %v2184_v54  ;;  %2188 = vmatprep.subr.msk.bf16.mxu0 %vm312_vm0, %v1807_v57 }
 0x119   : > { %1832 = vmatpush1.bf16.msra.mxu0 %v1812_v58  ;;  %v1865_v59 = vpop.permute.xlu1 %1864  ;;  %1912 = vmatprep.mubr.bf16.mxu1 %v2312_v6 }
 0x11a   : > { %v1863_v61 = vpop.permute.xlu0 %1862 }
 0x11b   : > { %v1869_v62 = vsel %vm1868_vm12, %v1863_v61, %v1865_v59 }
 0x11c   : > { %2189 = vmatmul.mubr.msk.bf16.vlgmr.msra.gmra.mxu0 %vm308_vm1, %v2187_v60  ;;  %v1875_v2 = vsel %vm312_vm0, %v1869_v62, 0 }
 0x11d   : > { %v1926_v63 = vpop.permute.xlu1 %1925  ;;  %1975 = vmatprep.mubr.bf16.mxu0 %v2312_v6  ;;  %v2193_v6 = vld [vmem:[%s2723_s2 + $0x68] sm:$0xf] }
 0x11e   : > { %v1867_v0 = vpop.permute.xlu0 %1866 }
 0x11f   : > { %v1870_v1 = vsel %vm1868_vm12, %v1865_v59, %v1867_v0 }
 0x120   : > { %2191 = vmatprep.subr.msk.bf16.mxu1 %vm312_vm0, %v1870_v1 }
 0x121   : > { %1895 = vmatpush1.bf16.msra.mxu1 %v1875_v2  ;;  %v1930_v3 = vpop.permute.xlu1 %1929 }
 0x122   : > { %v1928_v5 = vpop.permute.xlu0 %1927 }
 0x123   : > { %v1932_v7 = vsel %vm1931_vm13, %v1926_v63, %v1928_v5  ;;  %v1933_v8 = vsel %vm1931_vm13, %v1928_v5, %v1930_v3 }
 0x124   : > { %v1938_v9 = vsel %vm312_vm0, %v1932_v7, 0  ;;  %2192 = vmatmul.mubr.msk.bf16.vlgmr.msra.gmra.mxu1 %vm308_vm1, %v2190_v4  ;;  %2194 = vmatprep.subr.msk.bf16.mxu0 %vm312_vm0, %v1933_v8 }
 0x125   : > { %1958 = vmatpush1.bf16.msra.mxu0 %v1938_v9 }
 0x128   : > { %2195 = vmatmul.mubr.msk.bf16.vlgmr.msra.gmra.mxu0 %vm308_vm1, %v2193_v6 }
 0x159   : > { %v353_v10 = vpop.f32.mrf.mxu0 }
 0x15a   : > { %v404_v13 = vadd.f32 %v2607_v48, %v353_v10 }
 0x15b   : > { %v355_v11 = vpop.f32.mrf.mxu0 }
 0x15c   : > { %v406_v15 = vadd.f32 %v2613_v50, %v355_v11 }
 0x15d   : > { %v357_v12 = vpop.f32.mrf.mxu0 }
 0x15f   : > { %v358_v14 = vpop.f32.mrf.mxu0 }
 0x161   : > { %v464_v16 = vpop.f32.mrf.mxu0  ;;  %v527_v17 = vpop.f32.mrf.mxu1 }
 0x162   : > { %v471_v18 = vadd.f32 %v464_v16, %v404_v13 }
 0x163   : > { %v466_v19 = vpop.f32.mrf.mxu0  ;;  %v529_v20 = vpop.f32.mrf.mxu1 }
 0x164   : > { %v472_v21 = vadd.f32 %v466_v19, %v406_v15  ;;  %v534_v22 = vadd.f32 %v527_v17, %v471_v18 }
 0x165   : > { %v468_v23 = vpop.f32.mrf.mxu0  ;;  %v531_v24 = vpop.f32.mrf.mxu1 }
 0x166   : > { %v535_v25 = vadd.f32 %v529_v20, %v472_v21 }
 0x167   : > { %v469_v26 = vpop.f32.mrf.mxu0  ;;  %v532_v27 = vpop.f32.mrf.mxu1 }
 0x169   : > { %v590_v28 = vpop.f32.mrf.mxu0 }
 0x16a   : > { %v597_v29 = vadd.f32 %v590_v28, %v534_v22 }
 0x16b   : > { %v592_v30 = vpop.f32.mrf.mxu0 }
 0x16c   : > { %v598_v31 = vadd.f32 %v592_v30, %v535_v25 }
 0x16d   : > { %v594_v48 = vpop.f32.mrf.mxu0  ;;  %v653_v32 = vpop.f32.mrf.mxu1 }
 0x16e   : > { %v660_v33 = vadd.f32 %v653_v32, %v597_v29 }
 0x16f   : > { %v595_v50 = vpop.f32.mrf.mxu0  ;;  %v655_v34 = vpop.f32.mrf.mxu1 }
 0x170   : > { %v661_v35 = vadd.f32 %v655_v34, %v598_v31 }
 0x171   : > { %v657_v36 = vpop.f32.mrf.mxu1  ;;  %v716_v37 = vpop.f32.mrf.mxu0 }
 0x172   : > { %v723_v38 = vadd.f32 %v716_v37, %v660_v33 }
 0x173   : > { %v658_v39 = vpop.f32.mrf.mxu1  ;;  %v718_v40 = vpop.f32.mrf.mxu0 }
 0x174   : > { %v724_v41 = vadd.f32 %v718_v40, %v661_v35 }
 0x175   : > { %v720_v42 = vpop.f32.mrf.mxu0 }
 0x177   : > { %v721_v43 = vpop.f32.mrf.mxu0 }
 0x178   : > { %v779_v44 = vpop.f32.mrf.mxu1 }
 0x179   : > { %v786_v45 = vadd.f32 %v779_v44, %v723_v38 }
 0x17a   : > { %v781_v46 = vpop.f32.mrf.mxu1 }
 0x17b   : > { %v787_v47 = vadd.f32 %v781_v46, %v724_v41 }
 0x17c   : > { %v783_v49 = vpop.f32.mrf.mxu1  ;;  %v842_v51 = vpop.f32.mrf.mxu0 }
 0x17d   : > { %v849_v52 = vadd.f32 %v842_v51, %v786_v45 }
 0x17e   : > { %v784_v53 = vpop.f32.mrf.mxu1  ;;  %v844_v54 = vpop.f32.mrf.mxu0 }
 0x17f   : > { %v850_v55 = vadd.f32 %v844_v54, %v787_v47 }
 0x180   : > { %v846_v56 = vpop.f32.mrf.mxu0 }
 0x182   : > { %v847_v57 = vpop.f32.mrf.mxu0 }
 0x184   : > { %v905_v58 = vpop.f32.mrf.mxu1 }
 0x185   : > { %v912_v59 = vadd.f32 %v905_v58, %v849_v52 }
 0x186   : > { %v907_v60 = vpop.f32.mrf.mxu1 }
 0x187   : > { %v913_v61 = vadd.f32 %v907_v60, %v850_v55 }
 0x188   : > { %v909_v62 = vpop.f32.mrf.mxu1  ;;  %v968_v63 = vpop.f32.mrf.mxu0 }
 0x189   : > { %v975_v0 = vadd.f32 %v968_v63, %v912_v59 }
 0x18a   : > { %v910_v1 = vpop.f32.mrf.mxu1  ;;  %v970_v2 = vpop.f32.mrf.mxu0 }
 0x18b   : > { %v976_v3 = vadd.f32 %v970_v2, %v913_v61 }
 0x18c   : > { %v972_v4 = vpop.f32.mrf.mxu0 }
 0x18e   : > { %v973_v5 = vpop.f32.mrf.mxu0 }
 0x190   : > { %v1031_v7 = vpop.f32.mrf.mxu1 }
 0x191   : > { %v1038_v43 = vadd.f32 %v1031_v7, %v975_v0 }
 0x192   : > { %v1033_v8 = vpop.f32.mrf.mxu1 }
 0x193   : > { %v1039_v45 = vadd.f32 %v1033_v8, %v976_v3 }
 0x194   : > { %v1035_v9 = vpop.f32.mrf.mxu1  ;;  %v1094_v6 = vpop.f32.mrf.mxu0 }
 0x195   : > { %v1101_v47 = vadd.f32 %v1094_v6, %v1038_v43 }
 0x196   : > { %v1036_v10 = vpop.f32.mrf.mxu1  ;;  %v1096_v11 = vpop.f32.mrf.mxu0 }
 0x197   : > { %v1102_v51 = vadd.f32 %v1096_v11, %v1039_v45 }
 0x198   : > { %v1098_v12 = vpop.f32.mrf.mxu0 }
 0x19a   : > { %v1099_v13 = vpop.f32.mrf.mxu0 }
 0x19c   : > { %v1157_v14 = vpop.f32.mrf.mxu1 }
 0x19d   : > { %v1164_v52 = vadd.f32 %v1157_v14, %v1101_v47 }
 0x19e   : > { %v1159_v15 = vpop.f32.mrf.mxu1 }
 0x19f   : > { %v1165_v55 = vadd.f32 %v1159_v15, %v1102_v51 }
 0x1a0   : > { %v1220_v16 = vpop.f32.mrf.mxu0  ;;  %v1161_v17 = vpop.f32.mrf.mxu1 }
 0x1a1   : > { %v1227_v56 = vadd.f32 %v1220_v16, %v1164_v52 }
 0x1a2   : > { %v1222_v18 = vpop.f32.mrf.mxu0  ;;  %v1162_v19 = vpop.f32.mrf.mxu1 }
 0x1a3   : > { %v1228_v59 = vadd.f32 %v1222_v18, %v1165_v55 }
 0x1a4   : > { %v1224_v20 = vpop.f32.mrf.mxu0 }
 0x1a6   : > { %v1225_v21 = vpop.f32.mrf.mxu0 }
 0x1a8   : > { %v1283_v22 = vpop.f32.mrf.mxu1 }
 0x1a9   : > { %v1290_v60 = vadd.f32 %v1283_v22, %v1227_v56 }
 0x1aa   : > { %v1285_v23 = vpop.f32.mrf.mxu1 }
 0x1ab   : > { %v1291_v62 = vadd.f32 %v1285_v23, %v1228_v59 }
 0x1ac   : > { %v1346_v24 = vpop.f32.mrf.mxu0  ;;  %v1287_v25 = vpop.f32.mrf.mxu1 }
 0x1ad   : > { %v1353_v63 = vadd.f32 %v1346_v24, %v1290_v60 }
 0x1ae   : > { %v1348_v26 = vpop.f32.mrf.mxu0  ;;  %v1288_v27 = vpop.f32.mrf.mxu1 }
 0x1af   : > { %v1354_v1 = vadd.f32 %v1348_v26, %v1291_v62 }
 0x1b0   : > { %v1350_v28 = vpop.f32.mrf.mxu0 }
 0x1b2   : > { %v1351_v29 = vpop.f32.mrf.mxu0 }
 0x1b3   : > { %v1990_v29 = vpop.permute.xlu0 %1989 }
 0x1b4   : > { %v1409_v30 = vpop.f32.mrf.mxu1 }
 0x1b5   : > { %v1416_v2 = vadd.f32 %v1409_v30, %v1353_v63 }
 0x1b6   : > { %v1411_v31 = vpop.f32.mrf.mxu1 }
 0x1b7   : > { %v1417_v4 = vadd.f32 %v1411_v31, %v1354_v1 }
 0x1b8   : > { %v1473_v48 = vpop.f32.mrf.mxu0  ;;  %v1413_v32 = vpop.f32.mrf.mxu1 }
 0x1b9   : > { %v1480_v5 = vadd.f32 %v1473_v48, %v1416_v2 }
 0x1ba   : > { %v1475_v33 = vpop.f32.mrf.mxu0  ;;  %v1414_v50 = vpop.f32.mrf.mxu1 }
 0x1bb   : > { %v1481_v8 = vadd.f32 %v1475_v33, %v1417_v4 }
 0x1bc   : > { %v1477_v34 = vpop.f32.mrf.mxu0 }
 0x1be   : > { %v1478_v35 = vpop.f32.mrf.mxu0 }
 0x1c0   : > { %v1536_v36 = vpop.f32.mrf.mxu1 }
 0x1c1   : > { %v1543_v9 = vadd.f32 %v1536_v36, %v1480_v5 }
 0x1c2   : > { %v1538_v37 = vpop.f32.mrf.mxu1 }
 0x1c3   : > { %v1544_v11 = vadd.f32 %v1538_v37, %v1481_v8 }
 0x1c4   : > { %v1599_v38 = vpop.f32.mrf.mxu0  ;;  %v1540_v39 = vpop.f32.mrf.mxu1 }
 0x1c5   : > { %v1606_v12 = vadd.f32 %v1599_v38, %v1543_v9 }
 0x1c6   : > { %v1601_v40 = vpop.f32.mrf.mxu0  ;;  %v1541_v41 = vpop.f32.mrf.mxu1 }
 0x1c7   : > { %v1607_v15 = vadd.f32 %v1601_v40, %v1544_v11 }
 0x1c8   : > { %v1603_v42 = vpop.f32.mrf.mxu0 }
 0x1ca   : > { %v1604_v44 = vpop.f32.mrf.mxu0 }
 0x1cc   : > { %v1662_v46 = vpop.f32.mrf.mxu1 }
 0x1cd   : > { %v1669_v16 = vadd.f32 %v1662_v46, %v1606_v12 }
 0x1ce   : > { %v1664_v49 = vpop.f32.mrf.mxu1 }
 0x1cf   : > { %v1670_v18 = vadd.f32 %v1664_v49, %v1607_v15 }
 0x1d0   : > { %v1725_v53 = vpop.f32.mrf.mxu0  ;;  %v1666_v54 = vpop.f32.mrf.mxu1 }
 0x1d1   : > { %v1732_v19 = vadd.f32 %v1725_v53, %v1669_v16 }
 0x1d2   : > { %v1727_v57 = vpop.f32.mrf.mxu0  ;;  %v1667_v58 = vpop.f32.mrf.mxu1 }
 0x1d3   : > { %v1733_v21 = vadd.f32 %v1727_v57, %v1670_v18 }
 0x1d4   : > { %v1729_v61 = vpop.f32.mrf.mxu0 }
 0x1d6   : > { %v1730_v0 = vpop.f32.mrf.mxu0 }
 0x1d8   : > { %v1788_v3 = vpop.f32.mrf.mxu1 }
 0x1d9   : > { %v1795_v22 = vadd.f32 %v1788_v3, %v1732_v19 }
 0x1da   : > { %v1790_v7 = vpop.f32.mrf.mxu1 }
 0x1db   : > { %v1796_v24 = vadd.f32 %v1790_v7, %v1733_v21 }
 0x1dc   : > { %v1851_v6 = vpop.f32.mrf.mxu0  ;;  %v1792_v10 = vpop.f32.mrf.mxu1 }
 0x1dd   : > { %v1858_v25 = vadd.f32 %v1851_v6, %v1795_v22 }
 0x1de   : > { %v1853_v13 = vpop.f32.mrf.mxu0  ;;  %v1793_v14 = vpop.f32.mrf.mxu1 }
 0x1df   : > { %v1859_v27 = vadd.f32 %v1853_v13, %v1796_v24 }
 0x1e0   : > { %v1855_v17 = vpop.f32.mrf.mxu0 }
 0x1e2   : > { %v1856_v20 = vpop.f32.mrf.mxu0 }
 0x1e4   : > { %v1914_v23 = vpop.f32.mrf.mxu1 }
 0x1e5   : > { %v1921_v28 = vadd.f32 %v1914_v23, %v1858_v25 }
 0x1e6   : > { %v1916_v26 = vpop.f32.mrf.mxu1 }
 0x1e7   : > { %v1922_v48 = vadd.f32 %v1916_v26, %v1859_v27 }
 0x1e8   : > { %v1977_v30 = vpop.f32.mrf.mxu0  ;;  %v1918_v31 = vpop.f32.mrf.mxu1 }
 0x1e9   : > { %v1984_v32 = vadd.f32 %v1977_v30, %v1921_v28 }
 0x1ea   : > { %v1979_v33 = vpop.f32.mrf.mxu0  ;;  %v1919_v50 = vpop.f32.mrf.mxu1 }
 0x1eb   : > { %v1985_v34 = vadd.f32 %v1979_v33, %v1922_v48  ;;  %v1992_v35 = vadd.f32 %v1990_v29, %v1984_v32 }
 0x1ec   : > { %v1981_v36 = vpop.f32.mrf.mxu0 }
 0x1ed   : > { %v1993_v37 = vadd.f32 %v1990_v29, %v1985_v34  ;;  %1994 = vst [vmem:[%s278_s16] sm:$0xff] %v1992_v35 }
 0x1ee   : > { %v1982_v38 = vpop.f32.mrf.mxu0 }
 0x1ef   : > { %1995 = vst [vmem:[%s278_s16 + $0x8] sm:$0xff] %v1993_v37 }
 0x1f0 PF: > { %s14_s19 = sadd.s32 1, %s2309_s19   ;;  %s2726_s15 = smov %s2301_s17 }
 0x1f1   : > { %p11_p9 = scmp.ge.s32.totalorder %s14_s19, 26   ;;  %s2727_s16 = smov %s2305_s18 }
 0x1f2   : > { %s2728_s17 = smov %s2731_s20  ;;  %s2729_s18 = smov %s2735_s21 }
 0x1f3   :  { %13 = sbr.rel (!%p11_p9) target bundleno = 3 (0x3), region = 95 }

// kernel: crnet_forward.8
= control target key start
LH: loop header
LB: loop body
LE: loop exit
PB: predicated region body
PF: predicated region fallthrough
CT: control target
= control target key end

     0   :  { %s473_s12 = smov 0   ;;  %s475_s13 = smov 0   ;;  %s512_s0 = inlined_call_operand.vmem [shape: f32[6,8,512], index: 0, kind: input, shape index: {}]   ;;  %s513_s1 = inlined_call_operand.vmem [shape: f32[6,8,1], index: 1, kind: input, shape index: {}]   ;;  %s514_s2 = inlined_call_operand.vmem [shape: f32[6,8,1], index: 2, kind: input, shape index: {}]   ;;  %s515_s3 = inlined_call_operand.vmem [shape: f32[6,8,512], index: 3, kind: output, shape index: {}]  }
   0x1   :  { %s477_s14 = smov 0  }
   0x2 LB: > { %s25_s15 = sadd.s32 1, %s446_s13  ;;  %p391_p0 = scmp.ge.s32.totalorder %s450_s14, 1  ;;  %s450_s14 = sphi %s477_s14, %s13_s14   ;;  %s446_s13 = sphi %s475_s13, %s517_s13   ;;  %s442_s12 = sphi %s473_s12, %s516_s12  }
   0x3   : > { %p27_p1 = scmp.ge.s32.totalorder %s25_s15, 6  ;;  %p176_p2 = scmp.lt.s32.totalorder %s450_s14, 7 }
   0x5   : > { %s519_s15 = smov (%p27_p1, %s25_s15), 0  ;;  %p177_p3 = pnand %p391_p0, %p176_p2 }
   0x6   : > { %p217_p4 = scmp.lt.s32.totalorder (!%p177_p3), %s442_s12, 5 }
   0x7   : > { %180 = sbr.rel (%p177_p3) target bundleno = 150 (0x96), region = 32 }
   0xc   : > { %v452_v0 = vmov 0   ;;  %s521_s12 = smov (!%p217_p4, %s442_s12), 5 }
   0xd   : > { %427 = vset.pattern.permute.xlu0 %v452_v0  ;;  %s394_s16 = sshll.u32 %s521_s12, 3  ;;  %s400_s23 = sshll.u32 %s521_s12, 5 }
   0xe   : > { %s229_s19 = scalar_lea.vmem %s513_s1, %s394_s16  ;;  %s233_s22 = scalar_lea.vmem %s514_s2, %s394_s16 }
   0xf   : > { %v248_v1 = vld [vmem:[%s229_s19] sm:$0xff]  ;;  %s224_s26 = scalar_lea.vmem %s512_s0, %s400_s23  ;;  %s242_s29 = scalar_lea.vmem %s515_s3, %s400_s23 }
  0x10   : > { %251 = vperm.xlu0 %427, %v248_v1   ;;  %v258_v2 = vld [vmem:[%s233_s22] sm:$0xff]  ;;  %v245_v5 = vld [vmem:[%s224_s26 + $0x8] sm:$0xff]  ;;  %v246_v6 = vld [vmem:[%s224_s26 + $0x10] sm:$0xff] }
  0x11   : > { %v244_v3 = vld [vmem:[%s224_s26] sm:$0xff]  ;;  %v247_v7 = vld [vmem:[%s224_s26 + $0x18] sm:$0xff] }
  0x14   : > { %261 = vperm.xlu0 %427, %v258_v2  }
  0x8b   : > { %v252_v4 = vpop.permute.xlu0 %251 }
  0x8c   : > { %v254_v8 = vmul.f32 %v252_v4, %v244_v3  ;;  %v255_v9 = vmul.f32 %v252_v4, %v245_v5  ;;  %v256_v10 = vmul.f32 %v252_v4, %v246_v6  ;;  %v257_v11 = vmul.f32 %v252_v4, %v247_v7 }
  0x8f   : > { %v262_v12 = vpop.permute.xlu0 %261 }
  0x90   : > { %v264_v13 = vadd.f32 %v262_v12, %v254_v8  ;;  %v265_v14 = vadd.f32 %v262_v12, %v255_v9  ;;  %v266_v15 = vadd.f32 %v262_v12, %v256_v10  ;;  %v267_v16 = vadd.f32 %v262_v12, %v257_v11 }
  0x92   : > { %v268_v17 = vmax.f32 %v264_v13, 0.0  ;;  %v269_v18 = vmax.f32 %v265_v14, 0.0  ;;  %v270_v19 = vmax.f32 %v266_v15, 0.0  ;;  %v271_v20 = vmax.f32 %v267_v16, 0.0 }
  0x94   : > { %272 = vst [vmem:[%s242_s29] sm:$0xff] %v268_v17  ;;  %273 = vst [vmem:[%s242_s29 + $0x8] sm:$0xff] %v269_v18 }
  0x95   : > { %274 = vst [vmem:[%s242_s29 + $0x10] sm:$0xff] %v270_v19  ;;  %275 = vst [vmem:[%s242_s29 + $0x18] sm:$0xff] %v271_v20 }
  0x96 PF: > { %s13_s14 = sadd.s32 1, %s450_s14   ;;  %s516_s12 = smov %s446_s13 }
  0x97   : > { %p10_p5 = scmp.ge.s32.totalorder %s13_s14, 8   ;;  %s517_s13 = smov %s519_s15 }
  0x99   :  { %12 = sbr.rel (!%p10_p5) target bundleno = 2 (0x2), region = 68 }

// kernel: closed_call.12
= control target key start
LH: loop header
LB: loop body
LE: loop exit
PB: predicated region body
PF: predicated region fallthrough
CT: control target
= control target key end

     0   :  { %s4250_s24 = smov 0   ;;  %s5233_s0 = inlined_call_operand.vmem [shape: f32[2,8,512], index: 0, kind: input, shape index: {}]   ;;  %s5234_s1 = inlined_call_operand.vmem [shape: f32[2,8,512], index: 1, kind: input, shape index: {}]   ;;  %s5235_s2 = inlined_call_operand.vmem [shape: f32[1,256], index: 2, kind: input, shape index: {}]   ;;  %s5236_s3 = inlined_call_operand.vmem [shape: bf16[27,16,16], index: 3, kind: input, shape index: {}]   ;;  %s5237_s4 = inlined_call_operand.vmem [shape: f32[16,1], index: 4, kind: input, shape index: {}]   ;;  %s5238_s5 = inlined_call_operand.vmem [shape: bf16[27,8,16], index: 5, kind: input, shape index: {}]   ;;  %s5239_s6 = inlined_call_operand.vmem [shape: f32[8,1], index: 6, kind: input, shape index: {}]   ;;  %s5240_s7 = inlined_call_operand.vmem [shape: f32[2,8,512], index: 7, kind: output, shape index: {}]  }
   0x1 LB: > { %s3906_s25 = sadd.s32 4294967295, %s4180_s24   ;;  %p3910_p0 = scmp.ge.s32.totalorder %s4180_s24, 1  ;;  %s4180_s24 = sphi %s4250_s24, %s17_s24  }
   0x2   : > { %p247_p1 = scmp.lt.s32.totalorder %s4180_s24, 3 }
   0x4   : > { %p248_p2 = pnand %p3910_p0, %p247_p1 }
   0x5   : > { %p284_p3 = scmp.lt.s32.totalorder (!%p248_p2), %s3906_s25, 1  ;;  %s4182_s10 = smov (!%p248_p2), 42  }
   0x6   : > { %251 = sbr.rel (%p248_p2) target bundleno = 1006 (0x3ee), region = 48  ;;  %s4184_s11 = smov (!%p248_p2), 43  }
   0x7   : > { %s4185_s12 = smov (!%p248_p2), 41   ;;  %s4186_s13 = smov (!%p248_p2), 37  }
   0x8   : > { %s4187_s14 = smov (!%p248_p2), 36   ;;  %s4188_s15 = smov (!%p248_p2), 35  }
   0x9   : > { %s4189_s16 = smov (!%p248_p2), 31   ;;  %s4190_s17 = smov (!%p248_p2), 30  }
   0xa   : > { %s4191_s18 = smov (!%p248_p2), 29   ;;  %s4192_s19 = smov (!%p248_p2), 7  }
   0xb   : > { %s5308_s25 = smov (!%p284_p3, %s3906_s25), 1  ;;  %vm325_vm0 = vcmask 1043456   ;;  %v4183_v18 = vmov 0   ;;  %s4193_s20 = smov 6   ;;  %vm359_vm1 = vcmask 343040   ;;  %vm422_vm2 = vcmask 351232  }
   0xc   : > { %s4258_s26 = sshll.u32 %s5308_s25, 5  ;;  %400 = vmatprep.mubr.bf16.mxu0 %v4183_v18  ;;  %462 = vmatprep.mubr.bf16.mxu1 %v4183_v18  ;;  %s4194_s21 = smov 5   ;;  %v4123_v32 = vld [vmem:[%s5236_s3 + $0x8] sm:$0xff]   ;;  %vm364_vm3 = vcmask 130048   ;;  %v4124_v36 = vld [vmem:[%s5236_s3] sm:$0xff]   ;;  %vm487_vm4 = vcmask 334848  }
   0xd   : > { %s4264_s29 = scalar_lea.vmem %s5233_s0, %s4258_s26  ;;  %s4270_s9 = scalar_lea.vmem %s5234_s1, %s4258_s26  ;;  %4121 = vset.pattern.permute.xlu0 %v4183_v18  ;;  %4122 = vset.pattern.permute.xlu1 %v4183_v18  ;;  %v4125_v43 = vld [vmem:[%s5236_s3 + $0x10] sm:$0xff]   ;;  %vm556_vm5 = vcmask 302080   ;;  %v4126_v48 = vld [vmem:[%s5236_s3 + $0x18] sm:$0xff]   ;;  %vm625_vm6 = vcmask 293888   ;;  %v4127_v55 = vld [vmem:[%s5236_s3 + $0x20] sm:$0xff]   ;;  %vm694_vm7 = vcmask 285696  }
   0xe   : > { %v301_v0 = vld [vmem:[%s4264_s29 + $0x8] sm:$0xff]  ;;  %v300_v2 = vld [vmem:[%s4264_s29] sm:$0xff]  ;;  %v302_v6 = vld [vmem:[%s4264_s29 + $0x10] sm:$0xff]  ;;  %s4195_s22 = smov 1   ;;  %s4196_s23 = smov 127   ;;  %vm763_vm8 = vcmask 252928  }
   0xf   : > { %v305_v1 = vld [vmem:[%s4270_s9 + $0x8] sm:$0xff]  ;;  %v4275_v3 = vpack.c.bf16 %v301_v0, %v301_v0  ;;  %v304_v5 = vld [vmem:[%s4270_s9] sm:$0xff]  ;;  %v306_v7 = vld [vmem:[%s4270_s9 + $0x10] sm:$0xff]  ;;  %v4280_v8 = vpack.c.bf16 %v300_v2, %v300_v2  ;;  %v4282_v12 = vpack.c.bf16 %v302_v6, %v302_v6  ;;  %s5251_s25 = smov 123   ;;  %s5249_s27 = smov 122   ;;  %vm832_vm9 = vcmask 244736  }
  0x10   : > { %v314_v4 = vpack.c.bf16 %v305_v1, %v305_v1  ;;  %v313_v9 = vpack.c.bf16 %v304_v5, %v304_v5  ;;  %v315_v10 = vpack.c.bf16 %v306_v7, %v306_v7  ;;  %v307_v19 = vld [vmem:[%s4270_s9 + $0x18] sm:$0xff]  ;;  %s5247_s28 = smov 121   ;;  %s5243_s30 = smov 98   ;;  %v4128_v60 = vld [vmem:[%s5236_s3 + $0x28] sm:$0xff]   ;;  %vm901_vm10 = vcmask 236544  }
  0x11   : > { %v316_v20 = vpack.c.bf16 %v307_v19, %v307_v19  ;;  %v303_v21 = vld [vmem:[%s4264_s29 + $0x18] sm:$0xff]  ;;  %s5241_s29 = smov 99   ;;  %s5245_s8 = smov 97   ;;  %vm970_vm11 = vcmask 56320   ;;  %vm1039_vm12 = vcmask 48128   ;;  %vm1108_vm13 = vcmask 39936  }
  0x12   : > { %v322_v11 = vrot.slane %v314_v4, 4  ;;  %v321_v13 = vrot.slane %v313_v9, 4  ;;  %v323_v14 = vrot.slane %v315_v10, 4  ;;  %v4364_v22 = vpack.c.bf16 %v303_v21, %v303_v21  ;;  %v4129_v4 = vld [vmem:[%s5236_s3 + $0x30] sm:$0xff]   ;;  %v4130_v10 = vld [vmem:[%s5236_s3 + $0x38] sm:$0xff]   ;;  %v4131_v21 = vld [vmem:[%s5236_s3 + $0x40] sm:$0xff]  }
  0x13   : > { %v324_v23 = vrot.slane %v316_v20, 4  ;;  %vm5261_vm14 = vcmask 7168   ;;  %vm5262_vm15 = vcmask 1039360  }
  0x14   : > { %v4286_v15 = vsel %vm325_vm0, %v4275_v3, %v322_v11  ;;  %v328_v16 = vsel %vm325_vm0, %v4280_v8, %v321_v13  ;;  %v4295_v17 = vsel %vm325_vm0, %v4282_v12, %v323_v14 }
  0x15   : > { %355 = vrot.lane.b32.xlu0 %v4286_v15, %s4182_s10  ;;  %353 = vrot.lane.b32.xlu1 %v328_v16, %s4182_s10  ;;  %v4371_v24 = vsel %vm325_vm0, %v4364_v22, %v324_v23 }
  0x19   : > { %357 = vrot.lane.b32.xlu0 %v4295_v17, %s4182_s10  ;;  %418 = vrot.lane.b32.xlu1 %v4286_v15, %s4184_s11 }
  0x1d   : > { %420 = vrot.lane.b32.xlu0 %v4295_v17, %s4184_s11  ;;  %416 = vrot.lane.b32.xlu1 %v328_v16, %s4184_s11 }
  0x21   : > { %483 = vrot.lane.b32.xlu0 %v4286_v15, %s4185_s12  ;;  %485 = vrot.lane.b32.xlu1 %v4295_v17, %s4185_s12 }
  0x25   : > { %481 = vrot.lane.b32.xlu0 %v328_v16, %s4185_s12  ;;  %552 = vrot.lane.b32.xlu1 %v4286_v15, %s4186_s13 }
  0x29   : > { %554 = vrot.lane.b32.xlu0 %v4295_v17, %s4186_s13  ;;  %550 = vrot.lane.b32.xlu1 %v328_v16, %s4186_s13 }
  0x2d   : > { %621 = vrot.lane.b32.xlu0 %v4286_v15, %s4187_s14  ;;  %623 = vrot.lane.b32.xlu1 %v4295_v17, %s4187_s14 }
  0x31   : > { %619 = vrot.lane.b32.xlu0 %v328_v16, %s4187_s14  ;;  %690 = vrot.lane.b32.xlu1 %v4286_v15, %s4188_s15 }
  0x35   : > { %692 = vrot.lane.b32.xlu0 %v4295_v17, %s4188_s15  ;;  %688 = vrot.lane.b32.xlu1 %v328_v16, %s4188_s15 }
  0x39   : > { %759 = vrot.lane.b32.xlu0 %v4286_v15, %s4189_s16  ;;  %761 = vrot.lane.b32.xlu1 %v4295_v17, %s4189_s16 }
  0x3d   : > { %757 = vrot.lane.b32.xlu0 %v328_v16, %s4189_s16  ;;  %828 = vrot.lane.b32.xlu1 %v4286_v15, %s4190_s17 }
  0x41   : > { %830 = vrot.lane.b32.xlu0 %v4295_v17, %s4190_s17  ;;  %826 = vrot.lane.b32.xlu1 %v328_v16, %s4190_s17 }
  0x45   : > { %897 = vrot.lane.b32.xlu0 %v4286_v15, %s4191_s18  ;;  %899 = vrot.lane.b32.xlu1 %v4295_v17, %s4191_s18 }
  0x49   : > { %895 = vrot.lane.b32.xlu0 %v328_v16, %s4191_s18  ;;  %966 = vrot.lane.b32.xlu1 %v4286_v15, %s4192_s19 }
  0x4d   : > { %968 = vrot.lane.b32.xlu0 %v4295_v17, %s4192_s19  ;;  %964 = vrot.lane.b32.xlu1 %v328_v16, %s4192_s19 }
  0x51   : > { %1035 = vrot.lane.b32.xlu0 %v4286_v15, %s4193_s20  ;;  %1037 = vrot.lane.b32.xlu1 %v4295_v17, %s4193_s20 }
  0x55   : > { %1033 = vrot.lane.b32.xlu0 %v328_v16, %s4193_s20  ;;  %1104 = vrot.lane.b32.xlu1 %v4286_v15, %s4194_s21 }
  0x59   : > { %1106 = vrot.lane.b32.xlu0 %v4295_v17, %s4194_s21  ;;  %1102 = vrot.lane.b32.xlu1 %v328_v16, %s4194_s21 }
  0x5d   : > { %1173 = vrot.lane.b32.xlu0 %v4286_v15, %s4195_s22  ;;  %1175 = vrot.lane.b32.xlu1 %v4295_v17, %s4195_s22 }
  0x61   : > { %1171 = vrot.lane.b32.xlu0 %v328_v16, %s4195_s22  ;;  %1301 = vrot.lane.b32.xlu1 %v4295_v17, %s4196_s23 }
  0x65   : > { %1303 = vrot.lane.b32.xlu0 %v4371_v24, %s4196_s23  ;;  %1299 = vrot.lane.b32.xlu1 %v4286_v15, %s4196_s23 }
  0x69   : > { %1370 = vrot.lane.b32.xlu0 %v4295_v17, %s5251_s25  ;;  %1372 = vrot.lane.b32.xlu1 %v4371_v24, %s5251_s25 }
  0x6d   : > { %1368 = vrot.lane.b32.xlu0 %v4286_v15, %s5251_s25  ;;  %1439 = vrot.lane.b32.xlu1 %v4295_v17, %s5249_s27  ;;  %s4204_s25 = smov 92  }
  0x71   : > { %1441 = vrot.lane.b32.xlu0 %v4371_v24, %s5249_s27  ;;  %1437 = vrot.lane.b32.xlu1 %v4286_v15, %s5249_s27 }
  0x75   : > { %1508 = vrot.lane.b32.xlu0 %v4295_v17, %s5247_s28  ;;  %1510 = vrot.lane.b32.xlu1 %v4371_v24, %s5247_s28 }
  0x79   : > { %1506 = vrot.lane.b32.xlu0 %v4286_v15, %s5247_s28  ;;  %1577 = vrot.lane.b32.xlu1 %v4295_v17, %s5241_s29  ;;  %s5255_s28 = smov 87  }
  0x7d   : > { %1579 = vrot.lane.b32.xlu0 %v4371_v24, %s5241_s29  ;;  %1575 = vrot.lane.b32.xlu1 %v4286_v15, %s5241_s29  ;;  %s4203_s29 = smov 93  }
  0x81   : > { %1646 = vrot.lane.b32.xlu0 %v4295_v17, %s5243_s30  ;;  %1648 = vrot.lane.b32.xlu1 %v4371_v24, %s5243_s30 }
  0x85   : > { %1644 = vrot.lane.b32.xlu0 %v4286_v15, %s5243_s30  ;;  %1715 = vrot.lane.b32.xlu1 %v4295_v17, %s5245_s8  ;;  %s5253_s30 = smov 91  }
  0x87   : > { %v356_v25 = vpop.permute.xlu0 %355  ;;  %v354_v26 = vpop.permute.xlu1 %353 }
  0x88   : > { %v360_v30 = vsel %vm359_vm1, %v354_v26, %v356_v25 }
  0x89   : > { %1717 = vrot.lane.b32.xlu0 %v4371_v24, %s5245_s8  ;;  %1713 = vrot.lane.b32.xlu1 %v4286_v15, %s5245_s8 }
  0x8b   : > { %v358_v27 = vpop.permute.xlu0 %357  ;;  %v419_v28 = vpop.permute.xlu1 %418 }
  0x8c   : > { %v361_v29 = vsel %vm359_vm1, %v356_v25, %v358_v27  ;;  %v4132_v27 = vld [vmem:[%s5236_s3 + $0x48] sm:$0xff]  }
  0x8d   : > { %382 = vmatprep.subr.bf16.mxu0 %v361_v29  ;;  %1784 = vrot.lane.b32.xlu0 %v4295_v17, %s4203_s29 }
  0x8e   : > { %1786 = vrot.lane.b32.xlu1 %v4371_v24, %s4203_s29  ;;  %383 = vmatpush1.bf16.msra.mxu0 %v360_v30 }
  0x8f   : > { %v421_v31 = vpop.permute.xlu0 %420  ;;  %v417_v33 = vpop.permute.xlu1 %416 }
  0x90   : > { %v424_v34 = vsel %vm422_vm2, %v419_v28, %v421_v31  ;;  %v423_v35 = vsel %vm422_vm2, %v417_v33, %v419_v28 }
  0x91   : > { %1782 = vrot.lane.b32.xlu0 %v4286_v15, %s4203_s29  ;;  %444 = vmatprep.subr.bf16.mxu1 %v424_v34  ;;  %v4133_v34 = vld [vmem:[%s5236_s3 + $0x50] sm:$0xff]  }
  0x92   : > { %1853 = vrot.lane.b32.xlu1 %v4295_v17, %s4204_s25  ;;  %445 = vmatpush1.bf16.msra.mxu1 %v423_v35 }
  0x93   : > { %v484_v37 = vpop.permute.xlu0 %483  ;;  %3920 = vmatmul.mubr.msk.bf16.vlgmr.msra.gmra.mxu0 %vm364_vm3, %v4123_v32  ;;  %v486_v38 = vpop.permute.xlu1 %485 }
  0x94   : > { %527 = vmatprep.mubr.bf16.mxu0 %v4183_v18  ;;  %v489_v39 = vsel %vm487_vm4, %v484_v37, %v486_v38 }
  0x95   : > { %1855 = vrot.lane.b32.xlu0 %v4371_v24, %s4204_s25  ;;  %3922 = vmatmul.mubr.msk.bf16.vlgmr.msra.gmra.mxu1 %vm364_vm3, %v4124_v36 }
  0x96   : > { %1851 = vrot.lane.b32.xlu1 %v4286_v15, %s4204_s25  ;;  %509 = vmatprep.subr.bf16.mxu0 %v489_v39  ;;  %v4134_v39 = vld [vmem:[%s5236_s3 + $0x58] sm:$0xff]  }
  0x97   : > { %v482_v40 = vpop.permute.xlu0 %481  ;;  %596 = vmatprep.mubr.bf16.mxu1 %v4183_v18  ;;  %v553_v42 = vpop.permute.xlu1 %552 }
  0x98   : > { %v488_v41 = vsel %vm487_vm4, %v482_v40, %v484_v37 }
  0x99   : > { %1922 = vrot.lane.b32.xlu0 %v4295_v17, %s5253_s30  ;;  %510 = vmatpush1.bf16.msra.mxu0 %v488_v41 }
  0x9a   : > { %1924 = vrot.lane.b32.xlu1 %v4371_v24, %s5253_s30 }
  0x9b   : > { %v555_v44 = vpop.permute.xlu0 %554  ;;  %v551_v45 = vpop.permute.xlu1 %550 }
  0x9c   : > { %v558_v46 = vsel %vm556_vm5, %v553_v42, %v555_v44  ;;  %3926 = vmatmul.mubr.msk.bf16.vlgmr.msra.gmra.mxu0 %vm364_vm3, %v4125_v43  ;;  %v557_v47 = vsel %vm556_vm5, %v551_v45, %v553_v42 }
  0x9d   : > { %1920 = vrot.lane.b32.xlu0 %v4286_v15, %s5253_s30  ;;  %578 = vmatprep.subr.bf16.mxu1 %v558_v46  ;;  %s5259_s30 = smov 86   ;;  %v4135_v46 = vld [vmem:[%s5236_s3 + $0x60] sm:$0xff]  }
  0x9e   : > { %1991 = vrot.lane.b32.xlu1 %v4295_v17, %s5255_s28  ;;  %579 = vmatpush1.bf16.msra.mxu1 %v557_v47 }
  0x9f   : > { %v622_v49 = vpop.permute.xlu0 %621  ;;  %665 = vmatprep.mubr.bf16.mxu0 %v4183_v18  ;;  %v624_v50 = vpop.permute.xlu1 %623 }
  0xa0   : > { %v627_v51 = vsel %vm625_vm6, %v622_v49, %v624_v50  ;;  %v2188_v50 = vld [vmem:[%s5237_s4] sm:$0xff] }
  0xa1   : > { %1993 = vrot.lane.b32.xlu0 %v4371_v24, %s5255_s28  ;;  %3930 = vmatmul.mubr.msk.bf16.vlgmr.msra.gmra.mxu1 %vm364_vm3, %v4126_v48 }
  0xa2   : > { %1989 = vrot.lane.b32.xlu1 %v4286_v15, %s5255_s28  ;;  %647 = vmatprep.subr.bf16.mxu0 %v627_v51  ;;  %s5257_s28 = smov 85  }
  0xa3   : > { %v620_v52 = vpop.permute.xlu0 %619  ;;  %734 = vmatprep.mubr.bf16.mxu1 %v4183_v18  ;;  %v691_v54 = vpop.permute.xlu1 %690 }
  0xa4   : > { %v626_v53 = vsel %vm625_vm6, %v620_v52, %v622_v49 }
  0xa5   : > { %2060 = vrot.lane.b32.xlu0 %v4295_v17, %s5259_s30  ;;  %648 = vmatpush1.bf16.msra.mxu0 %v626_v53  ;;  %v4137_v53 = vld [vmem:[%s5236_s3 + $0x70] sm:$0xff]  }
  0xa6   : > { %2062 = vrot.lane.b32.xlu1 %v4371_v24, %s5259_s30 }
  0xa7   : > { %v693_v56 = vpop.permute.xlu0 %692  ;;  %v689_v57 = vpop.permute.xlu1 %688 }
  0xa8   : > { %v696_v58 = vsel %vm694_vm7, %v691_v54, %v693_v56  ;;  %3934 = vmatmul.mubr.msk.bf16.vlgmr.msra.gmra.mxu0 %vm364_vm3, %v4127_v55  ;;  %v695_v59 = vsel %vm694_vm7, %v689_v57, %v691_v54 }
  0xa9   : > { %2058 = vrot.lane.b32.xlu0 %v4286_v15, %s5259_s30  ;;  %716 = vmatprep.subr.bf16.mxu1 %v696_v58  ;;  %v4138_v58 = vld [vmem:[%s5236_s3 + $0x78] sm:$0xff]  }
  0xaa   : > { %2129 = vrot.lane.b32.xlu1 %v4295_v17, %s5257_s28  ;;  %717 = vmatpush1.bf16.msra.mxu1 %v695_v59 }
  0xab   : > { %v760_v61 = vpop.permute.xlu0 %759  ;;  %803 = vmatprep.mubr.bf16.mxu0 %v4183_v18  ;;  %v762_v62 = vpop.permute.xlu1 %761 }
  0xac   : > { %v765_v63 = vsel %vm763_vm8, %v760_v61, %v762_v62 }
  0xad   : > { %2131 = vrot.lane.b32.xlu0 %v4371_v24, %s5257_s28  ;;  %3938 = vmatmul.mubr.msk.bf16.vlgmr.msra.gmra.mxu1 %vm364_vm3, %v4128_v60 }
  0xae   : > { %2127 = vrot.lane.b32.xlu1 %v4286_v15, %s5257_s28  ;;  %785 = vmatprep.subr.bf16.mxu0 %v765_v63  ;;  %v4139_v63 = vld [vmem:[%s5236_s3 + $0x80] sm:$0xff]  }
  0xaf   : > { %v758_v0 = vpop.permute.xlu0 %757  ;;  %872 = vmatprep.mubr.bf16.mxu1 %v4183_v18  ;;  %v829_v2 = vpop.permute.xlu1 %828 }
  0xb0   : > { %v764_v1 = vsel %vm763_vm8, %v758_v0, %v760_v61 }
  0xb1   : > { %786 = vmatpush1.bf16.msra.mxu0 %v764_v1  ;;  %2192 = vperm.xlu0 %4121, %v2188_v50  }
  0xb3   : > { %v831_v5 = vpop.permute.xlu0 %830  ;;  %v827_v6 = vpop.permute.xlu1 %826 }
  0xb4   : > { %v834_v7 = vsel %vm832_vm9, %v829_v2, %v831_v5  ;;  %3942 = vmatmul.mubr.msk.bf16.vlgmr.msra.gmra.mxu0 %vm364_vm3, %v4129_v4  ;;  %v833_v9 = vsel %vm832_vm9, %v827_v6, %v829_v2 }
  0xb5   : > { %854 = vmatprep.subr.bf16.mxu1 %v834_v7  ;;  %941 = vmatprep.mubr.bf16.mxu0 %v4183_v18  ;;  %v4140_v7 = vld [vmem:[%s5236_s3 + $0x88] sm:$0xff]  }
  0xb6   : > { %855 = vmatpush1.bf16.msra.mxu1 %v833_v9 }
  0xb7   : > { %v898_v11 = vpop.permute.xlu0 %897  ;;  %v900_v13 = vpop.permute.xlu1 %899 }
  0xb8   : > { %v903_v14 = vsel %vm901_vm10, %v898_v11, %v900_v13 }
  0xb9   : > { %3946 = vmatmul.mubr.msk.bf16.vlgmr.msra.gmra.mxu1 %vm364_vm3, %v4130_v10  ;;  %923 = vmatprep.subr.bf16.mxu0 %v903_v14  ;;  %v4141_v14 = vld [vmem:[%s5236_s3 + $0x90] sm:$0xff]  }
  0xba   : > { %1010 = vmatprep.mubr.bf16.mxu1 %v4183_v18 }
  0xbb   : > { %v896_v16 = vpop.permute.xlu0 %895  ;;  %v967_v20 = vpop.permute.xlu1 %966 }
  0xbc   : > { %v902_v19 = vsel %vm901_vm10, %v896_v16, %v898_v11 }
  0xbd   : > { %924 = vmatpush1.bf16.msra.mxu0 %v902_v19 }
  0xbf   : > { %v969_v23 = vpop.permute.xlu0 %968  ;;  %v965_v24 = vpop.permute.xlu1 %964 }
  0xc0   : > { %v972_v25 = vsel %vm970_vm11, %v967_v20, %v969_v23  ;;  %3950 = vmatmul.mubr.msk.bf16.vlgmr.msra.gmra.mxu0 %vm364_vm3, %v4131_v21  ;;  %v971_v26 = vsel %vm970_vm11, %v965_v24, %v967_v20 }
  0xc1   : > { %992 = vmatprep.subr.bf16.mxu1 %v972_v25  ;;  %1079 = vmatprep.mubr.bf16.mxu0 %v4183_v18  ;;  %v4142_v25 = vld [vmem:[%s5236_s3 + $0x98] sm:$0xff]  }
  0xc2   : > { %993 = vmatpush1.bf16.msra.mxu1 %v971_v26 }
  0xc3   : > { %v1036_v28 = vpop.permute.xlu0 %1035  ;;  %v1038_v29 = vpop.permute.xlu1 %1037 }
  0xc4   : > { %v1041_v30 = vsel %vm1039_vm12, %v1036_v28, %v1038_v29 }
  0xc5   : > { %3954 = vmatmul.mubr.msk.bf16.vlgmr.msra.gmra.mxu1 %vm364_vm3, %v4132_v27  ;;  %1061 = vmatprep.subr.bf16.mxu0 %v1041_v30  ;;  %v4143_v30 = vld [vmem:[%s5236_s3 + $0xa0] sm:$0xff]  }
  0xc6   : > { %1148 = vmatprep.mubr.bf16.mxu1 %v4183_v18 }
  0xc7   : > { %v1034_v31 = vpop.permute.xlu0 %1033  ;;  %v1105_v33 = vpop.permute.xlu1 %1104 }
  0xc8   : > { %v1040_v32 = vsel %vm1039_vm12, %v1034_v31, %v1036_v28 }
  0xc9   : > { %1062 = vmatpush1.bf16.msra.mxu0 %v1040_v32 }
  0xcb   : > { %v1107_v35 = vpop.permute.xlu0 %1106  ;;  %v1103_v36 = vpop.permute.xlu1 %1102 }
  0xcc   : > { %3958 = vmatmul.mubr.msk.bf16.vlgmr.msra.gmra.mxu0 %vm364_vm3, %v4133_v34  ;;  %v1110_v37 = vsel %vm1108_vm13, %v1105_v33, %v1107_v35  ;;  %v1109_v38 = vsel %vm1108_vm13, %v1103_v36, %v1105_v33 }
  0xcd   : > { %1130 = vmatprep.subr.bf16.mxu1 %v1110_v37  ;;  %1217 = vmatprep.mubr.bf16.mxu0 %v4183_v18  ;;  %v4144_v37 = vld [vmem:[%s5236_s3 + $0xa8] sm:$0xff]  }
  0xce   : > { %1131 = vmatpush1.bf16.msra.mxu1 %v1109_v38 }
  0xcf   : > { %v1174_v40 = vpop.permute.xlu0 %1173  ;;  %1257 = vmatprep.subr.bf16.mxu1 %v4295_v17  ;;  %v1176_v41 = vpop.permute.xlu1 %1175  ;;  %v4136_v17 = vld [vmem:[%s5236_s3 + $0x68] sm:$0xff]  }
  0xd0   : > { %v1179_v42 = vsel %vm5261_vm14, %v1174_v40, %v1176_v41 }
  0xd1   : > { %3962 = vmatmul.mubr.msk.bf16.vlgmr.msra.gmra.mxu1 %vm364_vm3, %v4134_v39  ;;  %1199 = vmatprep.subr.bf16.mxu0 %v1179_v42  ;;  %v4145_v42 = vld [vmem:[%s5236_s3 + $0xb0] sm:$0xff]  }
  0xd2   : > { %1258 = vmatpush1.bf16.msra.mxu1 %v4286_v15  ;;  %1275 = vmatprep.mubr.bf16.mxu1 %v4183_v18 }
  0xd3   : > { %v1172_v43 = vpop.permute.xlu0 %1171  ;;  %v1302_v45 = vpop.permute.xlu1 %1301 }
  0xd4   : > { %v1178_v44 = vsel %vm5261_vm14, %v1172_v43, %v1174_v40  ;;  %vm5263_vm14 = vcmask 1006592  }
  0xd5   : > { %1200 = vmatpush1.bf16.msra.mxu0 %v1178_v44 }
  0xd7   : > { %v1304_v47 = vpop.permute.xlu0 %1303  ;;  %v1300_v48 = vpop.permute.xlu1 %1299 }
  0xd8   : > { %3966 = vmatmul.mubr.msk.bf16.vlgmr.msra.gmra.mxu0 %vm364_vm3, %v4135_v46  ;;  %v1307_v15 = vsel %vm5262_vm15, %v1302_v45, %v1304_v47  ;;  %v1306_v49 = vsel %vm5262_vm15, %v1300_v48, %v1302_v45  ;;  %vm5264_vm15 = vcmask 998400   ;;  %v4146_v48 = vld [vmem:[%s5236_s3 + $0xb8] sm:$0xff]  }
  0xd9   : > { %1327 = vmatprep.subr.bf16.mxu0 %v1307_v15  ;;  %3970 = vmatmul.mubr.msk.bf16.vlgmr.msra.gmra.mxu1 %vm364_vm3, %v4136_v17 }
  0xda   : > { %1328 = vmatpush1.bf16.msra.mxu0 %v1306_v49  ;;  %1345 = vmatprep.mubr.bf16.mxu0 %v4183_v18 }
  0xdb   : > { %v1371_v51 = vpop.permute.xlu0 %1370  ;;  %1414 = vmatprep.mubr.bf16.mxu1 %v4183_v18  ;;  %v1373_v52 = vpop.permute.xlu1 %1372 }
  0xdc   : > { %v1376_v54 = vsel %vm5263_vm14, %v1371_v51, %v1373_v52  ;;  %v4147_v52 = vld [vmem:[%s5236_s3 + $0xc0] sm:$0xff]  }
  0xdd   : > { %1396 = vmatprep.subr.bf16.mxu1 %v1376_v54 }
  0xdf   : > { %v1369_v55 = vpop.permute.xlu0 %1368  ;;  %v1440_v57 = vpop.permute.xlu1 %1439 }
  0xe0   : > { %v1375_v56 = vsel %vm5263_vm14, %v1369_v55, %v1371_v51  ;;  %3974 = vmatmul.mubr.msk.bf16.vlgmr.msra.gmra.mxu0 %vm364_vm3, %v4137_v53  ;;  %vm5265_vm14 = vcmask 990208  }
  0xe1   : > { %1397 = vmatpush1.bf16.msra.mxu1 %v1375_v56  ;;  %1483 = vmatprep.mubr.bf16.mxu0 %v4183_v18 }
  0xe3   : > { %v1442_v59 = vpop.permute.xlu0 %1441  ;;  %v1438_v60 = vpop.permute.xlu1 %1437 }
  0xe4   : > { %3978 = vmatmul.mubr.msk.bf16.vlgmr.msra.gmra.mxu1 %vm364_vm3, %v4138_v58  ;;  %v1445_v61 = vsel %vm5264_vm15, %v1440_v57, %v1442_v59  ;;  %v1444_v62 = vsel %vm5264_vm15, %v1438_v60, %v1440_v57  ;;  %vm5266_vm15 = vcmask 809984   ;;  %v4148_v59 = vld [vmem:[%s5236_s3 + $0xc8] sm:$0xff]  }
  0xe5   : > { %1465 = vmatprep.subr.bf16.mxu0 %v1445_v61  ;;  %1552 = vmatprep.mubr.bf16.mxu1 %v4183_v18 }
  0xe6   : > { %1466 = vmatpush1.bf16.msra.mxu0 %v1444_v62 }
  0xe7   : > { %v1509_v0 = vpop.permute.xlu0 %1508  ;;  %v1511_v1 = vpop.permute.xlu1 %1510 }
  0xe8   : > { %v1514_v2 = vsel %vm5265_vm14, %v1509_v0, %v1511_v1 }
  0xe9   : > { %3982 = vmatmul.mubr.msk.bf16.vlgmr.msra.gmra.mxu0 %vm364_vm3, %v4139_v63  ;;  %1534 = vmatprep.subr.bf16.mxu1 %v1514_v2 }
  0xea   : > { %1621 = vmatprep.mubr.bf16.mxu0 %v4183_v18 }
  0xeb   : > { %v1507_v4 = vpop.permute.xlu0 %1506  ;;  %v1578_v6 = vpop.permute.xlu1 %1577 }
  0xec   : > { %v1513_v5 = vsel %vm5265_vm14, %v1507_v4, %v1509_v0  ;;  %vm5267_vm14 = vcmask 801792   ;;  %v4149_v0 = vld [vmem:[%s5236_s3 + $0xd0] sm:$0xff]  }
  0xed   : > { %1535 = vmatpush1.bf16.msra.mxu1 %v1513_v5 }
  0xef   : > { %v1580_v9 = vpop.permute.xlu0 %1579  ;;  %v1576_v10 = vpop.permute.xlu1 %1575 }
  0xf0   : > { %3986 = vmatmul.mubr.msk.bf16.vlgmr.msra.gmra.mxu1 %vm364_vm3, %v4140_v7  ;;  %v1583_v11 = vsel %vm5266_vm15, %v1578_v6, %v1580_v9  ;;  %v1582_v13 = vsel %vm5266_vm15, %v1576_v10, %v1578_v6  ;;  %vm5268_vm15 = vcmask 793600  }
  0xf1   : > { %1603 = vmatprep.subr.bf16.mxu0 %v1583_v11  ;;  %1690 = vmatprep.mubr.bf16.mxu1 %v4183_v18 }
  0xf2   : > { %1604 = vmatpush1.bf16.msra.mxu0 %v1582_v13 }
  0xf3   : > { %v1647_v16 = vpop.permute.xlu0 %1646  ;;  %v1649_v19 = vpop.permute.xlu1 %1648 }
  0xf4   : > { %v1652_v20 = vsel %vm5267_vm14, %v1647_v16, %v1649_v19 }
  0xf5   : > { %3990 = vmatmul.mubr.msk.bf16.vlgmr.msra.gmra.mxu0 %vm364_vm3, %v4141_v14  ;;  %1672 = vmatprep.subr.bf16.mxu1 %v1652_v20 }
  0xf6   : > { %1759 = vmatprep.mubr.bf16.mxu0 %v4183_v18 }
  0xf7   : > { %v1645_v21 = vpop.permute.xlu0 %1644  ;;  %v1716_v24 = vpop.permute.xlu1 %1715 }
  0xf8   : > { %v1651_v23 = vsel %vm5267_vm14, %v1645_v21, %v1647_v16  ;;  %vm5269_vm14 = vcmask 760832  }
  0xf9   : > { %1673 = vmatpush1.bf16.msra.mxu1 %v1651_v23 }
  0xfb   : > { %v1718_v26 = vpop.permute.xlu0 %1717  ;;  %v1714_v27 = vpop.permute.xlu1 %1713 }
  0xfc   : > { %3994 = vmatmul.mubr.msk.bf16.vlgmr.msra.gmra.mxu1 %vm364_vm3, %v4142_v25  ;;  %v1721_v28 = vsel %vm5268_vm15, %v1716_v24, %v1718_v26  ;;  %v1720_v29 = vsel %vm5268_vm15, %v1714_v27, %v1716_v24  ;;  %vm5270_vm15 = vcmask 752640  }
  0xfd   : > { %1741 = vmatprep.subr.bf16.mxu0 %v1721_v28  ;;  %1828 = vmatprep.mubr.bf16.mxu1 %v4183_v18 }
  0xfe   : > { %1742 = vmatpush1.bf16.msra.mxu0 %v1720_v29 }
  0xff   : > { %v1785_v31 = vpop.permute.xlu0 %1784 }
 0x100   : > { %v1787_v32 = vpop.permute.xlu1 %1786 }
 0x101   : > { %3998 = vmatmul.mubr.msk.bf16.vlgmr.msra.gmra.mxu0 %vm364_vm3, %v4143_v30  ;;  %v1790_v33 = vsel %vm5269_vm14, %v1785_v31, %v1787_v32 }
 0x102   : > { %1810 = vmatprep.subr.bf16.mxu1 %v1790_v33  ;;  %1897 = vmatprep.mubr.bf16.mxu0 %v4183_v18 }
 0x103   : > { %v1783_v34 = vpop.permute.xlu0 %1782 }
 0x104   : > { %v1789_v35 = vsel %vm5269_vm14, %v1783_v34, %v1785_v31  ;;  %v1854_v36 = vpop.permute.xlu1 %1853  ;;  %vm5271_vm14 = vcmask 744448  }
 0x105   : > { %1811 = vmatpush1.bf16.msra.mxu1 %v1789_v35 }
 0x107   : > { %v1856_v38 = vpop.permute.xlu0 %1855 }
 0x108   : > { %v1852_v39 = vpop.permute.xlu1 %1851  ;;  %4002 = vmatmul.mubr.msk.bf16.vlgmr.msra.gmra.mxu1 %vm364_vm3, %v4144_v37  ;;  %v1859_v40 = vsel %vm5270_vm15, %v1854_v36, %v1856_v38 }
 0x109   : > { %v1858_v41 = vsel %vm5270_vm15, %v1852_v39, %v1854_v36  ;;  %1879 = vmatprep.subr.bf16.mxu0 %v1859_v40  ;;  %1966 = vmatprep.mubr.bf16.mxu1 %v4183_v18  ;;  %vm5272_vm15 = vcmask 711680  }
 0x10a   : > { %1880 = vmatpush1.bf16.msra.mxu0 %v1858_v41 }
 0x10b   : > { %v1923_v43 = vpop.permute.xlu0 %1922 }
 0x10c   : > { %v1925_v44 = vpop.permute.xlu1 %1924 }
 0x10d   : > { %4006 = vmatmul.mubr.msk.bf16.vlgmr.msra.gmra.mxu0 %vm364_vm3, %v4145_v42  ;;  %v1928_v45 = vsel %vm5271_vm14, %v1923_v43, %v1925_v44 }
 0x10e   : > { %1948 = vmatprep.subr.bf16.mxu1 %v1928_v45  ;;  %2035 = vmatprep.mubr.bf16.mxu0 %v4183_v18 }
 0x10f   : > { %v1921_v46 = vpop.permute.xlu0 %1920 }
 0x110   : > { %v1927_v17 = vsel %vm5271_vm14, %v1921_v46, %v1923_v43  ;;  %v1992_v47 = vpop.permute.xlu1 %1991  ;;  %vm2064_vm14 = vcmask 703488  }
 0x111   : > { %1949 = vmatpush1.bf16.msra.mxu1 %v1927_v17 }
 0x113   : > { %v1994_v15 = vpop.permute.xlu0 %1993 }
 0x114   : > { %v1990_v49 = vpop.permute.xlu1 %1989  ;;  %4010 = vmatmul.mubr.msk.bf16.vlgmr.msra.gmra.mxu1 %vm364_vm3, %v4146_v48  ;;  %v1997_v50 = vsel %vm5272_vm15, %v1992_v47, %v1994_v15 }
 0x115   : > { %v1996_v51 = vsel %vm5272_vm15, %v1990_v49, %v1992_v47  ;;  %2017 = vmatprep.subr.bf16.mxu0 %v1997_v50  ;;  %2104 = vmatprep.mubr.bf16.mxu1 %v4183_v18  ;;  %vm2133_vm15 = vcmask 695296   ;;  %v4664_v49 = vrot.slane %v4183_v18, 4 }
 0x116   : > { %2018 = vmatpush1.bf16.msra.mxu0 %v1996_v51 }
 0x117   : > { %v2061_v53 = vpop.permute.xlu0 %2060 }
 0x118   : > { %v2063_v54 = vpop.permute.xlu1 %2062 }
 0x119   : > { %4014 = vmatmul.mubr.msk.bf16.vlgmr.msra.gmra.mxu0 %vm364_vm3, %v4147_v52  ;;  %v2066_v55 = vsel %vm2064_vm14, %v2061_v53, %v2063_v54 }
 0x11a   : > { %2086 = vmatprep.subr.bf16.mxu1 %v2066_v55  ;;  %2173 = vmatprep.mubr.bf16.mxu0 %v4183_v18 }
 0x11b   : > { %v2059_v56 = vpop.permute.xlu0 %2058 }
 0x11c   : > { %v2065_v57 = vsel %vm2064_vm14, %v2059_v56, %v2061_v53  ;;  %v2130_v58 = vpop.permute.xlu1 %2129  ;;  %v4671_v53 = vsel %vm325_vm0, %v4280_v8, %v4664_v49 }
 0x11d   : > { %2087 = vmatpush1.bf16.msra.mxu1 %v2065_v57  ;;  %2266 = vrot.lane.b32.xlu0 %v4671_v53, %s4182_s10 }
 0x11e   : > { %2320 = vrot.lane.b32.xlu1 %v4671_v53, %s4184_s11 }
 0x11f   : > { %v2132_v60 = vpop.permute.xlu0 %2131 }
 0x120   : > { %v2128_v61 = vpop.permute.xlu1 %2127  ;;  %4018 = vmatmul.mubr.msk.bf16.vlgmr.msra.gmra.mxu1 %vm364_vm3, %v4148_v59  ;;  %v2135_v62 = vsel %vm2133_vm15, %v2130_v58, %v2132_v60 }
 0x121   : > { %v2134_v63 = vsel %vm2133_vm15, %v2128_v61, %v2130_v58  ;;  %2155 = vmatprep.subr.bf16.mxu0 %v2135_v62  ;;  %2311 = vmatprep.mubr.bf16.mxu1 %v4183_v18 }
 0x122   : > { %2156 = vmatpush1.bf16.msra.mxu0 %v2134_v63  ;;  %2376 = vrot.lane.b32.xlu0 %v4671_v53, %s4185_s12 }
 0x123   : > { %2434 = vrot.lane.b32.xlu1 %v4671_v53, %s4186_s13 }
 0x125   : > { %4022 = vmatmul.mubr.msk.bf16.vlgmr.msra.gmra.mxu0 %vm364_vm3, %v4149_v0 }
 0x126   : > { %2365 = vmatprep.mubr.bf16.mxu0 %v4183_v18  ;;  %2492 = vrot.lane.b32.xlu0 %v4671_v53, %s4187_s14 }
 0x127   : > { %2550 = vrot.lane.b32.xlu1 %v4671_v53, %s4188_s15 }
 0x12a   : > { %2608 = vrot.lane.b32.xlu0 %v4671_v53, %s4189_s16 }
 0x12b   : > { %2666 = vrot.lane.b32.xlu1 %v4671_v53, %s4190_s17 }
 0x12e   : > { %2724 = vrot.lane.b32.xlu0 %v4671_v53, %s4191_s18 }
 0x12f   : > { %2782 = vrot.lane.b32.xlu1 %v4671_v53, %s4192_s19 }
 0x132   : > { %2840 = vrot.lane.b32.xlu0 %v4671_v53, %s4193_s20 }
 0x153   : > { %v4641_v1 = vpop.f32.mrf.mxu0 }
 0x155   : > { %v404_v2 = vpop.f32.mrf.mxu0  ;;  %v4643_v4 = vpop.f32.mrf.mxu1 }
 0x157   : > { %v406_v5 = vpop.f32.mrf.mxu0  ;;  %v466_v6 = vpop.f32.mrf.mxu1 }
 0x158   : > { %v467_v7 = vadd.f32 %v466_v6, %v404_v2 }
 0x159   : > { %v408_v9 = vpop.f32.mrf.mxu0  ;;  %v468_v10 = vpop.f32.mrf.mxu1 }
 0x15a   : > { %v469_v11 = vadd.f32 %v468_v10, %v406_v5 }
 0x15b   : > { %v470_v13 = vpop.f32.mrf.mxu1 }
 0x15c   : > { %v4645_v14 = vpop.f32.mrf.mxu0  ;;  %v471_v16 = vadd.f32 %v470_v13, %v408_v9 }
 0x15e   : > { %v531_v19 = vpop.f32.mrf.mxu0 }
 0x15f   : > { %v539_v20 = vadd.f32 %v531_v19, %v467_v7 }
 0x160   : > { %v533_v21 = vpop.f32.mrf.mxu0 }
 0x161   : > { %v4647_v23 = vpop.f32.mrf.mxu1  ;;  %v540_v24 = vadd.f32 %v533_v21, %v469_v11 }
 0x162   : > { %v535_v25 = vpop.f32.mrf.mxu0 }
 0x163   : > { %v600_v26 = vpop.f32.mrf.mxu1  ;;  %v541_v27 = vadd.f32 %v535_v25, %v471_v16 }
 0x164   : > { %v608_v28 = vadd.f32 %v600_v26, %v539_v20 }
 0x165   : > { %v602_v29 = vpop.f32.mrf.mxu1 }
 0x166   : > { %v609_v30 = vadd.f32 %v602_v29, %v540_v24 }
 0x167   : > { %v604_v31 = vpop.f32.mrf.mxu1 }
 0x168   : > { %v4649_v32 = vpop.f32.mrf.mxu0  ;;  %v610_v33 = vadd.f32 %v604_v31, %v541_v27 }
 0x16a   : > { %v669_v34 = vpop.f32.mrf.mxu0 }
 0x16b   : > { %v4651_v35 = vadd.f32 %v669_v34, %v608_v28 }
 0x16c   : > { %v671_v36 = vpop.f32.mrf.mxu0 }
 0x16d   : > { %v4653_v37 = vpop.f32.mrf.mxu1  ;;  %v678_v38 = vadd.f32 %v671_v36, %v609_v30 }
 0x16e   : > { %v673_v39 = vpop.f32.mrf.mxu0 }
 0x16f   : > { %v4655_v40 = vpop.f32.mrf.mxu1  ;;  %v679_v41 = vadd.f32 %v673_v39, %v610_v33 }
 0x171   : > { %v740_v42 = vpop.f32.mrf.mxu1 }
 0x172   : > { %v747_v43 = vadd.f32 %v740_v42, %v678_v38  ;;  %v465_v38 = vadd.f32 %v4643_v4, %v4641_v1 }
 0x173   : > { %v742_v44 = vpop.f32.mrf.mxu1 }
 0x174   : > { %v4657_v45 = vpop.f32.mrf.mxu0  ;;  %v748_v46 = vadd.f32 %v742_v44, %v679_v41 }
 0x176   : > { %v4659_v17 = vpop.f32.mrf.mxu0 }
 0x178   : > { %v809_v47 = vpop.f32.mrf.mxu0 }
 0x179   : > { %v4661_v48 = vpop.f32.mrf.mxu1  ;;  %v816_v15 = vadd.f32 %v809_v47, %v747_v43  ;;  %v538_v47 = vadd.f32 %v4645_v14, %v465_v38 }
 0x17a   : > { %v811_v50 = vpop.f32.mrf.mxu0 }
 0x17b   : > { %v4666_v51 = vpop.f32.mrf.mxu1  ;;  %v817_v52 = vadd.f32 %v811_v50, %v748_v46 }
 0x17d   : > { %v878_v54 = vpop.f32.mrf.mxu1 }
 0x17e   : > { %v885_v55 = vadd.f32 %v878_v54, %v816_v15 }
 0x17f   : > { %v880_v56 = vpop.f32.mrf.mxu1 }
 0x180   : > { %v4677_v57 = vpop.f32.mrf.mxu0  ;;  %v886_v58 = vadd.f32 %v880_v56, %v817_v52 }
 0x182   : > { %v4683_v8 = vpop.f32.mrf.mxu0 }
 0x184   : > { %v947_v59 = vpop.f32.mrf.mxu0 }
 0x185   : > { %v4689_v60 = vpop.f32.mrf.mxu1  ;;  %v954_v61 = vadd.f32 %v947_v59, %v885_v55  ;;  %v607_v55 = vadd.f32 %v4647_v23, %v538_v47 }
 0x186   : > { %v949_v62 = vpop.f32.mrf.mxu0 }
 0x187   : > { %v4691_v63 = vpop.f32.mrf.mxu1  ;;  %v955_v0 = vadd.f32 %v949_v62, %v886_v58  ;;  %v676_v62 = vadd.f32 %v4649_v32, %v607_v55 }
 0x189   : > { %v1016_v2 = vpop.f32.mrf.mxu1 }
 0x18a   : > { %v1023_v5 = vadd.f32 %v1016_v2, %v954_v61 }
 0x18b   : > { %v1018_v6 = vpop.f32.mrf.mxu1 }
 0x18c   : > { %v4697_v7 = vpop.f32.mrf.mxu0  ;;  %v1024_v9 = vadd.f32 %v1018_v6, %v955_v0  ;;  %v745_v6 = vadd.f32 %v4653_v37, %v676_v62 }
 0x18e   : > { %v4703_v10 = vpop.f32.mrf.mxu0 }
 0x190   : > { %v1085_v11 = vpop.f32.mrf.mxu0 }
 0x191   : > { %v1092_v13 = vadd.f32 %v1085_v11, %v1023_v5  ;;  %v4707_v16 = vpop.f32.mrf.mxu1 }
 0x192   : > { %v1087_v19 = vpop.f32.mrf.mxu0 }
 0x193   : > { %v1093_v20 = vadd.f32 %v1087_v19, %v1024_v9  ;;  %v4709_v21 = vpop.f32.mrf.mxu1  ;;  %v814_v19 = vadd.f32 %v4657_v45, %v745_v6 }
 0x195   : > { %v1154_v24 = vpop.f32.mrf.mxu1 }
 0x196   : > { %v1161_v25 = vadd.f32 %v1154_v24, %v1092_v13  ;;  %v746_v24 = vadd.f32 %v4655_v40, %v4651_v35 }
 0x197   : > { %v1156_v26 = vpop.f32.mrf.mxu1 }
 0x198   : > { %v1162_v27 = vadd.f32 %v1156_v26, %v1093_v20  ;;  %v4711_v28 = vpop.f32.mrf.mxu0  ;;  %v815_v37 = vadd.f32 %v4659_v17, %v746_v24 }
 0x199   : > { %v4713_v29 = vpop.f32.mrf.mxu1 }
 0x19a   : > { %v4715_v30 = vpop.f32.mrf.mxu0  ;;  %v884_v45 = vadd.f32 %v4666_v51, %v815_v37 }
 0x19b   : > { %v4717_v31 = vpop.f32.mrf.mxu1 }
 0x19c   : > { %v1223_v33 = vpop.f32.mrf.mxu0  ;;  %v953_v47 = vadd.f32 %v4683_v8, %v884_v45 }
 0x19d   : > { %v1230_v34 = vadd.f32 %v1223_v33, %v1161_v25  ;;  %v1281_v36 = vpop.f32.mrf.mxu1 }
 0x19e   : > { %v1225_v39 = vpop.f32.mrf.mxu0 }
 0x19f   : > { %v1231_v41 = vadd.f32 %v1225_v39, %v1162_v27  ;;  %v1288_v42 = vadd.f32 %v1281_v36, %v1230_v34  ;;  %v1283_v43 = vpop.f32.mrf.mxu1  ;;  %v883_v27 = vadd.f32 %v4661_v48, %v814_v19 }
 0x1a0   : > { %v4721_v44 = vpop.f32.mrf.mxu0 }
 0x1a1   : > { %v1289_v46 = vadd.f32 %v1283_v43, %v1231_v41  ;;  %v952_v39 = vadd.f32 %v4677_v57, %v883_v27  ;;  %v1022_v57 = vadd.f32 %v4691_v63, %v953_v47 }
 0x1a2   : > { %v4724_v15 = vpop.f32.mrf.mxu0 }
 0x1a3   : > { %v1021_v35 = vadd.f32 %v4689_v60, %v952_v39  ;;  %v1091_v60 = vadd.f32 %v4703_v10, %v1022_v57 }
 0x1a4   : > { %v1351_v50 = vpop.f32.mrf.mxu0  ;;  %v4726_v52 = vpop.f32.mrf.mxu1 }
 0x1a5   : > { %v1358_v54 = vadd.f32 %v1351_v50, %v1288_v42  ;;  %v1090_v55 = vadd.f32 %v4697_v7, %v1021_v35 }
 0x1a6   : > { %v1353_v56 = vpop.f32.mrf.mxu0  ;;  %v4729_v58 = vpop.f32.mrf.mxu1 }
 0x1a7   : > { %v1359_v1 = vadd.f32 %v1353_v56, %v1289_v46  ;;  %v1159_v51 = vadd.f32 %v4707_v16, %v1090_v55 }
 0x1a8   : > { %v1420_v4 = vpop.f32.mrf.mxu1 }
 0x1a9   : > { %v1427_v59 = vadd.f32 %v1420_v4, %v1358_v54  ;;  %v4731_v61 = vpop.f32.mrf.mxu0 }
 0x1aa   : > { %v1422_v0 = vpop.f32.mrf.mxu1 }
 0x1ab   : > { %v1428_v14 = vadd.f32 %v1422_v0, %v1359_v1  ;;  %v4734_v2 = vpop.f32.mrf.mxu0  ;;  %v1228_v0 = vadd.f32 %v4711_v28, %v1159_v51 }
 0x1ad   : > { %v1489_v5 = vpop.f32.mrf.mxu0 }
 0x1ae   : > { %v1496_v9 = vadd.f32 %v1489_v5, %v1427_v59  ;;  %v1160_v5 = vadd.f32 %v4709_v21, %v1091_v60 }
 0x1af   : > { %v1491_v11 = vpop.f32.mrf.mxu0 }
 0x1b0   : > { %v1497_v23 = vadd.f32 %v1491_v11, %v1428_v14  ;;  %v1554_v13 = vpop.f32.mrf.mxu1  ;;  %v1229_v7 = vadd.f32 %v4715_v30, %v1160_v5 }
 0x1b2   : > { %v1556_v20 = vpop.f32.mrf.mxu1  ;;  %v1287_v10 = vadd.f32 %v4717_v31, %v1229_v7 }
 0x1b4   : > { %v1558_v25 = vpop.f32.mrf.mxu1  ;;  %v1357_v21 = vadd.f32 %v4724_v15, %v1287_v10 }
 0x1b5   : > { %v1565_v26 = vadd.f32 %v1558_v25, %v1496_v9  ;;  %v1623_v32 = vpop.f32.mrf.mxu0  ;;  %v1286_v9 = vadd.f32 %v4713_v29, %v1228_v0 }
 0x1b6   : > { %v1560_v33 = vpop.f32.mrf.mxu1  ;;  %v1426_v29 = vadd.f32 %v4729_v58, %v1357_v21  ;;  %v308_v21 = vld [vmem:[%s5235_s2] sm:$0x3] }
 0x1b7   : > { %v1566_v34 = vadd.f32 %v1560_v33, %v1497_v23  ;;  %v1625_v36 = vpop.f32.mrf.mxu0  ;;  %v1356_v16 = vadd.f32 %v4721_v44, %v1286_v9 }
 0x1b8   : > { %v1495_v44 = vadd.f32 %v4734_v2, %v1426_v29  ;;  %v4170_v29 = vld [vmem:[%s4270_s9 + $0x8] sm:$0xff] }
 0x1b9   : > { %v1627_v38 = vpop.f32.mrf.mxu0  ;;  %v1425_v28 = vadd.f32 %v4726_v52, %v1356_v16 }
 0x1ba   : > { %v1634_v41 = vadd.f32 %v1627_v38, %v1565_v26 }
 0x1bb   : > { %v1629_v42 = vpop.f32.mrf.mxu0  ;;  %v1494_v27 = vadd.f32 %v4731_v61, %v1425_v28 }
 0x1bc   : > { %v1635_v43 = vadd.f32 %v1629_v42, %v1566_v34  ;;  %v1692_v46 = vpop.f32.mrf.mxu1  ;;  %v1564_v42 = vadd.f32 %v1556_v20, %v1495_v44 }
 0x1bd   : > { %v1563_v34 = vadd.f32 %v1554_v13, %v1494_v27 }
 0x1be   : > { %v1694_v40 = vpop.f32.mrf.mxu1  ;;  %v1633_v35 = vadd.f32 %v1625_v36, %v1564_v42 }
 0x1bf   : > { %v1632_v39 = vadd.f32 %v1623_v32, %v1563_v34 }
 0x1c0   : > { %v1696_v48 = vpop.f32.mrf.mxu1 }
 0x1c1   : > { %v1703_v50 = vadd.f32 %v1696_v48, %v1634_v41  ;;  %v1761_v54 = vpop.f32.mrf.mxu0  ;;  %v1701_v31 = vadd.f32 %v1692_v46, %v1632_v39 }
 0x1c2   : > { %v1698_v17 = vpop.f32.mrf.mxu1 }
 0x1c3   : > { %v1704_v56 = vadd.f32 %v1698_v17, %v1635_v43  ;;  %v1763_v1 = vpop.f32.mrf.mxu0  ;;  %v1770_v15 = vadd.f32 %v1761_v54, %v1701_v31  ;;  %v4171_v31 = vld [vmem:[%s4270_s9 + $0x10] sm:$0xff] }
 0x1c5   : > { %v1765_v4 = vpop.f32.mrf.mxu0 }
 0x1c6   : > { %v1772_v59 = vadd.f32 %v1765_v4, %v1703_v50  ;;  %v1702_v50 = vadd.f32 %v1694_v40, %v1633_v35  ;;  %v2193_v40 = vpop.permute.xlu0 %2192 }
 0x1c7   : > { %v1767_v62 = vpop.f32.mrf.mxu0 }
 0x1c8   : > { %v1773_v8 = vadd.f32 %v1767_v62, %v1704_v56  ;;  %v1830_v14 = vpop.f32.mrf.mxu1  ;;  %v1771_v13 = vadd.f32 %v1763_v1, %v1702_v50 }
 0x1c9   : > { %v1839_v55 = vadd.f32 %v1830_v14, %v1770_v15 }
 0x1ca   : > { %v1832_v6 = vpop.f32.mrf.mxu1 }
 0x1cb   : > { %v1840_v2 = vadd.f32 %v1832_v6, %v1771_v13 }
 0x1cc   : > { %v1834_v11 = vpop.f32.mrf.mxu1 }
 0x1cd   : > { %v1841_v63 = vadd.f32 %v1834_v11, %v1772_v59  ;;  %v1899_v23 = vpop.f32.mrf.mxu0 }
 0x1ce   : > { %v1836_v19 = vpop.f32.mrf.mxu1  ;;  %v1908_v17 = vadd.f32 %v1899_v23, %v1839_v55 }
 0x1cf   : > { %v1842_v24 = vadd.f32 %v1836_v19, %v1773_v8  ;;  %v1901_v25 = vpop.f32.mrf.mxu0 }
 0x1d0   : > { %v1909_v46 = vadd.f32 %v1901_v25, %v1840_v2  ;;  %v2231_v25 = vlaneseq }
 0x1d1   : > { %v1903_v26 = vpop.f32.mrf.mxu0 }
 0x1d2   : > { %v1910_v30 = vadd.f32 %v1903_v26, %v1841_v63  ;;  %v2232_v10 = vshrl.u32 %v2231_v25, 7 }
 0x1d3   : > { %v1905_v33 = vpop.f32.mrf.mxu0 }
 0x1d4   : > { %v1911_v37 = vadd.f32 %v1905_v33, %v1842_v24  ;;  %v1968_v38 = vpop.f32.mrf.mxu1  ;;  %v2233_v26 = vsub.s32 0, %v2232_v10 }
 0x1d5   : > { %v1977_v32 = vadd.f32 %v1968_v38, %v1908_v17 }
 0x1d6   : > { %v1970_v41 = vpop.f32.mrf.mxu1 }
 0x1d7   : > { %v1978_v36 = vadd.f32 %v1970_v41, %v1909_v46  ;;  %v2237_v41 = vsub.s32 1, %v2232_v10  ;;  %v4032_v10 = vld [vmem:[%s5238_s5 + $0xc] sm:$0xf] }
 0x1d8   : > { %v1972_v45 = vpop.f32.mrf.mxu1 }
 0x1d9   : > { %v1979_v52 = vadd.f32 %v1972_v45, %v1910_v30  ;;  %v2037_v43 = vpop.f32.mrf.mxu0  ;;  %v4768_v30 = vrot.slane %v308_v21, %v2233_v26 }
 0x1da   : > { %v1974_v47 = vpop.f32.mrf.mxu1  ;;  %v2046_v51 = vadd.f32 %v2037_v43, %v1977_v32 }
 0x1db   : > { %v1980_v61 = vadd.f32 %v1974_v47, %v1911_v37  ;;  %v2039_v48 = vpop.f32.mrf.mxu0 }
 0x1dc   : > { %v2047_v8 = vadd.f32 %v2039_v48, %v1978_v36 }
 0x1dd   : > { %v2041_v58 = vpop.f32.mrf.mxu0 }
 0x1de   : > { %v2048_v56 = vadd.f32 %v2041_v58, %v1979_v52  ;;  %v4785_v52 = vrot.slane %v308_v21, %v2237_v41 }
 0x1df   : > { %v2043_v57 = vpop.f32.mrf.mxu0 }
 0x1e0   : > { %v4761_v4 = vadd.f32 %v2043_v57, %v1980_v61  ;;  %v2106_v20 = vpop.f32.mrf.mxu1 }
 0x1e1   : > { %v2115_v54 = vadd.f32 %v2106_v20, %v2046_v51  ;;  %v2189_v51 = vld [vmem:[%s5237_s4 + $0x8] sm:$0xff] }
 0x1e2   : > { %v2108_v59 = vpop.f32.mrf.mxu1 }
 0x1e3   : > { %v2116_v5 = vadd.f32 %v2108_v59, %v2047_v8 }
 0x1e4   : > { %v2110_v62 = vpop.f32.mrf.mxu1 }
 0x1e5   : > { %v2117_v60 = vadd.f32 %v2110_v62, %v2048_v56  ;;  %v2175_v0 = vpop.f32.mrf.mxu0 }
 0x1e6   : > { %v2184_v14 = vadd.f32 %v2175_v0, %v2115_v54 }
 0x1e7   : > { %v2177_v1 = vpop.f32.mrf.mxu0 }
 0x1e8   : > { %v2200_v7 = vadd.f32 %v2193_v40, %v2184_v14  ;;  %v2185_v11 = vadd.f32 %v2177_v1, %v2116_v5  ;;  %v2260_v5 = vld [vmem:[%s5238_s5] sm:$0xf] }
 0x1e9   : > { %v2179_v9 = vpop.f32.mrf.mxu0 }
 0x1ea   : > { %v4023_v6 = vmul.f32 -1.442695, %v2200_v7  ;;  %v4763_v63 = vadd.f32 %v2179_v9, %v2117_v60  ;;  %v2201_v23 = vadd.f32 %v2193_v40, %v2185_v11 }
 0x1ec   : > { %4150 = vpow2.f32 %v4023_v6  ;;  %v4024_v16 = vmul.f32 -1.442695, %v2201_v23  ;;  %v4027_v23 = vld [vmem:[%s5238_s5 + $0x4] sm:$0xf] }
 0x1ee   : > { %4152 = vpow2.f32 %v4024_v16 }
 0x1f9   : > { %v4151_v19 = vpop.eup %4150 }
 0x1fa   : > { %v2210_v24 = vadd.f32 1.0, %v4151_v19 }
 0x1fb   : > { %v4153_v28 = vpop.eup %4152 }
 0x1fc   : > { %4154 = vrcp.f32 %v2210_v24  ;;  %v2211_v27 = vadd.f32 1.0, %v4153_v28 }
 0x1fe   : > { %4156 = vrcp.f32 %v2211_v27 }
 0x209   : > { %v4155_v33 = vpop.eup %4154 }
 0x20a   : > { %v2228_v34 = vmul.f32 %v4170_v29, %v4155_v33  ;;  %v4030_v33 = vld [vmem:[%s5238_s5 + $0x8] sm:$0xf] }
 0x20b   : > { %v4157_v42 = vpop.eup %4156 }
 0x20c   : > { %v2241_v37 = vmul.f32 %v4768_v30, %v2228_v34  ;;  %v2229_v45 = vmul.f32 %v4171_v31, %v4157_v42 }
 0x20e   : > { %v2243_v38 = vpack.c.bf16 %v2241_v37, %v2241_v37 }
 0x210   : > { %v2249_v44 = vrot.slane %v2243_v38, 4 }
 0x212   : > { %v4774_v39 = vsel %vm325_vm0, %v4275_v3, %v2249_v44  ;;  %v2242_v3 = vmul.f32 %v4785_v52, %v2229_v45  ;;  %v4036_v44 = vld [vmem:[%s5238_s5 + $0x14] sm:$0xf]  ;;  %v3815_v45 = vld [vmem:[%s5239_s6] sm:$0xff] }
 0x213   : > { %2378 = vrot.lane.b32.xlu0 %v4774_v39, %s4185_s12  ;;  %2268 = vrot.lane.b32.xlu1 %v4774_v39, %s4182_s10 }
 0x214   : > { %v2244_v43 = vpack.c.bf16 %v2242_v3, %v2242_v3 }
 0x216   : > { %v2250_v35 = vrot.slane %v2244_v43, 4  ;;  %v4034_v43 = vld [vmem:[%s5238_s5 + $0x10] sm:$0xf] }
 0x217   : > { %2494 = vrot.lane.b32.xlu0 %v4774_v39, %s4187_s14  ;;  %2322 = vrot.lane.b32.xlu1 %v4774_v39, %s4184_s11 }
 0x218   : > { %v4806_v15 = vsel %vm325_vm0, %v4282_v12, %v2250_v35  ;;  %v4823_v12 = vsel %vm325_vm0, %v4364_v22, %v4664_v49  ;;  %v4869_v22 = vpop.permute.xlu0 %2266  ;;  %vm5283_vm0 = vcmask 7168  }
 0x21b   : > { %2610 = vrot.lane.b32.xlu0 %v4774_v39, %s4189_s16  ;;  %2436 = vrot.lane.b32.xlu1 %v4774_v39, %s4186_s13 }
 0x21c   : > { %v4879_v49 = vpop.permute.xlu0 %2376 }
 0x21f   : > { %2726 = vrot.lane.b32.xlu0 %v4774_v39, %s4191_s18  ;;  %2552 = vrot.lane.b32.xlu1 %v4774_v39, %s4188_s15 }
 0x220   : > { %v4885_v47 = vpop.permute.xlu0 %2492 }
 0x223   : > { %2842 = vrot.lane.b32.xlu0 %v4774_v39, %s4193_s20  ;;  %2668 = vrot.lane.b32.xlu1 %v4774_v39, %s4190_s17 }
 0x224   : > { %v4895_v48 = vpop.permute.xlu0 %2608 }
 0x227   : > { %2958 = vrot.lane.b32.xlu0 %v4774_v39, %s4195_s22  ;;  %2784 = vrot.lane.b32.xlu1 %v4774_v39, %s4192_s19 }
 0x228   : > { %v4903_v55 = vpop.permute.xlu0 %2724 }
 0x22b   : > { %2900 = vrot.lane.b32.xlu1 %v4774_v39, %s4194_s21  ;;  %2324 = vrot.lane.b32.xlu0 %v4806_v15, %s4184_s11  ;;  %s5274_s11 = smov 122  }
 0x22c   : > { %v4915_v13 = vpop.permute.xlu0 %2840 }
 0x22f   : > { %2956 = vrot.lane.b32.xlu0 %v4671_v53, %s4195_s22  ;;  %2270 = vrot.lane.b32.xlu1 %v4806_v15, %s4182_s10  ;;  %s5273_s10 = smov 123  }
 0x233   : > { %2438 = vrot.lane.b32.xlu0 %v4806_v15, %s4186_s13  ;;  %2898 = vrot.lane.b32.xlu1 %v4671_v53, %s4194_s21  ;;  %s5276_s13 = smov 99   ;;  %v2321_v53 = vpop.permute.xlu1 %2320 }
 0x237   : > { %3067 = vrot.lane.b32.xlu0 %v4823_v12, %s4196_s23  ;;  %2380 = vrot.lane.b32.xlu1 %v4806_v15, %s4185_s12  ;;  %s5275_s12 = smov 121   ;;  %v2435_v61 = vpop.permute.xlu1 %2434 }
 0x23b   : > { %2554 = vrot.lane.b32.xlu0 %v4806_v15, %s4188_s15  ;;  %3063 = vrot.lane.b32.xlu1 %v4774_v39, %s4196_s23  ;;  %s5278_s15 = smov 97   ;;  %v4897_v50 = vpop.permute.xlu1 %2550 }
 0x23f   : > { %3121 = vrot.lane.b32.xlu0 %v4774_v39, %s5273_s10  ;;  %2496 = vrot.lane.b32.xlu1 %v4806_v15, %s4187_s14  ;;  %s5277_s14 = smov 98   ;;  %v4905_v58 = vpop.permute.xlu1 %2666 }
 0x243   : > { %2670 = vrot.lane.b32.xlu0 %v4806_v15, %s4190_s17  ;;  %3125 = vrot.lane.b32.xlu1 %v4823_v12, %s5273_s10  ;;  %s5280_s17 = smov 87   ;;  %v4917_v17 = vpop.permute.xlu1 %2782 }
 0x247   : > { %3183 = vrot.lane.b32.xlu0 %v4823_v12, %s5274_s11  ;;  %2612 = vrot.lane.b32.xlu1 %v4806_v15, %s4189_s16  ;;  %s5279_s16 = smov 91  }
 0x24b   : > { %2786 = vrot.lane.b32.xlu0 %v4806_v15, %s4192_s19  ;;  %3179 = vrot.lane.b32.xlu1 %v4774_v39, %s5274_s11  ;;  %s5282_s19 = smov 85  }
 0x24f   : > { %3237 = vrot.lane.b32.xlu0 %v4774_v39, %s5275_s12  ;;  %2728 = vrot.lane.b32.xlu1 %v4806_v15, %s4191_s18  ;;  %s5281_s18 = smov 86  }
 0x253   : > { %2902 = vrot.lane.b32.xlu0 %v4806_v15, %s4194_s21  ;;  %3241 = vrot.lane.b32.xlu1 %v4823_v12, %s5275_s12 }
 0x257   : > { %3299 = vrot.lane.b32.xlu0 %v4823_v12, %s5276_s13  ;;  %2844 = vrot.lane.b32.xlu1 %v4806_v15, %s4193_s20  ;;  %s5212_s20 = scalar_lea.vmem %s5240_s7, %s4258_s26 }
 0x25b   : > { %3353 = vrot.lane.b32.xlu0 %v4774_v39, %s5277_s14  ;;  %3295 = vrot.lane.b32.xlu1 %v4774_v39, %s5276_s13 }
 0x25f   : > { %3415 = vrot.lane.b32.xlu0 %v4823_v12, %s5278_s15  ;;  %2960 = vrot.lane.b32.xlu1 %v4806_v15, %s4195_s22 }
 0x263   : > { %3123 = vrot.lane.b32.xlu0 %v4806_v15, %s5273_s10  ;;  %3357 = vrot.lane.b32.xlu1 %v4823_v12, %s5277_s14 }
 0x267   : > { %3469 = vrot.lane.b32.xlu0 %v4774_v39, %s4203_s29  ;;  %3065 = vrot.lane.b32.xlu1 %v4806_v15, %s4196_s23 }
 0x26b   : > { %3239 = vrot.lane.b32.xlu0 %v4806_v15, %s5275_s12  ;;  %3411 = vrot.lane.b32.xlu1 %v4774_v39, %s5278_s15 }
 0x26f   : > { %3531 = vrot.lane.b32.xlu0 %v4823_v12, %s4204_s25  ;;  %3181 = vrot.lane.b32.xlu1 %v4806_v15, %s5274_s11 }
 0x273   : > { %3355 = vrot.lane.b32.xlu0 %v4806_v15, %s5277_s14  ;;  %3473 = vrot.lane.b32.xlu1 %v4823_v12, %s4203_s29 }
 0x277   : > { %3585 = vrot.lane.b32.xlu0 %v4774_v39, %s5279_s16  ;;  %3297 = vrot.lane.b32.xlu1 %v4806_v15, %s5276_s13 }
 0x27b   : > { %3471 = vrot.lane.b32.xlu0 %v4806_v15, %s4203_s29  ;;  %3527 = vrot.lane.b32.xlu1 %v4774_v39, %s4204_s25 }
 0x27f   : > { %3647 = vrot.lane.b32.xlu0 %v4823_v12, %s5280_s17  ;;  %3413 = vrot.lane.b32.xlu1 %v4806_v15, %s5278_s15 }
 0x283   : > { %3587 = vrot.lane.b32.xlu0 %v4806_v15, %s5279_s16  ;;  %3589 = vrot.lane.b32.xlu1 %v4823_v12, %s5279_s16 }
 0x285   : > { %v2379_v56 = vpop.permute.xlu0 %2378  ;;  %v2269_v57 = vpop.permute.xlu1 %2268 }
 0x286   : > { %v2272_v11 = vsel %vm359_vm1, %v4869_v22, %v2269_v57  ;;  %v2382_v27 = vsel %vm487_vm4, %v4879_v49, %v2379_v56 }
 0x287   : > { %3701 = vrot.lane.b32.xlu0 %v4774_v39, %s5281_s18  ;;  %3529 = vrot.lane.b32.xlu1 %v4806_v15, %s4204_s25 }
 0x289   : > { %v4927_v2 = vpop.permute.xlu0 %2494  ;;  %v2323_v32 = vpop.permute.xlu1 %2322 }
 0x28a   : > { %v2326_v1 = vsel %vm422_vm2, %v2321_v53, %v2323_v32  ;;  %v2498_v3 = vsel %vm625_vm6, %v4885_v47, %v4927_v2  ;;  %v4040_v53 = vld [vmem:[%s5238_s5 + $0x1c] sm:$0xf] }
 0x28b   : > { %3703 = vrot.lane.b32.xlu0 %v4806_v15, %s5281_s18  ;;  %3643 = vrot.lane.b32.xlu1 %v4774_v39, %s5280_s17 }
 0x28d   : > { %v4933_v20 = vpop.permute.xlu0 %2610  ;;  %v2437_v46 = vpop.permute.xlu1 %2436 }
 0x28e   : > { %v2440_v25 = vsel %vm556_vm5, %v2435_v61, %v2437_v46 }
 0x28f   : > { %3763 = vrot.lane.b32.xlu0 %v4823_v12, %s5282_s19  ;;  %3645 = vrot.lane.b32.xlu1 %v4806_v15, %s5280_s17 }
 0x291   : > { %v4942_v59 = vpop.permute.xlu0 %2726  ;;  %v2553_v36 = vpop.permute.xlu1 %2552 }
 0x292   : > { %v2556_v38 = vsel %vm694_vm7, %v4897_v50, %v2553_v36 }
 0x293   : > { %2197 = vperm.xlu0 %4121, %v2189_v51   ;;  %3705 = vrot.lane.b32.xlu1 %v4823_v12, %s5281_s18 }
 0x295   : > { %v4946_v54 = vpop.permute.xlu0 %2842  ;;  %v4948_v62 = vpop.permute.xlu1 %2668 }
 0x296   : > { %v2672_v49 = vsel %vm832_vm9, %v4905_v58, %v4948_v62  ;;  %v2614_v58 = vsel %vm763_vm8, %v4895_v48, %v4933_v20 }
 0x297   : > { %3761 = vrot.lane.b32.xlu1 %v4806_v15, %s5282_s19 }
 0x299   : > { %v4952_v60 = vpop.permute.xlu0 %2958  ;;  %v4954_v0 = vpop.permute.xlu1 %2784 }
 0x29a   : > { %v2788_v48 = vsel %vm970_vm11, %v4917_v17, %v4954_v0  ;;  %v2730_v17 = vsel %vm901_vm10, %v4903_v55, %v4942_v59  ;;  %v4048_v55 = vld [vmem:[%s5238_s5 + $0x2c] sm:$0xf] }
 0x29b   : > { %3759 = vrot.lane.b32.xlu1 %v4774_v39, %s5282_s19 }
 0x29d   : > { %v2325_v40 = vpop.permute.xlu0 %2324  ;;  %v4958_v8 = vpop.permute.xlu1 %2900 }
 0x29e   : > { %v2327_v14 = vsel %vm422_vm2, %v2323_v32, %v2325_v40  ;;  %vm5285_vm2 = vcmask 1006592  }
 0x29f   : > { %2347 = vmatprep.subr.bf16.mxu0 %v2327_v14  ;;  %3818 = vperm.xlu1 %4122, %v3815_v45  }
 0x2a0   : > { %2348 = vmatpush1.bf16.msra.mxu0 %v2326_v1 }
 0x2a1   : > { %v4965_v7 = vpop.permute.xlu0 %2956  ;;  %v2271_v9 = vpop.permute.xlu1 %2270 }
 0x2a2   : > { %v2273_v6 = vsel %vm359_vm1, %v2269_v57, %v2271_v9  ;;  %vm5284_vm1 = vmmov %vm5283_vm0 }
 0x2a3   : > { %2293 = vmatprep.subr.bf16.mxu1 %v2273_v6  ;;  %4029 = vmatmul.mubr.msk.bf16.vlgmr.msra.gmra.mxu0 %vm364_vm3, %v2260_v5  ;;  %v4046_v6 = vld [vmem:[%s5238_s5 + $0x28] sm:$0xf] }
 0x2a4   : > { %2294 = vmatpush1.bf16.msra.mxu1 %v2272_v11  ;;  %2479 = vmatprep.mubr.bf16.mxu0 %v4183_v18 }
 0x2a5   : > { %v2439_v16 = vpop.permute.xlu0 %2438  ;;  %v4975_v19 = vpop.permute.xlu1 %2898 }
 0x2a6   : > { %v2441_v24 = vsel %vm556_vm5, %v2437_v46, %v2439_v16  ;;  %v2904_v1 = vsel %vm1108_vm13, %v4975_v19, %v4958_v8  ;;  %v2962_v16 = vsel %vm5284_vm1, %v4965_v7, %v4952_v60  ;;  %v4050_v19 = vld [vmem:[%s5238_s5 + $0x30] sm:$0xf]  ;;  %vm5287_vm5 = vcmask 1039360  }
 0x2a7   : > { %4028 = vmatmul.mubr.msk.bf16.vlgmr.msra.gmra.mxu1 %vm364_vm3, %v4027_v23  ;;  %2461 = vmatprep.subr.bf16.mxu0 %v2441_v24  ;;  %vm5297_vm1 = vcmask 760832  }
 0x2a8   : > { %2462 = vmatpush1.bf16.msra.mxu0 %v2440_v25  ;;  %2421 = vmatprep.mubr.bf16.mxu1 %v4183_v18 }
 0x2a9   : > { %v4984_v28 = vpop.permute.xlu0 %3067  ;;  %v2381_v26 = vpop.permute.xlu1 %2380 }
 0x2aa   : > { %v2383_v21 = vsel %vm487_vm4, %v2379_v56, %v2381_v26  ;;  %v4038_v56 = vld [vmem:[%s5238_s5 + $0x18] sm:$0xf]  ;;  %vm5286_vm4 = vmmov %vm5285_vm2 }
 0x2ab   : > { %2403 = vmatprep.subr.bf16.mxu1 %v2383_v21  ;;  %4033 = vmatmul.mubr.msk.bf16.vlgmr.msra.gmra.mxu0 %vm364_vm3, %v4032_v10 }
 0x2ac   : > { %2404 = vmatpush1.bf16.msra.mxu1 %v2382_v27  ;;  %2595 = vmatprep.mubr.bf16.mxu0 %v4183_v18 }
 0x2ad   : > { %v2555_v29 = vpop.permute.xlu0 %2554  ;;  %v4994_v34 = vpop.permute.xlu1 %3063 }
 0x2ae   : > { %v2557_v37 = vsel %vm694_vm7, %v2553_v36, %v2555_v29  ;;  %v4054_v29 = vld [vmem:[%s5238_s5 + $0x38] sm:$0xf]  ;;  %vm5289_vm7 = vcmask 990208  }
 0x2af   : > { %4031 = vmatmul.mubr.msk.bf16.vlgmr.msra.gmra.mxu1 %vm364_vm3, %v4030_v33  ;;  %2577 = vmatprep.subr.bf16.mxu0 %v2557_v37 }
 0x2b0   : > { %2578 = vmatpush1.bf16.msra.mxu0 %v2556_v38  ;;  %2537 = vmatprep.mubr.bf16.mxu1 %v4183_v18 }
 0x2b1   : > { %v5004_v41 = vpop.permute.xlu0 %3121  ;;  %v2497_v42 = vpop.permute.xlu1 %2496 }
 0x2b2   : > { %v2499_v31 = vsel %vm625_vm6, %v4927_v2, %v2497_v42  ;;  %vm5288_vm6 = vmmov %vm5287_vm5 }
 0x2b3   : > { %2519 = vmatprep.subr.bf16.mxu1 %v2499_v31  ;;  %4037 = vmatmul.mubr.msk.bf16.vlgmr.msra.gmra.mxu0 %vm364_vm3, %v4036_v44 }
 0x2b4   : > { %2520 = vmatpush1.bf16.msra.mxu1 %v2498_v3  ;;  %2711 = vmatprep.mubr.bf16.mxu0 %v4183_v18  ;;  %v4058_v3 = vld [vmem:[%s5238_s5 + $0x40] sm:$0xf] }
 0x2b5   : > { %v2671_v35 = vpop.permute.xlu0 %2670  ;;  %v5019_v12 = vpop.permute.xlu1 %3125 }
 0x2b6   : > { %v2673_v22 = vsel %vm832_vm9, %v4948_v62, %v2671_v35  ;;  %v4042_v62 = vld [vmem:[%s5238_s5 + $0x20] sm:$0xf]  ;;  %vm5291_vm9 = vcmask 998400  }
 0x2b7   : > { %4035 = vmatmul.mubr.msk.bf16.vlgmr.msra.gmra.mxu1 %vm364_vm3, %v4034_v43  ;;  %2693 = vmatprep.subr.bf16.mxu0 %v2673_v22 }
 0x2b8   : > { %2694 = vmatpush1.bf16.msra.mxu0 %v2672_v49  ;;  %2653 = vmatprep.mubr.bf16.mxu1 %v4183_v18  ;;  %v4064_v49 = vld [vmem:[%s5238_s5 + $0x4c] sm:$0xf] }
 0x2b9   : > { %v5031_v47 = vpop.permute.xlu0 %3183  ;;  %v2613_v61 = vpop.permute.xlu1 %2612 }
 0x2ba   : > { %v2615_v50 = vsel %vm763_vm8, %v4933_v20, %v2613_v61  ;;  %v4044_v20 = vld [vmem:[%s5238_s5 + $0x24] sm:$0xf]  ;;  %vm5290_vm8 = vmmov %vm5289_vm7 }
 0x2bb   : > { %2635 = vmatprep.subr.bf16.mxu1 %v2615_v50  ;;  %4041 = vmatmul.mubr.msk.bf16.vlgmr.msra.gmra.mxu0 %vm364_vm3, %v4040_v53 }
 0x2bc   : > { %2636 = vmatpush1.bf16.msra.mxu1 %v2614_v58  ;;  %2827 = vmatprep.mubr.bf16.mxu0 %v4183_v18  ;;  %v4062_v58 = vld [vmem:[%s5238_s5 + $0x48] sm:$0xf] }
 0x2bd   : > { %v2787_v57 = vpop.permute.xlu0 %2786  ;;  %v5043_v2 = vpop.permute.xlu1 %3179 }
 0x2be   : > { %v2789_v32 = vsel %vm970_vm11, %v4954_v0, %v2787_v57  ;;  %vm5293_vm11 = vcmask 801792  }
 0x2bf   : > { %4039 = vmatmul.mubr.msk.bf16.vlgmr.msra.gmra.mxu1 %vm364_vm3, %v4038_v56  ;;  %2809 = vmatprep.subr.bf16.mxu0 %v2789_v32 }
 0x2c0   : > { %2810 = vmatpush1.bf16.msra.mxu0 %v2788_v48  ;;  %2769 = vmatprep.mubr.bf16.mxu1 %v4183_v18  ;;  %v4068_v48 = vld [vmem:[%s5238_s5 + $0x54] sm:$0xf] }
 0x2c1   : > { %v5055_v46 = vpop.permute.xlu0 %3237  ;;  %v2729_v51 = vpop.permute.xlu1 %2728 }
 0x2c2   : > { %v2731_v36 = vsel %vm901_vm10, %v4942_v59, %v2729_v51  ;;  %vm5292_vm10 = vmmov %vm5291_vm9 }
 0x2c3   : > { %2751 = vmatprep.subr.bf16.mxu1 %v2731_v36  ;;  %4045 = vmatmul.mubr.msk.bf16.vlgmr.msra.gmra.mxu0 %vm364_vm3, %v4044_v20 }
 0x2c4   : > { %2752 = vmatpush1.bf16.msra.mxu1 %v2730_v17  ;;  %2943 = vmatprep.mubr.bf16.mxu0 %v4183_v18  ;;  %v4066_v17 = vld [vmem:[%s5238_s5 + $0x50] sm:$0xf] }
 0x2c5   : > { %v2903_v0 = vpop.permute.xlu0 %2902  ;;  %v3242_v40 = vpop.permute.xlu1 %3241 }
 0x2c6   : > { %v2905_v14 = vsel %vm1108_vm13, %v4958_v8, %v2903_v0  ;;  %v2846_v8 = vsel %vm1039_vm12, %v4915_v13, %v4946_v54  ;;  %v4052_v13 = vld [vmem:[%s5238_s5 + $0x34] sm:$0xf]  ;;  %vm5295_vm13 = vcmask 809984  }
 0x2c7   : > { %4043 = vmatmul.mubr.msk.bf16.vlgmr.msra.gmra.mxu1 %vm364_vm3, %v4042_v62  ;;  %2925 = vmatprep.subr.bf16.mxu0 %v2905_v14 }
 0x2c8   : > { %2926 = vmatpush1.bf16.msra.mxu0 %v2904_v1  ;;  %2885 = vmatprep.mubr.bf16.mxu1 %v4183_v18  ;;  %v4072_v1 = vld [vmem:[%s5238_s5 + $0x5c] sm:$0xf] }
 0x2c9   : > { %v5077_v59 = vpop.permute.xlu0 %3299  ;;  %3031 = vmatprep.subr.bf16.mxu0 %v4806_v15  ;;  %v2845_v5 = vpop.permute.xlu1 %2844 }
 0x2ca   : > { %v2847_v9 = vsel %vm1039_vm12, %v4946_v54, %v2845_v5  ;;  %vm5294_vm12 = vmmov %vm5293_vm11 }
 0x2cb   : > { %2867 = vmatprep.subr.bf16.mxu1 %v2847_v9  ;;  %4049 = vmatmul.mubr.msk.bf16.vlgmr.msra.gmra.mxu0 %vm364_vm3, %v4048_v55  ;;  %v4070_v9 = vld [vmem:[%s5238_s5 + $0x58] sm:$0xf] }
 0x2cc   : > { %2868 = vmatpush1.bf16.msra.mxu1 %v2846_v8  ;;  %3032 = vmatpush1.bf16.msra.mxu0 %v4774_v39 }
 0x2cd   : > { %v3354_v11 = vpop.permute.xlu0 %3353  ;;  %v3296_v15 = vpop.permute.xlu1 %3295  ;;  %3049 = vmatprep.mubr.bf16.mxu0 %v4183_v18 }
 0x2cf   : > { %4047 = vmatmul.mubr.msk.bf16.vlgmr.msra.gmra.mxu1 %vm364_vm3, %v4046_v6 }
 0x2d0   : > { %3001 = vmatprep.mubr.bf16.mxu1 %v4183_v18 }
 0x2d1   : > { %v5096_v54 = vpop.permute.xlu0 %3415  ;;  %v2961_v23 = vpop.permute.xlu1 %2960 }
 0x2d2   : > { %v2963_v39 = vsel %vm5283_vm0, %v4952_v60, %v2961_v23  ;;  %v4056_v60 = vld [vmem:[%s5238_s5 + $0x3c] sm:$0xf]  ;;  %vm5296_vm0 = vmmov %vm5295_vm13  ;;  %v4074_v23 = vld [vmem:[%s5238_s5 + $0x60] sm:$0xf] }
 0x2d3   : > { %2983 = vmatprep.subr.bf16.mxu1 %v2963_v39  ;;  %4053 = vmatmul.mubr.msk.bf16.vlgmr.msra.gmra.mxu0 %vm364_vm3, %v4052_v13 }
 0x2d4   : > { %2984 = vmatpush1.bf16.msra.mxu1 %v2962_v16  ;;  %3166 = vmatprep.mubr.bf16.mxu0 %v4183_v18 }
 0x2d5   : > { %v3124_v24 = vpop.permute.xlu0 %3123  ;;  %v3358_v25 = vpop.permute.xlu1 %3357 }
 0x2d6   : > { %v3127_v10 = vsel %vm5285_vm2, %v5004_v41, %v3124_v24  ;;  %v3128_v26 = vsel %vm5286_vm4, %v3124_v24, %v5019_v12  ;;  %vm5298_vm2 = vmmov %vm5297_vm1  ;;  %vm5299_vm4 = vcmask 793600  }
 0x2d7   : > { %4051 = vmatmul.mubr.msk.bf16.vlgmr.msra.gmra.mxu1 %vm364_vm3, %v4050_v19  ;;  %3148 = vmatprep.subr.bf16.mxu0 %v3128_v26 }
 0x2d8   : > { %3149 = vmatpush1.bf16.msra.mxu0 %v3127_v10  ;;  %3108 = vmatprep.mubr.bf16.mxu1 %v4183_v18 }
 0x2d9   : > { %v3470_v7 = vpop.permute.xlu0 %3469  ;;  %v3066_v21 = vpop.permute.xlu1 %3065 }
 0x2da   : > { %v3069_v27 = vsel %vm5287_vm5, %v4994_v34, %v3066_v21  ;;  %v3070_v33 = vsel %vm5288_vm6, %v3066_v21, %v4984_v28  ;;  %v4060_v28 = vld [vmem:[%s5238_s5 + $0x44] sm:$0xf]  ;;  %vm5300_vm5 = vmmov %vm5299_vm4  ;;  %vm5301_vm6 = vcmask 744448   ;;  %v4078_v21 = vld [vmem:[%s5238_s5 + $0x68] sm:$0xf] }
 0x2db   : > { %3090 = vmatprep.subr.bf16.mxu1 %v3070_v33  ;;  %4057 = vmatmul.mubr.msk.bf16.vlgmr.msra.gmra.mxu0 %vm364_vm3, %v4056_v60 }
 0x2dc   : > { %3091 = vmatpush1.bf16.msra.mxu1 %v3069_v27  ;;  %3282 = vmatprep.mubr.bf16.mxu0 %v4183_v18  ;;  %v5216_v27 = vpop.f32.mrf.mxu0 }
 0x2dd   : > { %v3240_v37 = vpop.permute.xlu0 %3239  ;;  %v3412_v38 = vpop.permute.xlu1 %3411 }
 0x2de   : > { %v3243_v44 = vsel %vm5289_vm7, %v5055_v46, %v3240_v37  ;;  %v3244_v34 = vsel %vm5290_vm8, %v3240_v37, %v3242_v40  ;;  %vm5302_vm7 = vmmov %vm5301_vm6  ;;  %vm5303_vm8 = vcmask 752640  }
 0x2df   : > { %4055 = vmatmul.mubr.msk.bf16.vlgmr.msra.gmra.mxu1 %vm364_vm3, %v4054_v29  ;;  %3264 = vmatprep.subr.bf16.mxu0 %v3244_v34  ;;  %v5218_v29 = vpop.f32.mrf.mxu1 }
 0x2e0   : > { %3265 = vmatpush1.bf16.msra.mxu0 %v3243_v44  ;;  %3224 = vmatprep.mubr.bf16.mxu1 %v4183_v18 }
 0x2e1   : > { %v3532_v41 = vpop.permute.xlu0 %3531  ;;  %v3182_v42 = vpop.permute.xlu1 %3181 }
 0x2e2   : > { %v3185_v31 = vsel %vm5291_vm9, %v5043_v2, %v3182_v42  ;;  %v3186_v45 = vsel %vm5292_vm10, %v3182_v42, %v5031_v47  ;;  %vm5304_vm9 = vmmov %vm5303_vm8  ;;  %vm5305_vm10 = vcmask 711680  }
 0x2e3   : > { %3206 = vmatprep.subr.bf16.mxu1 %v3186_v45  ;;  %4061 = vmatmul.mubr.msk.bf16.vlgmr.msra.gmra.mxu0 %vm364_vm3, %v4060_v28 }
 0x2e4   : > { %3207 = vmatpush1.bf16.msra.mxu1 %v3185_v31  ;;  %3398 = vmatprep.mubr.bf16.mxu0 %v4183_v18 }
 0x2e5   : > { %v3356_v43 = vpop.permute.xlu0 %3355  ;;  %v3474_v35 = vpop.permute.xlu1 %3473 }
 0x2e6   : > { %v3359_v12 = vsel %vm5293_vm11, %v3354_v11, %v3356_v43  ;;  %v3360_v22 = vsel %vm5294_vm12, %v3356_v43, %v3358_v25  ;;  %vm5306_vm11 = vmmov %vm5305_vm10  ;;  %v4076_v25 = vld [vmem:[%s5238_s5 + $0x64] sm:$0xf] }
 0x2e7   : > { %4059 = vmatmul.mubr.msk.bf16.vlgmr.msra.gmra.mxu1 %vm364_vm3, %v4058_v3  ;;  %3380 = vmatprep.subr.bf16.mxu0 %v3360_v22 }
 0x2e8   : > { %3381 = vmatpush1.bf16.msra.mxu0 %v3359_v12  ;;  %3340 = vmatprep.mubr.bf16.mxu1 %v4183_v18 }
 0x2e9   : > { %v3586_v53 = vpop.permute.xlu0 %3585  ;;  %v3298_v47 = vpop.permute.xlu1 %3297 }
 0x2ea   : > { %v3301_v61 = vsel %vm5295_vm13, %v3296_v15, %v3298_v47  ;;  %v3302_v50 = vsel %vm5296_vm0, %v3298_v47, %v5077_v59 }
 0x2eb   : > { %3322 = vmatprep.subr.bf16.mxu1 %v3302_v50  ;;  %4065 = vmatmul.mubr.msk.bf16.vlgmr.msra.gmra.mxu0 %vm364_vm3, %v4064_v49 }
 0x2ec   : > { %3323 = vmatpush1.bf16.msra.mxu1 %v3301_v61  ;;  %3514 = vmatprep.mubr.bf16.mxu0 %v4183_v18 }
 0x2ed   : > { %v3472_v56 = vpop.permute.xlu0 %3471  ;;  %v3528_v57 = vpop.permute.xlu1 %3527 }
 0x2ee   : > { %v3475_v2 = vsel %vm5297_vm1, %v3470_v7, %v3472_v56  ;;  %v3476_v32 = vsel %vm5298_vm2, %v3472_v56, %v3474_v35 }
 0x2ef   : > { %4063 = vmatmul.mubr.msk.bf16.vlgmr.msra.gmra.mxu1 %vm364_vm3, %v4062_v58  ;;  %3496 = vmatprep.subr.bf16.mxu0 %v3476_v32 }
 0x2f0   : > { %3497 = vmatpush1.bf16.msra.mxu0 %v3475_v2  ;;  %3456 = vmatprep.mubr.bf16.mxu1 %v4183_v18 }
 0x2f1   : > { %v3648_v20 = vpop.permute.xlu0 %3647  ;;  %v3414_v46 = vpop.permute.xlu1 %3413 }
 0x2f2   : > { %v3417_v51 = vsel %vm5299_vm4, %v3412_v38, %v3414_v46  ;;  %v3418_v36 = vsel %vm5300_vm5, %v3414_v46, %v5096_v54 }
 0x2f3   : > { %3438 = vmatprep.subr.bf16.mxu1 %v3418_v36  ;;  %4069 = vmatmul.mubr.msk.bf16.vlgmr.msra.gmra.mxu0 %vm364_vm3, %v4068_v48 }
 0x2f4   : > { %3439 = vmatpush1.bf16.msra.mxu1 %v3417_v51  ;;  %3630 = vmatprep.mubr.bf16.mxu0 %v4183_v18 }
 0x2f5   : > { %v3588_v62 = vpop.permute.xlu0 %3587  ;;  %v3590_v0 = vpop.permute.xlu1 %3589 }
 0x2f6   : > { %v3591_v40 = vsel %vm5301_vm6, %v3586_v53, %v3588_v62  ;;  %v3592_v14 = vsel %vm5302_vm7, %v3588_v62, %v3590_v0 }
 0x2f7   : > { %4067 = vmatmul.mubr.msk.bf16.vlgmr.msra.gmra.mxu1 %vm364_vm3, %v4066_v17  ;;  %3612 = vmatprep.subr.bf16.mxu0 %v3592_v14 }
 0x2f8   : > { %3613 = vmatpush1.bf16.msra.mxu0 %v3591_v40  ;;  %3572 = vmatprep.mubr.bf16.mxu1 %v4183_v18 }
 0x2f9   : > { %v3530_v55 = vpop.permute.xlu1 %3529  ;;  %v3702_v8 = vpop.permute.xlu0 %3701 }
 0x2fa   : > { %v3533_v59 = vsel %vm5303_vm8, %v3528_v57, %v3530_v55  ;;  %v3534_v5 = vsel %vm5304_vm9, %v3530_v55, %v3532_v41 }
 0x2fb   : > { %3554 = vmatprep.subr.bf16.mxu1 %v3534_v5  ;;  %4073 = vmatmul.mubr.msk.bf16.vlgmr.msra.gmra.mxu0 %vm364_vm3, %v4072_v1 }
 0x2fc   : > { %3555 = vmatpush1.bf16.msra.mxu1 %v3533_v59  ;;  %3746 = vmatprep.mubr.bf16.mxu0 %v4183_v18 }
 0x2fd   : > { %v3644_v6 = vpop.permute.xlu1 %3643  ;;  %v3704_v54 = vpop.permute.xlu0 %3703 }
 0x2fe   : > { %v3707_v19 = vsel %vm2064_vm14, %v3702_v8, %v3704_v54 }
 0x2ff   : > { %4071 = vmatmul.mubr.msk.bf16.vlgmr.msra.gmra.mxu1 %vm364_vm3, %v4070_v9 }
 0x300   : > { %3688 = vmatprep.mubr.bf16.mxu1 %v4183_v18 }
 0x301   : > { %v3646_v11 = vpop.permute.xlu1 %3645  ;;  %v3764_v24 = vpop.permute.xlu0 %3763 }
 0x302   : > { %v3649_v15 = vsel %vm5305_vm10, %v3644_v6, %v3646_v11  ;;  %v3650_v13 = vsel %vm5306_vm11, %v3646_v11, %v3648_v20 }
 0x303   : > { %3670 = vmatprep.subr.bf16.mxu1 %v3650_v13 }
 0x304   : > { %3671 = vmatpush1.bf16.msra.mxu1 %v3649_v15 }
 0x305   : > { %v3706_v39 = vpop.permute.xlu1 %3705 }
 0x306   : > { %v3708_v16 = vsel %vm2064_vm14, %v3704_v54, %v3706_v39 }
 0x307   : > { %4075 = vmatmul.mubr.msk.bf16.vlgmr.msra.gmra.mxu1 %vm364_vm3, %v4074_v23  ;;  %3728 = vmatprep.subr.bf16.mxu0 %v3708_v16 }
 0x308   : > { %3729 = vmatpush1.bf16.msra.mxu0 %v3707_v19  ;;  %3804 = vmatprep.mubr.bf16.mxu1 %v4183_v18  ;;  %v4209_v18 = vmov 0.0  }
 0x309   : > { %v3762_v10 = vpop.permute.xlu1 %3761  ;;  %3835 = vst [vmem:[%s5212_s20] sm:$0xff] %v4209_v18  ;;  %3838 = vst [vmem:[%s5212_s20 + $0x18] sm:$0xff] %v4209_v18 }
 0x30a   : > { %v3766_v26 = vsel %vm2133_vm15, %v3762_v10, %v3764_v24 }
 0x30b   : > { %4077 = vmatmul.mubr.msk.bf16.vlgmr.msra.gmra.mxu0 %vm364_vm3, %v4076_v25  ;;  %3786 = vmatprep.subr.bf16.mxu1 %v3766_v26 }
 0x30d   : > { %v3760_v60 = vpop.permute.xlu1 %3759 }
 0x30e   : > { %v3765_v7 = vsel %vm2133_vm15, %v3760_v60, %v3762_v10 }
 0x30f   : > { %3787 = vmatpush1.bf16.msra.mxu1 %v3765_v7 }
 0x312   : > { %4079 = vmatmul.mubr.msk.bf16.vlgmr.msra.gmra.mxu1 %vm364_vm3, %v4078_v21 }
 0x363   : > { %v2367_v33 = vpop.f32.mrf.mxu0 }
 0x365   : > { %v2369_v37 = vpop.f32.mrf.mxu0 }
 0x367   : > { %v2313_v38 = vpop.f32.mrf.mxu1  ;;  %v2371_v44 = vpop.f32.mrf.mxu0 }
 0x368   : > { %v2368_v5 = vadd.f32 %v2367_v33, %v2313_v38 }
 0x369   : > { %v2315_v34 = vpop.f32.mrf.mxu1  ;;  %v2372_v28 = vpop.f32.mrf.mxu0 }
 0x36a   : > { %v2370_v6 = vadd.f32 %v2369_v37, %v2315_v34 }
 0x36b   : > { %v2317_v41 = vpop.f32.mrf.mxu1  ;;  %v2481_v42 = vpop.f32.mrf.mxu0 }
 0x36d   : > { %v2318_v31 = vpop.f32.mrf.mxu1  ;;  %v2483_v45 = vpop.f32.mrf.mxu0 }
 0x36f   : > { %v2423_v3 = vpop.f32.mrf.mxu1  ;;  %v2485_v43 = vpop.f32.mrf.mxu0 }
 0x370   : > { %v2430_v11 = vadd.f32 %v2423_v3, %v2368_v5 }
 0x371   : > { %v2425_v35 = vpop.f32.mrf.mxu1  ;;  %v2486_v12 = vpop.f32.mrf.mxu0 }
 0x372   : > { %v2431_v54 = vadd.f32 %v2425_v35, %v2370_v6  ;;  %v2488_v16 = vadd.f32 %v2481_v42, %v2430_v11 }
 0x373   : > { %v2427_v22 = vpop.f32.mrf.mxu1  ;;  %v2597_v49 = vpop.f32.mrf.mxu0 }
 0x374   : > { %v2489_v25 = vadd.f32 %v2483_v45, %v2431_v54 }
 0x375   : > { %v2428_v53 = vpop.f32.mrf.mxu1  ;;  %v2599_v47 = vpop.f32.mrf.mxu0 }
 0x377   : > { %v2539_v61 = vpop.f32.mrf.mxu1  ;;  %v2601_v50 = vpop.f32.mrf.mxu0 }
 0x378   : > { %v2546_v10 = vadd.f32 %v2539_v61, %v2488_v16 }
 0x379   : > { %v2541_v58 = vpop.f32.mrf.mxu1  ;;  %v2602_v56 = vpop.f32.mrf.mxu0 }
 0x37a   : > { %v2547_v7 = vadd.f32 %v2541_v58, %v2489_v25  ;;  %v2604_v33 = vadd.f32 %v2597_v49, %v2546_v10 }
 0x37b   : > { %v2543_v57 = vpop.f32.mrf.mxu1  ;;  %v2713_v2 = vpop.f32.mrf.mxu0 }
 0x37c   : > { %v2605_v37 = vadd.f32 %v2599_v47, %v2547_v7 }
 0x37d   : > { %v2544_v32 = vpop.f32.mrf.mxu1  ;;  %v2715_v48 = vpop.f32.mrf.mxu0 }
 0x37f   : > { %v2655_v20 = vpop.f32.mrf.mxu1  ;;  %v2717_v46 = vpop.f32.mrf.mxu0 }
 0x380   : > { %v2662_v34 = vadd.f32 %v2655_v20, %v2604_v33 }
 0x381   : > { %v2657_v51 = vpop.f32.mrf.mxu1  ;;  %v2718_v36 = vpop.f32.mrf.mxu0 }
 0x382   : > { %v2663_v31 = vadd.f32 %v2657_v51, %v2605_v37  ;;  %v2720_v42 = vadd.f32 %v2713_v2, %v2662_v34 }
 0x383   : > { %v2659_v17 = vpop.f32.mrf.mxu1  ;;  %v2829_v62 = vpop.f32.mrf.mxu0 }
 0x384   : > { %v2721_v45 = vadd.f32 %v2715_v48, %v2663_v31 }
 0x385   : > { %v2660_v0 = vpop.f32.mrf.mxu1  ;;  %v2831_v40 = vpop.f32.mrf.mxu0 }
 0x387   : > { %v2771_v14 = vpop.f32.mrf.mxu1  ;;  %v2833_v1 = vpop.f32.mrf.mxu0 }
 0x388   : > { %v2778_v22 = vadd.f32 %v2771_v14, %v2720_v42 }
 0x389   : > { %v2773_v55 = vpop.f32.mrf.mxu1  ;;  %v2834_v59 = vpop.f32.mrf.mxu0 }
 0x38a   : > { %v2779_v50 = vadd.f32 %v2773_v55, %v2721_v45  ;;  %v2836_v49 = vadd.f32 %v2829_v62, %v2778_v22 }
 0x38b   : > { %v2775_v9 = vpop.f32.mrf.mxu1  ;;  %v2945_v8 = vpop.f32.mrf.mxu0 }
 0x38c   : > { %v2837_v47 = vadd.f32 %v2831_v40, %v2779_v50 }
 0x38d   : > { %v2776_v15 = vpop.f32.mrf.mxu1  ;;  %v2947_v13 = vpop.f32.mrf.mxu0 }
 0x38f   : > { %v2887_v23 = vpop.f32.mrf.mxu1  ;;  %v2949_v39 = vpop.f32.mrf.mxu0 }
 0x390   : > { %v2894_v20 = vadd.f32 %v2887_v23, %v2836_v49 }
 0x391   : > { %v2889_v19 = vpop.f32.mrf.mxu1  ;;  %v2950_v24 = vpop.f32.mrf.mxu0 }
 0x392   : > { %v2895_v51 = vadd.f32 %v2889_v19, %v2837_v47  ;;  %v2952_v2 = vadd.f32 %v2945_v8, %v2894_v20  ;;  %v2198_v19 = vpop.permute.xlu0 %2197  ;;  %v2118_v8 = vadd.f32 %v5218_v29, %v4761_v4 }
 0x393   : > { %v2891_v26 = vpop.f32.mrf.mxu1  ;;  %v3051_v60 = vpop.f32.mrf.mxu0 }
 0x394   : > { %v2953_v48 = vadd.f32 %v2947_v13, %v2895_v51  ;;  %v2187_v10 = vadd.f32 %v5216_v27, %v2118_v8  ;;  %v2202_v26 = vadd.f32 %v2198_v19, %v4763_v63 }
 0x395   : > { %v2892_v21 = vpop.f32.mrf.mxu1  ;;  %v3053_v18 = vpop.f32.mrf.mxu0 }
 0x396   : > { %v2203_v33 = vadd.f32 %v2198_v19, %v2187_v10  ;;  %v4025_v34 = vmul.f32 -1.442695, %v2202_v26 }
 0x397   : > { %v3003_v38 = vpop.f32.mrf.mxu1  ;;  %v3055_v44 = vpop.f32.mrf.mxu0 }
 0x398   : > { %v3010_v14 = vadd.f32 %v3003_v38, %v2952_v2  ;;  %v4026_v4 = vmul.f32 -1.442695, %v2203_v33  ;;  %4158 = vpow2.f32 %v4025_v34 }
 0x399   : > { %v3005_v28 = vpop.f32.mrf.mxu1  ;;  %v3056_v41 = vpop.f32.mrf.mxu0 }
 0x39a   : > { %v3011_v55 = vadd.f32 %v3005_v28, %v2953_v48  ;;  %v3058_v62 = vadd.f32 %v3051_v60, %v3010_v14  ;;  %4160 = vpow2.f32 %v4026_v4 }
 0x39b   : > { %v3007_v3 = vpop.f32.mrf.mxu1  ;;  %v3168_v43 = vpop.f32.mrf.mxu0 }
 0x39c   : > { %v3059_v40 = vadd.f32 %v3053_v18, %v3011_v55 }
 0x39d   : > { %v3008_v35 = vpop.f32.mrf.mxu1  ;;  %v3170_v12 = vpop.f32.mrf.mxu0 }
 0x39f   : > { %v3110_v53 = vpop.f32.mrf.mxu1  ;;  %v3172_v61 = vpop.f32.mrf.mxu0 }
 0x3a0   : > { %v3117_v23 = vadd.f32 %v3110_v53, %v3058_v62 }
 0x3a1   : > { %v3112_v58 = vpop.f32.mrf.mxu1  ;;  %v3173_v56 = vpop.f32.mrf.mxu0 }
 0x3a2   : > { %v3118_v24 = vadd.f32 %v3112_v58, %v3059_v40  ;;  %v3175_v7 = vadd.f32 %v3168_v43, %v3117_v23 }
 0x3a3   : > { %v3114_v57 = vpop.f32.mrf.mxu1  ;;  %v3284_v32 = vpop.f32.mrf.mxu0 }
 0x3a4   : > { %v3176_v38 = vadd.f32 %v3170_v12, %v3118_v24 }
 0x3a5   : > { %v3115_v46 = vpop.f32.mrf.mxu1  ;;  %v3286_v36 = vpop.f32.mrf.mxu0 }
 0x3a7   : > { %v3226_v17 = vpop.f32.mrf.mxu1  ;;  %v3288_v0 = vpop.f32.mrf.mxu0 }
 0x3a8   : > { %v3233_v18 = vadd.f32 %v3226_v17, %v3175_v7  ;;  %v4159_v17 = vpop.eup %4158 }
 0x3a9   : > { %v3228_v1 = vpop.f32.mrf.mxu1  ;;  %v3289_v59 = vpop.f32.mrf.mxu0  ;;  %v2222_v48 = vadd.f32 1.0, %v4159_v17 }
 0x3aa   : > { %v3234_v28 = vadd.f32 %v3228_v1, %v3176_v38  ;;  %v3291_v29 = vadd.f32 %v3284_v32, %v3233_v18  ;;  %v4161_v59 = vpop.eup %4160  ;;  %v4172_v18 = vld [vmem:[%s4270_s9 + $0x8] sm:$0xff] }
 0x3ab   : > { %v3230_v5 = vpop.f32.mrf.mxu1  ;;  %v3400_v9 = vpop.f32.mrf.mxu0  ;;  %v2223_v55 = vadd.f32 1.0, %v4161_v59  ;;  %4162 = vrcp.f32 %v2222_v48 }
 0x3ac   : > { %v3292_v27 = vadd.f32 %v3286_v36, %v3234_v28  ;;  %v4173_v28 = vld [vmem:[%s4270_s9 + $0x10] sm:$0xff] }
 0x3ad   : > { %v3231_v6 = vpop.f32.mrf.mxu1  ;;  %v3402_v11 = vpop.f32.mrf.mxu0  ;;  %4164 = vrcp.f32 %v2223_v55 }
 0x3af   : > { %v3342_v15 = vpop.f32.mrf.mxu1  ;;  %v3404_v54 = vpop.f32.mrf.mxu0 }
 0x3b0   : > { %v3349_v35 = vadd.f32 %v3342_v15, %v3291_v29 }
 0x3b1   : > { %v3344_v39 = vpop.f32.mrf.mxu1  ;;  %v3405_v16 = vpop.f32.mrf.mxu0 }
 0x3b2   : > { %v3350_v45 = vadd.f32 %v3344_v39, %v3292_v27  ;;  %v3407_v53 = vadd.f32 %v3400_v9, %v3349_v35  ;;  %v3819_v39 = vpop.permute.xlu1 %3818 }
 0x3b3   : > { %v3346_v25 = vpop.f32.mrf.mxu1  ;;  %v3516_v13 = vpop.f32.mrf.mxu0 }
 0x3b4   : > { %v3408_v58 = vadd.f32 %v3402_v11, %v3350_v45 }
 0x3b5   : > { %v3347_v21 = vpop.f32.mrf.mxu1  ;;  %v3518_v60 = vpop.f32.mrf.mxu0 }
 0x3b7   : > { %v3458_v44 = vpop.f32.mrf.mxu1  ;;  %v3520_v37 = vpop.f32.mrf.mxu0 }
 0x3b8   : > { %v3465_v56 = vadd.f32 %v3458_v44, %v3407_v53  ;;  %v4163_v7 = vpop.eup %4162 }
 0x3b9   : > { %v3460_v41 = vpop.f32.mrf.mxu1  ;;  %v3521_v31 = vpop.f32.mrf.mxu0 }
 0x3ba   : > { %v3466_v57 = vadd.f32 %v3460_v41, %v3408_v58  ;;  %v3523_v32 = vadd.f32 %v3516_v13, %v3465_v56  ;;  %v4165_v21 = vpop.eup %4164 }
 0x3bb   : > { %v3462_v3 = vpop.f32.mrf.mxu1  ;;  %v3632_v42 = vpop.f32.mrf.mxu0  ;;  %v3824_v33 = vsub.f32 1.0, %v4165_v21 }
 0x3bc   : > { %v3524_v46 = vadd.f32 %v3518_v60, %v3466_v57  ;;  %v3823_v60 = vsub.f32 1.0, %v4163_v7 }
 0x3bd   : > { %v3463_v63 = vpop.f32.mrf.mxu1  ;;  %v3634_v43 = vpop.f32.mrf.mxu0  ;;  %v3826_v41 = vmul.f32 %v4173_v28, %v3824_v33 }
 0x3be   : > { %v3825_v44 = vmul.f32 %v4172_v18, %v3823_v60 }
 0x3bf   : > { %v3574_v22 = vpop.f32.mrf.mxu1  ;;  %v3636_v12 = vpop.f32.mrf.mxu0 }
 0x3c0   : > { %v3581_v51 = vadd.f32 %v3574_v22, %v3523_v32 }
 0x3c1   : > { %v3576_v61 = vpop.f32.mrf.mxu1  ;;  %v3637_v50 = vpop.f32.mrf.mxu0 }
 0x3c2   : > { %v3582_v0 = vadd.f32 %v3576_v61, %v3524_v46  ;;  %v3639_v14 = vadd.f32 %v3632_v42, %v3581_v51 }
 0x3c3   : > { %v3578_v49 = vpop.f32.mrf.mxu1 }
 0x3c4   : > { %v3640_v6 = vadd.f32 %v3634_v43, %v3582_v0 }
 0x3c5   : > { %v3579_v47 = vpop.f32.mrf.mxu1 }
 0x3c7   : > { %v3690_v20 = vpop.f32.mrf.mxu1 }
 0x3c8   : > { %v3697_v11 = vadd.f32 %v3690_v20, %v3639_v14 }
 0x3c9   : > { %v3692_v36 = vpop.f32.mrf.mxu1 }
 0x3ca   : > { %v3698_v15 = vadd.f32 %v3692_v36, %v3640_v6 }
 0x3cb   : > { %v3748_v2 = vpop.f32.mrf.mxu0  ;;  %v3694_v1 = vpop.f32.mrf.mxu1 }
 0x3cc   : > { %v3755_v54 = vadd.f32 %v3748_v2, %v3697_v11 }
 0x3cd   : > { %v3750_v5 = vpop.f32.mrf.mxu0  ;;  %v3695_v9 = vpop.f32.mrf.mxu1 }
 0x3ce   : > { %v3756_v16 = vadd.f32 %v3750_v5, %v3698_v15 }
 0x3cf   : > { %v3752_v62 = vpop.f32.mrf.mxu0 }
 0x3d1   : > { %v3753_v40 = vpop.f32.mrf.mxu0 }
 0x3d2   : > { %v3806_v23 = vpop.f32.mrf.mxu1 }
 0x3d3   : > { %v3813_v19 = vadd.f32 %v3806_v23, %v3755_v54 }
 0x3d4   : > { %v3808_v8 = vpop.f32.mrf.mxu1 }
 0x3d5   : > { %v3814_v24 = vadd.f32 %v3808_v8, %v3756_v16  ;;  %v3821_v25 = vadd.f32 %v3819_v39, %v3813_v19 }
 0x3d6   : > { %v3810_v13 = vpop.f32.mrf.mxu1 }
 0x3d7   : > { %v3822_v10 = vadd.f32 %v3819_v39, %v3814_v24  ;;  %4166 = vtanh.f32 %v3821_v25 }
 0x3d8   : > { %v3811_v26 = vpop.f32.mrf.mxu1 }
 0x3d9   : > { %4168 = vtanh.f32 %v3822_v10 }
 0x3e4   : > { %v4167_v38 = vpop.eup %4166 }
 0x3e5   : > { %v3829_v37 = vmul.f32 %v4167_v38, %v4163_v7 }
 0x3e6   : > { %v4169_v34 = vpop.eup %4168 }
 0x3e7   : > { %v3830_v31 = vmul.f32 %v4169_v34, %v4165_v21  ;;  %v3831_v4 = vadd.f32 %v3829_v37, %v3825_v44 }
 0x3e9   : > { %v3832_v29 = vadd.f32 %v3830_v31, %v3826_v41  ;;  %v3833_v3 = vmul.f32 %v3831_v4, %v4768_v30 }
 0x3eb   : > { %v3834_v42 = vmul.f32 %v3832_v29, %v4785_v52  ;;  %3836 = vst [vmem:[%s5212_s20 + $0x8] sm:$0xff] %v3833_v3 }
 0x3ed   : > { %3837 = vst [vmem:[%s5212_s20 + $0x10] sm:$0xff] %v3834_v42 }
 0x3ee PF: > { %s17_s24 = sadd.s32 1, %s4180_s24  }
 0x3ef   : > { %p14_p4 = scmp.ge.s32.totalorder %s17_s24, 4  }
 0x3f1   :  { %16 = sbr.rel (!%p14_p4) target bundleno = 1 (0x1), region = 133 }

// kernel: crnet_forward.9
= control target key start
LH: loop header
LB: loop body
LE: loop exit
PB: predicated region body
PF: predicated region fallthrough
CT: control target
= control target key end

     0   :  { %s2323_s15 = smov 0   ;;  %s2325_s16 = smov 0   ;;  %s2648_s0 = inlined_call_operand.vmem [shape: f32[4,8,512], index: 0, kind: input, shape index: {}, may-alias: {0,1}]   ;;  %s2649_s1 = inlined_call_operand.vmem [shape: f32[4,8,512], index: 1, kind: input, shape index: {}, may-alias: {0,1}]   ;;  %s2650_s2 = inlined_call_operand.vmem [shape: bf16[27,3,8], index: 2, kind: input, shape index: {}]   ;;  %s2651_s3 = inlined_call_operand.vmem [shape: f32[3,1], index: 3, kind: input, shape index: {}]   ;;  %s2652_s4 = inlined_call_operand.vmem [shape: f32[4,3,256], index: 4, kind: output, shape index: {}]  }
   0x1   :  { %s2327_s17 = smov 0  }
   0x2 LB: > { %s26_s18 = sadd.s32 1, %s2265_s16  ;;  %p2101_p0 = scmp.ge.s32.totalorder %s2269_s17, 1  ;;  %s2269_s17 = sphi %s2327_s17, %s14_s17   ;;  %s2265_s16 = sphi %s2325_s16, %s2654_s16   ;;  %s2261_s15 = sphi %s2323_s15, %s2653_s15  }
   0x3   : > { %p28_p1 = scmp.ge.s32.totalorder %s26_s18, 4  ;;  %p204_p2 = scmp.lt.s32.totalorder %s2269_s17, 5 }
   0x5   : > { %s2656_s18 = smov (%p28_p1, %s26_s18), 0  ;;  %p205_p3 = pnand %p2101_p0, %p204_p2 }
   0x6   : > { %p249_p4 = scmp.lt.s32.totalorder (!%p205_p3), %s2261_s15, 3  ;;  %s2272_s27 = smov (!%p205_p3), 126  }
   0x7   : > { %208 = sbr.rel (%p205_p3) target bundleno = 492 (0x1ec), region = 36  ;;  %s2273_s28 = smov (!%p205_p3), 127  }
   0x8   : > { %s2274_s5 = smov (!%p205_p3), 122   ;;  %s2275_s6 = smov (!%p205_p3), 121  }
   0x9   : > { %s2276_s7 = smov (!%p205_p3), 120   ;;  %s2277_s8 = smov (!%p205_p3), 116  }
   0xa   : > { %s2278_s9 = smov (!%p205_p3), 115   ;;  %s2279_s10 = smov (!%p205_p3), 114  }
   0xb   : > { %s2280_s11 = smov (!%p205_p3), 92   ;;  %s2281_s12 = smov (!%p205_p3), 91  }
   0xc   : > { %s2658_s15 = smov (!%p249_p4, %s2261_s15), 3  ;;  %v2271_v2 = vmov 0   ;;  %vm306_vm0 = vcmask 1043456   ;;  %vm302_vm1 = vcmask 64512   ;;  %v287_v8 = vld [vmem:[%s2650_s2] sm:$0x3] }
   0xd   : > { %s2190_s19 = sshll.u32 %s2658_s15, 5  ;;  %345 = vmatprep.mubr.bf16.mxu0 %v2271_v2  ;;  %395 = vmatprep.mubr.bf16.mxu1 %v2271_v2  ;;  %s2282_s13 = smov 90   ;;  %vm299_vm2 = vcmask 1039360   ;;  %vm412_vm3 = vcmask 1031168   ;;  %v2108_v18 = vld [vmem:[%s2650_s2 + $0x2] sm:$0x3] }
   0xe   : > { %s256_s22 = scalar_lea.vmem %s2648_s0, %s2190_s19  ;;  %s2192_s23 = sadd.s32 16, %s2190_s19  ;;  %2246 = vset.pattern.permute.xlu0 %v2271_v2  ;;  %vm475_vm4 = vcmask 998400   ;;  %v2113_v27 = vld [vmem:[%s2650_s2 + $0x4] sm:$0x3]  ;;  %vm538_vm5 = vcmask 990208   ;;  %vm601_vm6 = vcmask 982016  }
   0xf   : > { %v281_v0 = vld [vmem:[%s256_s22] sm:$0xff]  ;;  %s267_s26 = scalar_lea.vmem %s2649_s1, %s2192_s23  ;;  %v282_v1 = vld [vmem:[%s256_s22 + $0x8] sm:$0xff]  ;;  %s2283_s14 = smov 86   ;;  %vm664_vm7 = vcmask 949248   ;;  %vm727_vm8 = vcmask 941056   ;;  %vm790_vm9 = vcmask 932864  }
  0x10   : > { %v2352_v3 = vpack.c.bf16 %v281_v0, %v281_v0  ;;  %v285_v4 = vld [vmem:[%s267_s26] sm:$0xff]  ;;  %v2355_v5 = vpack.c.bf16 %v282_v1, %v282_v1  ;;  %s2284_s19 = smov 85   ;;  %s2285_s20 = smov 84   ;;  %v2119_v38 = vld [vmem:[%s2650_s2 + $0x8] sm:$0x3]  ;;  %vm853_vm10 = vcmask 752640  }
  0x11   : > { %v2359_v6 = vpack.c.bf16 %v285_v4, %v285_v4  ;;  %s2286_s21 = smov 80   ;;  %s2287_s22 = smov 79   ;;  %v2116_v32 = vld [vmem:[%s2650_s2 + $0x6] sm:$0x3]  ;;  %v2122_v46 = vld [vmem:[%s2650_s2 + $0xa] sm:$0x3] }
  0x12   : > { %406 = vrot.lane.b32.xlu1 %v2352_v3, %s2272_s27  ;;  %293 = vrot.lane.b32.xlu0 %v2352_v3, %s2273_s28  ;;  %v358_v7 = vsel %vm306_vm0, %v2352_v3, 0  ;;  %s2288_s23 = smov 78   ;;  %s2289_s24 = smov 56   ;;  %v2125_v52 = vld [vmem:[%s2650_s2 + $0xc] sm:$0x3]  ;;  %vm916_vm11 = vcmask 744448  }
  0x13   : > { %2111 = vmatprep.subr.msk.bf16.mxu1 %vm306_vm0, %v2355_v5  ;;  %s2290_s25 = smov 55   ;;  %s2291_s26 = smov 54   ;;  %v2128_v58 = vld [vmem:[%s2650_s2 + $0xe] sm:$0x3]  ;;  %v2131_v0 = vld [vmem:[%s2650_s2 + $0x10] sm:$0x3] }
  0x14   : > { %378 = vmatpush1.bf16.msra.mxu1 %v358_v7  ;;  %s2293_s30 = smov 49   ;;  %vm979_vm12 = vcmask 736256   ;;  %vm1042_vm13 = vcmask 703488   ;;  %vm1105_vm14 = vcmask 695296   ;;  %vm1168_vm15 = vcmask 687104  }
  0x16   : > { %297 = vrot.lane.b32.xlu1 %v2359_v6, %s2273_s28  ;;  %295 = vrot.lane.b32.xlu0 %v2355_v5, %s2273_s28 }
  0x17   : > { %2112 = vmatmul.mubr.msk.bf16.vlgmr.msra.gmra.mxu1 %vm302_vm1, %v287_v8 }
  0x18   : > { %519 = vmatprep.mubr.bf16.mxu1 %v2271_v2 }
  0x1a   : > { %410 = vrot.lane.b32.xlu1 %v2359_v6, %s2272_s27  ;;  %408 = vrot.lane.b32.xlu0 %v2355_v5, %s2272_s27  ;;  %s2292_s27 = smov 50  }
  0x1e   : > { %471 = vrot.lane.b32.xlu1 %v2355_v5, %s2274_s5  ;;  %469 = vrot.lane.b32.xlu0 %v2352_v3, %s2274_s5 }
  0x22   : > { %532 = vrot.lane.b32.xlu1 %v2352_v3, %s2275_s6  ;;  %473 = vrot.lane.b32.xlu0 %v2359_v6, %s2274_s5 }
  0x26   : > { %536 = vrot.lane.b32.xlu1 %v2359_v6, %s2275_s6  ;;  %534 = vrot.lane.b32.xlu0 %v2355_v5, %s2275_s6 }
  0x2a   : > { %597 = vrot.lane.b32.xlu1 %v2355_v5, %s2276_s7  ;;  %595 = vrot.lane.b32.xlu0 %v2352_v3, %s2276_s7 }
  0x2e   : > { %658 = vrot.lane.b32.xlu1 %v2352_v3, %s2277_s8  ;;  %599 = vrot.lane.b32.xlu0 %v2359_v6, %s2276_s7  ;;  %s2294_s7 = smov 48  }
  0x32   : > { %662 = vrot.lane.b32.xlu1 %v2359_v6, %s2277_s8  ;;  %660 = vrot.lane.b32.xlu0 %v2355_v5, %s2277_s8 }
  0x36   : > { %723 = vrot.lane.b32.xlu1 %v2355_v5, %s2278_s9  ;;  %721 = vrot.lane.b32.xlu0 %v2352_v3, %s2278_s9 }
  0x3a   : > { %784 = vrot.lane.b32.xlu1 %v2352_v3, %s2279_s10  ;;  %725 = vrot.lane.b32.xlu0 %v2359_v6, %s2278_s9 }
  0x3e   : > { %788 = vrot.lane.b32.xlu1 %v2359_v6, %s2279_s10  ;;  %786 = vrot.lane.b32.xlu0 %v2355_v5, %s2279_s10  ;;  %s2295_s10 = smov 44  }
  0x42   : > { %849 = vrot.lane.b32.xlu1 %v2355_v5, %s2280_s11  ;;  %847 = vrot.lane.b32.xlu0 %v2352_v3, %s2280_s11 }
  0x46   : > { %910 = vrot.lane.b32.xlu1 %v2352_v3, %s2281_s12  ;;  %851 = vrot.lane.b32.xlu0 %v2359_v6, %s2280_s11 }
  0x4a   : > { %914 = vrot.lane.b32.xlu1 %v2359_v6, %s2281_s12  ;;  %912 = vrot.lane.b32.xlu0 %v2355_v5, %s2281_s12 }
  0x4e   : > { %975 = vrot.lane.b32.xlu1 %v2355_v5, %s2282_s13  ;;  %973 = vrot.lane.b32.xlu0 %v2352_v3, %s2282_s13 }
  0x52   : > { %1036 = vrot.lane.b32.xlu1 %v2352_v3, %s2283_s14  ;;  %977 = vrot.lane.b32.xlu0 %v2359_v6, %s2282_s13  ;;  %s2296_s13 = smov 43  }
  0x56   : > { %1040 = vrot.lane.b32.xlu1 %v2359_v6, %s2283_s14  ;;  %1038 = vrot.lane.b32.xlu0 %v2355_v5, %s2283_s14 }
  0x5a   : > { %1101 = vrot.lane.b32.xlu1 %v2355_v5, %s2284_s19  ;;  %1099 = vrot.lane.b32.xlu0 %v2352_v3, %s2284_s19 }
  0x5e   : > { %1162 = vrot.lane.b32.xlu1 %v2352_v3, %s2285_s20  ;;  %1103 = vrot.lane.b32.xlu0 %v2359_v6, %s2284_s19 }
  0x62   : > { %1166 = vrot.lane.b32.xlu1 %v2359_v6, %s2285_s20  ;;  %1164 = vrot.lane.b32.xlu0 %v2355_v5, %s2285_s20  ;;  %s2297_s20 = smov 42  }
  0x66   : > { %1227 = vrot.lane.b32.xlu1 %v2355_v5, %s2286_s21  ;;  %1225 = vrot.lane.b32.xlu0 %v2352_v3, %s2286_s21 }
  0x6a   : > { %1288 = vrot.lane.b32.xlu1 %v2352_v3, %s2287_s22  ;;  %1229 = vrot.lane.b32.xlu0 %v2359_v6, %s2286_s21  ;;  %s2193_s21 = sshll.u32 %s2658_s15, 3 }
  0x6e   : > { %1292 = vrot.lane.b32.xlu1 %v2359_v6, %s2287_s22  ;;  %1290 = vrot.lane.b32.xlu0 %v2355_v5, %s2287_s22 }
  0x72   : > { %1353 = vrot.lane.b32.xlu1 %v2355_v5, %s2288_s23  ;;  %1351 = vrot.lane.b32.xlu0 %v2352_v3, %s2288_s23 }
  0x76   : > { %1414 = vrot.lane.b32.xlu1 %v2352_v3, %s2289_s24  ;;  %1355 = vrot.lane.b32.xlu0 %v2359_v6, %s2288_s23 }
  0x7a   : > { %1418 = vrot.lane.b32.xlu1 %v2359_v6, %s2289_s24  ;;  %1416 = vrot.lane.b32.xlu0 %v2355_v5, %s2289_s24  ;;  %s278_s24 = scalar_lea.vmem %s2652_s4, %s2193_s21 }
  0x7e   : > { %1479 = vrot.lane.b32.xlu1 %v2355_v5, %s2290_s25  ;;  %1477 = vrot.lane.b32.xlu0 %v2352_v3, %s2290_s25 }
  0x82   : > { %1540 = vrot.lane.b32.xlu1 %v2352_v3, %s2291_s26  ;;  %1481 = vrot.lane.b32.xlu0 %v2359_v6, %s2290_s25 }
  0x84   : > { %v407_v9 = vpop.permute.xlu1 %406  ;;  %v294_v10 = vpop.permute.xlu0 %293 }
  0x86   : > { %1544 = vrot.lane.b32.xlu1 %v2359_v6, %s2291_s26  ;;  %1542 = vrot.lane.b32.xlu0 %v2355_v5, %s2291_s26 }
  0x88   : > { %v298_v11 = vpop.permute.xlu1 %297  ;;  %v296_v12 = vpop.permute.xlu0 %295 }
  0x89   : > { %v301_v13 = vsel %vm299_vm2, %v296_v12, %v298_v11  ;;  %v300_v14 = vsel %vm299_vm2, %v294_v10, %v296_v12  ;;  %vm1231_vm2 = vcmask 654336  }
  0x8a   : > { %1605 = vrot.lane.b32.xlu1 %v2355_v5, %s2292_s27  ;;  %1603 = vrot.lane.b32.xlu0 %v2352_v3, %s2292_s27  ;;  %v308_v15 = vsel %vm306_vm0, %v300_v14, 0 }
  0x8b   : > { %2109 = vmatprep.subr.msk.bf16.mxu0 %vm306_vm0, %v301_v13 }
  0x8c   : > { %328 = vmatpush1.bf16.msra.mxu0 %v308_v15  ;;  %v411_v16 = vpop.permute.xlu1 %410  ;;  %v409_v17 = vpop.permute.xlu0 %408  ;;  %v2137_v15 = vld [vmem:[%s2650_s2 + $0x14] sm:$0x3] }
  0x8d   : > { %v413_v19 = vsel %vm412_vm3, %v407_v9, %v409_v17  ;;  %v414_v20 = vsel %vm412_vm3, %v409_v17, %v411_v16  ;;  %v2134_v9 = vld [vmem:[%s2650_s2 + $0x12] sm:$0x3]  ;;  %vm1294_vm3 = vcmask 646144  }
  0x8e   : > { %v419_v21 = vsel %vm306_vm0, %v413_v19, 0  ;;  %1666 = vrot.lane.b32.xlu1 %v2352_v3, %s2293_s30  ;;  %1607 = vrot.lane.b32.xlu0 %v2359_v6, %s2292_s27 }
  0x8f   : > { %2114 = vmatprep.subr.msk.bf16.mxu0 %vm306_vm0, %v414_v20  ;;  %2110 = vmatmul.mubr.msk.bf16.vlgmr.msra.gmra.mxu0 %vm302_vm1, %v2108_v18 }
  0x90   : > { %439 = vmatpush1.bf16.msra.mxu0 %v419_v21  ;;  %v472_v22 = vpop.permute.xlu1 %471  ;;  %v470_v23 = vpop.permute.xlu0 %469  ;;  %456 = vmatprep.mubr.bf16.mxu0 %v2271_v2 }
  0x91   : > { %v476_v24 = vsel %vm475_vm4, %v470_v23, %v472_v22  ;;  %v2140_v23 = vld [vmem:[%s2650_s2 + $0x16] sm:$0x3] }
  0x92   : > { %1670 = vrot.lane.b32.xlu1 %v2359_v6, %s2293_s30  ;;  %1668 = vrot.lane.b32.xlu0 %v2355_v5, %s2293_s30  ;;  %v482_v29 = vsel %vm306_vm0, %v476_v24, 0 }
  0x94   : > { %v533_v25 = vpop.permute.xlu1 %532  ;;  %v474_v26 = vpop.permute.xlu0 %473 }
  0x95   : > { %v477_v28 = vsel %vm475_vm4, %v472_v22, %v474_v26  ;;  %vm1357_vm4 = vcmask 637952  }
  0x96   : > { %1731 = vrot.lane.b32.xlu1 %v2355_v5, %s2294_s7  ;;  %1729 = vrot.lane.b32.xlu0 %v2352_v3, %s2294_s7 }
  0x97   : > { %2117 = vmatprep.subr.msk.bf16.mxu1 %vm306_vm0, %v477_v28  ;;  %2115 = vmatmul.mubr.msk.bf16.vlgmr.msra.gmra.mxu0 %vm302_vm1, %v2113_v27 }
  0x98   : > { %502 = vmatpush1.bf16.msra.mxu1 %v482_v29  ;;  %v537_v30 = vpop.permute.xlu1 %536  ;;  %v535_v31 = vpop.permute.xlu0 %534  ;;  %582 = vmatprep.mubr.bf16.mxu0 %v2271_v2  ;;  %v2143_v29 = vld [vmem:[%s2650_s2 + $0x18] sm:$0x3] }
  0x99   : > { %v539_v33 = vsel %vm538_vm5, %v533_v25, %v535_v31  ;;  %v540_v34 = vsel %vm538_vm5, %v535_v31, %v537_v30  ;;  %vm1420_vm5 = vcmask 457728  }
  0x9a   : > { %v545_v35 = vsel %vm306_vm0, %v539_v33, 0  ;;  %1792 = vrot.lane.b32.xlu1 %v2352_v3, %s2295_s10  ;;  %1733 = vrot.lane.b32.xlu0 %v2359_v6, %s2294_s7 }
  0x9b   : > { %2120 = vmatprep.subr.msk.bf16.mxu0 %vm306_vm0, %v540_v34  ;;  %2118 = vmatmul.mubr.msk.bf16.vlgmr.msra.gmra.mxu1 %vm302_vm1, %v2116_v32 }
  0x9c   : > { %565 = vmatpush1.bf16.msra.mxu0 %v545_v35  ;;  %v598_v36 = vpop.permute.xlu1 %597  ;;  %v596_v37 = vpop.permute.xlu0 %595  ;;  %645 = vmatprep.mubr.bf16.mxu1 %v2271_v2 }
  0x9d   : > { %v602_v39 = vsel %vm601_vm6, %v596_v37, %v598_v36  ;;  %v2146_v37 = vld [vmem:[%s2650_s2 + $0x1a] sm:$0x3] }
  0x9e   : > { %1796 = vrot.lane.b32.xlu1 %v2359_v6, %s2295_s10  ;;  %1794 = vrot.lane.b32.xlu0 %v2355_v5, %s2295_s10  ;;  %v608_v43 = vsel %vm306_vm0, %v602_v39, 0 }
  0x9f   : > { %2121 = vmatmul.mubr.msk.bf16.vlgmr.msra.gmra.mxu0 %vm302_vm1, %v2119_v38 }
  0xa0   : > { %v659_v40 = vpop.permute.xlu1 %658  ;;  %v600_v41 = vpop.permute.xlu0 %599  ;;  %708 = vmatprep.mubr.bf16.mxu0 %v2271_v2 }
  0xa1   : > { %v603_v42 = vsel %vm601_vm6, %v598_v36, %v600_v41  ;;  %vm1483_vm6 = vcmask 449536  }
  0xa2   : > { %1857 = vrot.lane.b32.xlu1 %v2355_v5, %s2296_s13  ;;  %1855 = vrot.lane.b32.xlu0 %v2352_v3, %s2296_s13 }
  0xa3   : > { %2123 = vmatprep.subr.msk.bf16.mxu1 %vm306_vm0, %v603_v42  ;;  %v1979_v42 = vld [vmem:[%s2651_s3] sm:$0x7] }
  0xa4   : > { %628 = vmatpush1.bf16.msra.mxu1 %v608_v43  ;;  %v663_v44 = vpop.permute.xlu1 %662  ;;  %v661_v45 = vpop.permute.xlu0 %660 }
  0xa5   : > { %v665_v47 = vsel %vm664_vm7, %v659_v40, %v661_v45  ;;  %v666_v48 = vsel %vm664_vm7, %v661_v45, %v663_v44  ;;  %v2149_v44 = vld [vmem:[%s2650_s2 + $0x1c] sm:$0x3]  ;;  %vm1546_vm7 = vcmask 441344  }
  0xa6   : > { %v671_v49 = vsel %vm306_vm0, %v665_v47, 0  ;;  %1918 = vrot.lane.b32.xlu1 %v2352_v3, %s2297_s20  ;;  %1859 = vrot.lane.b32.xlu0 %v2359_v6, %s2296_s13 }
  0xa7   : > { %2126 = vmatprep.subr.msk.bf16.mxu0 %vm306_vm0, %v666_v48  ;;  %2124 = vmatmul.mubr.msk.bf16.vlgmr.msra.gmra.mxu1 %vm302_vm1, %v2122_v46 }
  0xa8   : > { %691 = vmatpush1.bf16.msra.mxu0 %v671_v49  ;;  %v724_v50 = vpop.permute.xlu1 %723  ;;  %v722_v51 = vpop.permute.xlu0 %721  ;;  %771 = vmatprep.mubr.bf16.mxu1 %v2271_v2 }
  0xa9   : > { %v728_v53 = vsel %vm727_vm8, %v722_v51, %v724_v50 }
  0xaa   : > { %1922 = vrot.lane.b32.xlu1 %v2359_v6, %s2297_s20  ;;  %1920 = vrot.lane.b32.xlu0 %v2355_v5, %s2297_s20  ;;  %v734_v57 = vsel %vm306_vm0, %v728_v53, 0 }
  0xab   : > { %2127 = vmatmul.mubr.msk.bf16.vlgmr.msra.gmra.mxu0 %vm302_vm1, %v2125_v52 }
  0xac   : > { %v785_v54 = vpop.permute.xlu1 %784  ;;  %v726_v55 = vpop.permute.xlu0 %725  ;;  %834 = vmatprep.mubr.bf16.mxu0 %v2271_v2 }
  0xad   : > { %v729_v56 = vsel %vm727_vm8, %v724_v50, %v726_v55  ;;  %v2152_v55 = vld [vmem:[%s2650_s2 + $0x1e] sm:$0x3]  ;;  %vm1609_vm8 = vcmask 408576  }
  0xae   : > { %2129 = vmatprep.subr.msk.bf16.mxu1 %vm306_vm0, %v729_v56  ;;  %1982 = vperm.xlu0 %2246, %v1979_v42  }
  0xaf   : > { %754 = vmatpush1.bf16.msra.mxu1 %v734_v57 }
  0xb0   : > { %v789_v59 = vpop.permute.xlu1 %788  ;;  %v787_v60 = vpop.permute.xlu0 %786 }
  0xb1   : > { %v791_v61 = vsel %vm790_vm9, %v785_v54, %v787_v60  ;;  %v792_v62 = vsel %vm790_vm9, %v787_v60, %v789_v59  ;;  %vm1672_vm9 = vcmask 400384  }
  0xb2   : > { %v797_v63 = vsel %vm306_vm0, %v791_v61, 0  ;;  %2132 = vmatprep.subr.msk.bf16.mxu0 %vm306_vm0, %v792_v62  ;;  %2130 = vmatmul.mubr.msk.bf16.vlgmr.msra.gmra.mxu1 %vm302_vm1, %v2128_v58  ;;  %v2155_v62 = vld [vmem:[%s2650_s2 + $0x20] sm:$0x3] }
  0xb3   : > { %817 = vmatpush1.bf16.msra.mxu0 %v797_v63  ;;  %897 = vmatprep.mubr.bf16.mxu1 %v2271_v2 }
  0xb4   : > { %v850_v1 = vpop.permute.xlu1 %849  ;;  %v848_v3 = vpop.permute.xlu0 %847 }
  0xb5   : > { %v854_v4 = vsel %vm853_vm10, %v848_v3, %v850_v1 }
  0xb6   : > { %2133 = vmatmul.mubr.msk.bf16.vlgmr.msra.gmra.mxu0 %vm302_vm1, %v2131_v0  ;;  %v860_v8 = vsel %vm306_vm0, %v854_v4, 0 }
  0xb7   : > { %960 = vmatprep.mubr.bf16.mxu0 %v2271_v2 }
  0xb8   : > { %v911_v5 = vpop.permute.xlu1 %910  ;;  %v852_v6 = vpop.permute.xlu0 %851 }
  0xb9   : > { %v855_v7 = vsel %vm853_vm10, %v850_v1, %v852_v6  ;;  %vm1735_vm10 = vcmask 392192  }
  0xba   : > { %2135 = vmatprep.subr.msk.bf16.mxu1 %vm306_vm0, %v855_v7  ;;  %v2158_v7 = vld [vmem:[%s2650_s2 + $0x22] sm:$0x3] }
  0xbb   : > { %880 = vmatpush1.bf16.msra.mxu1 %v860_v8 }
  0xbc   : > { %v915_v10 = vpop.permute.xlu1 %914  ;;  %v913_v11 = vpop.permute.xlu0 %912 }
  0xbd   : > { %v917_v12 = vsel %vm916_vm11, %v911_v5, %v913_v11  ;;  %v918_v13 = vsel %vm916_vm11, %v913_v11, %v915_v10  ;;  %vm1798_vm11 = vcmask 359424  }
  0xbe   : > { %v923_v14 = vsel %vm306_vm0, %v917_v12, 0  ;;  %2138 = vmatprep.subr.msk.bf16.mxu0 %vm306_vm0, %v918_v13  ;;  %2136 = vmatmul.mubr.msk.bf16.vlgmr.msra.gmra.mxu1 %vm302_vm1, %v2134_v9  ;;  %v2161_v13 = vld [vmem:[%s2650_s2 + $0x24] sm:$0x3] }
  0xbf   : > { %943 = vmatpush1.bf16.msra.mxu0 %v923_v14  ;;  %1023 = vmatprep.mubr.bf16.mxu1 %v2271_v2 }
  0xc0   : > { %v976_v16 = vpop.permute.xlu1 %975  ;;  %v974_v17 = vpop.permute.xlu0 %973 }
  0xc1   : > { %v980_v18 = vsel %vm979_vm12, %v974_v17, %v976_v16 }
  0xc2   : > { %2139 = vmatmul.mubr.msk.bf16.vlgmr.msra.gmra.mxu0 %vm302_vm1, %v2137_v15  ;;  %v986_v22 = vsel %vm306_vm0, %v980_v18, 0 }
  0xc3   : > { %1086 = vmatprep.mubr.bf16.mxu0 %v2271_v2 }
  0xc4   : > { %v1037_v19 = vpop.permute.xlu1 %1036  ;;  %v978_v20 = vpop.permute.xlu0 %977 }
  0xc5   : > { %v981_v21 = vsel %vm979_vm12, %v976_v16, %v978_v20  ;;  %vm1861_vm12 = vcmask 351232  }
  0xc6   : > { %2141 = vmatprep.subr.msk.bf16.mxu1 %vm306_vm0, %v981_v21  ;;  %v2164_v21 = vld [vmem:[%s2650_s2 + $0x26] sm:$0x3] }
  0xc7   : > { %1006 = vmatpush1.bf16.msra.mxu1 %v986_v22 }
  0xc8   : > { %v1041_v24 = vpop.permute.xlu1 %1040  ;;  %v1039_v25 = vpop.permute.xlu0 %1038 }
  0xc9   : > { %v1043_v26 = vsel %vm1042_vm13, %v1037_v19, %v1039_v25  ;;  %v1044_v27 = vsel %vm1042_vm13, %v1039_v25, %v1041_v24  ;;  %vm1924_vm13 = vcmask 343040  }
  0xca   : > { %v1049_v28 = vsel %vm306_vm0, %v1043_v26, 0  ;;  %2144 = vmatprep.subr.msk.bf16.mxu0 %vm306_vm0, %v1044_v27  ;;  %2142 = vmatmul.mubr.msk.bf16.vlgmr.msra.gmra.mxu1 %vm302_vm1, %v2140_v23  ;;  %v2167_v27 = vld [vmem:[%s2650_s2 + $0x28] sm:$0x3] }
  0xcb   : > { %1069 = vmatpush1.bf16.msra.mxu0 %v1049_v28  ;;  %1149 = vmatprep.mubr.bf16.mxu1 %v2271_v2 }
  0xcc   : > { %v1102_v30 = vpop.permute.xlu1 %1101  ;;  %v1100_v31 = vpop.permute.xlu0 %1099 }
  0xcd   : > { %v1106_v32 = vsel %vm1105_vm14, %v1100_v31, %v1102_v30 }
  0xce   : > { %2145 = vmatmul.mubr.msk.bf16.vlgmr.msra.gmra.mxu0 %vm302_vm1, %v2143_v29  ;;  %v1112_v36 = vsel %vm306_vm0, %v1106_v32, 0 }
  0xcf   : > { %1212 = vmatprep.mubr.bf16.mxu0 %v2271_v2 }
  0xd0   : > { %v1163_v33 = vpop.permute.xlu1 %1162  ;;  %v1104_v34 = vpop.permute.xlu0 %1103 }
  0xd1   : > { %v1107_v35 = vsel %vm1105_vm14, %v1102_v30, %v1104_v34 }
  0xd2   : > { %2147 = vmatprep.subr.msk.bf16.mxu1 %vm306_vm0, %v1107_v35  ;;  %v2170_v35 = vld [vmem:[%s2650_s2 + $0x2a] sm:$0x3] }
  0xd3   : > { %1132 = vmatpush1.bf16.msra.mxu1 %v1112_v36 }
  0xd4   : > { %v1167_v38 = vpop.permute.xlu1 %1166  ;;  %v1165_v39 = vpop.permute.xlu0 %1164 }
  0xd5   : > { %v1169_v40 = vsel %vm1168_vm15, %v1163_v33, %v1165_v39  ;;  %v1170_v41 = vsel %vm1168_vm15, %v1165_v39, %v1167_v38 }
  0xd6   : > { %v1175_v43 = vsel %vm306_vm0, %v1169_v40, 0  ;;  %2148 = vmatmul.mubr.msk.bf16.vlgmr.msra.gmra.mxu1 %vm302_vm1, %v2146_v37  ;;  %2150 = vmatprep.subr.msk.bf16.mxu0 %vm306_vm0, %v1170_v41  ;;  %v2173_v41 = vld [vmem:[%s2650_s2 + $0x2c] sm:$0x3] }
  0xd7   : > { %1195 = vmatpush1.bf16.msra.mxu0 %v1175_v43  ;;  %1275 = vmatprep.mubr.bf16.mxu1 %v2271_v2  ;;  %v2545_v47 = vpop.f32.mrf.mxu1 }
  0xd8   : > { %v1228_v45 = vpop.permute.xlu1 %1227  ;;  %v1226_v46 = vpop.permute.xlu0 %1225 }
  0xd9   : > { %v1232_v48 = vsel %vm1231_vm2, %v1226_v46, %v1228_v45  ;;  %v2549_v49 = vpop.f32.mrf.mxu1 }
  0xda   : > { %2151 = vmatmul.mubr.msk.bf16.vlgmr.msra.gmra.mxu0 %vm302_vm1, %v2149_v44  ;;  %v1238_v54 = vsel %vm306_vm0, %v1232_v48, 0 }
  0xdb   : > { %1338 = vmatprep.mubr.bf16.mxu0 %v2271_v2  ;;  %v401_v53 = vpop.f32.mrf.mxu1 }
  0xdc   : > { %v1289_v50 = vpop.permute.xlu1 %1288  ;;  %v1230_v51 = vpop.permute.xlu0 %1229 }
  0xdd   : > { %v1233_v52 = vsel %vm1231_vm2, %v1228_v45, %v1230_v51  ;;  %v402_v56 = vpop.f32.mrf.mxu1  ;;  %v2176_v51 = vld [vmem:[%s2650_s2 + $0x2e] sm:$0x3] }
  0xde   : > { %2153 = vmatprep.subr.msk.bf16.mxu1 %vm306_vm0, %v1233_v52 }
  0xdf   : > { %1258 = vmatpush1.bf16.msra.mxu1 %v1238_v54 }
  0xe0   : > { %v1293_v57 = vpop.permute.xlu1 %1292  ;;  %v1291_v58 = vpop.permute.xlu0 %1290 }
  0xe1   : > { %v1295_v59 = vsel %vm1294_vm3, %v1289_v50, %v1291_v58  ;;  %v1296_v60 = vsel %vm1294_vm3, %v1291_v58, %v1293_v57  ;;  %v2179_v57 = vld [vmem:[%s2650_s2 + $0x30] sm:$0x3] }
  0xe2   : > { %v1301_v61 = vsel %vm306_vm0, %v1295_v59, 0  ;;  %2154 = vmatmul.mubr.msk.bf16.vlgmr.msra.gmra.mxu1 %vm302_vm1, %v2152_v55  ;;  %2156 = vmatprep.subr.msk.bf16.mxu0 %vm306_vm0, %v1296_v60 }
  0xe3   : > { %1321 = vmatpush1.bf16.msra.mxu0 %v1301_v61  ;;  %1401 = vmatprep.mubr.bf16.mxu1 %v2271_v2 }
  0xe4   : > { %v1354_v63 = vpop.permute.xlu1 %1353  ;;  %v1352_v0 = vpop.permute.xlu0 %1351 }
  0xe5   : > { %v1358_v1 = vsel %vm1357_vm4, %v1352_v0, %v1354_v63 }
  0xe6   : > { %2157 = vmatmul.mubr.msk.bf16.vlgmr.msra.gmra.mxu0 %vm302_vm1, %v2155_v62  ;;  %v1364_v6 = vsel %vm306_vm0, %v1358_v1, 0  ;;  %v2182_v1 = vld [vmem:[%s2650_s2 + $0x32] sm:$0x3] }
  0xe7   : > { %1464 = vmatprep.mubr.bf16.mxu0 %v2271_v2 }
  0xe8   : > { %v1415_v3 = vpop.permute.xlu1 %1414  ;;  %v1356_v4 = vpop.permute.xlu0 %1355 }
  0xe9   : > { %v1359_v5 = vsel %vm1357_vm4, %v1354_v63, %v1356_v4 }
  0xea   : > { %2159 = vmatprep.subr.msk.bf16.mxu1 %vm306_vm0, %v1359_v5 }
  0xeb   : > { %1384 = vmatpush1.bf16.msra.mxu1 %v1364_v6 }
  0xec   : > { %v1419_v8 = vpop.permute.xlu1 %1418  ;;  %v1417_v9 = vpop.permute.xlu0 %1416 }
  0xed   : > { %v1421_v10 = vsel %vm1420_vm5, %v1415_v3, %v1417_v9  ;;  %v1422_v11 = vsel %vm1420_vm5, %v1417_v9, %v1419_v8 }
  0xee   : > { %v1427_v12 = vsel %vm306_vm0, %v1421_v10, 0  ;;  %2160 = vmatmul.mubr.msk.bf16.vlgmr.msra.gmra.mxu1 %vm302_vm1, %v2158_v7  ;;  %2162 = vmatprep.subr.msk.bf16.mxu0 %vm306_vm0, %v1422_v11 }
  0xef   : > { %1447 = vmatpush1.bf16.msra.mxu0 %v1427_v12  ;;  %1527 = vmatprep.mubr.bf16.mxu1 %v2271_v2 }
  0xf0   : > { %v1480_v14 = vpop.permute.xlu1 %1479  ;;  %v1478_v15 = vpop.permute.xlu0 %1477 }
  0xf1   : > { %v1484_v16 = vsel %vm1483_vm6, %v1478_v15, %v1480_v14 }
  0xf2   : > { %2163 = vmatmul.mubr.msk.bf16.vlgmr.msra.gmra.mxu0 %vm302_vm1, %v2161_v13  ;;  %v1490_v20 = vsel %vm306_vm0, %v1484_v16, 0 }
  0xf3   : > { %1590 = vmatprep.mubr.bf16.mxu0 %v2271_v2 }
  0xf4   : > { %v1541_v17 = vpop.permute.xlu1 %1540  ;;  %v1482_v18 = vpop.permute.xlu0 %1481 }
  0xf5   : > { %v1485_v19 = vsel %vm1483_vm6, %v1480_v14, %v1482_v18 }
  0xf6   : > { %2165 = vmatprep.subr.msk.bf16.mxu1 %vm306_vm0, %v1485_v19 }
  0xf7   : > { %1510 = vmatpush1.bf16.msra.mxu1 %v1490_v20 }
  0xf8   : > { %v1545_v22 = vpop.permute.xlu1 %1544  ;;  %v1543_v23 = vpop.permute.xlu0 %1542 }
  0xf9   : > { %v1547_v24 = vsel %vm1546_vm7, %v1541_v17, %v1543_v23  ;;  %v1548_v25 = vsel %vm1546_vm7, %v1543_v23, %v1545_v22 }
  0xfa   : > { %v1553_v26 = vsel %vm306_vm0, %v1547_v24, 0  ;;  %2166 = vmatmul.mubr.msk.bf16.vlgmr.msra.gmra.mxu1 %vm302_vm1, %v2164_v21  ;;  %2168 = vmatprep.subr.msk.bf16.mxu0 %vm306_vm0, %v1548_v25 }
  0xfb   : > { %1573 = vmatpush1.bf16.msra.mxu0 %v1553_v26  ;;  %1653 = vmatprep.mubr.bf16.mxu1 %v2271_v2 }
  0xfc   : > { %v1606_v28 = vpop.permute.xlu1 %1605  ;;  %v1604_v29 = vpop.permute.xlu0 %1603 }
  0xfd   : > { %v1610_v30 = vsel %vm1609_vm8, %v1604_v29, %v1606_v28 }
  0xfe   : > { %2169 = vmatmul.mubr.msk.bf16.vlgmr.msra.gmra.mxu0 %vm302_vm1, %v2167_v27  ;;  %v1616_v34 = vsel %vm306_vm0, %v1610_v30, 0 }
  0xff   : > { %1716 = vmatprep.mubr.bf16.mxu0 %v2271_v2 }
 0x100   : > { %v1667_v31 = vpop.permute.xlu1 %1666  ;;  %v1608_v32 = vpop.permute.xlu0 %1607 }
 0x101   : > { %v1611_v33 = vsel %vm1609_vm8, %v1606_v28, %v1608_v32 }
 0x102   : > { %2171 = vmatprep.subr.msk.bf16.mxu1 %vm306_vm0, %v1611_v33 }
 0x103   : > { %1636 = vmatpush1.bf16.msra.mxu1 %v1616_v34 }
 0x104   : > { %v1671_v36 = vpop.permute.xlu1 %1670  ;;  %v1669_v37 = vpop.permute.xlu0 %1668 }
 0x105   : > { %v1673_v38 = vsel %vm1672_vm9, %v1667_v31, %v1669_v37  ;;  %v1674_v39 = vsel %vm1672_vm9, %v1669_v37, %v1671_v36 }
 0x106   : > { %v1679_v40 = vsel %vm306_vm0, %v1673_v38, 0  ;;  %2172 = vmatmul.mubr.msk.bf16.vlgmr.msra.gmra.mxu1 %vm302_vm1, %v2170_v35  ;;  %2174 = vmatprep.subr.msk.bf16.mxu0 %vm306_vm0, %v1674_v39 }
 0x107   : > { %1699 = vmatpush1.bf16.msra.mxu0 %v1679_v40  ;;  %1779 = vmatprep.mubr.bf16.mxu1 %v2271_v2 }
 0x108   : > { %v1732_v42 = vpop.permute.xlu1 %1731  ;;  %v1730_v43 = vpop.permute.xlu0 %1729 }
 0x109   : > { %v1736_v44 = vsel %vm1735_vm10, %v1730_v43, %v1732_v42 }
 0x10a   : > { %2175 = vmatmul.mubr.msk.bf16.vlgmr.msra.gmra.mxu0 %vm302_vm1, %v2173_v41  ;;  %v1742_v50 = vsel %vm306_vm0, %v1736_v44, 0 }
 0x10b   : > { %1842 = vmatprep.mubr.bf16.mxu0 %v2271_v2 }
 0x10c   : > { %v1793_v45 = vpop.permute.xlu1 %1792  ;;  %v1734_v46 = vpop.permute.xlu0 %1733 }
 0x10d   : > { %v1737_v48 = vsel %vm1735_vm10, %v1732_v42, %v1734_v46 }
 0x10e   : > { %2177 = vmatprep.subr.msk.bf16.mxu1 %vm306_vm0, %v1737_v48 }
 0x10f   : > { %1762 = vmatpush1.bf16.msra.mxu1 %v1742_v50 }
 0x110   : > { %v1797_v52 = vpop.permute.xlu1 %1796  ;;  %v1795_v53 = vpop.permute.xlu0 %1794 }
 0x111   : > { %v1799_v54 = vsel %vm1798_vm11, %v1793_v45, %v1795_v53  ;;  %v1800_v55 = vsel %vm1798_vm11, %v1795_v53, %v1797_v52 }
 0x112   : > { %v1805_v56 = vsel %vm306_vm0, %v1799_v54, 0  ;;  %2178 = vmatmul.mubr.msk.bf16.vlgmr.msra.gmra.mxu1 %vm302_vm1, %v2176_v51  ;;  %2180 = vmatprep.subr.msk.bf16.mxu0 %vm306_vm0, %v1800_v55 }
 0x113   : > { %1825 = vmatpush1.bf16.msra.mxu0 %v1805_v56  ;;  %1905 = vmatprep.mubr.bf16.mxu1 %v2271_v2 }
 0x114   : > { %v1858_v58 = vpop.permute.xlu1 %1857  ;;  %v1856_v59 = vpop.permute.xlu0 %1855 }
 0x115   : > { %v1862_v60 = vsel %vm1861_vm12, %v1856_v59, %v1858_v58 }
 0x116   : > { %2181 = vmatmul.mubr.msk.bf16.vlgmr.msra.gmra.mxu0 %vm302_vm1, %v2179_v57  ;;  %v1868_v0 = vsel %vm306_vm0, %v1862_v60, 0 }
 0x117   : > { %1968 = vmatprep.mubr.bf16.mxu0 %v2271_v2  ;;  %v2185_v2 = vld [vmem:[%s2650_s2 + $0x34] sm:$0x3] }
 0x118   : > { %v1919_v61 = vpop.permute.xlu1 %1918  ;;  %v1860_v62 = vpop.permute.xlu0 %1859 }
 0x119   : > { %v1863_v63 = vsel %vm1861_vm12, %v1858_v58, %v1860_v62 }
 0x11a   : > { %2183 = vmatprep.subr.msk.bf16.mxu1 %vm306_vm0, %v1863_v63 }
 0x11b   : > { %1888 = vmatpush1.bf16.msra.mxu1 %v1868_v0 }
 0x11c   : > { %v1923_v3 = vpop.permute.xlu1 %1922  ;;  %v1921_v4 = vpop.permute.xlu0 %1920 }
 0x11d   : > { %v1925_v5 = vsel %vm1924_vm13, %v1919_v61, %v1921_v4  ;;  %v1926_v6 = vsel %vm1924_vm13, %v1921_v4, %v1923_v3 }
 0x11e   : > { %v1931_v7 = vsel %vm306_vm0, %v1925_v5, 0  ;;  %2184 = vmatmul.mubr.msk.bf16.vlgmr.msra.gmra.mxu1 %vm302_vm1, %v2182_v1  ;;  %2186 = vmatprep.subr.msk.bf16.mxu0 %vm306_vm0, %v1926_v6 }
 0x11f   : > { %1951 = vmatpush1.bf16.msra.mxu0 %v1931_v7 }
 0x122   : > { %2187 = vmatmul.mubr.msk.bf16.vlgmr.msra.gmra.mxu0 %vm302_vm1, %v2185_v2 }
 0x14f   : > { %v347_v8 = vpop.f32.mrf.mxu0 }
 0x150   : > { %v398_v11 = vadd.f32 %v2545_v47, %v347_v8 }
 0x151   : > { %v349_v9 = vpop.f32.mrf.mxu0 }
 0x152   : > { %v400_v13 = vadd.f32 %v2549_v49, %v349_v9 }
 0x153   : > { %v351_v10 = vpop.f32.mrf.mxu0 }
 0x155   : > { %v352_v12 = vpop.f32.mrf.mxu0 }
 0x157   : > { %v458_v14 = vpop.f32.mrf.mxu0 }
 0x158   : > { %v465_v15 = vadd.f32 %v458_v14, %v398_v11 }
 0x159   : > { %v460_v16 = vpop.f32.mrf.mxu0 }
 0x15a   : > { %v466_v17 = vadd.f32 %v460_v16, %v400_v13 }
 0x15b   : > { %v462_v18 = vpop.f32.mrf.mxu0  ;;  %v521_v19 = vpop.f32.mrf.mxu1 }
 0x15c   : > { %v528_v20 = vadd.f32 %v521_v19, %v465_v15 }
 0x15d   : > { %v463_v21 = vpop.f32.mrf.mxu0  ;;  %v523_v22 = vpop.f32.mrf.mxu1 }
 0x15e   : > { %v529_v23 = vadd.f32 %v523_v22, %v466_v17 }
 0x15f   : > { %v525_v24 = vpop.f32.mrf.mxu1  ;;  %v584_v25 = vpop.f32.mrf.mxu0 }
 0x160   : > { %v591_v26 = vadd.f32 %v584_v25, %v528_v20 }
 0x161   : > { %v526_v27 = vpop.f32.mrf.mxu1  ;;  %v586_v28 = vpop.f32.mrf.mxu0 }
 0x162   : > { %v592_v29 = vadd.f32 %v586_v28, %v529_v23 }
 0x163   : > { %v588_v47 = vpop.f32.mrf.mxu0 }
 0x165   : > { %v589_v30 = vpop.f32.mrf.mxu0 }
 0x167   : > { %v647_v31 = vpop.f32.mrf.mxu1 }
 0x168   : > { %v654_v49 = vadd.f32 %v647_v31, %v591_v26 }
 0x169   : > { %v649_v32 = vpop.f32.mrf.mxu1 }
 0x16a   : > { %v655_v33 = vadd.f32 %v649_v32, %v592_v29 }
 0x16b   : > { %v651_v34 = vpop.f32.mrf.mxu1  ;;  %v710_v35 = vpop.f32.mrf.mxu0 }
 0x16c   : > { %v717_v36 = vadd.f32 %v710_v35, %v654_v49 }
 0x16d   : > { %v652_v37 = vpop.f32.mrf.mxu1  ;;  %v712_v38 = vpop.f32.mrf.mxu0 }
 0x16e   : > { %v718_v39 = vadd.f32 %v712_v38, %v655_v33 }
 0x16f   : > { %v714_v40 = vpop.f32.mrf.mxu0 }
 0x171   : > { %v715_v41 = vpop.f32.mrf.mxu0 }
 0x172   : > { %v773_v42 = vpop.f32.mrf.mxu1 }
 0x173   : > { %v780_v43 = vadd.f32 %v773_v42, %v717_v36 }
 0x174   : > { %v775_v44 = vpop.f32.mrf.mxu1 }
 0x175   : > { %v781_v45 = vadd.f32 %v775_v44, %v718_v39 }
 0x176   : > { %v777_v46 = vpop.f32.mrf.mxu1  ;;  %v836_v48 = vpop.f32.mrf.mxu0 }
 0x177   : > { %v843_v50 = vadd.f32 %v836_v48, %v780_v43 }
 0x178   : > { %v778_v51 = vpop.f32.mrf.mxu1  ;;  %v838_v52 = vpop.f32.mrf.mxu0 }
 0x179   : > { %v844_v53 = vadd.f32 %v838_v52, %v781_v45 }
 0x17a   : > { %v840_v54 = vpop.f32.mrf.mxu0 }
 0x17c   : > { %v841_v55 = vpop.f32.mrf.mxu0 }
 0x17e   : > { %v899_v56 = vpop.f32.mrf.mxu1 }
 0x17f   : > { %v906_v57 = vadd.f32 %v899_v56, %v843_v50 }
 0x180   : > { %v901_v58 = vpop.f32.mrf.mxu1 }
 0x181   : > { %v907_v59 = vadd.f32 %v901_v58, %v844_v53 }
 0x182   : > { %v903_v60 = vpop.f32.mrf.mxu1  ;;  %v962_v61 = vpop.f32.mrf.mxu0 }
 0x183   : > { %v969_v62 = vadd.f32 %v962_v61, %v906_v57 }
 0x184   : > { %v904_v63 = vpop.f32.mrf.mxu1  ;;  %v964_v0 = vpop.f32.mrf.mxu0 }
 0x185   : > { %v970_v1 = vadd.f32 %v964_v0, %v907_v59 }
 0x186   : > { %v966_v3 = vpop.f32.mrf.mxu0 }
 0x188   : > { %v967_v4 = vpop.f32.mrf.mxu0 }
 0x18a   : > { %v1025_v5 = vpop.f32.mrf.mxu1 }
 0x18b   : > { %v1032_v41 = vadd.f32 %v1025_v5, %v969_v62 }
 0x18c   : > { %v1027_v6 = vpop.f32.mrf.mxu1 }
 0x18d   : > { %v1033_v43 = vadd.f32 %v1027_v6, %v970_v1 }
 0x18e   : > { %v1029_v7 = vpop.f32.mrf.mxu1  ;;  %v1088_v2 = vpop.f32.mrf.mxu0 }
 0x18f   : > { %v1095_v45 = vadd.f32 %v1088_v2, %v1032_v41 }
 0x190   : > { %v1030_v8 = vpop.f32.mrf.mxu1  ;;  %v1090_v9 = vpop.f32.mrf.mxu0 }
 0x191   : > { %v1096_v48 = vadd.f32 %v1090_v9, %v1033_v43 }
 0x192   : > { %v1092_v10 = vpop.f32.mrf.mxu0 }
 0x194   : > { %v1093_v11 = vpop.f32.mrf.mxu0 }
 0x196   : > { %v1151_v12 = vpop.f32.mrf.mxu1 }
 0x197   : > { %v1158_v50 = vadd.f32 %v1151_v12, %v1095_v45 }
 0x198   : > { %v1153_v13 = vpop.f32.mrf.mxu1 }
 0x199   : > { %v1159_v53 = vadd.f32 %v1153_v13, %v1096_v48 }
 0x19a   : > { %v1214_v14 = vpop.f32.mrf.mxu0  ;;  %v1155_v15 = vpop.f32.mrf.mxu1 }
 0x19b   : > { %v1221_v54 = vadd.f32 %v1214_v14, %v1158_v50 }
 0x19c   : > { %v1216_v16 = vpop.f32.mrf.mxu0  ;;  %v1156_v17 = vpop.f32.mrf.mxu1 }
 0x19d   : > { %v1222_v57 = vadd.f32 %v1216_v16, %v1159_v53 }
 0x19e   : > { %v1218_v18 = vpop.f32.mrf.mxu0 }
 0x1a0   : > { %v1219_v19 = vpop.f32.mrf.mxu0 }
 0x1a2   : > { %v1277_v20 = vpop.f32.mrf.mxu1 }
 0x1a3   : > { %v1284_v58 = vadd.f32 %v1277_v20, %v1221_v54 }
 0x1a4   : > { %v1279_v21 = vpop.f32.mrf.mxu1 }
 0x1a5   : > { %v1285_v60 = vadd.f32 %v1279_v21, %v1222_v57 }
 0x1a6   : > { %v1340_v22 = vpop.f32.mrf.mxu0  ;;  %v1281_v23 = vpop.f32.mrf.mxu1 }
 0x1a7   : > { %v1347_v61 = vadd.f32 %v1340_v22, %v1284_v58 }
 0x1a8   : > { %v1342_v24 = vpop.f32.mrf.mxu0  ;;  %v1282_v25 = vpop.f32.mrf.mxu1 }
 0x1a9   : > { %v1348_v62 = vadd.f32 %v1342_v24, %v1285_v60 }
 0x1aa   : > { %v1344_v26 = vpop.f32.mrf.mxu0 }
 0x1ac   : > { %v1345_v27 = vpop.f32.mrf.mxu0 }
 0x1ae   : > { %v1403_v28 = vpop.f32.mrf.mxu1 }
 0x1af   : > { %v1410_v0 = vadd.f32 %v1403_v28, %v1347_v61 }
 0x1b0   : > { %v1405_v29 = vpop.f32.mrf.mxu1 }
 0x1b1   : > { %v1411_v3 = vadd.f32 %v1405_v29, %v1348_v62 }
 0x1b2   : > { %v1466_v47 = vpop.f32.mrf.mxu0  ;;  %v1407_v30 = vpop.f32.mrf.mxu1 }
 0x1b3   : > { %v1473_v4 = vadd.f32 %v1466_v47, %v1410_v0  ;;  %v1983_v30 = vpop.permute.xlu0 %1982 }
 0x1b4   : > { %v1468_v31 = vpop.f32.mrf.mxu0  ;;  %v1408_v49 = vpop.f32.mrf.mxu1 }
 0x1b5   : > { %v1474_v6 = vadd.f32 %v1468_v31, %v1411_v3 }
 0x1b6   : > { %v1470_v32 = vpop.f32.mrf.mxu0 }
 0x1b8   : > { %v1471_v33 = vpop.f32.mrf.mxu0 }
 0x1ba   : > { %v1529_v34 = vpop.f32.mrf.mxu1 }
 0x1bb   : > { %v1536_v7 = vadd.f32 %v1529_v34, %v1473_v4 }
 0x1bc   : > { %v1531_v35 = vpop.f32.mrf.mxu1 }
 0x1bd   : > { %v1537_v9 = vadd.f32 %v1531_v35, %v1474_v6 }
 0x1be   : > { %v1592_v36 = vpop.f32.mrf.mxu0  ;;  %v1533_v37 = vpop.f32.mrf.mxu1 }
 0x1bf   : > { %v1599_v10 = vadd.f32 %v1592_v36, %v1536_v7 }
 0x1c0   : > { %v1594_v38 = vpop.f32.mrf.mxu0  ;;  %v1534_v39 = vpop.f32.mrf.mxu1 }
 0x1c1   : > { %v1600_v13 = vadd.f32 %v1594_v38, %v1537_v9 }
 0x1c2   : > { %v1596_v40 = vpop.f32.mrf.mxu0 }
 0x1c4   : > { %v1597_v42 = vpop.f32.mrf.mxu0 }
 0x1c6   : > { %v1655_v44 = vpop.f32.mrf.mxu1 }
 0x1c7   : > { %v1662_v14 = vadd.f32 %v1655_v44, %v1599_v10 }
 0x1c8   : > { %v1657_v46 = vpop.f32.mrf.mxu1 }
 0x1c9   : > { %v1663_v16 = vadd.f32 %v1657_v46, %v1600_v13 }
 0x1ca   : > { %v1718_v51 = vpop.f32.mrf.mxu0  ;;  %v1659_v52 = vpop.f32.mrf.mxu1 }
 0x1cb   : > { %v1725_v17 = vadd.f32 %v1718_v51, %v1662_v14 }
 0x1cc   : > { %v1720_v55 = vpop.f32.mrf.mxu0  ;;  %v1660_v56 = vpop.f32.mrf.mxu1 }
 0x1cd   : > { %v1726_v19 = vadd.f32 %v1720_v55, %v1663_v16 }
 0x1ce   : > { %v1722_v59 = vpop.f32.mrf.mxu0 }
 0x1d0   : > { %v1723_v63 = vpop.f32.mrf.mxu0 }
 0x1d2   : > { %v1781_v1 = vpop.f32.mrf.mxu1 }
 0x1d3   : > { %v1788_v20 = vadd.f32 %v1781_v1, %v1725_v17 }
 0x1d4   : > { %v1783_v5 = vpop.f32.mrf.mxu1 }
 0x1d5   : > { %v1789_v22 = vadd.f32 %v1783_v5, %v1726_v19 }
 0x1d6   : > { %v1844_v2 = vpop.f32.mrf.mxu0  ;;  %v1785_v8 = vpop.f32.mrf.mxu1 }
 0x1d7   : > { %v1851_v23 = vadd.f32 %v1844_v2, %v1788_v20 }
 0x1d8   : > { %v1846_v11 = vpop.f32.mrf.mxu0  ;;  %v1786_v12 = vpop.f32.mrf.mxu1 }
 0x1d9   : > { %v1852_v25 = vadd.f32 %v1846_v11, %v1789_v22 }
 0x1da   : > { %v1848_v15 = vpop.f32.mrf.mxu0 }
 0x1dc   : > { %v1849_v18 = vpop.f32.mrf.mxu0 }
 0x1de   : > { %v1907_v21 = vpop.f32.mrf.mxu1 }
 0x1df   : > { %v1914_v26 = vadd.f32 %v1907_v21, %v1851_v23 }
 0x1e0   : > { %v1909_v24 = vpop.f32.mrf.mxu1 }
 0x1e1   : > { %v1915_v29 = vadd.f32 %v1909_v24, %v1852_v25 }
 0x1e2   : > { %v1970_v27 = vpop.f32.mrf.mxu0  ;;  %v1911_v28 = vpop.f32.mrf.mxu1 }
 0x1e3   : > { %v1977_v47 = vadd.f32 %v1970_v27, %v1914_v26 }
 0x1e4   : > { %v1972_v31 = vpop.f32.mrf.mxu0  ;;  %v1912_v49 = vpop.f32.mrf.mxu1 }
 0x1e5   : > { %v1978_v32 = vadd.f32 %v1972_v31, %v1915_v29  ;;  %v1985_v34 = vadd.f32 %v1983_v30, %v1977_v47 }
 0x1e6   : > { %v1974_v33 = vpop.f32.mrf.mxu0 }
 0x1e7   : > { %v1986_v35 = vadd.f32 %v1983_v30, %v1978_v32 }
 0x1e8   : > { %v1975_v36 = vpop.f32.mrf.mxu0 }
 0x1e9   : > { %v1989_v37 = vcombine.low %v1985_v34, %v1986_v35 }
 0x1eb   : > { %1991 = vst [vmem:[%s278_s24] sm:$0x77] %v1989_v37 }
 0x1ec PF: > { %s14_s17 = sadd.s32 1, %s2269_s17   ;;  %s2653_s15 = smov %s2265_s16 }
 0x1ed   : > { %p11_p5 = scmp.ge.s32.totalorder %s14_s17, 6   ;;  %s2654_s16 = smov %s2656_s18 }
 0x1ef   :  { %13 = sbr.rel (!%p11_p5) target bundleno = 2 (0x2), region = 95 }

</bundles_post_ra>
